<compile_context>
chip_gen: v7x
topology: tpu7x:2x2x1
jax: 0.10.0
libtpu: 0.0.40
codegen_flags: <defaults>
</compile_context>

<pallas_src>
import functools
import numpy as np
import jax
import jax.numpy as jnp
from jax.experimental import pallas as pl
from jax.experimental.pallas import tpu as pltpu

# ------------- static config (mirrors VQSegmentationModel defaults) -----------
INPUT_DIM = 2
HIDDEN_DIM = 64
LATENT_DIM = 32
CODEBOOK_SIZE = 4
NUM_QUANTIZERS = 2
CHUNK_SIZE = 10
DEC_WINDOW = 5  # W in forward()

# deterministic stand-in for cfg.* weights
VQT_REC_WEIGHT = 1.0
VQT_COMMIT_WEIGHT = 1.0
VQT_SMOOTHNESS_WEIGHT = 0.1

# bf16 matmul operands (f32 accumulate).  Set to jnp.float32 for bit-exact
# parity with an f32 PyTorch reference.
CONV_DTYPE = jnp.bfloat16


# --------------------- static (numpy) operator construction -------------------
def _adaptive_avg_pool_matrix(l_in, l_out):
    """(l_in, l_out) matrix form of F.adaptive_avg_pool1d."""
    m = np.zeros((l_in, l_out), np.float32)
    for i in range(l_out):
        s = (i * l_in) // l_out
        e = -(-((i + 1) * l_in) // l_out)  # ceil
        m[s:e, i] = 1.0 / (e - s)
    return m


def _linear_interp_matrix(l_in, l_out):
    """(l_in, l_out) matrix form of F.interpolate(mode='linear', align_corners=False)."""
    m = np.zeros((l_in, l_out), np.float32)
    scale = l_in / l_out
    for i in range(l_out):
        src = max((i + 0.5) * scale - 0.5, 0.0)
        i0 = min(int(np.floor(src)), l_in - 1)
        lam = src - i0
        i1 = min(i0 + 1, l_in - 1)
        m[i0, i] += 1.0 - lam
        m[i1, i] += lam
    return m


@functools.lru_cache(maxsize=None)
def _resample_matrix(batch, total_t):
    """Block-diagonal pool+interp resampler in row layout: (B*T, B*T_new) f32."""
    t_new = total_t // CHUNK_SIZE
    t_half = total_t // 2
    pool = _adaptive_avg_pool_matrix(t_new, t_half)        # (t_new, t_half)
    interp = _linear_interp_matrix(t_half, total_t)        # (t_half, T)
    per_batch = interp.T @ pool.T                          # (T, t_new)
    out = np.zeros((batch * total_t, batch * t_new), np.float32)
    for b in range(batch):
        out[b * total_t:(b + 1) * total_t, b * t_new:(b + 1) * t_new] = per_batch
    return out


# ------------------------------ fused Pallas kernel ----------------------------
def _fused_forward_kernel(
        x0_ref,                       # (B*Tn, Din*chunk) f32
        tpos1_ref,                    # (B*Tn, 1) int32, time index within [0, Tn)
        tposT_ref,                    # (B*T, 1)  int32, time index within [0, T)
        tposW_ref,                    # (B*nW, 1) int32, position within decoder chunk [0, W)
        res_ref,                      # (B*T, B*Tn) f32 pool+interp resampler
        e1w_ref, e1b_ref,             # enc1 stacked weight (3*Cin, H), bias (1, H)
        e2aw_ref, e2ab_ref,           # enc2a (5*H, H)
        e2bw_ref, e2bb_ref,           # enc2b (7*H, D)
        cb_ref,                       # (nq, Kc, D) f32 codebooks
        d1w_ref, d1b_ref,             # dec1 (5*(D+nq), H)
        d2w_ref, d2b_ref,             # dec2 (3*H, D)
        codes_ref, losses_ref,        # outputs: (N_pad, 128) int32, (1, 4) f32
        *, b_sz, t_len, t_new, w_win, n_chunks, pad_rows, smooth_denom):
    f32 = jnp.float32

    def sum_all(x):
        """Full reduction of a 2-D array to a (1,1) f32 (MXU row-sum + lane sum)."""
        ones_row = jnp.ones((1, x.shape[0]), f32)
        s = jnp.dot(ones_row, x, preferred_element_type=f32)
        return jnp.sum(s, axis=1, keepdims=True)

    def conv_rows(x, tpos, w_ref, b_ref, ksize, block_len, relu):
        """Conv1d('same') in row layout as ONE wide-K matmul.

        Rows are (block, t); zero-pad the rows once, take K static sublane
        windows (roll equivalent), mask cross-block taps with the per-row time
        index, lane-concatenate and hit the MXU once with the stacked weight."""
        n, cin = x.shape
        p = (ksize - 1) // 2
        zpad = jnp.zeros((p, cin), f32)
        xp = jnp.concatenate([zpad, x, zpad], axis=0)          # (n + 2p, cin)
        cols = []
        for k in range(ksize):
            d = k - p
            win = xp[k:k + n, :]                               # row r = x[r + d] (zeros off ends)
            if d != 0:
                valid = jnp.logical_and(tpos + d >= 0, tpos + d < block_len)
                win = jnp.where(valid, win, 0.0)
            cols.append(win)
        xcat = jnp.concatenate(cols, axis=-1)                  # (n, K*cin)
        y = jnp.dot(xcat.astype(w_ref.dtype), w_ref[...],
                    preferred_element_type=f32) + b_ref[...]
        return jnp.maximum(y, 0.0) if relu else y

    tpos1 = tpos1_ref[...]
    tposT = tposT_ref[...]
    tposW = tposW_ref[...]

    # ---------------- encoder ----------------
    z1 = conv_rows(x0_ref[...], tpos1, e1w_ref, e1b_ref, 3, t_new, relu=True)   # (B*Tn, H)
    z2 = jnp.dot(res_ref[...], z1, preferred_element_type=f32)                  # (B*T, H)
    z3 = conv_rows(z2, tposT, e2aw_ref, e2ab_ref, 5, t_len, relu=True)          # (B*T, H)
    z_e = conv_rows(z3, tposT, e2bw_ref, e2bb_ref, 7, t_len, relu=False)        # (B*T, D)

    n_rows, d_lat = z_e.shape
    nq, kc, _ = cb_ref.shape

    # ------------- residual VQ (both quantizers fused) -------------
    # TODO(synk): rotation_trick / EMA codebook updates in vector-quantize-pytorch
    # only affect the gradient/training path; forward codes & quantized values use
    # the plain nearest-neighbour lookup implemented here.
    residual = z_e
    q_total = jnp.zeros_like(z_e)
    idxs = []
    commit_sum = None
    for q in range(nq):
        cb = cb_ref[q]                                                   # (Kc, D)
        sc = jax.lax.dot_general(residual, cb, (((1,), (1,)), ((), ())),
                                 preferred_element_type=f32)             # (N, Kc)
        cb_sq = jax.lax.dot_general(jnp.ones((1, d_lat), f32), cb * cb,
                                    (((1,), (1,)), ((), ())),
                                    preferred_element_type=f32)          # (1, Kc)
        dist = cb_sq - 2.0 * sc       # ||c||^2 - 2 r.c  (||r||^2 const wrt argmin)
        min_d = jnp.min(dist, axis=-1, keepdims=True)
        lane = jax.lax.broadcasted_iota(jnp.int32, dist.shape, 1)
        idx = jnp.min(jnp.where(dist <= min_d, lane, kc),
                      axis=-1, keepdims=True)                            # first argmin
        onehot = (lane == idx).astype(f32)                               # (N, Kc)
        quant = jnp.dot(onehot, cb, preferred_element_type=f32)          # (N, D)
        diff = residual - quant
        c = sum_all(diff * diff) / float(n_rows * d_lat)                 # commitment MSE
        commit_sum = c if commit_sum is None else commit_sum + c
        q_total = q_total + quant
        residual = residual - quant
        idxs.append(idx)
    vq_loss = commit_sum / float(nq)

    # ------------- smoothness loss on first quantizer's codes -------------
    idx0f = idxs[0].astype(f32)                                          # (N, 1)
    nxt = jnp.concatenate([idx0f[1:, :], idx0f[n_rows - 1:n_rows, :]], axis=0)
    has_next = tposT < (t_len - 1)
    trans = jnp.where(jnp.logical_and(has_next, nxt != idx0f), 1.0, 0.0)
    smooth = sum_all(trans) / smooth_denom

    # ------------- decoder prediction loss -------------
    # Chunk windows start at 0, W, 2W, ... so inputs / targets are contiguous
    # row ranges per batch — pure static slices, no gather matrices.
    n_win = n_chunks * w_win
    codes_f = jnp.concatenate([i.astype(f32) for i in idxs], axis=-1)    # (N, nq)

    def window_rows(src, off):
        pieces = [src[b * t_len + off: b * t_len + off + n_win, :]
                  for b in range(b_sz)]
        return pieces[0] if b_sz == 1 else jnp.concatenate(pieces, axis=0)

    q_dec = window_rows(q_total, 0)                                      # (B*nW, D)
    c_dec = window_rows(codes_f, 0)                                      # (B*nW, nq)
    true_dec = window_rows(q_total, w_win)                               # (B*nW, D)

    dec_in = jnp.concatenate([q_dec, c_dec], axis=-1)                    # (B*nW, D+nq)
    h = conv_rows(dec_in, tposW, d1w_ref, d1b_ref, 5, w_win, relu=True)  # (B*nW, H)
    dec_out = conv_rows(h, tposW, d2w_ref, d2b_ref, 3, w_win, relu=False)

    rdiff = dec_out - true_dec
    recon = sum_all(rdiff * rdiff) / float(dec_out.shape[0] * d_lat)

    total = (recon * VQT_REC_WEIGHT
             + vq_loss * VQT_COMMIT_WEIGHT
             + smooth * VQT_SMOOTHNESS_WEIGHT)

    lane4 = jax.lax.broadcasted_iota(jnp.int32, (1, 4), 1)
    losses_ref[...] = jnp.where(lane4 == 0, total,
                       jnp.where(lane4 == 1, recon,
                        jnp.where(lane4 == 2, vq_loss, smooth)))

    # lane-dense codes slab: (N_pad, 128) int32, codes in lanes [0, nq)
    lane128 = jax.lax.broadcasted_iota(jnp.int32, (n_rows, 128), 1)
    slab = jnp.zeros((n_rows, 128), jnp.int32)
    for q in range(nq):
        slab = jnp.where(lane128 == q, idxs[q], slab)
    if pad_rows > 0:
        slab = jnp.concatenate(
            [slab, jnp.zeros((pad_rows, 128), jnp.int32)], axis=0)
    codes_ref[...] = slab


def _full_spec(a):
    nd = a.ndim
    return pl.BlockSpec(tuple(a.shape), lambda i: (0,) * nd)


# ------------------------------ params / forward -------------------------------
def _conv_init(key, cout, cin, k):
    kw, kb = jax.random.split(key)
    fan_in = cin * k
    w = jax.random.normal(kw, (cout, cin, k), jnp.float32) / np.sqrt(fan_in)
    b = jax.random.normal(kb, (cout,), jnp.float32) * 0.01
    return w, b


def init_params(key):
    keys = jax.random.split(key, 6)
    p = {}
    p["enc1_w"], p["enc1_b"] = _conv_init(keys[0], HIDDEN_DIM, INPUT_DIM * CHUNK_SIZE, 3)
    p["enc2a_w"], p["enc2a_b"] = _conv_init(keys[1], HIDDEN_DIM, HIDDEN_DIM, 5)
    p["enc2b_w"], p["enc2b_b"] = _conv_init(keys[2], LATENT_DIM, HIDDEN_DIM, 7)
    p["dec1_w"], p["dec1_b"] = _conv_init(keys[3], HIDDEN_DIM, LATENT_DIM + NUM_QUANTIZERS, 5)
    p["dec2_w"], p["dec2_b"] = _conv_init(keys[4], LATENT_DIM, HIDDEN_DIM, 3)
    p["codebooks"] = jax.random.normal(
        keys[5], (NUM_QUANTIZERS, CODEBOOK_SIZE, LATENT_DIM), jnp.float32)
    return p


def forward(params, traj_xy, masks):
    """traj_xy:(B,2,T)  masks:(B,T) (unused, kept for parity with the PyTorch forward).

    Returns (codes (B,T,nq) int32, loss scalar, loss_components dict)."""
    del masks  # PyTorch reference forward also ignores it
    x = traj_xy.astype(jnp.float32)
    B, D, T = x.shape
    assert T % CHUNK_SIZE == 0, f"T={T} must be divisible by chunk_size={CHUNK_SIZE}"
    assert T >= 2 * DEC_WINDOW, "need at least one decoder prediction chunk"
    t_new = T // CHUNK_SIZE
    W = DEC_WINDOW
    n_chunks = (T - 2 * W) // W + 1
    n_win = n_chunks * W
    n_rows = B * T
    n_pad = -(-n_rows // 8) * 8
    pad_rows = n_pad - n_rows

    # small static constants (pool+interp coefficients kept f32 for exactness)
    resample = jnp.asarray(_resample_matrix(B, T))                       # (B*T, B*Tn)
    tpos1 = jnp.asarray(np.tile(np.arange(t_new, dtype=np.int32), B)[:, None])
    tposT = jnp.asarray(np.tile(np.arange(T, dtype=np.int32), B)[:, None])
    tposW = jnp.asarray(np.tile(np.arange(W, dtype=np.int32), B * n_chunks)[:, None])

    # chunk the trajectory into row layout: rows=(b, t_new), lanes=D*chunk channels
    x0 = (x.reshape(B, D, t_new, CHUNK_SIZE)
           .transpose(0, 2, 1, 3)
           .reshape(B * t_new, D * CHUNK_SIZE))

    def stack_taps(w):
        """torch (Cout, Cin, K) -> stacked (K*Cin, Cout) wide-K matmul weight."""
        cout, cin, k = w.shape
        return jnp.transpose(w, (2, 1, 0)).reshape(k * cin, cout).astype(CONV_DTYPE)

    e1w, e1b = stack_taps(params["enc1_w"]), params["enc1_b"][None, :].astype(jnp.float32)
    e2aw, e2ab = stack_taps(params["enc2a_w"]), params["enc2a_b"][None, :].astype(jnp.float32)
    e2bw, e2bb = stack_taps(params["enc2b_w"]), params["enc2b_b"][None, :].astype(jnp.float32)
    d1w, d1b = stack_taps(params["dec1_w"]), params["dec1_b"][None, :].astype(jnp.float32)
    d2w, d2b = stack_taps(params["dec2_w"]), params["dec2_b"][None, :].astype(jnp.float32)
    cbs = params["codebooks"].astype(jnp.float32)

    operands = [
        x0, tpos1, tposT, tposW, resample,
        e1w, e1b, e2aw, e2ab, e2bw, e2bb,
        cbs,
        d1w, d1b, d2w, d2b,
    ]

    kernel = functools.partial(
        _fused_forward_kernel,
        b_sz=B, t_len=T, t_new=t_new, w_win=W, n_chunks=n_chunks,
        pad_rows=pad_rows, smooth_denom=float(B * (T - 1)))

    codes_slab, losses = pl.pallas_call(
        kernel,
        out_shape=(jax.ShapeDtypeStruct((n_pad, 128), jnp.int32),
                   jax.ShapeDtypeStruct((1, 4), jnp.float32)),
        grid=(1,),
        in_specs=[_full_spec(a) for a in operands],
        out_specs=(pl.BlockSpec((n_pad, 128), lambda i: (0, 0)),
                   pl.BlockSpec((1, 4), lambda i: (0, 0))),
        compiler_params=pltpu.CompilerParams(dimension_semantics=("arbitrary",)),
    )(*operands)

    codes = codes_slab[:n_rows, :NUM_QUANTIZERS].reshape(B, T, NUM_QUANTIZERS)
    loss = losses[0, 0]
    loss_components = {"recon_loss": losses[0, 1],
                       "vq_loss": losses[0, 2],
                       "smooth_loss": losses[0, 3]}
    return codes, loss, loss_components


# ----------------------------------- main ---------------------------------------
if __name__ == "__main__":
    key = jax.random.PRNGKey(0)
    k_params, k_x = jax.random.split(key)
    params = init_params(k_params)

    B, T = 2, 40  # T divisible by chunk_size=10; decoder loop gets 7 chunks
    traj_xy = jax.random.normal(k_x, (B, INPUT_DIM, T), jnp.float32)
    masks = jnp.ones((B, T), jnp.float32)

    fwd = jax.jit(forward)
    codes, loss, comps = fwd(params, traj_xy, masks)
    jax.block_until_ready((codes, loss, comps))

    assert codes.shape == (B, T, NUM_QUANTIZERS)
    assert codes.dtype == jnp.int32
    assert bool(jnp.all((codes >= 0) & (codes < CODEBOOK_SIZE)))
    assert bool(jnp.isfinite(loss))
    assert all(bool(jnp.isfinite(v)) for v in comps.values())
    print("KERNEL_OK")
</pallas_src>

<mosaic_0001>
module attributes {stable_mosaic.version = 11 : i64} {
  func.func @_fused_forward_kernel(%arg0: i32, %arg1: memref<8x20xf32, #tpu.memory_space<vmem>>, %arg2: memref<8x1xi32, #tpu.memory_space<vmem>>, %arg3: memref<80x1xi32, #tpu.memory_space<vmem>>, %arg4: memref<70x1xi32, #tpu.memory_space<vmem>>, %arg5: memref<80x8xf32, #tpu.memory_space<vmem>>, %arg6: memref<60x64xbf16, #tpu.memory_space<vmem>>, %arg7: memref<1x64xf32, #tpu.memory_space<vmem>>, %arg8: memref<320x64xbf16, #tpu.memory_space<vmem>>, %arg9: memref<1x64xf32, #tpu.memory_space<vmem>>, %arg10: memref<448x32xbf16, #tpu.memory_space<vmem>>, %arg11: memref<1x32xf32, #tpu.memory_space<vmem>>, %arg12: memref<2x4x32xf32, #tpu.memory_space<vmem>>, %arg13: memref<170x64xbf16, #tpu.memory_space<vmem>>, %arg14: memref<1x64xf32, #tpu.memory_space<vmem>>, %arg15: memref<192x32xbf16, #tpu.memory_space<vmem>>, %arg16: memref<1x32xf32, #tpu.memory_space<vmem>>, %arg17: memref<80x128xi32, #tpu.memory_space<vmem>>, %arg18: memref<1x4xf32, #tpu.memory_space<vmem>>) attributes {dimension_semantics = [#tpu.dimension_semantics<arbitrary>], iteration_bounds = array<i64: 1>, scalar_prefetch = 0 : i64, scratch_operands = 0 : i64, tpu.core_type = #tpu.core_type<tc>, window_params = [{pipeline_mode = #tpu.pipeline_mode<synchronous>, transform_indices = @transform_0, window_bounds = array<i64: 8, 20>}, {pipeline_mode = #tpu.pipeline_mode<synchronous>, transform_indices = @transform_1, window_bounds = array<i64: 8, 1>}, {pipeline_mode = #tpu.pipeline_mode<synchronous>, transform_indices = @transform_2, window_bounds = array<i64: 80, 1>}, {pipeline_mode = #tpu.pipeline_mode<synchronous>, transform_indices = @transform_3, window_bounds = array<i64: 70, 1>}, {pipeline_mode = #tpu.pipeline_mode<synchronous>, transform_indices = @transform_4, window_bounds = array<i64: 80, 8>}, {pipeline_mode = #tpu.pipeline_mode<synchronous>, transform_indices = @transform_5, window_bounds = array<i64: 60, 64>}, {pipeline_mode = #tpu.pipeline_mode<synchronous>, transform_indices = @transform_6, window_bounds = array<i64: 1, 64>}, {pipeline_mode = #tpu.pipeline_mode<synchronous>, transform_indices = @transform_7, window_bounds = array<i64: 320, 64>}, {pipeline_mode = #tpu.pipeline_mode<synchronous>, transform_indices = @transform_8, window_bounds = array<i64: 1, 64>}, {pipeline_mode = #tpu.pipeline_mode<synchronous>, transform_indices = @transform_9, window_bounds = array<i64: 448, 32>}, {pipeline_mode = #tpu.pipeline_mode<synchronous>, transform_indices = @transform_10, window_bounds = array<i64: 1, 32>}, {pipeline_mode = #tpu.pipeline_mode<synchronous>, transform_indices = @transform_11, window_bounds = array<i64: 2, 4, 32>}, {pipeline_mode = #tpu.pipeline_mode<synchronous>, transform_indices = @transform_12, window_bounds = array<i64: 170, 64>}, {pipeline_mode = #tpu.pipeline_mode<synchronous>, transform_indices = @transform_13, window_bounds = array<i64: 1, 64>}, {pipeline_mode = #tpu.pipeline_mode<synchronous>, transform_indices = @transform_14, window_bounds = array<i64: 192, 32>}, {pipeline_mode = #tpu.pipeline_mode<synchronous>, transform_indices = @transform_15, window_bounds = array<i64: 1, 32>}, {pipeline_mode = #tpu.pipeline_mode<synchronous>, transform_indices = @transform_16, window_bounds = array<i64: 80, 128>}, {pipeline_mode = #tpu.pipeline_mode<synchronous>, transform_indices = @transform_17, window_bounds = array<i64: 1, 4>}]} {
    %c0 = arith.constant 0 : index
    %c0_0 = arith.constant 0 : index
    %0 = vector.load %arg2[%c0, %c0_0] : memref<8x1xi32, #tpu.memory_space<vmem>>, vector<8x1xi32>
    %c0_1 = arith.constant 0 : index
    %c0_2 = arith.constant 0 : index
    %1 = vector.load %arg3[%c0_1, %c0_2] : memref<80x1xi32, #tpu.memory_space<vmem>>, vector<80x1xi32>
    %c0_3 = arith.constant 0 : index
    %c0_4 = arith.constant 0 : index
    %2 = vector.load %arg4[%c0_3, %c0_4] : memref<70x1xi32, #tpu.memory_space<vmem>>, vector<70x1xi32>
    %c0_5 = arith.constant 0 : index
    %c0_6 = arith.constant 0 : index
    %3 = vector.load %arg1[%c0_5, %c0_6] : memref<8x20xf32, #tpu.memory_space<vmem>>, vector<8x20xf32>
    %cst = arith.constant 0.000000e+00 : f32
    %4 = vector.broadcast %cst : f32 to vector<1x20xf32>
    %5 = tpu.concatenate %4, %3, %4 in 0 : vector<1x20xf32>, vector<8x20xf32>, vector<1x20xf32> -> vector<10x20xf32>
    %6 = vector.extract_strided_slice %5 {offsets = [0, 0], sizes = [8, 20], strides = [1, 1]} : vector<10x20xf32> to vector<8x20xf32>
    %c-1_i32 = arith.constant -1 : i32
    %7 = vector.broadcast %c-1_i32 : i32 to vector<8x1xi32>
    %8 = arith.addi %0, %7 : vector<8x1xi32>
    %c0_i32 = arith.constant 0 : i32
    %9 = vector.broadcast %c0_i32 : i32 to vector<8x1xi32>
    %10 = arith.cmpi sge, %8, %9 : vector<8x1xi32>
    %c-1_i32_7 = arith.constant -1 : i32
    %11 = vector.broadcast %c-1_i32_7 : i32 to vector<8x1xi32>
    %12 = arith.addi %0, %11 : vector<8x1xi32>
    %c4_i32 = arith.constant 4 : i32
    %13 = vector.broadcast %c4_i32 : i32 to vector<8x1xi32>
    %14 = arith.cmpi slt, %12, %13 : vector<8x1xi32>
    %15 = arith.andi %10, %14 : vector<8x1xi1>
    %cst_8 = arith.constant 0.000000e+00 : f32
    %16 = vector.shape_cast %15 : vector<8x1xi1> to vector<8x1xi1>
    %17 = vector.broadcast %16 : vector<8x1xi1> to vector<8x20xi1>
    %18 = vector.broadcast %cst_8 : f32 to vector<8x20xf32>
    %19 = arith.select %17, %6, %18 : vector<8x20xi1>, vector<8x20xf32>
    %20 = vector.extract_strided_slice %5 {offsets = [1, 0], sizes = [8, 20], strides = [1, 1]} : vector<10x20xf32> to vector<8x20xf32>
    %21 = vector.extract_strided_slice %5 {offsets = [2, 0], sizes = [8, 20], strides = [1, 1]} : vector<10x20xf32> to vector<8x20xf32>
    %c1_i32 = arith.constant 1 : i32
    %22 = vector.broadcast %c1_i32 : i32 to vector<8x1xi32>
    %23 = arith.addi %0, %22 : vector<8x1xi32>
    %c0_i32_9 = arith.constant 0 : i32
    %24 = vector.broadcast %c0_i32_9 : i32 to vector<8x1xi32>
    %25 = arith.cmpi sge, %23, %24 : vector<8x1xi32>
    %c1_i32_10 = arith.constant 1 : i32
    %26 = vector.broadcast %c1_i32_10 : i32 to vector<8x1xi32>
    %27 = arith.addi %0, %26 : vector<8x1xi32>
    %c4_i32_11 = arith.constant 4 : i32
    %28 = vector.broadcast %c4_i32_11 : i32 to vector<8x1xi32>
    %29 = arith.cmpi slt, %27, %28 : vector<8x1xi32>
    %30 = arith.andi %25, %29 : vector<8x1xi1>
    %cst_12 = arith.constant 0.000000e+00 : f32
    %31 = vector.shape_cast %30 : vector<8x1xi1> to vector<8x1xi1>
    %32 = vector.broadcast %31 : vector<8x1xi1> to vector<8x20xi1>
    %33 = vector.broadcast %cst_12 : f32 to vector<8x20xf32>
    %34 = arith.select %32, %21, %33 : vector<8x20xi1>, vector<8x20xf32>
    %35 = tpu.concatenate %19, %20, %34 in 1 : vector<8x20xf32>, vector<8x20xf32>, vector<8x20xf32> -> vector<8x60xf32>
    %36 = arith.truncf %35 : vector<8x60xf32> to vector<8x60xbf16>
    %c0_13 = arith.constant 0 : index
    %c0_14 = arith.constant 0 : index
    %37 = vector.load %arg6[%c0_13, %c0_14] : memref<60x64xbf16, #tpu.memory_space<vmem>>, vector<60x64xbf16>
    %cst_15 = arith.constant dense<0.000000e+00> : vector<8x64xf32>
    %38 = tpu.matmul %36, %37, %cst_15 {dimension_numbers = #tpu.dot_dimension_numbers<[1], [0], [0], [1], [0, 0, 1, 1], [], []>} : vector<8x60xbf16>, vector<60x64xbf16>, vector<8x64xf32> -> vector<8x64xf32>
    %c0_16 = arith.constant 0 : index
    %c0_17 = arith.constant 0 : index
    %39 = vector.load %arg7[%c0_16, %c0_17] : memref<1x64xf32, #tpu.memory_space<vmem>>, vector<1x64xf32>
    %40 = vector.broadcast %39 : vector<1x64xf32> to vector<8x64xf32>
    %41 = arith.addf %38, %40 : vector<8x64xf32>
    %cst_18 = arith.constant 0.000000e+00 : f32
    %42 = vector.broadcast %cst_18 : f32 to vector<8x64xf32>
    %43 = arith.maximumf %41, %42 : vector<8x64xf32>
    %c0_19 = arith.constant 0 : index
    %c0_20 = arith.constant 0 : index
    %44 = vector.load %arg5[%c0_19, %c0_20] : memref<80x8xf32, #tpu.memory_space<vmem>>, vector<80x8xf32>
    %cst_21 = arith.constant dense<0.000000e+00> : vector<80x64xf32>
    %45 = tpu.matmul %44, %43, %cst_21 {dimension_numbers = #tpu.dot_dimension_numbers<[1], [0], [0], [1], [0, 0, 1, 1], [], []>} : vector<80x8xf32>, vector<8x64xf32>, vector<80x64xf32> -> vector<80x64xf32>
    %cst_22 = arith.constant 0.000000e+00 : f32
    %46 = vector.broadcast %cst_22 : f32 to vector<2x64xf32>
    %47 = tpu.concatenate %46, %45, %46 in 0 : vector<2x64xf32>, vector<80x64xf32>, vector<2x64xf32> -> vector<84x64xf32>
    %48 = vector.extract_strided_slice %47 {offsets = [0, 0], sizes = [80, 64], strides = [1, 1]} : vector<84x64xf32> to vector<80x64xf32>
    %c-2_i32 = arith.constant -2 : i32
    %49 = vector.broadcast %c-2_i32 : i32 to vector<80x1xi32>
    %50 = arith.addi %1, %49 : vector<80x1xi32>
    %c0_i32_23 = arith.constant 0 : i32
    %51 = vector.broadcast %c0_i32_23 : i32 to vector<80x1xi32>
    %52 = arith.cmpi sge, %50, %51 : vector<80x1xi32>
    %c-2_i32_24 = arith.constant -2 : i32
    %53 = vector.broadcast %c-2_i32_24 : i32 to vector<80x1xi32>
    %54 = arith.addi %1, %53 : vector<80x1xi32>
    %c40_i32 = arith.constant 40 : i32
    %55 = vector.broadcast %c40_i32 : i32 to vector<80x1xi32>
    %56 = arith.cmpi slt, %54, %55 : vector<80x1xi32>
    %57 = arith.andi %52, %56 : vector<80x1xi1>
    %cst_25 = arith.constant 0.000000e+00 : f32
    %58 = vector.shape_cast %57 : vector<80x1xi1> to vector<80x1xi1>
    %59 = vector.broadcast %58 : vector<80x1xi1> to vector<80x64xi1>
    %60 = vector.broadcast %cst_25 : f32 to vector<80x64xf32>
    %61 = arith.select %59, %48, %60 : vector<80x64xi1>, vector<80x64xf32>
    %62 = vector.extract_strided_slice %47 {offsets = [1, 0], sizes = [80, 64], strides = [1, 1]} : vector<84x64xf32> to vector<80x64xf32>
    %c-1_i32_26 = arith.constant -1 : i32
    %63 = vector.broadcast %c-1_i32_26 : i32 to vector<80x1xi32>
    %64 = arith.addi %1, %63 : vector<80x1xi32>
    %c0_i32_27 = arith.constant 0 : i32
    %65 = vector.broadcast %c0_i32_27 : i32 to vector<80x1xi32>
    %66 = arith.cmpi sge, %64, %65 : vector<80x1xi32>
    %c-1_i32_28 = arith.constant -1 : i32
    %67 = vector.broadcast %c-1_i32_28 : i32 to vector<80x1xi32>
    %68 = arith.addi %1, %67 : vector<80x1xi32>
    %c40_i32_29 = arith.constant 40 : i32
    %69 = vector.broadcast %c40_i32_29 : i32 to vector<80x1xi32>
    %70 = arith.cmpi slt, %68, %69 : vector<80x1xi32>
    %71 = arith.andi %66, %70 : vector<80x1xi1>
    %cst_30 = arith.constant 0.000000e+00 : f32
    %72 = vector.shape_cast %71 : vector<80x1xi1> to vector<80x1xi1>
    %73 = vector.broadcast %72 : vector<80x1xi1> to vector<80x64xi1>
    %74 = vector.broadcast %cst_30 : f32 to vector<80x64xf32>
    %75 = arith.select %73, %62, %74 : vector<80x64xi1>, vector<80x64xf32>
    %76 = vector.extract_strided_slice %47 {offsets = [2, 0], sizes = [80, 64], strides = [1, 1]} : vector<84x64xf32> to vector<80x64xf32>
    %77 = vector.extract_strided_slice %47 {offsets = [3, 0], sizes = [80, 64], strides = [1, 1]} : vector<84x64xf32> to vector<80x64xf32>
    %c1_i32_31 = arith.constant 1 : i32
    %78 = vector.broadcast %c1_i32_31 : i32 to vector<80x1xi32>
    %79 = arith.addi %1, %78 : vector<80x1xi32>
    %c0_i32_32 = arith.constant 0 : i32
    %80 = vector.broadcast %c0_i32_32 : i32 to vector<80x1xi32>
    %81 = arith.cmpi sge, %79, %80 : vector<80x1xi32>
    %c1_i32_33 = arith.constant 1 : i32
    %82 = vector.broadcast %c1_i32_33 : i32 to vector<80x1xi32>
    %83 = arith.addi %1, %82 : vector<80x1xi32>
    %c40_i32_34 = arith.constant 40 : i32
    %84 = vector.broadcast %c40_i32_34 : i32 to vector<80x1xi32>
    %85 = arith.cmpi slt, %83, %84 : vector<80x1xi32>
    %86 = arith.andi %81, %85 : vector<80x1xi1>
    %cst_35 = arith.constant 0.000000e+00 : f32
    %87 = vector.shape_cast %86 : vector<80x1xi1> to vector<80x1xi1>
    %88 = vector.broadcast %87 : vector<80x1xi1> to vector<80x64xi1>
    %89 = vector.broadcast %cst_35 : f32 to vector<80x64xf32>
    %90 = arith.select %88, %77, %89 : vector<80x64xi1>, vector<80x64xf32>
    %91 = vector.extract_strided_slice %47 {offsets = [4, 0], sizes = [80, 64], strides = [1, 1]} : vector<84x64xf32> to vector<80x64xf32>
    %c2_i32 = arith.constant 2 : i32
    %92 = vector.broadcast %c2_i32 : i32 to vector<80x1xi32>
    %93 = arith.addi %1, %92 : vector<80x1xi32>
    %c0_i32_36 = arith.constant 0 : i32
    %94 = vector.broadcast %c0_i32_36 : i32 to vector<80x1xi32>
    %95 = arith.cmpi sge, %93, %94 : vector<80x1xi32>
    %c2_i32_37 = arith.constant 2 : i32
    %96 = vector.broadcast %c2_i32_37 : i32 to vector<80x1xi32>
    %97 = arith.addi %1, %96 : vector<80x1xi32>
    %c40_i32_38 = arith.constant 40 : i32
    %98 = vector.broadcast %c40_i32_38 : i32 to vector<80x1xi32>
    %99 = arith.cmpi slt, %97, %98 : vector<80x1xi32>
    %100 = arith.andi %95, %99 : vector<80x1xi1>
    %cst_39 = arith.constant 0.000000e+00 : f32
    %101 = vector.shape_cast %100 : vector<80x1xi1> to vector<80x1xi1>
    %102 = vector.broadcast %101 : vector<80x1xi1> to vector<80x64xi1>
    %103 = vector.broadcast %cst_39 : f32 to vector<80x64xf32>
    %104 = arith.select %102, %91, %103 : vector<80x64xi1>, vector<80x64xf32>
    %105 = tpu.concatenate %61, %75, %76, %90, %104 in 1 : vector<80x64xf32>, vector<80x64xf32>, vector<80x64xf32>, vector<80x64xf32>, vector<80x64xf32> -> vector<80x320xf32>
    %106 = arith.truncf %105 : vector<80x320xf32> to vector<80x320xbf16>
    %c0_40 = arith.constant 0 : index
    %c0_41 = arith.constant 0 : index
    %107 = vector.load %arg8[%c0_40, %c0_41] : memref<320x64xbf16, #tpu.memory_space<vmem>>, vector<320x64xbf16>
    %cst_42 = arith.constant dense<0.000000e+00> : vector<80x64xf32>
    %108 = tpu.matmul %106, %107, %cst_42 {dimension_numbers = #tpu.dot_dimension_numbers<[1], [0], [0], [1], [0, 0, 1, 1], [], []>} : vector<80x320xbf16>, vector<320x64xbf16>, vector<80x64xf32> -> vector<80x64xf32>
    %c0_43 = arith.constant 0 : index
    %c0_44 = arith.constant 0 : index
    %109 = vector.load %arg9[%c0_43, %c0_44] : memref<1x64xf32, #tpu.memory_space<vmem>>, vector<1x64xf32>
    %110 = vector.broadcast %109 : vector<1x64xf32> to vector<80x64xf32>
    %111 = arith.addf %108, %110 : vector<80x64xf32>
    %cst_45 = arith.constant 0.000000e+00 : f32
    %112 = vector.broadcast %cst_45 : f32 to vector<80x64xf32>
    %113 = arith.maximumf %111, %112 : vector<80x64xf32>
    %cst_46 = arith.constant 0.000000e+00 : f32
    %114 = vector.broadcast %cst_46 : f32 to vector<3x64xf32>
    %115 = tpu.concatenate %114, %113, %114 in 0 : vector<3x64xf32>, vector<80x64xf32>, vector<3x64xf32> -> vector<86x64xf32>
    %116 = vector.extract_strided_slice %115 {offsets = [0, 0], sizes = [80, 64], strides = [1, 1]} : vector<86x64xf32> to vector<80x64xf32>
    %c-3_i32 = arith.constant -3 : i32
    %117 = vector.broadcast %c-3_i32 : i32 to vector<80x1xi32>
    %118 = arith.addi %1, %117 : vector<80x1xi32>
    %c0_i32_47 = arith.constant 0 : i32
    %119 = vector.broadcast %c0_i32_47 : i32 to vector<80x1xi32>
    %120 = arith.cmpi sge, %118, %119 : vector<80x1xi32>
    %c-3_i32_48 = arith.constant -3 : i32
    %121 = vector.broadcast %c-3_i32_48 : i32 to vector<80x1xi32>
    %122 = arith.addi %1, %121 : vector<80x1xi32>
    %c40_i32_49 = arith.constant 40 : i32
    %123 = vector.broadcast %c40_i32_49 : i32 to vector<80x1xi32>
    %124 = arith.cmpi slt, %122, %123 : vector<80x1xi32>
    %125 = arith.andi %120, %124 : vector<80x1xi1>
    %cst_50 = arith.constant 0.000000e+00 : f32
    %126 = vector.shape_cast %125 : vector<80x1xi1> to vector<80x1xi1>
    %127 = vector.broadcast %126 : vector<80x1xi1> to vector<80x64xi1>
    %128 = vector.broadcast %cst_50 : f32 to vector<80x64xf32>
    %129 = arith.select %127, %116, %128 : vector<80x64xi1>, vector<80x64xf32>
    %130 = vector.extract_strided_slice %115 {offsets = [1, 0], sizes = [80, 64], strides = [1, 1]} : vector<86x64xf32> to vector<80x64xf32>
    %c-2_i32_51 = arith.constant -2 : i32
    %131 = vector.broadcast %c-2_i32_51 : i32 to vector<80x1xi32>
    %132 = arith.addi %1, %131 : vector<80x1xi32>
    %c0_i32_52 = arith.constant 0 : i32
    %133 = vector.broadcast %c0_i32_52 : i32 to vector<80x1xi32>
    %134 = arith.cmpi sge, %132, %133 : vector<80x1xi32>
    %c-2_i32_53 = arith.constant -2 : i32
    %135 = vector.broadcast %c-2_i32_53 : i32 to vector<80x1xi32>
    %136 = arith.addi %1, %135 : vector<80x1xi32>
    %c40_i32_54 = arith.constant 40 : i32
    %137 = vector.broadcast %c40_i32_54 : i32 to vector<80x1xi32>
    %138 = arith.cmpi slt, %136, %137 : vector<80x1xi32>
    %139 = arith.andi %134, %138 : vector<80x1xi1>
    %cst_55 = arith.constant 0.000000e+00 : f32
    %140 = vector.shape_cast %139 : vector<80x1xi1> to vector<80x1xi1>
    %141 = vector.broadcast %140 : vector<80x1xi1> to vector<80x64xi1>
    %142 = vector.broadcast %cst_55 : f32 to vector<80x64xf32>
    %143 = arith.select %141, %130, %142 : vector<80x64xi1>, vector<80x64xf32>
    %144 = vector.extract_strided_slice %115 {offsets = [2, 0], sizes = [80, 64], strides = [1, 1]} : vector<86x64xf32> to vector<80x64xf32>
    %c-1_i32_56 = arith.constant -1 : i32
    %145 = vector.broadcast %c-1_i32_56 : i32 to vector<80x1xi32>
    %146 = arith.addi %1, %145 : vector<80x1xi32>
    %c0_i32_57 = arith.constant 0 : i32
    %147 = vector.broadcast %c0_i32_57 : i32 to vector<80x1xi32>
    %148 = arith.cmpi sge, %146, %147 : vector<80x1xi32>
    %c-1_i32_58 = arith.constant -1 : i32
    %149 = vector.broadcast %c-1_i32_58 : i32 to vector<80x1xi32>
    %150 = arith.addi %1, %149 : vector<80x1xi32>
    %c40_i32_59 = arith.constant 40 : i32
    %151 = vector.broadcast %c40_i32_59 : i32 to vector<80x1xi32>
    %152 = arith.cmpi slt, %150, %151 : vector<80x1xi32>
    %153 = arith.andi %148, %152 : vector<80x1xi1>
    %cst_60 = arith.constant 0.000000e+00 : f32
    %154 = vector.shape_cast %153 : vector<80x1xi1> to vector<80x1xi1>
    %155 = vector.broadcast %154 : vector<80x1xi1> to vector<80x64xi1>
    %156 = vector.broadcast %cst_60 : f32 to vector<80x64xf32>
    %157 = arith.select %155, %144, %156 : vector<80x64xi1>, vector<80x64xf32>
    %158 = vector.extract_strided_slice %115 {offsets = [3, 0], sizes = [80, 64], strides = [1, 1]} : vector<86x64xf32> to vector<80x64xf32>
    %159 = vector.extract_strided_slice %115 {offsets = [4, 0], sizes = [80, 64], strides = [1, 1]} : vector<86x64xf32> to vector<80x64xf32>
    %c1_i32_61 = arith.constant 1 : i32
    %160 = vector.broadcast %c1_i32_61 : i32 to vector<80x1xi32>
    %161 = arith.addi %1, %160 : vector<80x1xi32>
    %c0_i32_62 = arith.constant 0 : i32
    %162 = vector.broadcast %c0_i32_62 : i32 to vector<80x1xi32>
    %163 = arith.cmpi sge, %161, %162 : vector<80x1xi32>
    %c1_i32_63 = arith.constant 1 : i32
    %164 = vector.broadcast %c1_i32_63 : i32 to vector<80x1xi32>
    %165 = arith.addi %1, %164 : vector<80x1xi32>
    %c40_i32_64 = arith.constant 40 : i32
    %166 = vector.broadcast %c40_i32_64 : i32 to vector<80x1xi32>
    %167 = arith.cmpi slt, %165, %166 : vector<80x1xi32>
    %168 = arith.andi %163, %167 : vector<80x1xi1>
    %cst_65 = arith.constant 0.000000e+00 : f32
    %169 = vector.shape_cast %168 : vector<80x1xi1> to vector<80x1xi1>
    %170 = vector.broadcast %169 : vector<80x1xi1> to vector<80x64xi1>
    %171 = vector.broadcast %cst_65 : f32 to vector<80x64xf32>
    %172 = arith.select %170, %159, %171 : vector<80x64xi1>, vector<80x64xf32>
    %173 = vector.extract_strided_slice %115 {offsets = [5, 0], sizes = [80, 64], strides = [1, 1]} : vector<86x64xf32> to vector<80x64xf32>
    %c2_i32_66 = arith.constant 2 : i32
    %174 = vector.broadcast %c2_i32_66 : i32 to vector<80x1xi32>
    %175 = arith.addi %1, %174 : vector<80x1xi32>
    %c0_i32_67 = arith.constant 0 : i32
    %176 = vector.broadcast %c0_i32_67 : i32 to vector<80x1xi32>
    %177 = arith.cmpi sge, %175, %176 : vector<80x1xi32>
    %c2_i32_68 = arith.constant 2 : i32
    %178 = vector.broadcast %c2_i32_68 : i32 to vector<80x1xi32>
    %179 = arith.addi %1, %178 : vector<80x1xi32>
    %c40_i32_69 = arith.constant 40 : i32
    %180 = vector.broadcast %c40_i32_69 : i32 to vector<80x1xi32>
    %181 = arith.cmpi slt, %179, %180 : vector<80x1xi32>
    %182 = arith.andi %177, %181 : vector<80x1xi1>
    %cst_70 = arith.constant 0.000000e+00 : f32
    %183 = vector.shape_cast %182 : vector<80x1xi1> to vector<80x1xi1>
    %184 = vector.broadcast %183 : vector<80x1xi1> to vector<80x64xi1>
    %185 = vector.broadcast %cst_70 : f32 to vector<80x64xf32>
    %186 = arith.select %184, %173, %185 : vector<80x64xi1>, vector<80x64xf32>
    %187 = vector.extract_strided_slice %115 {offsets = [6, 0], sizes = [80, 64], strides = [1, 1]} : vector<86x64xf32> to vector<80x64xf32>
    %c3_i32 = arith.constant 3 : i32
    %188 = vector.broadcast %c3_i32 : i32 to vector<80x1xi32>
    %189 = arith.addi %1, %188 : vector<80x1xi32>
    %c0_i32_71 = arith.constant 0 : i32
    %190 = vector.broadcast %c0_i32_71 : i32 to vector<80x1xi32>
    %191 = arith.cmpi sge, %189, %190 : vector<80x1xi32>
    %c3_i32_72 = arith.constant 3 : i32
    %192 = vector.broadcast %c3_i32_72 : i32 to vector<80x1xi32>
    %193 = arith.addi %1, %192 : vector<80x1xi32>
    %c40_i32_73 = arith.constant 40 : i32
    %194 = vector.broadcast %c40_i32_73 : i32 to vector<80x1xi32>
    %195 = arith.cmpi slt, %193, %194 : vector<80x1xi32>
    %196 = arith.andi %191, %195 : vector<80x1xi1>
    %cst_74 = arith.constant 0.000000e+00 : f32
    %197 = vector.shape_cast %196 : vector<80x1xi1> to vector<80x1xi1>
    %198 = vector.broadcast %197 : vector<80x1xi1> to vector<80x64xi1>
    %199 = vector.broadcast %cst_74 : f32 to vector<80x64xf32>
    %200 = arith.select %198, %187, %199 : vector<80x64xi1>, vector<80x64xf32>
    %201 = tpu.concatenate %129, %143, %157, %158, %172, %186, %200 in 1 : vector<80x64xf32>, vector<80x64xf32>, vector<80x64xf32>, vector<80x64xf32>, vector<80x64xf32>, vector<80x64xf32>, vector<80x64xf32> -> vector<80x448xf32>
    %202 = arith.truncf %201 : vector<80x448xf32> to vector<80x448xbf16>
    %c0_75 = arith.constant 0 : index
    %c0_76 = arith.constant 0 : index
    %203 = vector.load %arg10[%c0_75, %c0_76] : memref<448x32xbf16, #tpu.memory_space<vmem>>, vector<448x32xbf16>
    %cst_77 = arith.constant dense<0.000000e+00> : vector<80x32xf32>
    %204 = tpu.matmul %202, %203, %cst_77 {dimension_numbers = #tpu.dot_dimension_numbers<[1], [0], [0], [1], [0, 0, 1, 1], [], []>} : vector<80x448xbf16>, vector<448x32xbf16>, vector<80x32xf32> -> vector<80x32xf32>
    %c0_78 = arith.constant 0 : index
    %c0_79 = arith.constant 0 : index
    %205 = vector.load %arg11[%c0_78, %c0_79] : memref<1x32xf32, #tpu.memory_space<vmem>>, vector<1x32xf32>
    %206 = vector.broadcast %205 : vector<1x32xf32> to vector<80x32xf32>
    %207 = arith.addf %204, %206 : vector<80x32xf32>
    %cst_80 = arith.constant 0.000000e+00 : f32
    %208 = vector.broadcast %cst_80 : f32 to vector<80x32xf32>
    %c0_81 = arith.constant 0 : index
    %c0_82 = arith.constant 0 : index
    %c0_83 = arith.constant 0 : index
    %209 = vector.load %arg12[%c0_81, %c0_82, %c0_83] : memref<2x4x32xf32, #tpu.memory_space<vmem>>, vector<1x4x32xf32>
    %210 = vector.shape_cast %209 : vector<1x4x32xf32> to vector<4x32xf32>
    %cst_84 = arith.constant dense<0.000000e+00> : vector<80x4xf32>
    %211 = tpu.matmul %207, %210, %cst_84 {dimension_numbers = #tpu.dot_dimension_numbers<[1], [1], [0], [0], [0, 0, 1, 0], [], []>} : vector<80x32xf32>, vector<4x32xf32>, vector<80x4xf32> -> vector<80x4xf32>
    %cst_85 = arith.constant 1.000000e+00 : f32
    %212 = vector.broadcast %cst_85 : f32 to vector<1x32xf32>
    %213 = arith.mulf %210, %210 : vector<4x32xf32>
    %cst_86 = arith.constant dense<0.000000e+00> : vector<1x4xf32>
    %214 = tpu.matmul %212, %213, %cst_86 {dimension_numbers = #tpu.dot_dimension_numbers<[1], [1], [0], [0], [0, 0, 1, 0], [], []>} : vector<1x32xf32>, vector<4x32xf32>, vector<1x4xf32> -> vector<1x4xf32>
    %cst_87 = arith.constant 2.000000e+00 : f32
    %215 = vector.broadcast %cst_87 : f32 to vector<80x4xf32>
    %216 = arith.mulf %215, %211 : vector<80x4xf32>
    %217 = vector.broadcast %214 : vector<1x4xf32> to vector<80x4xf32>
    %218 = arith.subf %217, %216 : vector<80x4xf32>
    %cst_88 = arith.constant dense<0x7F800000> : vector<80xf32>
    %219 = vector.multi_reduction <minimumf>, %218, %cst_88 [1] : vector<80x4xf32> to vector<80xf32>
    %220 = vector.shape_cast %219 : vector<80xf32> to vector<80x1xf32>
    %221 = tpu.iota {dimensions = array<i32: 1>} : vector<80x4xi32>
    %222 = vector.broadcast %220 : vector<80x1xf32> to vector<80x4xf32>
    %223 = arith.cmpf ole, %218, %222 : vector<80x4xf32>
    %c4_i32_89 = arith.constant 4 : i32
    %224 = vector.broadcast %c4_i32_89 : i32 to vector<80x4xi32>
    %225 = arith.select %223, %221, %224 : vector<80x4xi1>, vector<80x4xi32>
    %cst_90 = arith.constant dense<2147483647> : vector<80xi32>
    %226 = vector.multi_reduction <minsi>, %225, %cst_90 [1] : vector<80x4xi32> to vector<80xi32>
    %227 = vector.shape_cast %226 : vector<80xi32> to vector<80x1xi32>
    %228 = vector.broadcast %227 : vector<80x1xi32> to vector<80x4xi32>
    %229 = arith.cmpi eq, %221, %228 : vector<80x4xi32>
    %230 = arith.extui %229 : vector<80x4xi1> to vector<80x4xi32>
    %231 = arith.sitofp %230 : vector<80x4xi32> to vector<80x4xf32>
    %cst_91 = arith.constant dense<0.000000e+00> : vector<80x32xf32>
    %232 = tpu.matmul %231, %210, %cst_91 {dimension_numbers = #tpu.dot_dimension_numbers<[1], [0], [0], [1], [0, 0, 1, 1], [], []>} : vector<80x4xf32>, vector<4x32xf32>, vector<80x32xf32> -> vector<80x32xf32>
    %233 = arith.subf %207, %232 : vector<80x32xf32>
    %234 = arith.mulf %233, %233 : vector<80x32xf32>
    %cst_92 = arith.constant 1.000000e+00 : f32
    %235 = vector.broadcast %cst_92 : f32 to vector<1x80xf32>
    %cst_93 = arith.constant dense<0.000000e+00> : vector<1x32xf32>
    %236 = tpu.matmul %235, %234, %cst_93 {dimension_numbers = #tpu.dot_dimension_numbers<[1], [0], [0], [1], [0, 0, 1, 1], [], []>} : vector<1x80xf32>, vector<80x32xf32>, vector<1x32xf32> -> vector<1x32xf32>
    %cst_94 = arith.constant dense<0.000000e+00> : vector<1xf32>
    %237 = vector.multi_reduction <add>, %236, %cst_94 [1] : vector<1x32xf32> to vector<1xf32>
    %238 = vector.shape_cast %237 : vector<1xf32> to vector<1x1xf32>
    %cst_95 = arith.constant 2.560000e+03 : f32
    %239 = vector.broadcast %cst_95 : f32 to vector<1x1xf32>
    %240 = arith.divf %238, %239 : vector<1x1xf32>
    %241 = arith.addf %208, %232 : vector<80x32xf32>
    %242 = arith.subf %207, %232 : vector<80x32xf32>
    %c1 = arith.constant 1 : index
    %c0_96 = arith.constant 0 : index
    %c0_97 = arith.constant 0 : index
    %243 = vector.load %arg12[%c1, %c0_96, %c0_97] : memref<2x4x32xf32, #tpu.memory_space<vmem>>, vector<1x4x32xf32>
    %244 = vector.shape_cast %243 : vector<1x4x32xf32> to vector<4x32xf32>
    %cst_98 = arith.constant dense<0.000000e+00> : vector<80x4xf32>
    %245 = tpu.matmul %242, %244, %cst_98 {dimension_numbers = #tpu.dot_dimension_numbers<[1], [1], [0], [0], [0, 0, 1, 0], [], []>} : vector<80x32xf32>, vector<4x32xf32>, vector<80x4xf32> -> vector<80x4xf32>
    %cst_99 = arith.constant 1.000000e+00 : f32
    %246 = vector.broadcast %cst_99 : f32 to vector<1x32xf32>
    %247 = arith.mulf %244, %244 : vector<4x32xf32>
    %cst_100 = arith.constant dense<0.000000e+00> : vector<1x4xf32>
    %248 = tpu.matmul %246, %247, %cst_100 {dimension_numbers = #tpu.dot_dimension_numbers<[1], [1], [0], [0], [0, 0, 1, 0], [], []>} : vector<1x32xf32>, vector<4x32xf32>, vector<1x4xf32> -> vector<1x4xf32>
    %cst_101 = arith.constant 2.000000e+00 : f32
    %249 = vector.broadcast %cst_101 : f32 to vector<80x4xf32>
    %250 = arith.mulf %249, %245 : vector<80x4xf32>
    %251 = vector.broadcast %248 : vector<1x4xf32> to vector<80x4xf32>
    %252 = arith.subf %251, %250 : vector<80x4xf32>
    %cst_102 = arith.constant dense<0x7F800000> : vector<80xf32>
    %253 = vector.multi_reduction <minimumf>, %252, %cst_102 [1] : vector<80x4xf32> to vector<80xf32>
    %254 = vector.shape_cast %253 : vector<80xf32> to vector<80x1xf32>
    %255 = tpu.iota {dimensions = array<i32: 1>} : vector<80x4xi32>
    %256 = vector.broadcast %254 : vector<80x1xf32> to vector<80x4xf32>
    %257 = arith.cmpf ole, %252, %256 : vector<80x4xf32>
    %c4_i32_103 = arith.constant 4 : i32
    %258 = vector.broadcast %c4_i32_103 : i32 to vector<80x4xi32>
    %259 = arith.select %257, %255, %258 : vector<80x4xi1>, vector<80x4xi32>
    %cst_104 = arith.constant dense<2147483647> : vector<80xi32>
    %260 = vector.multi_reduction <minsi>, %259, %cst_104 [1] : vector<80x4xi32> to vector<80xi32>
    %261 = vector.shape_cast %260 : vector<80xi32> to vector<80x1xi32>
    %262 = vector.broadcast %261 : vector<80x1xi32> to vector<80x4xi32>
    %263 = arith.cmpi eq, %255, %262 : vector<80x4xi32>
    %264 = arith.extui %263 : vector<80x4xi1> to vector<80x4xi32>
    %265 = arith.sitofp %264 : vector<80x4xi32> to vector<80x4xf32>
    %cst_105 = arith.constant dense<0.000000e+00> : vector<80x32xf32>
    %266 = tpu.matmul %265, %244, %cst_105 {dimension_numbers = #tpu.dot_dimension_numbers<[1], [0], [0], [1], [0, 0, 1, 1], [], []>} : vector<80x4xf32>, vector<4x32xf32>, vector<80x32xf32> -> vector<80x32xf32>
    %267 = arith.subf %242, %266 : vector<80x32xf32>
    %268 = arith.mulf %267, %267 : vector<80x32xf32>
    %cst_106 = arith.constant 1.000000e+00 : f32
    %269 = vector.broadcast %cst_106 : f32 to vector<1x80xf32>
    %cst_107 = arith.constant dense<0.000000e+00> : vector<1x32xf32>
    %270 = tpu.matmul %269, %268, %cst_107 {dimension_numbers = #tpu.dot_dimension_numbers<[1], [0], [0], [1], [0, 0, 1, 1], [], []>} : vector<1x80xf32>, vector<80x32xf32>, vector<1x32xf32> -> vector<1x32xf32>
    %cst_108 = arith.constant dense<0.000000e+00> : vector<1xf32>
    %271 = vector.multi_reduction <add>, %270, %cst_108 [1] : vector<1x32xf32> to vector<1xf32>
    %272 = vector.shape_cast %271 : vector<1xf32> to vector<1x1xf32>
    %cst_109 = arith.constant 2.560000e+03 : f32
    %273 = vector.broadcast %cst_109 : f32 to vector<1x1xf32>
    %274 = arith.divf %272, %273 : vector<1x1xf32>
    %275 = arith.addf %240, %274 : vector<1x1xf32>
    %276 = arith.addf %241, %266 : vector<80x32xf32>
    %cst_110 = arith.constant 2.000000e+00 : f32
    %277 = vector.broadcast %cst_110 : f32 to vector<1x1xf32>
    %278 = arith.divf %275, %277 : vector<1x1xf32>
    %279 = arith.sitofp %227 : vector<80x1xi32> to vector<80x1xf32>
    %280 = vector.extract_strided_slice %279 {offsets = [1, 0], sizes = [79, 1], strides = [1, 1]} : vector<80x1xf32> to vector<79x1xf32>
    %281 = vector.extract_strided_slice %279 {offsets = [79, 0], sizes = [1, 1], strides = [1, 1]} : vector<80x1xf32> to vector<1x1xf32>
    %282 = tpu.concatenate %280, %281 in 0 : vector<79x1xf32>, vector<1x1xf32> -> vector<80x1xf32>
    %c39_i32 = arith.constant 39 : i32
    %283 = vector.broadcast %c39_i32 : i32 to vector<80x1xi32>
    %284 = arith.cmpi slt, %1, %283 : vector<80x1xi32>
    %285 = arith.cmpf one, %282, %279 : vector<80x1xf32>
    %286 = arith.andi %284, %285 : vector<80x1xi1>
    %cst_111 = arith.constant 1.000000e+00 : f32
    %cst_112 = arith.constant 0.000000e+00 : f32
    %287 = vector.broadcast %cst_111 : f32 to vector<80x1xf32>
    %288 = vector.broadcast %cst_112 : f32 to vector<80x1xf32>
    %289 = arith.select %286, %287, %288 : vector<80x1xi1>, vector<80x1xf32>
    %cst_113 = arith.constant 1.000000e+00 : f32
    %290 = vector.broadcast %cst_113 : f32 to vector<1x80xf32>
    %cst_114 = arith.constant dense<0.000000e+00> : vector<1x1xf32>
    %291 = tpu.matmul %290, %289, %cst_114 {dimension_numbers = #tpu.dot_dimension_numbers<[1], [0], [0], [1], [0, 0, 1, 1], [], []>} : vector<1x80xf32>, vector<80x1xf32>, vector<1x1xf32> -> vector<1x1xf32>
    %cst_115 = arith.constant dense<0.000000e+00> : vector<1xf32>
    %292 = vector.multi_reduction <add>, %291, %cst_115 [1] : vector<1x1xf32> to vector<1xf32>
    %293 = vector.shape_cast %292 : vector<1xf32> to vector<1x1xf32>
    %cst_116 = arith.constant 7.800000e+01 : f32
    %294 = vector.broadcast %cst_116 : f32 to vector<1x1xf32>
    %295 = arith.divf %293, %294 : vector<1x1xf32>
    %296 = arith.sitofp %227 : vector<80x1xi32> to vector<80x1xf32>
    %297 = arith.sitofp %261 : vector<80x1xi32> to vector<80x1xf32>
    %298 = tpu.concatenate %296, %297 in 1 : vector<80x1xf32>, vector<80x1xf32> -> vector<80x2xf32>
    %299 = vector.extract_strided_slice %276 {offsets = [0, 0], sizes = [35, 32], strides = [1, 1]} : vector<80x32xf32> to vector<35x32xf32>
    %300 = vector.extract_strided_slice %276 {offsets = [40, 0], sizes = [35, 32], strides = [1, 1]} : vector<80x32xf32> to vector<35x32xf32>
    %301 = tpu.concatenate %299, %300 in 0 : vector<35x32xf32>, vector<35x32xf32> -> vector<70x32xf32>
    %302 = vector.extract_strided_slice %298 {offsets = [0, 0], sizes = [35, 2], strides = [1, 1]} : vector<80x2xf32> to vector<35x2xf32>
    %303 = vector.extract_strided_slice %298 {offsets = [40, 0], sizes = [35, 2], strides = [1, 1]} : vector<80x2xf32> to vector<35x2xf32>
    %304 = tpu.concatenate %302, %303 in 0 : vector<35x2xf32>, vector<35x2xf32> -> vector<70x2xf32>
    %305 = vector.extract_strided_slice %276 {offsets = [5, 0], sizes = [35, 32], strides = [1, 1]} : vector<80x32xf32> to vector<35x32xf32>
    %306 = vector.extract_strided_slice %276 {offsets = [45, 0], sizes = [35, 32], strides = [1, 1]} : vector<80x32xf32> to vector<35x32xf32>
    %307 = tpu.concatenate %305, %306 in 0 : vector<35x32xf32>, vector<35x32xf32> -> vector<70x32xf32>
    %308 = tpu.concatenate %301, %304 in 1 : vector<70x32xf32>, vector<70x2xf32> -> vector<70x34xf32>
    %cst_117 = arith.constant 0.000000e+00 : f32
    %309 = vector.broadcast %cst_117 : f32 to vector<2x34xf32>
    %310 = tpu.concatenate %309, %308, %309 in 0 : vector<2x34xf32>, vector<70x34xf32>, vector<2x34xf32> -> vector<74x34xf32>
    %311 = vector.extract_strided_slice %310 {offsets = [0, 0], sizes = [70, 34], strides = [1, 1]} : vector<74x34xf32> to vector<70x34xf32>
    %c-2_i32_118 = arith.constant -2 : i32
    %312 = vector.broadcast %c-2_i32_118 : i32 to vector<70x1xi32>
    %313 = arith.addi %2, %312 : vector<70x1xi32>
    %c0_i32_119 = arith.constant 0 : i32
    %314 = vector.broadcast %c0_i32_119 : i32 to vector<70x1xi32>
    %315 = arith.cmpi sge, %313, %314 : vector<70x1xi32>
    %c-2_i32_120 = arith.constant -2 : i32
    %316 = vector.broadcast %c-2_i32_120 : i32 to vector<70x1xi32>
    %317 = arith.addi %2, %316 : vector<70x1xi32>
    %c5_i32 = arith.constant 5 : i32
    %318 = vector.broadcast %c5_i32 : i32 to vector<70x1xi32>
    %319 = arith.cmpi slt, %317, %318 : vector<70x1xi32>
    %320 = arith.andi %315, %319 : vector<70x1xi1>
    %cst_121 = arith.constant 0.000000e+00 : f32
    %321 = vector.shape_cast %320 : vector<70x1xi1> to vector<70x1xi1>
    %322 = vector.broadcast %321 : vector<70x1xi1> to vector<70x34xi1>
    %323 = vector.broadcast %cst_121 : f32 to vector<70x34xf32>
    %324 = arith.select %322, %311, %323 : vector<70x34xi1>, vector<70x34xf32>
    %325 = vector.extract_strided_slice %310 {offsets = [1, 0], sizes = [70, 34], strides = [1, 1]} : vector<74x34xf32> to vector<70x34xf32>
    %c-1_i32_122 = arith.constant -1 : i32
    %326 = vector.broadcast %c-1_i32_122 : i32 to vector<70x1xi32>
    %327 = arith.addi %2, %326 : vector<70x1xi32>
    %c0_i32_123 = arith.constant 0 : i32
    %328 = vector.broadcast %c0_i32_123 : i32 to vector<70x1xi32>
    %329 = arith.cmpi sge, %327, %328 : vector<70x1xi32>
    %c-1_i32_124 = arith.constant -1 : i32
    %330 = vector.broadcast %c-1_i32_124 : i32 to vector<70x1xi32>
    %331 = arith.addi %2, %330 : vector<70x1xi32>
    %c5_i32_125 = arith.constant 5 : i32
    %332 = vector.broadcast %c5_i32_125 : i32 to vector<70x1xi32>
    %333 = arith.cmpi slt, %331, %332 : vector<70x1xi32>
    %334 = arith.andi %329, %333 : vector<70x1xi1>
    %cst_126 = arith.constant 0.000000e+00 : f32
    %335 = vector.shape_cast %334 : vector<70x1xi1> to vector<70x1xi1>
    %336 = vector.broadcast %335 : vector<70x1xi1> to vector<70x34xi1>
    %337 = vector.broadcast %cst_126 : f32 to vector<70x34xf32>
    %338 = arith.select %336, %325, %337 : vector<70x34xi1>, vector<70x34xf32>
    %339 = vector.extract_strided_slice %310 {offsets = [2, 0], sizes = [70, 34], strides = [1, 1]} : vector<74x34xf32> to vector<70x34xf32>
    %340 = vector.extract_strided_slice %310 {offsets = [3, 0], sizes = [70, 34], strides = [1, 1]} : vector<74x34xf32> to vector<70x34xf32>
    %c1_i32_127 = arith.constant 1 : i32
    %341 = vector.broadcast %c1_i32_127 : i32 to vector<70x1xi32>
    %342 = arith.addi %2, %341 : vector<70x1xi32>
    %c0_i32_128 = arith.constant 0 : i32
    %343 = vector.broadcast %c0_i32_128 : i32 to vector<70x1xi32>
    %344 = arith.cmpi sge, %342, %343 : vector<70x1xi32>
    %c1_i32_129 = arith.constant 1 : i32
    %345 = vector.broadcast %c1_i32_129 : i32 to vector<70x1xi32>
    %346 = arith.addi %2, %345 : vector<70x1xi32>
    %c5_i32_130 = arith.constant 5 : i32
    %347 = vector.broadcast %c5_i32_130 : i32 to vector<70x1xi32>
    %348 = arith.cmpi slt, %346, %347 : vector<70x1xi32>
    %349 = arith.andi %344, %348 : vector<70x1xi1>
    %cst_131 = arith.constant 0.000000e+00 : f32
    %350 = vector.shape_cast %349 : vector<70x1xi1> to vector<70x1xi1>
    %351 = vector.broadcast %350 : vector<70x1xi1> to vector<70x34xi1>
    %352 = vector.broadcast %cst_131 : f32 to vector<70x34xf32>
    %353 = arith.select %351, %340, %352 : vector<70x34xi1>, vector<70x34xf32>
    %354 = vector.extract_strided_slice %310 {offsets = [4, 0], sizes = [70, 34], strides = [1, 1]} : vector<74x34xf32> to vector<70x34xf32>
    %c2_i32_132 = arith.constant 2 : i32
    %355 = vector.broadcast %c2_i32_132 : i32 to vector<70x1xi32>
    %356 = arith.addi %2, %355 : vector<70x1xi32>
    %c0_i32_133 = arith.constant 0 : i32
    %357 = vector.broadcast %c0_i32_133 : i32 to vector<70x1xi32>
    %358 = arith.cmpi sge, %356, %357 : vector<70x1xi32>
    %c2_i32_134 = arith.constant 2 : i32
    %359 = vector.broadcast %c2_i32_134 : i32 to vector<70x1xi32>
    %360 = arith.addi %2, %359 : vector<70x1xi32>
    %c5_i32_135 = arith.constant 5 : i32
    %361 = vector.broadcast %c5_i32_135 : i32 to vector<70x1xi32>
    %362 = arith.cmpi slt, %360, %361 : vector<70x1xi32>
    %363 = arith.andi %358, %362 : vector<70x1xi1>
    %cst_136 = arith.constant 0.000000e+00 : f32
    %364 = vector.shape_cast %363 : vector<70x1xi1> to vector<70x1xi1>
    %365 = vector.broadcast %364 : vector<70x1xi1> to vector<70x34xi1>
    %366 = vector.broadcast %cst_136 : f32 to vector<70x34xf32>
    %367 = arith.select %365, %354, %366 : vector<70x34xi1>, vector<70x34xf32>
    %368 = tpu.concatenate %324, %338, %339, %353, %367 in 1 : vector<70x34xf32>, vector<70x34xf32>, vector<70x34xf32>, vector<70x34xf32>, vector<70x34xf32> -> vector<70x170xf32>
    %369 = arith.truncf %368 : vector<70x170xf32> to vector<70x170xbf16>
    %c0_137 = arith.constant 0 : index
    %c0_138 = arith.constant 0 : index
    %370 = vector.load %arg13[%c0_137, %c0_138] : memref<170x64xbf16, #tpu.memory_space<vmem>>, vector<170x64xbf16>
    %cst_139 = arith.constant dense<0.000000e+00> : vector<70x64xf32>
    %371 = tpu.matmul %369, %370, %cst_139 {dimension_numbers = #tpu.dot_dimension_numbers<[1], [0], [0], [1], [0, 0, 1, 1], [], []>} : vector<70x170xbf16>, vector<170x64xbf16>, vector<70x64xf32> -> vector<70x64xf32>
    %c0_140 = arith.constant 0 : index
    %c0_141 = arith.constant 0 : index
    %372 = vector.load %arg14[%c0_140, %c0_141] : memref<1x64xf32, #tpu.memory_space<vmem>>, vector<1x64xf32>
    %373 = vector.broadcast %372 : vector<1x64xf32> to vector<70x64xf32>
    %374 = arith.addf %371, %373 : vector<70x64xf32>
    %cst_142 = arith.constant 0.000000e+00 : f32
    %375 = vector.broadcast %cst_142 : f32 to vector<70x64xf32>
    %376 = arith.maximumf %374, %375 : vector<70x64xf32>
    %cst_143 = arith.constant 0.000000e+00 : f32
    %377 = vector.broadcast %cst_143 : f32 to vector<1x64xf32>
    %378 = tpu.concatenate %377, %376, %377 in 0 : vector<1x64xf32>, vector<70x64xf32>, vector<1x64xf32> -> vector<72x64xf32>
    %379 = vector.extract_strided_slice %378 {offsets = [0, 0], sizes = [70, 64], strides = [1, 1]} : vector<72x64xf32> to vector<70x64xf32>
    %c-1_i32_144 = arith.constant -1 : i32
    %380 = vector.broadcast %c-1_i32_144 : i32 to vector<70x1xi32>
    %381 = arith.addi %2, %380 : vector<70x1xi32>
    %c0_i32_145 = arith.constant 0 : i32
    %382 = vector.broadcast %c0_i32_145 : i32 to vector<70x1xi32>
    %383 = arith.cmpi sge, %381, %382 : vector<70x1xi32>
    %c-1_i32_146 = arith.constant -1 : i32
    %384 = vector.broadcast %c-1_i32_146 : i32 to vector<70x1xi32>
    %385 = arith.addi %2, %384 : vector<70x1xi32>
    %c5_i32_147 = arith.constant 5 : i32
    %386 = vector.broadcast %c5_i32_147 : i32 to vector<70x1xi32>
    %387 = arith.cmpi slt, %385, %386 : vector<70x1xi32>
    %388 = arith.andi %383, %387 : vector<70x1xi1>
    %cst_148 = arith.constant 0.000000e+00 : f32
    %389 = vector.shape_cast %388 : vector<70x1xi1> to vector<70x1xi1>
    %390 = vector.broadcast %389 : vector<70x1xi1> to vector<70x64xi1>
    %391 = vector.broadcast %cst_148 : f32 to vector<70x64xf32>
    %392 = arith.select %390, %379, %391 : vector<70x64xi1>, vector<70x64xf32>
    %393 = vector.extract_strided_slice %378 {offsets = [1, 0], sizes = [70, 64], strides = [1, 1]} : vector<72x64xf32> to vector<70x64xf32>
    %394 = vector.extract_strided_slice %378 {offsets = [2, 0], sizes = [70, 64], strides = [1, 1]} : vector<72x64xf32> to vector<70x64xf32>
    %c1_i32_149 = arith.constant 1 : i32
    %395 = vector.broadcast %c1_i32_149 : i32 to vector<70x1xi32>
    %396 = arith.addi %2, %395 : vector<70x1xi32>
    %c0_i32_150 = arith.constant 0 : i32
    %397 = vector.broadcast %c0_i32_150 : i32 to vector<70x1xi32>
    %398 = arith.cmpi sge, %396, %397 : vector<70x1xi32>
    %c1_i32_151 = arith.constant 1 : i32
    %399 = vector.broadcast %c1_i32_151 : i32 to vector<70x1xi32>
    %400 = arith.addi %2, %399 : vector<70x1xi32>
    %c5_i32_152 = arith.constant 5 : i32
    %401 = vector.broadcast %c5_i32_152 : i32 to vector<70x1xi32>
    %402 = arith.cmpi slt, %400, %401 : vector<70x1xi32>
    %403 = arith.andi %398, %402 : vector<70x1xi1>
    %cst_153 = arith.constant 0.000000e+00 : f32
    %404 = vector.shape_cast %403 : vector<70x1xi1> to vector<70x1xi1>
    %405 = vector.broadcast %404 : vector<70x1xi1> to vector<70x64xi1>
    %406 = vector.broadcast %cst_153 : f32 to vector<70x64xf32>
    %407 = arith.select %405, %394, %406 : vector<70x64xi1>, vector<70x64xf32>
    %408 = tpu.concatenate %392, %393, %407 in 1 : vector<70x64xf32>, vector<70x64xf32>, vector<70x64xf32> -> vector<70x192xf32>
    %409 = arith.truncf %408 : vector<70x192xf32> to vector<70x192xbf16>
    %c0_154 = arith.constant 0 : index
    %c0_155 = arith.constant 0 : index
    %410 = vector.load %arg15[%c0_154, %c0_155] : memref<192x32xbf16, #tpu.memory_space<vmem>>, vector<192x32xbf16>
    %cst_156 = arith.constant dense<0.000000e+00> : vector<70x32xf32>
    %411 = tpu.matmul %409, %410, %cst_156 {dimension_numbers = #tpu.dot_dimension_numbers<[1], [0], [0], [1], [0, 0, 1, 1], [], []>} : vector<70x192xbf16>, vector<192x32xbf16>, vector<70x32xf32> -> vector<70x32xf32>
    %c0_157 = arith.constant 0 : index
    %c0_158 = arith.constant 0 : index
    %412 = vector.load %arg16[%c0_157, %c0_158] : memref<1x32xf32, #tpu.memory_space<vmem>>, vector<1x32xf32>
    %413 = vector.broadcast %412 : vector<1x32xf32> to vector<70x32xf32>
    %414 = arith.addf %411, %413 : vector<70x32xf32>
    %415 = arith.subf %414, %307 : vector<70x32xf32>
    %416 = arith.mulf %415, %415 : vector<70x32xf32>
    %cst_159 = arith.constant 1.000000e+00 : f32
    %417 = vector.broadcast %cst_159 : f32 to vector<1x70xf32>
    %cst_160 = arith.constant dense<0.000000e+00> : vector<1x32xf32>
    %418 = tpu.matmul %417, %416, %cst_160 {dimension_numbers = #tpu.dot_dimension_numbers<[1], [0], [0], [1], [0, 0, 1, 1], [], []>} : vector<1x70xf32>, vector<70x32xf32>, vector<1x32xf32> -> vector<1x32xf32>
    %cst_161 = arith.constant dense<0.000000e+00> : vector<1xf32>
    %419 = vector.multi_reduction <add>, %418, %cst_161 [1] : vector<1x32xf32> to vector<1xf32>
    %420 = vector.shape_cast %419 : vector<1xf32> to vector<1x1xf32>
    %cst_162 = arith.constant 2.240000e+03 : f32
    %421 = vector.broadcast %cst_162 : f32 to vector<1x1xf32>
    %422 = arith.divf %420, %421 : vector<1x1xf32>
    %cst_163 = arith.constant 1.000000e+00 : f32
    %423 = vector.broadcast %cst_163 : f32 to vector<1x1xf32>
    %424 = arith.mulf %422, %423 : vector<1x1xf32>
    %cst_164 = arith.constant 1.000000e+00 : f32
    %425 = vector.broadcast %cst_164 : f32 to vector<1x1xf32>
    %426 = arith.mulf %278, %425 : vector<1x1xf32>
    %427 = arith.addf %424, %426 : vector<1x1xf32>
    %cst_165 = arith.constant 1.000000e-01 : f32
    %428 = vector.broadcast %cst_165 : f32 to vector<1x1xf32>
    %429 = arith.mulf %295, %428 : vector<1x1xf32>
    %430 = arith.addf %427, %429 : vector<1x1xf32>
    %431 = tpu.iota {dimensions = array<i32: 1>} : vector<1x4xi32>
    %c0_i32_166 = arith.constant 0 : i32
    %432 = vector.broadcast %c0_i32_166 : i32 to vector<1x4xi32>
    %433 = arith.cmpi eq, %431, %432 : vector<1x4xi32>
    %c1_i32_167 = arith.constant 1 : i32
    %434 = vector.broadcast %c1_i32_167 : i32 to vector<1x4xi32>
    %435 = arith.cmpi eq, %431, %434 : vector<1x4xi32>
    %c2_i32_168 = arith.constant 2 : i32
    %436 = vector.broadcast %c2_i32_168 : i32 to vector<1x4xi32>
    %437 = arith.cmpi eq, %431, %436 : vector<1x4xi32>
    %438 = vector.shape_cast %278 : vector<1x1xf32> to vector<1x1xf32>
    %439 = vector.broadcast %438 : vector<1x1xf32> to vector<1x4xf32>
    %440 = vector.shape_cast %295 : vector<1x1xf32> to vector<1x1xf32>
    %441 = vector.broadcast %440 : vector<1x1xf32> to vector<1x4xf32>
    %442 = arith.select %437, %439, %441 : vector<1x4xi1>, vector<1x4xf32>
    %443 = vector.shape_cast %422 : vector<1x1xf32> to vector<1x1xf32>
    %444 = vector.broadcast %443 : vector<1x1xf32> to vector<1x4xf32>
    %445 = arith.select %435, %444, %442 : vector<1x4xi1>, vector<1x4xf32>
    %446 = vector.shape_cast %430 : vector<1x1xf32> to vector<1x1xf32>
    %447 = vector.broadcast %446 : vector<1x1xf32> to vector<1x4xf32>
    %448 = arith.select %433, %447, %445 : vector<1x4xi1>, vector<1x4xf32>
    %c0_169 = arith.constant 0 : index
    %c0_170 = arith.constant 0 : index
    %449 = vector.load %arg18[%c0_169, %c0_170] : memref<1x4xf32, #tpu.memory_space<vmem>>, vector<1x4xf32>
    tpu.vector_store %arg18[%c0_169, %c0_170], %448 {strides = array<i32>} : memref<1x4xf32, #tpu.memory_space<vmem>>, vector<1x4xf32>,
    %450 = tpu.iota {dimensions = array<i32: 1>} : vector<80x128xi32>
    %c0_i32_171 = arith.constant 0 : i32
    %451 = vector.broadcast %c0_i32_171 : i32 to vector<80x128xi32>
    %c0_i32_172 = arith.constant 0 : i32
    %452 = vector.broadcast %c0_i32_172 : i32 to vector<80x128xi32>
    %453 = arith.cmpi eq, %450, %452 : vector<80x128xi32>
    %454 = vector.shape_cast %227 : vector<80x1xi32> to vector<80x1xi32>
    %455 = vector.broadcast %454 : vector<80x1xi32> to vector<80x128xi32>
    %456 = arith.select %453, %455, %451 : vector<80x128xi1>, vector<80x128xi32>
    %c1_i32_173 = arith.constant 1 : i32
    %457 = vector.broadcast %c1_i32_173 : i32 to vector<80x128xi32>
    %458 = arith.cmpi eq, %450, %457 : vector<80x128xi32>
    %459 = vector.shape_cast %261 : vector<80x1xi32> to vector<80x1xi32>
    %460 = vector.broadcast %459 : vector<80x1xi32> to vector<80x128xi32>
    %461 = arith.select %458, %460, %456 : vector<80x128xi1>, vector<80x128xi32>
    %c0_174 = arith.constant 0 : index
    %c0_175 = arith.constant 0 : index
    %462 = vector.load %arg17[%c0_174, %c0_175] : memref<80x128xi32, #tpu.memory_space<vmem>>, vector<80x128xi32>
    tpu.vector_store %arg17[%c0_174, %c0_175], %461 {strides = array<i32>} : memref<80x128xi32, #tpu.memory_space<vmem>>, vector<80x128xi32>,
    return
  }
  func.func @transform_0(%arg0: i32) -> (i32, i32) {
    %c0_i32 = arith.constant 0 : i32
    %c0_i32_0 = arith.constant 0 : i32
    %c0_i32_1 = arith.constant 0 : i32
    return %c0_i32, %c0_i32_0 : i32, i32
  }
  func.func @transform_1(%arg0: i32) -> (i32, i32) {
    %c0_i32 = arith.constant 0 : i32
    %c0_i32_0 = arith.constant 0 : i32
    %c0_i32_1 = arith.constant 0 : i32
    return %c0_i32, %c0_i32_0 : i32, i32
  }
  func.func @transform_2(%arg0: i32) -> (i32, i32) {
    %c0_i32 = arith.constant 0 : i32
    %c0_i32_0 = arith.constant 0 : i32
    %c0_i32_1 = arith.constant 0 : i32
    return %c0_i32, %c0_i32_0 : i32, i32
  }
  func.func @transform_3(%arg0: i32) -> (i32, i32) {
    %c0_i32 = arith.constant 0 : i32
    %c0_i32_0 = arith.constant 0 : i32
    %c0_i32_1 = arith.constant 0 : i32
    return %c0_i32, %c0_i32_0 : i32, i32
  }
  func.func @transform_4(%arg0: i32) -> (i32, i32) {
    %c0_i32 = arith.constant 0 : i32
    %c0_i32_0 = arith.constant 0 : i32
    %c0_i32_1 = arith.constant 0 : i32
    return %c0_i32, %c0_i32_0 : i32, i32
  }
  func.func @transform_5(%arg0: i32) -> (i32, i32) {
    %c0_i32 = arith.constant 0 : i32
    %c0_i32_0 = arith.constant 0 : i32
    %c0_i32_1 = arith.constant 0 : i32
    return %c0_i32, %c0_i32_0 : i32, i32
  }
  func.func @transform_6(%arg0: i32) -> (i32, i32) {
    %c0_i32 = arith.constant 0 : i32
    %c0_i32_0 = arith.constant 0 : i32
    %c0_i32_1 = arith.constant 0 : i32
    return %c0_i32, %c0_i32_0 : i32, i32
  }
  func.func @transform_7(%arg0: i32) -> (i32, i32) {
    %c0_i32 = arith.constant 0 : i32
    %c0_i32_0 = arith.constant 0 : i32
    %c0_i32_1 = arith.constant 0 : i32
    return %c0_i32, %c0_i32_0 : i32, i32
  }
  func.func @transform_8(%arg0: i32) -> (i32, i32) {
    %c0_i32 = arith.constant 0 : i32
    %c0_i32_0 = arith.constant 0 : i32
    %c0_i32_1 = arith.constant 0 : i32
    return %c0_i32, %c0_i32_0 : i32, i32
  }
  func.func @transform_9(%arg0: i32) -> (i32, i32) {
    %c0_i32 = arith.constant 0 : i32
    %c0_i32_0 = arith.constant 0 : i32
    %c0_i32_1 = arith.constant 0 : i32
    return %c0_i32, %c0_i32_0 : i32, i32
  }
  func.func @transform_10(%arg0: i32) -> (i32, i32) {
    %c0_i32 = arith.constant 0 : i32
    %c0_i32_0 = arith.constant 0 : i32
    %c0_i32_1 = arith.constant 0 : i32
    return %c0_i32, %c0_i32_0 : i32, i32
  }
  func.func @transform_11(%arg0: i32) -> (i32, i32, i32) {
    %c0_i32 = arith.constant 0 : i32
    %c0_i32_0 = arith.constant 0 : i32
    %c0_i32_1 = arith.constant 0 : i32
    %c0_i32_2 = arith.constant 0 : i32
    return %c0_i32, %c0_i32_0, %c0_i32_1 : i32, i32, i32
  }
  func.func @transform_12(%arg0: i32) -> (i32, i32) {
    %c0_i32 = arith.constant 0 : i32
    %c0_i32_0 = arith.constant 0 : i32
    %c0_i32_1 = arith.constant 0 : i32
    return %c0_i32, %c0_i32_0 : i32, i32
  }
  func.func @transform_13(%arg0: i32) -> (i32, i32) {
    %c0_i32 = arith.constant 0 : i32
    %c0_i32_0 = arith.constant 0 : i32
    %c0_i32_1 = arith.constant 0 : i32
    return %c0_i32, %c0_i32_0 : i32, i32
  }
  func.func @transform_14(%arg0: i32) -> (i32, i32) {
    %c0_i32 = arith.constant 0 : i32
    %c0_i32_0 = arith.constant 0 : i32
    %c0_i32_1 = arith.constant 0 : i32
    return %c0_i32, %c0_i32_0 : i32, i32
  }
  func.func @transform_15(%arg0: i32) -> (i32, i32) {
    %c0_i32 = arith.constant 0 : i32
    %c0_i32_0 = arith.constant 0 : i32
    %c0_i32_1 = arith.constant 0 : i32
    return %c0_i32, %c0_i32_0 : i32, i32
  }
  func.func @transform_16(%arg0: i32) -> (i32, i32) {
    %c0_i32 = arith.constant 0 : i32
    %c0_i32_0 = arith.constant 0 : i32
    %c0_i32_1 = arith.constant 0 : i32
    return %c0_i32, %c0_i32_0 : i32, i32
  }
  func.func @transform_17(%arg0: i32) -> (i32, i32) {
    %c0_i32 = arith.constant 0 : i32
    %c0_i32_0 = arith.constant 0 : i32
    %c0_i32_1 = arith.constant 0 : i32
    return %c0_i32, %c0_i32_0 : i32, i32
  }
}

</mosaic_0001>

<bundles_post_ra>
// kernel: forward.1
= control target key start
LH: loop header
LB: loop body
LE: loop exit
PB: predicated region body
PF: predicated region fallthrough
CT: control target
= control target key end

     0   :  { %v9972_v0 = vmov 0   ;;  %vm9967_vm0 = vcmask 1040384   ;;  %vm10009_vm9 = vcmask 1046528   ;;  %s6581_s19 = smov 20   ;;  %v9974_v50 = vmov 0.0   ;;  %s9948_s1 = inlined_call_operand.vmem [shape: s32[8,1], index: 1, kind: input, shape index: {}]   ;;  %s9949_s2 = inlined_call_operand.vmem [shape: s32[80,1], index: 2, kind: input, shape index: {}]   ;;  %s9950_s0 = inlined_call_operand.vmem [shape: f32[8,20], index: 0, kind: input, shape index: {}]   ;;  %s9951_s5 = inlined_call_operand.vmem [shape: bf16[60,64], index: 5, kind: input, shape index: {}]   ;;  %s9952_s4 = inlined_call_operand.vmem [shape: f32[80,8], index: 4, kind: input, shape index: {}]   ;;  %s9953_s6 = inlined_call_operand.vmem [shape: f32[1,64], index: 6, kind: input, shape index: {}]   ;;  %s9954_s7 = inlined_call_operand.vmem [shape: bf16[320,64], index: 7, kind: input, shape index: {}]   ;;  %s9955_s9 = inlined_call_operand.vmem [shape: bf16[448,32], index: 9, kind: input, shape index: {}]   ;;  %s9956_s8 = inlined_call_operand.vmem [shape: f32[1,64], index: 8, kind: input, shape index: {}]   ;;  %s9957_s11 = inlined_call_operand.vmem [shape: f32[2,4,32], index: 11, kind: input, shape index: {}]   ;;  %s9958_s10 = inlined_call_operand.vmem [shape: f32[1,32], index: 10, kind: input, shape index: {}]   ;;  %s9959_s3 = inlined_call_operand.vmem [shape: s32[70,1], index: 3, kind: input, shape index: {}]   ;;  %s9960_s16 = inlined_call_operand.vmem [shape: s32[80,128], index: 16, kind: output, shape index: {0}]   ;;  %s9961_s12 = inlined_call_operand.vmem [shape: bf16[170,64], index: 12, kind: input, shape index: {}]   ;;  %s9962_s14 = inlined_call_operand.vmem [shape: bf16[192,32], index: 14, kind: input, shape index: {}]   ;;  %s9963_s13 = inlined_call_operand.vmem [shape: f32[1,64], index: 13, kind: input, shape index: {}]   ;;  %s9964_s15 = inlined_call_operand.vmem [shape: f32[1,32], index: 15, kind: input, shape index: {}]   ;;  %s9965_s17 = inlined_call_operand.vmem [shape: f32[1,4], index: 17, kind: output, shape index: {1}]  }
   0x1   :  { %10095 = sst [smem:[#allocation24_spill]] %s9948_s1  ;;  %6241 = vset.pattern.permute.xlu0 %v9972_v0  ;;  %6242 = vset.pattern.permute.xlu1 %v9972_v0  ;;  %v76_v6 = vld [vmem:[%s9950_s0] sm:$0xff]  ;;  %v6489_v52 = vld [vmem:[%s9951_s5 + $0x8] sm:$0xff]   ;;  %v6490_v53 = vld [vmem:[%s9951_s5 + $0x10] sm:$0xff]  }
   0x2   :  { %10096 = sst [smem:[#allocation25_spill]] %s9949_s2  ;;  %s10097_s26 = sld [smem:[#allocation24_spill]]  ;;  %v78_v7 = vrot.slane %v76_v6, 7  ;;  %5945 = vmatprep.subr.bf16.mxu0 %v9974_v50  ;;  %v6488_v51 = vld [vmem:[%s9951_s5] sm:$0xff]   ;;  %v6491_v54 = vld [vmem:[%s9951_s5 + $0x18] sm:$0x3f]  }
   0x3   :  { %s10098_s29 = sld [smem:[#allocation25_spill]]  ;;  %5946 = vmatpush3.bf16.msra.mxu0 %v6488_v51  ;;  %s6591_s2 = smov 34  }
   0x4   :  { %v6701_v10 = vsel %vm9967_vm0, 0.0, %v78_v7  ;;  %v6709_v12 = vsel %vm9967_vm0, %v78_v7, 0.0  ;;  %5947 = vmatprep.subr.bf16.mxu0 %v9974_v50 }
   0x5   :  { %v111_v13 = vrot.slane %v6701_v10, 1  ;;  %v112_v15 = vrot.slane %v6709_v12, 1  ;;  %v106_v56 = vrot.slane %v6709_v12, 2  ;;  %v105_v57 = vrot.slane %v6701_v10, 2 }
   0x7   :  { %v113_v17 = vsel %vm10009_vm9, %v111_v13, %v112_v15  ;;  %5948 = vmatpush3.bf16.msra.mxu0 %v6489_v52 }
   0x8   :  { %v56_v1 = vld [vmem:[%s10097_s26] sm:$0xff]  ;;  %114 = vrot.lane.b32.xlu1 %v113_v17, %s6581_s19  ;;  %5949 = vmatprep.subr.bf16.mxu0 %v9974_v50  ;;  %s6584_s19 = smov 40  }
   0x9   :  { %v6691_v2 = vld [vmem:[%s10098_s29] sm:$0xff]  ;;  %v93_v3 = vadd.s32 1, %v56_v1  ;;  %v83_v4 = vadd.s32 4294967295, %v56_v1  ;;  %v6706_v11 = vld [vmem:[%s10098_s29 + $0x10] sm:$0xff]  ;;  %v6790_v6 = vld [vmem:[%s10098_s29 + $0x8] sm:$0xff] }
   0xa   :  { %v644_v5 = vadd.s32 1, %v6691_v2  ;;  %v511_v8 = vadd.s32 4294967295, %v6691_v2  ;;  %v646_v16 = vadd.s32 1, %v6706_v11  ;;  %v513_v19 = vadd.s32 4294967295, %v6706_v11  ;;  %v6721_v20 = vld [vmem:[%s10098_s29 + $0x20] sm:$0xff]  ;;  %v6730_v25 = vld [vmem:[%s10098_s29 + $0x30] sm:$0xff] }
   0xb   :  { %vm94_vm1 = vcmp.ge.s32.totalorder %v93_v3, 0  ;;  %vm95_vm2 = vcmp.lt.s32.totalorder %v93_v3, 4  ;;  %vm84_vm3 = vcmp.ge.s32.totalorder %v83_v4, 0  ;;  %vm85_vm4 = vcmp.lt.s32.totalorder %v83_v4, 4  ;;  %v6739_v30 = vld [vmem:[%s10098_s29 + $0x40] sm:$0xff]  ;;  %5950 = vmatpush3.bf16.msra.mxu0 %v6490_v53  ;;  %v6795_v7 = vld [vmem:[%s10098_s29 + $0x18] sm:$0xff] }
   0xc   :  { %vm96_vm5 = vmand %vm94_vm1, %vm95_vm2  ;;  %vm654_vm7 = vcmp.ge.s32.totalorder %v644_v5, 0  ;;  %vm664_vm8 = vcmp.lt.s32.totalorder %v644_v5, 40  ;;  %vm521_vm11 = vcmp.ge.s32.totalorder %v511_v8, 0  ;;  %vm531_vm12 = vcmp.lt.s32.totalorder %v511_v8, 40  ;;  %5951 = vmatprep.subr.bf16.mxu0 %v9974_v50  ;;  %v212_v5 = vld [vmem:[%s9952_s4] sm:$0xff]  ;;  %v6805_v13 = vld [vmem:[%s10098_s29 + $0x28] sm:$0xff] }
   0xd   :  { %v97_v9 = vsel %vm96_vm5, 1, %v9972_v0  ;;  %vm86_vm6 = vmand %vm84_vm3, %vm85_vm4  ;;  %vm656_vm14 = vcmp.ge.s32.totalorder %v646_v16, 0  ;;  %vm666_vm15 = vcmp.lt.s32.totalorder %v646_v16, 40  ;;  %vm523_vm2 = vcmp.ge.s32.totalorder %v513_v19, 0  ;;  %v213_v53 = vld [vmem:[%s9952_s4 + $0x8] sm:$0xff] }
   0xe   :  { %99 = vperm.xlu0 %6241, %v97_v9   ;;  %v87_v14 = vsel %vm86_vm6, 1, %v9972_v0  ;;  %vm674_vm10 = vmand %vm654_vm7, %vm664_vm8  ;;  %vm533_vm3 = vcmp.lt.s32.totalorder %v513_v19, 40  ;;  %v648_v22 = vadd.s32 1, %v6721_v20  ;;  %v515_v24 = vadd.s32 4294967295, %v6721_v20 }
   0xf   :  { %v684_v18 = vsel %vm674_vm10, 1, %v9972_v0  ;;  %vm541_vm13 = vmand %vm521_vm11, %vm531_vm12  ;;  %v650_v27 = vadd.s32 1, %v6730_v25  ;;  %v517_v29 = vadd.s32 4294967295, %v6730_v25  ;;  %v652_v32 = vadd.s32 1, %v6739_v30 }
  0x10   :  { %v551_v21 = vsel %vm541_vm13, 1, %v9972_v0  ;;  %vm676_vm1 = vmand %vm656_vm14, %vm666_vm15  ;;  %vm658_vm5 = vcmp.ge.s32.totalorder %v648_v22, 0  ;;  %vm668_vm6 = vcmp.lt.s32.totalorder %v648_v22, 40  ;;  %vm525_vm8 = vcmp.ge.s32.totalorder %v515_v24, 0 }
  0x11   :  { %v686_v23 = vsel %vm676_vm1, 1, %v9972_v0  ;;  %vm543_vm4 = vmand %vm523_vm2, %vm533_vm3  ;;  %vm535_vm10 = vcmp.lt.s32.totalorder %v515_v24, 40  ;;  %vm660_vm12 = vcmp.ge.s32.totalorder %v650_v27, 0  ;;  %vm670_vm13 = vcmp.lt.s32.totalorder %v650_v27, 40 }
  0x12   :  { %89 = vperm.xlu0 %6241, %v87_v14   ;;  %v553_v26 = vsel %vm543_vm4, 1, %v9972_v0  ;;  %vm678_vm7 = vmand %vm658_vm5, %vm668_vm6  ;;  %vm527_vm15 = vcmp.ge.s32.totalorder %v517_v29, 0  ;;  %vm537_vm1 = vcmp.lt.s32.totalorder %v517_v29, 40  ;;  %vm662_vm3 = vcmp.ge.s32.totalorder %v652_v32, 0 }
  0x13   :  { %v688_v28 = vsel %vm678_vm7, 1, %v9972_v0  ;;  %vm545_vm11 = vmand %vm525_vm8, %vm535_vm10  ;;  %vm672_vm4 = vcmp.lt.s32.totalorder %v652_v32, 40  ;;  %v519_v34 = vadd.s32 4294967295, %v6739_v30  ;;  %v411_v36 = vadd.s32 4294967294, %v6691_v2 }
  0x14   :  { %v555_v31 = vsel %vm545_vm11, 1, %v9972_v0  ;;  %vm680_vm14 = vmand %vm660_vm12, %vm670_vm13  ;;  %v776_v38 = vadd.s32 2, %v6691_v2  ;;  %v413_v40 = vadd.s32 4294967294, %v6706_v11  ;;  %v778_v42 = vadd.s32 2, %v6706_v11 }
  0x15   :  { %v690_v33 = vsel %vm680_vm14, 1, %v9972_v0  ;;  %vm547_vm2 = vmand %vm527_vm15, %vm537_vm1  ;;  %vm529_vm6 = vcmp.ge.s32.totalorder %v519_v34, 0  ;;  %vm539_vm7 = vcmp.lt.s32.totalorder %v519_v34, 40  ;;  %vm421_vm10 = vcmp.ge.s32.totalorder %v411_v36, 0 }
  0x16   :  { %695 = vperm.xlu0 %6241, %v684_v18   ;;  %v557_v35 = vsel %vm547_vm2, 1, %v9972_v0  ;;  %vm682_vm5 = vmand %vm662_vm3, %vm672_vm4  ;;  %vm431_vm11 = vcmp.lt.s32.totalorder %v411_v36, 40  ;;  %vm786_vm13 = vcmp.ge.s32.totalorder %v776_v38, 0  ;;  %vm796_vm14 = vcmp.lt.s32.totalorder %v776_v38, 40  ;;  %v6814_v18 = vld [vmem:[%s10098_s29 + $0x38] sm:$0xff] }
  0x17   :  { %v692_v37 = vsel %vm682_vm5, 1, %v9972_v0  ;;  %vm549_vm8 = vmand %vm529_vm6, %vm539_vm7  ;;  %vm423_vm1 = vcmp.ge.s32.totalorder %v413_v40, 0  ;;  %vm433_vm2 = vcmp.lt.s32.totalorder %v413_v40, 40  ;;  %vm788_vm4 = vcmp.ge.s32.totalorder %v778_v42, 0 }
  0x18   :  { %v559_v39 = vsel %vm549_vm8, 1, %v9972_v0  ;;  %vm441_vm12 = vmand %vm421_vm10, %vm431_vm11  ;;  %vm798_vm5 = vcmp.lt.s32.totalorder %v778_v42, 40  ;;  %v415_v44 = vadd.s32 4294967294, %v6721_v20  ;;  %v780_v46 = vadd.s32 2, %v6721_v20 }
  0x19   :  { %v451_v41 = vsel %vm441_vm12, 1, %v9972_v0  ;;  %vm806_vm15 = vmand %vm786_vm13, %vm796_vm14  ;;  %vm9969_vm14 = vcmask 1045504   ;;  %v645_v8 = vadd.s32 1, %v6790_v6  ;;  %v512_v9 = vadd.s32 4294967295, %v6790_v6 }
  0x1a   :  { %562 = vperm.xlu0 %6241, %v551_v21   ;;  %v816_v43 = vsel %vm806_vm15, 1, %v9972_v0  ;;  %vm443_vm3 = vmand %vm423_vm1, %vm433_vm2  ;;  %vm425_vm7 = vcmp.ge.s32.totalorder %v415_v44, 0  ;;  %vm435_vm8 = vcmp.lt.s32.totalorder %v415_v44, 40  ;;  %vm790_vm11 = vcmp.ge.s32.totalorder %v780_v46, 0 }
  0x1b   :  { %v453_v45 = vsel %vm443_vm3, 1, %v9972_v0  ;;  %vm808_vm6 = vmand %vm788_vm4, %vm798_vm5  ;;  %vm800_vm12 = vcmp.lt.s32.totalorder %v780_v46, 40  ;;  %v169_v55 = vsel %vm9969_vm14, %v6491_v54, 0  ;;  %vm9970_vm15 = vmmov 0   ;;  %v214_v54 = vld [vmem:[%s9952_s4 + $0x10] sm:$0xff] }
  0x1c   :  { %v818_v47 = vsel %vm808_vm6, 1, %v9972_v0  ;;  %vm445_vm10 = vmand %vm425_vm7, %vm435_vm8  ;;  %5952 = vmatpush3.bf16.msra.mxu0 %v169_v55  ;;  %5953 = vmatprep.mubr.msk.bf16.mxu0 %vm9970_vm15, %v9974_v50  ;;  %v107_v58 = vsel %vm9969_vm14, %v105_v57, %v106_v56  ;;  %vm121_vm3 = vcmask 162816   ;;  %vm123_vm4 = vcmask 326656   ;;  %v215_v55 = vld [vmem:[%s9952_s4 + $0x18] sm:$0xff]  ;;  %v216_v56 = vld [vmem:[%s9952_s4 + $0x20] sm:$0xff] }
  0x1d   :  { %v455_v48 = vsel %vm445_vm10, 1, %v9972_v0  ;;  %vm810_vm13 = vmand %vm790_vm11, %vm800_vm12  ;;  %vm164_vm5 = vcmask 490496   ;;  %vm9968_vm6 = vcmask 64512   ;;  %vm655_vm7 = vcmp.ge.s32.totalorder %v645_v8, 0  ;;  %v217_v57 = vld [vmem:[%s9952_s4 + $0x28] sm:$0xff] }
  0x1e   :  { %701 = vperm.xlu0 %6241, %v686_v23   ;;  %v820_v49 = vsel %vm810_vm13, 1, %v9972_v0  ;;  %vm665_vm8 = vcmp.lt.s32.totalorder %v645_v8, 40  ;;  %vm522_vm10 = vcmp.ge.s32.totalorder %v512_v9, 0  ;;  %vm532_vm11 = vcmp.lt.s32.totalorder %v512_v9, 40  ;;  %v6823_v23 = vld [vmem:[%s10098_s29 + $0x48] sm:$0xff] }
  0x1f   :  { %vm675_vm12 = vmand %vm655_vm7, %vm665_vm8  ;;  %v514_v12 = vadd.s32 4294967295, %v6795_v7  ;;  %v649_v15 = vadd.s32 1, %v6805_v13  ;;  %v516_v17 = vadd.s32 4294967295, %v6805_v13  ;;  %v651_v20 = vadd.s32 1, %v6814_v18 }
  0x20   :  { %v685_v11 = vsel %vm675_vm12, 1, %v9972_v0  ;;  %vm542_vm13 = vmand %vm522_vm10, %vm532_vm11  ;;  %v518_v22 = vadd.s32 4294967295, %v6814_v18 }
  0x21   :  { %v552_v14 = vsel %vm542_vm13, 1, %v9972_v0  ;;  %vm659_vm8 = vcmp.ge.s32.totalorder %v649_v15, 0  ;;  %vm669_vm10 = vcmp.lt.s32.totalorder %v649_v15, 40  ;;  %vm526_vm12 = vcmp.ge.s32.totalorder %v516_v17, 0 }
  0x22   :  { %568 = vperm.xlu0 %6241, %v553_v26   ;;  %vm679_vm11 = vmand %vm659_vm8, %vm669_vm10  ;;  %vm536_vm13 = vcmp.lt.s32.totalorder %v516_v17, 40  ;;  %v653_v26 = vadd.s32 1, %v6823_v23  ;;  %v6496_v17 = vld [vmem:[%s9954_s7 + $0x40] sm:$0xff]  }
  0x23   :  { %v689_v21 = vsel %vm679_vm11, 1, %v9972_v0  ;;  %5753 = vmatprep.subr.bf16.mxu1 %v6496_v17 }
  0x24   :  { %vm663_vm10 = vcmp.ge.s32.totalorder %v653_v26, 0  ;;  %vm673_vm11 = vcmp.lt.s32.totalorder %v653_v26, 40  ;;  %v6500_v26 = vld [vmem:[%s9954_s7 + $0x50] sm:$0xff]  }
  0x26   :  { %707 = vperm.xlu0 %6241, %v688_v28   ;;  %v520_v28 = vadd.s32 4294967295, %v6823_v23 }
  0x28   :  { %vm540_vm0 = vcmp.lt.s32.totalorder %v520_v28, 40 }
  0x2a   :  { %574 = vperm.xlu0 %6241, %v555_v31   ;;  %v412_v31 = vadd.s32 4294967294, %v6790_v6 }
  0x2e   :  { %713 = vperm.xlu0 %6241, %v690_v33   ;;  %v777_v33 = vadd.s32 2, %v6790_v6 }
  0x32   :  { %580 = vperm.xlu0 %6241, %v557_v35   ;;  %v414_v35 = vadd.s32 4294967294, %v6795_v7 }
  0x36   :  { %719 = vperm.xlu0 %6241, %v692_v37   ;;  %v779_v37 = vadd.s32 2, %v6795_v7 }
  0x3a   :  { %586 = vperm.xlu0 %6241, %v559_v39   ;;  %v416_v39 = vadd.s32 4294967294, %v6805_v13 }
  0x3e   :  { %462 = vperm.xlu0 %6241, %v451_v41   ;;  %v781_v41 = vadd.s32 2, %v6805_v13 }
  0x42   :  { %827 = vperm.xlu0 %6241, %v816_v43  }
  0x46   :  { %468 = vperm.xlu0 %6241, %v453_v45   ;;  %v5542_v45 = vld [vmem:[%s9953_s6] ss:$0 sm:$0xff] }
  0x4a   :  { %833 = vperm.xlu0 %6241, %v818_v47  }
  0x4e   :  { %474 = vperm.xlu0 %6241, %v455_v48  }
  0x52   :  { %839 = vperm.xlu0 %6241, %v820_v49  }
  0x7a   :  { %v115_v62 = vpop.permute.xlu1 %114 }
  0x8d   :  { %v100_v59 = vpop.permute.xlu0 %99 }
  0x8e   :  { %vm101_vm1 = vcmp.eq.s32.totalorder %v100_v59, 1  ;;  %v219_v59 = vld [vmem:[%s9952_s4 + $0x38] sm:$0xff] }
  0x8f   :  { %v109_v60 = vsel %vm101_vm1, %v107_v58, 0.0  ;;  %v218_v58 = vld [vmem:[%s9952_s4 + $0x30] sm:$0xff] }
  0x90   :  { %118 = vrot.lane.b32.xlu1 %v109_v60, %s6584_s19  ;;  %v220_v60 = vld [vmem:[%s9952_s4 + $0x40] sm:$0xff] }
  0x91   :  { %v90_v61 = vpop.permute.xlu0 %89 }
  0x92   :  { %vm91_vm2 = vcmp.eq.s32.totalorder %v90_v61, 1  ;;  %v221_v61 = vld [vmem:[%s9952_s4 + $0x48] sm:$0xff]  ;;  %s6592_s4 = smov 8  }
  0x93   :  { %v92_v63 = vsel %vm91_vm2, %v6701_v10, 0.0  ;;  %v647_v10 = vadd.s32 1, %v6795_v7 }
  0x94   :  { %v122_v1 = vsel %vm121_vm3, %v92_v63, %v115_v62  ;;  %698 = vperm.xlu1 %6242, %v685_v11   ;;  %v6492_v62 = vld [vmem:[%s9954_s7 + $0x80] sm:$0xff]   ;;  %v6493_v63 = vld [vmem:[%s9954_s7 + $0x88] sm:$0xff]  }
  0x95   :  { %vm657_vm1 = vcmp.ge.s32.totalorder %v647_v10, 0  ;;  %vm667_vm2 = vcmp.lt.s32.totalorder %v647_v10, 40 }
  0x96   :  { %vm677_vm3 = vmand %vm657_vm1, %vm667_vm2  ;;  %vm661_vm2 = vcmp.ge.s32.totalorder %v651_v20, 0 }
  0x97   :  { %v687_v16 = vsel %vm677_vm3, 1, %v9972_v0  ;;  %vm546_vm1 = vmand %vm526_vm12, %vm536_vm13  ;;  %vm671_vm3 = vcmp.lt.s32.totalorder %v651_v20, 40  ;;  %vm530_vm13 = vcmp.ge.s32.totalorder %v520_v28, 0  ;;  %v6498_v20 = vld [vmem:[%s9954_s7 + $0x48] sm:$0xff]  }
  0x98   :  { %565 = vperm.xlu1 %6242, %v552_v14   ;;  %v556_v24 = vsel %vm546_vm1, 1, %v9972_v0  ;;  %vm683_vm12 = vmand %vm663_vm10, %vm673_vm11  ;;  %vm424_vm10 = vcmp.ge.s32.totalorder %v414_v35, 0  ;;  %vm434_vm11 = vcmp.lt.s32.totalorder %v414_v35, 40 }
  0x99   :  { %v693_v32 = vsel %vm683_vm12, 1, %v9972_v0  ;;  %vm550_vm1 = vmand %vm530_vm13, %vm540_vm0  ;;  %vm789_vm12 = vcmp.ge.s32.totalorder %v779_v37, 0  ;;  %vm799_vm13 = vcmp.lt.s32.totalorder %v779_v37, 40  ;;  %v6506_v37 = vld [vmem:[%s9954_s7 + $0x68] sm:$0xff]  }
  0x9a   :  { %v560_v34 = vsel %vm550_vm1, 1, %v9972_v0  ;;  %vm444_vm0 = vmand %vm424_vm10, %vm434_vm11  ;;  %vm9989_vm10 = vcmask 1041408  }
  0x9b   :  { %v454_v40 = vsel %vm444_vm0, 1, %v9972_v0  ;;  %vm809_vm1 = vmand %vm789_vm12, %vm799_vm13  ;;  %vm10010_vm13 = vcmask 1043456  }
  0x9c   :  { %704 = vperm.xlu1 %6242, %v687_v16   ;;  %v819_v42 = vsel %vm809_vm1, 1, %v9972_v0 }
 0x102   :  { %v119_v2 = vpop.permute.xlu1 %118 }
 0x103   :  { %v124_v3 = vsel %vm123_vm4, %v122_v1, %v119_v2  ;;  %vm524_vm4 = vcmp.ge.s32.totalorder %v514_v12, 0  ;;  %v6494_v1 = vld [vmem:[%s9954_s7 + $0x90] sm:$0xff]   ;;  %v6495_v2 = vld [vmem:[%s9954_s7 + $0x98] sm:$0xff]  }
 0x104   :  { %v125_v4 = vpack.c.bf16 %v124_v3, %v124_v3  ;;  %v6901_v3 = vpop.permute.xlu0 %695 }
 0x105   :  { %10099 = vst [vmem:[#allocation2_spill] sm:$0xff] %v6901_v3  ;;  %vm9983_vm1 = vcmp.eq.s32.totalorder %v6901_v3, 1 }
 0x106   :  { %5954 = vmatmul.mubr.msk.bf16.vlgmr.msra.gmra.mrb[0].mxu0 %vm164_vm5, %v125_v4  ;;  %vm534_vm5 = vcmp.lt.s32.totalorder %v514_v12, 40 }
 0x107   :  { %5959 = vmatprep.mubr.msk.f32.mxu0 %vm9968_vm6, %v212_v5  ;;  %vm544_vm7 = vmand %vm524_vm4, %vm534_vm5  ;;  %vm528_vm5 = vcmp.ge.s32.totalorder %v518_v22, 0 }
 0x108   :  { %v554_v19 = vsel %vm544_vm7, 1, %v9972_v0  ;;  %vm681_vm4 = vmand %vm661_vm2, %vm671_vm3  ;;  %vm538_vm7 = vcmp.lt.s32.totalorder %v518_v22, 40  ;;  %vm422_vm2 = vcmp.ge.s32.totalorder %v412_v31, 0  ;;  %vm432_vm3 = vcmp.lt.s32.totalorder %v412_v31, 40  ;;  %v6903_v4 = vpop.permute.xlu0 %562 }
 0x109   :  { %571 = vperm.xlu1 %6242, %v554_v19   ;;  %v691_v27 = vsel %vm681_vm4, 1, %v9972_v0  ;;  %vm548_vm8 = vmand %vm528_vm5, %vm538_vm7  ;;  %vm787_vm5 = vcmp.ge.s32.totalorder %v777_v33, 0  ;;  %vm797_vm7 = vcmp.lt.s32.totalorder %v777_v33, 40  ;;  %v6497_v19 = vld [vmem:[%s9954_s7] sm:$0xff]  }
 0x10a   :  { %v558_v29 = vsel %vm548_vm8, 1, %v9972_v0  ;;  %vm442_vm4 = vmand %vm422_vm2, %vm432_vm3  ;;  %vm426_vm2 = vcmp.ge.s32.totalorder %v416_v39, 0  ;;  %vm436_vm3 = vcmp.lt.s32.totalorder %v416_v39, 40  ;;  %5754 = vmatpush3.bf16.msra.mxu1 %v6497_v19  ;;  %v6504_v33 = vld [vmem:[%s9954_s7 + $0x60] sm:$0xff]  }
 0x10b   :  { %v452_v36 = vsel %vm442_vm4, 1, %v9972_v0  ;;  %vm807_vm8 = vmand %vm787_vm5, %vm797_vm7  ;;  %vm791_vm5 = vcmp.ge.s32.totalorder %v781_v41, 0  ;;  %vm801_vm7 = vcmp.lt.s32.totalorder %v781_v41, 40  ;;  %5755 = vmatprep.subr.bf16.mxu1 %v6498_v20 }
 0x10c   :  { %v817_v38 = vsel %vm807_vm8, 1, %v9972_v0  ;;  %vm446_vm4 = vmand %vm426_vm2, %vm436_vm3  ;;  %v6907_v8 = vpop.permute.xlu0 %701  ;;  %vm9984_vm2 = vcmp.eq.s32.totalorder %v6903_v4, 1 }
 0x10d   :  { %710 = vperm.xlu1 %6242, %v689_v21   ;;  %v456_v43 = vsel %vm446_vm4, 1, %v9972_v0  ;;  %vm811_vm8 = vmand %vm791_vm5, %vm801_vm7  ;;  %10101 = vst [vmem:[#allocation4_spill] sm:$0xff] %v6907_v8  ;;  %vm9980_vm4 = vcmask 1044480  }
 0x10e   :  { %v821_v44 = vsel %vm811_vm8, 1, %v9972_v0  ;;  %vm10011_vm8 = vcmask 523264  }
 0x110   :  { %v6911_v10 = vpop.permute.xlu0 %568 }
 0x111   :  { %577 = vperm.xlu1 %6242, %v556_v24   ;;  %v6499_v24 = vld [vmem:[%s9954_s7 + $0x8] sm:$0xff]  }
 0x112   :  { %5756 = vmatpush3.bf16.msra.mxu1 %v6499_v24 }
 0x113   :  { %v6905_v5 = vpop.permute.xlu1 %698  ;;  %5757 = vmatprep.subr.bf16.mxu1 %v6500_v26 }
 0x114   :  { %10100 = vst [vmem:[#allocation3_spill] sm:$0xff] %v6905_v5  ;;  %v6915_v12 = vpop.permute.xlu0 %707  ;;  %vm9982_vm7 = vcmp.eq.s32.totalorder %v6905_v5, 1 }
 0x115   :  { %716 = vperm.xlu1 %6242, %v691_v27   ;;  %10104 = vst [vmem:[#allocation7_spill] sm:$0xff] %v6915_v12  ;;  %v6501_v27 = vld [vmem:[%s9954_s7 + $0x10] sm:$0xff]  }
 0x116   :  { %5758 = vmatpush3.bf16.msra.mxu1 %v6501_v27 }
 0x117   :  { %v6909_v9 = vpop.permute.xlu1 %565 }
 0x118   :  { %10102 = vst [vmem:[#allocation5_spill] sm:$0xff] %v6909_v9  ;;  %v6919_v15 = vpop.permute.xlu0 %574 }
 0x119   :  { %583 = vperm.xlu1 %6242, %v558_v29   ;;  %10106 = vst [vmem:[#allocation9_spill] sm:$0xff] %v6919_v15  ;;  %v6502_v29 = vld [vmem:[%s9954_s7 + $0x58] sm:$0xff]  }
 0x11a   :  { %5759 = vmatprep.subr.bf16.mxu1 %v6502_v29 }
 0x11b   :  { %v6913_v11 = vpop.permute.xlu1 %704 }
 0x11c   :  { %10103 = vst [vmem:[#allocation6_spill] sm:$0xff] %v6913_v11  ;;  %v6932_v21 = vpop.permute.xlu0 %713 }
 0x11d   :  { %722 = vperm.xlu1 %6242, %v693_v32   ;;  %10108 = vst [vmem:[#allocation11_spill] sm:$0xff] %v6932_v21  ;;  %v6503_v32 = vld [vmem:[%s9954_s7 + $0x18] sm:$0xff]  }
 0x11e   :  { %5760 = vmatpush3.bf16.msra.mxu1 %v6503_v32  ;;  %v6510_v32 = vld [vmem:[%s9954_s7 + $0x78] sm:$0xff]  }
 0x11f   :  { %5761 = vmatprep.subr.bf16.mxu1 %v6504_v33  ;;  %v6511_v33 = vld [vmem:[%s9954_s7 + $0x38] sm:$0xff]  }
 0x120   :  { %v6945_v28 = vpop.permute.xlu0 %580 }
 0x121   :  { %589 = vperm.xlu1 %6242, %v560_v34   ;;  %10110 = vst [vmem:[#allocation13_spill] sm:$0xff] %v6945_v28 }
 0x124   :  { %v6958_v34 = vpop.permute.xlu0 %719 }
 0x125   :  { %465 = vperm.xlu1 %6242, %v452_v36   ;;  %10112 = vst [vmem:[#allocation15_spill] sm:$0xff] %v6958_v34  ;;  %v6505_v36 = vld [vmem:[%s9954_s7 + $0x20] sm:$0xff]  }
 0x126   :  { %5762 = vmatpush3.bf16.msra.mxu1 %v6505_v36 }
 0x127   :  { %5763 = vmatprep.subr.bf16.mxu1 %v6506_v37 }
 0x128   :  { %v6971_v39 = vpop.permute.xlu0 %586 }
 0x129   :  { %830 = vperm.xlu1 %6242, %v817_v38   ;;  %v6507_v38 = vld [vmem:[%s9954_s7 + $0x28] sm:$0xff]   ;;  %10114 = vst [vmem:[#allocation17_spill] sm:$0xff] %v6971_v39 }
 0x12a   :  { %5764 = vmatpush3.bf16.msra.mxu1 %v6507_v38 }
 0x12d   :  { %471 = vperm.xlu1 %6242, %v454_v40   ;;  %v6508_v40 = vld [vmem:[%s9954_s7 + $0x70] sm:$0xff]  }
 0x12e   :  { %5765 = vmatprep.subr.bf16.mxu1 %v6508_v40 }
 0x131   :  { %836 = vperm.xlu1 %6242, %v819_v42   ;;  %v6509_v42 = vld [vmem:[%s9954_s7 + $0x30] sm:$0xff]   ;;  %s6585_s7 = smov 64  }
 0x132   :  { %5766 = vmatpush3.bf16.msra.mxu1 %v6509_v42 }
 0x133   :  { %5767 = vmatprep.subr.bf16.mxu1 %v6510_v32 }
 0x135   :  { %477 = vperm.xlu1 %6242, %v456_v43   ;;  %v6981_v43 = vpop.permute.xlu0 %462 }
 0x136   :  { %5768 = vmatpush3.bf16.msra.mxu1 %v6511_v33 }
 0x137   :  { %2333 = vmatprep.subr.bf16.mxu1 %v9972_v0 }
 0x139   :  { %842 = vperm.xlu1 %6242, %v821_v44  }
 0x188   :  { %v6917_v14 = vpop.permute.xlu1 %571 }
 0x189   :  { %10105 = vst [vmem:[#allocation8_spill] sm:$0xff] %v6917_v14 }
 0x18c   :  { %v6921_v16 = vpop.permute.xlu1 %710 }
 0x18d   :  { %10107 = vst [vmem:[#allocation10_spill] sm:$0xff] %v6921_v16 }
 0x190   :  { %v6934_v22 = vpop.permute.xlu1 %577 }
 0x191   :  { %10109 = vst [vmem:[#allocation12_spill] sm:$0xff] %v6934_v22 }
 0x194   :  { %v6950_v31 = vpop.permute.xlu1 %716 }
 0x195   :  { %10111 = vst [vmem:[#allocation14_spill] sm:$0xff] %v6950_v31 }
 0x198   :  { %v6960_v35 = vpop.permute.xlu1 %583 }
 0x199   :  { %10113 = vst [vmem:[#allocation16_spill] sm:$0xff] %v6960_v35 }
 0x19c   :  { %v6976_v41 = vpop.permute.xlu1 %722 }
 0x19d   :  { %10115 = vst [vmem:[#allocation18_spill] sm:$0xff] %v6976_v41 }
 0x1a0   :  { %v6983_v44 = vpop.permute.xlu1 %589 }
 0x1a1   :  { %10116 = vst [vmem:[#allocation19_spill] sm:$0xff] %v6983_v44 }
 0x1d9   :  { %v205_v46 = vpop.f32.mrb[0].mxu0 }
 0x1da   :  { %v206_v47 = vadd.f32 %v5542_v45, %v205_v46  ;;  %v5955_v48 = vpop.f32.mrb[1].mxu0  ;;  %v6985_v45 = vpop.permute.xlu0 %827 }
 0x1db   :  { %v208_v49 = vpop.f32.mrb[2].mxu0  ;;  %v6987_v46 = vpop.permute.xlu1 %465  ;;  %vm9979_vm3 = vcmp.eq.s32.totalorder %v6985_v45, 1 }
 0x1dc   :  { %v211_v51 = vmax.f32 %v206_v47, 0.0  ;;  %v5956_v52 = vpop.f32.mrb[3].mxu0  ;;  %v417_v49 = vadd.s32 4294967294, %v6730_v25 }
 0x1de   :  { %5957 = vmatprep.subr.mxu0 %v211_v51  ;;  %v6989_v47 = vpop.permute.xlu0 %468  ;;  %vm427_vm11 = vcmp.ge.s32.totalorder %v417_v49, 0  ;;  %vm437_vm0 = vcmp.lt.s32.totalorder %v417_v49, 40 }
 0x1df   :  { %5958 = vmatpush3.msra.mxu0 %v211_v51  ;;  %v6991_v48 = vpop.permute.xlu1 %830  ;;  %vm7014_vm5 = vmand %vm427_vm11, %vm437_vm0  ;;  %vm9985_vm0 = vcmp.eq.s32.totalorder %v6909_v9, 1 }
 0x1e0   :  { %5960 = vmatmul.mubr.msk.f32.vlgmr.msra.gmra.mrb[4].mxu0 %vm9968_vm6, %v213_v53  ;;  %5974 = vmatprep.subr.bf16.mxu0 %v9974_v50  ;;  %10117 = vst [vmem:[#allocation20_spill] sm:$0xff] %v6991_v48  ;;  %vm9976_vm12 = vcmp.eq.s32.totalorder %v6991_v48, 1  ;;  %v7045_v37 = vsel %vm7014_vm5, 1, %v9972_v0  ;;  %vm9998_vm5 = vcmp.eq.s32.totalorder %v6911_v10, 1 }
 0x1e1   :  { %5962 = vmatprep.mubr.msk.f32.mxu0 %vm9968_vm6, %v214_v54  ;;  %5975 = vmatpush3.bf16.msra.mxu0 %v6492_v62 }
 0x1e2   :  { %5976 = vmatprep.subr.bf16.mxu0 %v9974_v50  ;;  %v6994_v51 = vpop.permute.xlu0 %833 }
 0x1e3   :  { %v6996_v52 = vpop.permute.xlu1 %471  ;;  %vm9986_vm11 = vcmp.eq.s32.totalorder %v6994_v51, 1 }
 0x1e4   :  { %5963 = vmatmul.mubr.msk.f32.gmra.mrb[6].mxu0 %vm9968_vm6, %v215_v55 }
 0x1e5   :  { %5965 = vmatprep.mubr.msk.f32.mxu0 %vm9968_vm6, %v216_v56  ;;  %5977 = vmatpush3.bf16.msra.mxu0 %v6493_v63  ;;  %v6999_v56 = vadd.s32 4294967294, %v6814_v18 }
 0x1e6   :  { %5978 = vmatprep.subr.bf16.mxu0 %v9974_v50  ;;  %v7021_v63 = vpop.permute.xlu0 %474 }
 0x1e7   :  { %v7029_v24 = vpop.permute.xlu1 %836  ;;  %vm438_vm14 = vcmp.lt.s32.totalorder %v6999_v56, 40 }
 0x1e8   :  { %5966 = vmatmul.mubr.msk.f32.gmra.mrb[8].mxu0 %vm9968_vm6, %v217_v57 }
 0x1e9   :  { %5968 = vmatprep.mubr.msk.f32.mxu0 %vm9968_vm6, %v218_v58  ;;  %5979 = vmatpush3.bf16.msra.mxu0 %v6494_v1  ;;  %v7003_v58 = vadd.s32 2, %v6730_v25  ;;  %v7019_v25 = vadd.s32 2, %v6814_v18 }
 0x1ea   :  { %5980 = vmatprep.subr.bf16.mxu0 %v9974_v50 }
 0x1eb   :  { %v7073_v33 = vpop.permute.xlu1 %477 }
 0x1ec   :  { %5969 = vmatmul.mubr.msk.f32.gmra.mrb[10].mxu0 %vm9968_vm6, %v219_v59  ;;  %10120 = vst [vmem:[#allocation21_spill] sm:$0xff] %v7073_v33 }
 0x1ed   :  { %5971 = vmatprep.mubr.msk.f32.mxu0 %vm9968_vm6, %v220_v60  ;;  %5981 = vmatpush3.bf16.msra.mxu0 %v6495_v2 }
 0x1f0   :  { %5972 = vmatmul.mubr.msk.f32.gmra.mrb[12].mxu0 %vm9968_vm6, %v221_v61  ;;  %vm802_vm6 = vcmp.lt.s32.totalorder %v7003_v58, 40 }
 0x1f1   :  { %5982 = vmatprep.mubr.msk.bf16.mxu0 %vm9970_vm15, %v9974_v50  ;;  %vm803_vm15 = vcmp.lt.s32.totalorder %v7019_v25, 40 }
 0x2b3   :  { %v5961_v53 = vpop.f32.mrb[4].mxu0 }
 0x2b4   :  { %v380_v54 = vrot.slane %v5961_v53, 6  ;;  %v319_v55 = vpop.f32.mrb[5].mxu0 }
 0x2b5   :  { %v379_v57 = vrot.slane %v319_v55, 6 }
 0x2b7   :  { %v7009_v59 = vsel %vm9989_vm10, %v379_v57, %v380_v54  ;;  %v7012_v60 = vsel %vm9989_vm10, 0.0, %v379_v57  ;;  %v5964_v61 = vpop.f32.mrb[6].mxu0 }
 0x2b8   :  { %v603_v1 = vrot.slane %v7012_v60, 1  ;;  %v735_v2 = vrot.slane %v7012_v60, 3  ;;  %v867_v17 = vrot.slane %v7012_v60, 4  ;;  %v868_v19 = vrot.slane %v7009_v59, 4  ;;  %v329_v20 = vpop.f32.mrb[7].mxu0 }
 0x2b9   :  { %v384_v18 = vrot.slane %v5964_v61, 6  ;;  %v382_v26 = vrot.slane %v329_v20, 6  ;;  %v736_v27 = vrot.slane %v7009_v59, 3  ;;  %v604_v29 = vrot.slane %v7009_v59, 1 }
 0x2ba   :  { %v869_v36 = vsel %vm10010_vm13, %v867_v17, %v868_v19 }
 0x2bb   :  { %v7051_v38 = vsel %vm9989_vm10, %v380_v54, %v382_v26  ;;  %v7054_v40 = vsel %vm9989_vm10, %v382_v26, %v384_v18  ;;  %v5967_v42 = vpop.f32.mrb[8].mxu0  ;;  %v737_v49 = vsel %vm9980_vm4, %v735_v2, %v736_v27  ;;  %v605_v17 = vsel %vm10009_vm9, %v603_v1, %v604_v29  ;;  %v7065_v2 = vpop.permute.xlu0 %839 }
 0x2bc   :  { %v870_v53 = vrot.slane %v7051_v38, 4  ;;  %v872_v55 = vrot.slane %v7054_v40, 4  ;;  %v388_v57 = vrot.slane %v5967_v42, 6  ;;  %v339_v61 = vpop.f32.mrb[9].mxu0  ;;  %v9981_v62 = vrot.slane %v7051_v38, 3 }
 0x2bd   :  { %v386_v54 = vrot.slane %v339_v61, 6  ;;  %v7071_v42 = vadd.s32 4294967294, %v6739_v30  ;;  %v898_v30 = vsel %vm9979_vm3, %v869_v36, 0.0  ;;  %v10135_v3 = vrot.slane %v7051_v38, 3 }
 0x2be   :  { %v871_v20 = vsel %vm10010_vm13, %v868_v19, %v870_v53  ;;  %v873_v32 = vsel %vm10010_vm13, %v870_v53, %v872_v55  ;;  %v739_v19 = vsel %vm9980_vm4, %v736_v27, %v9981_v62  ;;  %vm9997_vm4 = vcmp.eq.s32.totalorder %v6917_v14, 1 }
 0x2bf   :  { %v899_v1 = vsel %vm9976_vm12, %v871_v20, 0.0  ;;  %v7078_v61 = vsel %vm9989_vm10, %v384_v18, %v386_v54  ;;  %v7081_v0 = vsel %vm9989_vm10, %v386_v54, %v388_v57  ;;  %v5970_v50 = vpop.f32.mrb[10].mxu0  ;;  %v766_v18 = vsel %vm9983_vm1, %v737_v49, 0.0 }
 0x2c0   :  { %v874_v53 = vrot.slane %v7078_v61, 4  ;;  %v349_v26 = vpop.f32.mrb[11].mxu0  ;;  %v634_v54 = vsel %vm9984_vm2, %v605_v17, 0.0  ;;  %vm9994_vm12 = vcmp.eq.s32.totalorder %v6913_v11, 1  ;;  %v392_v20 = vrot.slane %v5970_v50, 6 }
 0x2c1   :  { %v390_v48 = vrot.slane %v349_v26, 6  ;;  %v1042_v33 = vpack.c.bf16 %v899_v1, %v898_v30  ;;  %v767_v27 = vsel %vm9982_vm7, %v739_v19, 0.0  ;;  %v876_v36 = vrot.slane %v7081_v0, 4 }
 0x2c2   :  { %v6243_v49 = vpack.i.bf16 %v767_v27, %v766_v18  ;;  %v10121_v62 = vrot.slane %v7051_v38, 1  ;;  %v875_v50 = vsel %vm10010_vm13, %v872_v55, %v874_v53  ;;  %vm10122_vm7 = vcmp.ge.s32.totalorder %v6999_v56, 0 }
 0x2c3   :  { %v7106_v26 = vsel %vm9989_vm10, %v388_v57, %v390_v48  ;;  %v7109_v1 = vsel %vm9989_vm10, %v390_v48, %v392_v20  ;;  %5983 = vmatmul.mubr.msk.bf16.vlgmr.msra.gmra.mrb[16].mxu0 %vm10011_vm8, %v1042_v33  ;;  %v7114_v30 = vpop.f32.mrb[12].mxu0  ;;  %vm7120_vm1 = vmand %vm10122_vm7, %vm438_vm14  ;;  %vm10125_vm2 = vcmp.eq.s32.totalorder %v7029_v24, 1  ;;  %v10126_v33 = vmov 0.0  }
 0x2c4   :  { %v607_v17 = vsel %vm10009_vm9, %v604_v29, %v10121_v62  ;;  %v901_v55 = vsel %vm10125_vm2, %v875_v50, 0.0  ;;  %6244 = vrot.lane.b32.xlu0 %v6243_v49, %s6585_s7  ;;  %v359_v62 = vpop.f32.mrb[13].mxu0  ;;  %v900_v56 = vsel %vm9986_vm11, %v873_v32, 0.0  ;;  %vm10128_vm14 = vcmp.ge.s32.totalorder %v7003_v58, 0  ;;  %v7143_v49 = vpop.permute.xlu1 %842 }
 0x2c5   :  { %v635_v19 = vsel %vm9985_vm0, %v607_v17, 0.0  ;;  %vm10127_vm0 = vmmov 0   ;;  %vm7136_vm7 = vmand %vm10128_vm14, %vm802_vm6  ;;  %v7141_v27 = vadd.s32 4294967294, %v6823_v23  ;;  %v394_v17 = vrot.slane %v359_v62, 6 }
 0x2c6   :  { %v6248_v57 = vpack.i.bf16 %v635_v19, %v634_v54  ;;  %5986 = vmatprep.mubr.msk.bf16.mxu0 %vm10127_vm0, %v10126_v33  ;;  %v9990_v54 = vrot.slane %v7114_v30, 6  ;;  %v1045_v50 = vpack.c.bf16 %v901_v55, %v900_v56  ;;  %v740_v19 = vrot.slane %v7054_v40, 3 }
 0x2c7   :  { %vm10131_vm2 = vcmp.ge.s32.totalorder %v7019_v25, 0  ;;  %vm9995_vm6 = vcmp.eq.s32.totalorder %v6915_v12, 1  ;;  %v742_v32 = vrot.slane %v7078_v61, 3  ;;  %v608_v55 = vrot.slane %v7054_v40, 1 }
 0x2c8   :  { %vm7151_vm11 = vmand %vm10131_vm2, %vm803_vm15  ;;  %6249 = vrot.lane.b32.xlu1 %v6248_v57, %s6585_s7  ;;  %v610_v62 = vrot.slane %v7078_v61, 1  ;;  %v877_v56 = vsel %vm10010_vm13, %v874_v53, %v876_v36  ;;  %v7165_v25 = vsel %vm9989_vm10, %v392_v20, %v394_v17  ;;  %v7170_v48 = vsel %vm9989_vm10, %v394_v17, %v9990_v54  ;;  %480 = vperm.xlu0 %6241, %v7045_v37  }
 0x2c9   :  { %v10134_v57 = vmov 0   ;;  %vm10136_vm2 = vcmask 1044480   ;;  %vm9999_vm3 = vcmp.eq.s32.totalorder %v7143_v49, 1  ;;  %vm429_vm10 = vcmp.ge.s32.totalorder %v7071_v42, 0 }
 0x2ca   :  { %v458_v5 = vsel %vm7120_vm1, 1, %v10134_v57  ;;  %v741_v53 = vsel %vm10136_vm2, %v10135_v3, %v740_v19  ;;  %v822_v20 = vsel %vm7136_vm7, 1, %v10134_v57  ;;  %v823_v17 = vsel %vm7151_vm11, 1, %v10134_v57  ;;  %vm10137_vm15 = vmmov %vm10136_vm2 }
 0x2cb   :  { %v743_v29 = vsel %vm10137_vm15, %v740_v19, %v742_v32  ;;  %vm10138_vm1 = vcmp.eq.s32.totalorder %v6907_v8, 1  ;;  %vm439_vm2 = vcmp.lt.s32.totalorder %v7071_v42, 40  ;;  %vm430_vm14 = vcmp.ge.s32.totalorder %v7141_v27, 0  ;;  %5987 = vmatmul.mubr.msk.bf16.gmra.mrb[20].mxu0 %vm10011_vm8, %v1045_v50 }
 0x2cc   :  { %v768_v54 = vsel %vm10138_vm1, %v741_v53, 0.0  ;;  %483 = vperm.xlu1 %6242, %v458_v5   ;;  %v769_v3 = vsel %vm9994_vm12, %v743_v29, 0.0  ;;  %v10139_v37 = vrot.slane %v7051_v38, 1  ;;  %v611_v58 = vsel %vm10009_vm9, %v608_v55, %v610_v62  ;;  %5990 = vmatprep.mubr.msk.bf16.mxu0 %vm10127_vm0, %v10126_v33  ;;  %vm10142_vm1 = vmmov %vm10137_vm15 }
 0x2cd   :  { %v10140_v9 = vrot.slane %v7106_v26, 4  ;;  %v6253_v53 = vpack.i.bf16 %v769_v3, %v768_v54  ;;  %v637_v5 = vsel %vm9997_vm4, %v611_v58, 0.0  ;;  %vm10141_vm11 = vcmp.eq.s32.totalorder %v7065_v2, 1 }
 0x2ce   :  { %v609_v18 = vsel %vm10009_vm9, %v10139_v37, %v608_v55  ;;  %v902_v29 = vsel %vm10141_vm11, %v877_v56, 0.0  ;;  %v612_v50 = vrot.slane %v7081_v0, 1  ;;  %v614_v3 = vrot.slane %v7106_v26, 1 }
 0x2cf   :  { %v879_v19 = vsel %vm10010_vm13, %v876_v36, %v10140_v9  ;;  %v636_v8 = vsel %vm9998_vm5, %v609_v18, 0.0  ;;  %v744_v9 = vrot.slane %v7081_v0, 3  ;;  %v746_v36 = vrot.slane %v7106_v26, 3  ;;  %6254 = vrot.lane.b32.xlu0 %v6253_v53, %s6585_s7 }
 0x2d0   :  { %v6258_v11 = vpack.i.bf16 %v637_v5, %v636_v8  ;;  %v903_v55 = vsel %vm9999_vm3, %v879_v19, 0.0  ;;  %vm440_vm7 = vcmp.lt.s32.totalorder %v7141_v27, 40  ;;  %v948_v37 = vrot.slane %v7012_v60, 2 }
 0x2d1   :  { %v1048_v54 = vpack.c.bf16 %v903_v55, %v902_v29  ;;  %v745_v8 = vsel %vm10137_vm15, %v742_v32, %v744_v9  ;;  %v747_v56 = vsel %vm10142_vm1, %v744_v9, %v746_v36  ;;  %v949_v18 = vrot.slane %v7009_v59, 2  ;;  %vm7237_vm1 = vmand %vm429_vm10, %vm439_vm2 }
 0x2d2   :  { %6259 = vrot.lane.b32.xlu1 %v6258_v11, %s6585_s7  ;;  %v770_v58 = vsel %vm9995_vm6, %v745_v8, 0.0  ;;  %vm10143_vm11 = vcmp.eq.s32.totalorder %v6921_v16, 1  ;;  %v613_v53 = vsel %vm10009_vm9, %v610_v62, %v612_v50  ;;  %v615_v5 = vsel %vm10009_vm9, %v612_v50, %v614_v3  ;;  %v7256_v50 = vld [vmem:[%s10098_s29 + $0x40] sm:$0xff] }
 0x2d3   :  { %v771_v19 = vsel %vm10143_vm11, %v747_v56, 0.0  ;;  %vm10144_vm12 = vcmp.eq.s32.totalorder %v6919_v15, 1  ;;  %vm10145_vm15 = vcmp.eq.s32.totalorder %v6934_v22, 1  ;;  %845 = vperm.xlu0 %6241, %v822_v20   ;;  %v750_v62 = vrot.slane %v7165_v25, 3  ;;  %5991 = vmatmul.mubr.msk.bf16.gmra.mrb[24].mxu0 %vm10011_vm8, %v1048_v54 }
 0x2d4   :  { %v6263_v29 = vpack.i.bf16 %v771_v19, %v770_v58  ;;  %v638_v11 = vsel %vm10144_vm12, %v613_v53, 0.0  ;;  %v639_v32 = vsel %vm10145_vm15, %v615_v5, 0.0  ;;  %vm10002_vm11 = vcmp.eq.s32.totalorder %v6932_v21, 1  ;;  %vm7248_vm12 = vmand %vm430_vm14, %vm440_vm7  ;;  %5994 = vmatprep.mubr.msk.bf16.mxu0 %vm10127_vm0, %v10126_v33 }
 0x2d5   :  { %v6268_v55 = vpack.i.bf16 %v639_v32, %v638_v11  ;;  %vm10001_vm6 = vcmp.eq.s32.totalorder %v6950_v31, 1  ;;  %v618_v42 = vrot.slane %v7165_v25, 1  ;;  %v784_v8 = vadd.s32 2, %v7256_v50 }
 0x2d6   :  { %848 = vperm.xlu1 %6242, %v823_v17   ;;  %v748_v17 = vrot.slane %v7109_v1, 3  ;;  %v785_v56 = vadd.s32 2, %v6823_v23  ;;  %vm10150_vm10 = vcmask 1045504   ;;  %v951_v58 = vrot.slane %v7051_v38, 2 }
 0x2d7   :  { %v7263_v27 = vsel %vm10150_vm10, %v948_v37, %v949_v18  ;;  %vm10004_vm14 = vcmp.eq.s32.totalorder %v6960_v35, 1  ;;  %v953_v19 = vrot.slane %v7054_v40, 2  ;;  %v955_v53 = vrot.slane %v7078_v61, 2  ;;  %6264 = vrot.lane.b32.xlu0 %v6263_v29, %s6585_s7 }
 0x2d8   :  { %v616_v5 = vrot.slane %v7109_v1, 1  ;;  %v459_v23 = vsel %vm7237_vm1, 1, %v10134_v57  ;;  %v460_v37 = vsel %vm7248_vm12, 1, %v10134_v57  ;;  %vm10151_vm2 = vcmask 1044480  }
 0x2d9   :  { %v751_v11 = vsel %vm10151_vm2, %v748_v17, %v750_v62  ;;  %v10152_v32 = vrot.slane %v7114_v30, 6  ;;  %vm10153_vm7 = vcmask 1041408   ;;  %vm794_vm15 = vcmp.ge.s32.totalorder %v784_v8, 0  ;;  %vm10154_vm4 = vmmov %vm10151_vm2 }
 0x2da   :  { %6269 = vrot.lane.b32.xlu1 %v6268_v55, %s6585_s7  ;;  %v619_v54 = vsel %vm10009_vm9, %v616_v5, %v618_v42  ;;  %vm804_vm10 = vcmp.lt.s32.totalorder %v784_v8, 40  ;;  %v749_v29 = vsel %vm10154_vm4, %v746_v36, %v748_v17  ;;  %vm795_vm1 = vcmp.ge.s32.totalorder %v785_v56, 0 }
 0x2db   :  { %v7284_v16 = vsel %vm10153_vm7, %v10152_v32, 0.0  ;;  %vm805_vm5 = vcmp.lt.s32.totalorder %v785_v56, 40  ;;  %vm10155_vm3 = vcmask 1045504   ;;  %v773_v20 = vsel %vm10001_vm6, %v751_v11, 0.0  ;;  %486 = vperm.xlu0 %6241, %v459_v23   ;;  %vm814_vm7 = vmand %vm794_vm15, %vm804_vm10 }
 0x2dc   :  { %v7290_v9 = vsel %vm10155_vm3, %v949_v18, %v951_v58  ;;  %v617_v30 = vsel %vm10009_vm9, %v614_v3, %v616_v5  ;;  %vm10156_vm12 = vmmov %vm10155_vm3  ;;  %v754_v12 = vrot.slane %v7284_v16, 3  ;;  %v641_v36 = vsel %vm10004_vm14, %v619_v54, 0.0 }
 0x2dd   :  { %v7296_v32 = vsel %vm10156_vm12, %v951_v58, %v953_v19  ;;  %vm10157_vm2 = vmmov %vm10155_vm3  ;;  %v752_v18 = vrot.slane %v7170_v48, 3  ;;  %v10158_v17 = vrot.slane %v7081_v0, 2  ;;  %vm10008_vm4 = vcmp.eq.s32.totalorder %v6945_v28, 1 }
 0x2de   :  { %v7299_v55 = vsel %vm10157_vm2, %v953_v19, %v955_v53  ;;  %vm10159_vm3 = vmmov %vm10157_vm2  ;;  %v622_v3 = vrot.slane %v7284_v16, 1  ;;  %489 = vperm.xlu1 %6242, %v460_v37   ;;  %v772_v58 = vsel %vm10002_vm11, %v749_v29, 0.0  ;;  %v620_v19 = vrot.slane %v7170_v48, 1 }
 0x2df   :  { %v7308_v11 = vsel %vm10159_vm3, %v955_v53, %v10158_v17  ;;  %v6273_v5 = vpack.i.bf16 %v773_v20, %v772_v58  ;;  %v640_v54 = vsel %vm10008_vm4, %v617_v30, 0.0  ;;  %v6564_v53 = vld [vmem:[%s10098_s29] sm:$0xff]  ;;  %vm815_vm12 = vmand %vm795_vm1, %vm805_vm5  ;;  %v1437_v37 = vadd.s32 4294967293, %v6790_v6 }
 0x2e0   :  { %v1436_v23 = vadd.s32 4294967293, %v6564_v53  ;;  %v6278_v17 = vpack.i.bf16 %v641_v36, %v640_v54  ;;  %vm10003_vm2 = vcmp.eq.s32.totalorder %v6958_v34, 1  ;;  %vm10006_vm3 = vcmp.eq.s32.totalorder %v6971_v39, 1  ;;  %v6565_v54 = vld [vmem:[%s10098_s29 + $0x10] sm:$0xff] }
 0x2e1   :  { %6274 = vrot.lane.b32.xlu0 %v6273_v5, %s6585_s7  ;;  %vm10160_vm6 = vcmask 1044480   ;;  %vm10005_vm10 = vcmp.eq.s32.totalorder %v6976_v41, 1  ;;  %v824_v20 = vsel %vm814_vm7, 1, %v10134_v57  ;;  %v621_v56 = vsel %vm10009_vm9, %v618_v42, %v620_v19 }
 0x2e2   :  { %v753_v8 = vsel %vm10160_vm6, %v750_v62, %v752_v18  ;;  %vm10161_vm15 = vmmov %vm10160_vm6  ;;  %6279 = vrot.lane.b32.xlu1 %v6278_v17, %s6585_s7  ;;  %v623_v30 = vsel %vm10009_vm9, %v620_v19, %v622_v3  ;;  %vm10007_vm5 = vcmp.eq.s32.totalorder %v6983_v44, 1  ;;  %v825_v36 = vsel %vm815_vm12, 1, %v10134_v57 }
 0x2e3   :  { %v755_v29 = vsel %vm10161_vm15, %v752_v18, %v754_v12  ;;  %vm1446_vm1 = vcmp.ge.s32.totalorder %v1436_v23, 0  ;;  %vm1456_vm11 = vcmp.lt.s32.totalorder %v1436_v23, 40  ;;  %v774_v62 = vsel %vm10003_vm2, %v753_v8, 0.0 }
 0x2e4   :  { %v775_v12 = vsel %vm10005_vm10, %v755_v29, 0.0  ;;  %vm1447_vm6 = vcmp.ge.s32.totalorder %v1437_v37, 0  ;;  %v1702_v18 = vadd.s32 3, %v6564_v53  ;;  %v642_v42 = vsel %vm10006_vm3, %v621_v56, 0.0  ;;  %vm1466_vm12 = vmand %vm1446_vm1, %vm1456_vm11 }
 0x2e5   :  { %851 = vperm.xlu0 %6241, %v824_v20   ;;  %v643_v3 = vsel %vm10007_vm5, %v623_v30, 0.0  ;;  %vm1457_vm7 = vcmp.lt.s32.totalorder %v1437_v37, 40  ;;  %v1703_v58 = vadd.s32 3, %v6790_v6  ;;  %v6283_v19 = vpack.i.bf16 %v775_v12, %v774_v62  ;;  %v6566_v30 = vld [vmem:[%s10098_s29 + $0x20] sm:$0xff] }
 0x2e6   :  { %854 = vperm.xlu1 %6242, %v825_v36   ;;  %v6288_v5 = vpack.i.bf16 %v643_v3, %v642_v42  ;;  %vm1467_vm15 = vmand %vm1447_vm6, %vm1457_vm7  ;;  %vm1712_vm2 = vcmp.ge.s32.totalorder %v1702_v18, 0  ;;  %vm1722_vm14 = vcmp.lt.s32.totalorder %v1702_v18, 40  ;;  %v1438_v53 = vadd.s32 4294967293, %v6565_v54 }
 0x2e7   :  { %vm1713_vm10 = vcmp.ge.s32.totalorder %v1703_v58, 0  ;;  %vm1723_vm3 = vcmp.lt.s32.totalorder %v1703_v58, 40  ;;  %v1439_v23 = vadd.s32 4294967293, %v6795_v7  ;;  %v1476_v6 = vsel %vm1466_vm12, 1, %v10134_v57  ;;  %vm1732_vm11 = vmand %vm1712_vm2, %vm1722_vm14  ;;  %v6567_v58 = vld [vmem:[%s10098_s29 + $0x30] sm:$0xff] }
 0x2e8   :  { %v1477_v17 = vsel %vm1467_vm15, 1, %v10134_v57  ;;  %vm1733_vm1 = vmand %vm1713_vm10, %vm1723_vm3  ;;  %vm1448_vm6 = vcmp.ge.s32.totalorder %v1438_v53, 0  ;;  %vm1458_vm7 = vcmp.lt.s32.totalorder %v1438_v53, 40  ;;  %v1704_v37 = vadd.s32 3, %v6565_v54 }
 0x2e9   :  { %6284 = vrot.lane.b32.xlu0 %v6283_v19, %s6585_s7  ;;  %vm1449_vm5 = vcmp.ge.s32.totalorder %v1439_v23, 0  ;;  %vm1459_vm4 = vcmp.lt.s32.totalorder %v1439_v23, 40  ;;  %v1705_v8 = vadd.s32 3, %v6795_v7  ;;  %v1742_v29 = vsel %vm1732_vm11, 1, %v10134_v57  ;;  %vm1468_vm9 = vmand %vm1448_vm6, %vm1458_vm7 }
 0x2ea   :  { %6289 = vrot.lane.b32.xlu1 %v6288_v5, %s6585_s7  ;;  %v1743_v20 = vsel %vm1733_vm1, 1, %v10134_v57  ;;  %vm1469_vm13 = vmand %vm1449_vm5, %vm1459_vm4  ;;  %vm1714_vm12 = vcmp.ge.s32.totalorder %v1704_v37, 0  ;;  %vm1724_vm8 = vcmp.lt.s32.totalorder %v1704_v37, 40  ;;  %v1441_v56 = vadd.s32 4294967293, %v6805_v13 }
 0x2eb   :  { %vm1715_vm14 = vcmp.ge.s32.totalorder %v1705_v8, 0  ;;  %vm1725_vm2 = vcmp.lt.s32.totalorder %v1705_v8, 40  ;;  %v1440_v36 = vadd.s32 4294967293, %v6566_v30  ;;  %v1478_v7 = vsel %vm1468_vm9, 1, %v10134_v57  ;;  %vm1734_vm3 = vmand %vm1714_vm12, %vm1724_vm8 }
 0x2ec   :  { %v1479_v62 = vsel %vm1469_vm13, 1, %v10134_v57  ;;  %vm1735_vm10 = vmand %vm1715_vm14, %vm1725_vm2  ;;  %vm1451_vm4 = vcmp.ge.s32.totalorder %v1441_v56, 0  ;;  %vm1461_vm5 = vcmp.lt.s32.totalorder %v1441_v56, 40  ;;  %v1707_v12 = vadd.s32 3, %v6805_v13  ;;  %v6568_v13 = vld [vmem:[%s10098_s29 + $0x38] sm:$0xff] }
 0x2ed   :  { %1487 = vperm.xlu0 %6241, %v1476_v6   ;;  %vm1450_vm15 = vcmp.ge.s32.totalorder %v1440_v36, 0  ;;  %vm1460_vm11 = vcmp.lt.s32.totalorder %v1440_v36, 40  ;;  %v1706_v18 = vadd.s32 3, %v6566_v30  ;;  %v1744_v42 = vsel %vm1734_vm3, 1, %v10134_v57  ;;  %vm1471_vm1 = vmand %vm1451_vm4, %vm1461_vm5 }
 0x2ee   :  { %1490 = vperm.xlu1 %6242, %v1477_v17   ;;  %v1745_v3 = vsel %vm1735_vm10, 1, %v10134_v57  ;;  %vm1470_vm6 = vmand %vm1450_vm15, %vm1460_vm11  ;;  %vm1717_vm9 = vcmp.ge.s32.totalorder %v1707_v12, 0  ;;  %vm1727_vm7 = vcmp.lt.s32.totalorder %v1707_v12, 40  ;;  %v1442_v19 = vadd.s32 4294967293, %v6567_v58 }
 0x2ef   :  { %vm1716_vm13 = vcmp.ge.s32.totalorder %v1706_v18, 0  ;;  %vm1726_vm8 = vcmp.lt.s32.totalorder %v1706_v18, 40  ;;  %v1443_v5 = vadd.s32 4294967293, %v6568_v13  ;;  %v1481_v54 = vsel %vm1471_vm1, 1, %v10134_v57  ;;  %vm1737_vm12 = vmand %vm1717_vm9, %vm1727_vm7 }
 0x2f0   :  { %v1480_v53 = vsel %vm1470_vm6, 1, %v10134_v57  ;;  %vm1736_vm14 = vmand %vm1716_vm13, %vm1726_vm8  ;;  %vm1452_vm2 = vcmp.ge.s32.totalorder %v1442_v19, 0  ;;  %vm1462_vm3 = vcmp.lt.s32.totalorder %v1442_v19, 40  ;;  %v1708_v23 = vadd.s32 3, %v6567_v58 }
 0x2f1   :  { %1753 = vperm.xlu0 %6241, %v1742_v29   ;;  %vm1453_vm10 = vcmp.ge.s32.totalorder %v1443_v5, 0  ;;  %vm1463_vm4 = vcmp.lt.s32.totalorder %v1443_v5, 40  ;;  %v1709_v6 = vadd.s32 3, %v6568_v13  ;;  %v1747_v17 = vsel %vm1737_vm12, 1, %v10134_v57  ;;  %vm1472_vm5 = vmand %vm1452_vm2, %vm1462_vm3 }
 0x2f2   :  { %1756 = vperm.xlu1 %6242, %v1743_v20   ;;  %v1746_v37 = vsel %vm1736_vm14, 1, %v10134_v57  ;;  %vm1473_vm15 = vmand %vm1453_vm10, %vm1463_vm4  ;;  %vm1718_vm11 = vcmp.ge.s32.totalorder %v1708_v23, 0  ;;  %vm1728_vm1 = vcmp.lt.s32.totalorder %v1708_v23, 40  ;;  %v1482_v8 = vsel %vm1472_vm5, 1, %v10134_v57 }
 0x2f3   :  { %vm1719_vm6 = vcmp.ge.s32.totalorder %v1709_v6, 0  ;;  %vm1729_vm9 = vcmp.lt.s32.totalorder %v1709_v6, 40  ;;  %v1483_v29 = vsel %vm1473_vm15, 1, %v10134_v57  ;;  %vm1738_vm7 = vmand %vm1718_vm11, %vm1728_vm1  ;;  %vm492_vm8 = vcmp.eq.s32.totalorder %v6987_v46, 1 }
 0x2f4   :  { %vm1739_vm13 = vmand %vm1719_vm6, %vm1729_vm9  ;;  %v1748_v20 = vsel %vm1738_vm7, 1, %v10134_v57  ;;  %vm491_vm12 = vcmp.eq.s32.totalorder %v6981_v43, 1  ;;  %vm10162_vm14 = vcmask 523264   ;;  %v502_v13 = vsel %vm492_vm8, %v7009_v59, 0.0  ;;  %v6539_v43 = vld [vmem:[%s9955_s9 + $0xd8] sm:$0xff]  }
 0x2f5   :  { %1493 = vperm.xlu0 %6241, %v1478_v7   ;;  %v1749_v56 = vsel %vm1739_vm13, 1, %v10134_v57  ;;  %vm10163_vm2 = vmmov %vm10162_vm14  ;;  %v501_v19 = vsel %vm491_vm12, %v7012_v60, 0.0  ;;  %vm494_vm4 = vcmp.eq.s32.totalorder %v6996_v52, 1  ;;  %vm493_vm5 = vcmp.eq.s32.totalorder %v6989_v47, 1 }
 0x2f6   :  { %1496 = vperm.xlu1 %6242, %v1479_v62   ;;  %vm10164_vm3 = vmmov %vm10163_vm2  ;;  %v880_v59 = vrot.slane %v7109_v1, 4  ;;  %vm10171_vm7 = vcmask 1043456  }
 0x2f7   :  { %vm10165_vm10 = vmmov %vm10163_vm2 }
 0x2f8   :  { %vm10166_vm15 = vmmov %vm10163_vm2 }
 0x2f9   :  { %1759 = vperm.xlu0 %6241, %v1744_v42   ;;  %vm10167_vm11 = vmmov %vm10163_vm2 }
 0x2fa   :  { %1762 = vperm.xlu1 %6242, %v1745_v3   ;;  %vm10168_vm1 = vmmov %vm10163_vm2 }
 0x2fb   :  { %vm10169_vm6 = vmmov %vm10168_vm1 }
 0x2fd   :  { %1502 = vperm.xlu0 %6241, %v1481_v54  }
 0x2fe   :  { %1499 = vperm.xlu1 %6242, %v1480_v53  }
 0x301   :  { %1768 = vperm.xlu0 %6241, %v1747_v17  }
 0x302   :  { %1765 = vperm.xlu1 %6242, %v1746_v37   ;;  %v882_v37 = vrot.slane %v7165_v25, 4 }
 0x305   :  { %1505 = vperm.xlu0 %6241, %v1482_v8  }
 0x306   :  { %1508 = vperm.xlu1 %6242, %v1483_v29  }
 0x309   :  { %1771 = vperm.xlu0 %6241, %v1748_v20  }
 0x30a   :  { %1774 = vperm.xlu1 %6242, %v1749_v56  }
 0x336   :  { %v6245_v30 = vpop.permute.xlu0 %6244 }
 0x337   :  { %v6247_v36 = vunpack.i.h.bf16 %v6245_v30  ;;  %v6246_v7 = vunpack.i.l.bf16 %v6245_v30 }
 0x339   :  { %v1030_v42 = vsel %vm10162_vm14, %v7263_v27, %v6246_v7  ;;  %v1031_v3 = vsel %vm10163_vm2, %v7290_v9, %v6247_v36  ;;  %v503_v36 = vsel %vm493_vm5, %v7051_v38, 0.0  ;;  %v504_v7 = vsel %vm494_vm4, %v7054_v40, 0.0  ;;  %vm10172_vm14 = vmmov %vm10171_vm7 }
 0x33a   :  { %v6250_v62 = vpop.permute.xlu1 %6249  ;;  %v1041_v58 = vpack.c.bf16 %v1031_v3, %v1030_v42  ;;  %v959_v3 = vrot.slane %v7106_v26, 2  ;;  %vm495_vm2 = vcmp.eq.s32.totalorder %v7021_v63, 1 }
 0x33b   :  { %v6252_v12 = vunpack.i.h.bf16 %v6250_v62  ;;  %v6251_v18 = vunpack.i.l.bf16 %v6250_v62 }
 0x33c   :  { %1269 = vmatprep.mubr.bf16.mxu1 %v1041_v58  ;;  %v883_v58 = vsel %vm10172_vm14, %v880_v59, %v882_v37 }
 0x33d   :  { %v1020_v5 = vsel %vm10164_vm3, %v501_v19, %v6251_v18  ;;  %v1021_v54 = vsel %vm10165_vm10, %v502_v13, %v6252_v12  ;;  %vm10174_vm10 = vmmov %vm10168_vm1 }
 0x33e   :  { %v1040_v53 = vpack.c.bf16 %v1021_v54, %v1020_v5 }
 0x340   :  { %1270 = vmatmul.mubr.bf16.vlgmr.msra.gmra.mrb[0].mxu1 %v1040_v53 }
 0x347   :  { %v7394_v27 = vpop.permute.xlu0 %480 }
 0x348   :  { %vm10028_vm14 = vcmp.eq.s32.totalorder %v7394_v27, 1 }
 0x34b   :  { %v7396_v23 = vpop.permute.xlu1 %483  ;;  %v6255_v9 = vpop.permute.xlu0 %6254 }
 0x34c   :  { %v6257_v6 = vunpack.i.h.bf16 %v6255_v9  ;;  %v6256_v60 = vunpack.i.l.bf16 %v6255_v9 }
 0x34e   :  { %v1032_v20 = vsel %vm10166_vm15, %v7296_v32, %v6256_v60  ;;  %v1033_v56 = vsel %vm10167_vm11, %v7299_v55, %v6257_v6  ;;  %v10170_v32 = vrot.slane %v7106_v26, 4  ;;  %v10173_v6 = vld [vmem:[#allocation21_spill] sm:$0xff]  ;;  %vm10176_vm15 = vcmask 1045504   ;;  %vm10177_vm11 = vmmov %vm10168_vm1 }
 0x34f   :  { %v6260_v17 = vpop.permute.xlu1 %6259  ;;  %v1044_v30 = vpack.c.bf16 %v1033_v56, %v1032_v20  ;;  %vm496_vm3 = vcmp.eq.s32.totalorder %v10173_v6, 1  ;;  %v505_v56 = vsel %vm495_vm2, %v7078_v61, 0.0  ;;  %v963_v61 = vrot.slane %v7165_v25, 2 }
 0x350   :  { %v6262_v8 = vunpack.i.h.bf16 %v6260_v17  ;;  %v6261_v29 = vunpack.i.l.bf16 %v6260_v17  ;;  %v881_v55 = vsel %vm10171_vm7, %v10170_v32, %v880_v59  ;;  %vm10179_vm7 = vmmov %vm10168_vm1 }
 0x351   :  { %1277 = vmatprep.mubr.bf16.mxu1 %v1044_v30  ;;  %v506_v30 = vsel %vm496_vm3, %v7081_v0, 0.0 }
 0x352   :  { %v7412_v62 = vpop.permute.xlu0 %845  ;;  %v1022_v12 = vsel %vm10168_vm1, %v503_v36, %v6261_v29  ;;  %v1023_v18 = vsel %vm10169_vm6, %v504_v7, %v6262_v8  ;;  %v10175_v8 = vrot.slane %v7081_v0, 2  ;;  %vm10178_vm6 = vmmov %vm10168_vm1 }
 0x353   :  { %vm10016_vm9 = vcmp.eq.s32.totalorder %v7412_v62, 1  ;;  %v1043_v38 = vpack.c.bf16 %v1023_v18, %v1022_v12 }
 0x354   :  { %v904_v40 = vsel %vm10016_vm9, %v881_v55, 0.0  ;;  %v960_v59 = vsel %vm10176_vm15, %v10175_v8, %v959_v3  ;;  %v961_v55 = vrot.slane %v7109_v1, 2 }
 0x355   :  { %v7420_v42 = vpop.permute.xlu1 %848  ;;  %1278 = vmatmul.mubr.bf16.gmra.mrb[4].mxu1 %v1043_v38  ;;  %v886_v38 = vrot.slane %v7284_v16, 4 }
 0x356   :  { %vm10012_vm13 = vcmp.eq.s32.totalorder %v7420_v42, 1  ;;  %v6265_v5 = vpop.permute.xlu0 %6264 }
 0x357   :  { %v905_v19 = vsel %vm10012_vm13, %v883_v58, 0.0  ;;  %v6267_v54 = vunpack.i.h.bf16 %v6265_v5  ;;  %v6266_v53 = vunpack.i.l.bf16 %v6265_v5 }
 0x358   :  { %v1051_v13 = vpack.c.bf16 %v905_v19, %v904_v40 }
 0x359   :  { %v6270_v9 = vpop.permute.xlu1 %6269  ;;  %v1034_v29 = vsel %vm10177_vm11, %v7308_v11, %v6266_v53  ;;  %v1035_v20 = vsel %vm10168_vm1, %v960_v59, %v6267_v54  ;;  %v962_v53 = vsel %vm10176_vm15, %v959_v3, %v961_v55  ;;  %vm10180_vm11 = vmmov %vm10176_vm15 }
 0x35a   :  { %v6272_v60 = vunpack.i.h.bf16 %v6270_v9  ;;  %v6271_v17 = vunpack.i.l.bf16 %v6270_v9  ;;  %5995 = vmatmul.mubr.msk.bf16.gmra.mrb[28].mxu0 %vm10174_vm10, %v1051_v13  ;;  %v7448_v36 = vpop.permute.xlu0 %486  ;;  %v1047_v7 = vpack.c.bf16 %v1035_v20, %v1034_v29  ;;  %vm10015_vm10 = vcmp.eq.s32.totalorder %v7396_v23, 1  ;;  %vm10183_vm15 = vmmov %vm10168_vm1 }
 0x35b   :  { %5998 = vmatprep.mubr.msk.bf16.mxu0 %vm10127_vm0, %v10126_v33  ;;  %v884_v13 = vrot.slane %v7170_v48, 4  ;;  %v964_v9 = vsel %vm10180_vm11, %v961_v55, %v963_v61  ;;  %vm10184_vm11 = vcmask 1043456  }
 0x35c   :  { %v1024_v12 = vsel %vm10178_vm6, %v505_v56, %v6271_v17  ;;  %v1025_v11 = vsel %vm10179_vm7, %v506_v30, %v6272_v60  ;;  %1285 = vmatprep.mubr.bf16.mxu1 %v1047_v7  ;;  %v507_v60 = vsel %vm10028_vm14, %v7106_v26, 0.0  ;;  %v508_v17 = vsel %vm10015_vm10, %v7109_v1, 0.0  ;;  %vm10181_vm6 = vmmov %vm10168_vm1 }
 0x35d   :  { %v7452_v18 = vpop.permute.xlu1 %489  ;;  %v1046_v32 = vpack.c.bf16 %v1025_v11, %v1024_v12  ;;  %vm10182_vm7 = vmmov %vm10168_vm1  ;;  %v967_v30 = vrot.slane %v7284_v16, 2  ;;  %v885_v26 = vsel %vm10184_vm11, %v882_v37, %v884_v13  ;;  %v965_v12 = vrot.slane %v7170_v48, 2 }
 0x35e   :  { %v6275_v0 = vpop.permute.xlu0 %6274 }
 0x35f   :  { %1286 = vmatmul.mubr.bf16.gmra.mrb[8].mxu1 %v1046_v32  ;;  %v6277_v40 = vunpack.i.h.bf16 %v6275_v0  ;;  %v6276_v58 = vunpack.i.l.bf16 %v6275_v0 }
 0x361   :  { %v6280_v19 = vpop.permute.xlu1 %6279  ;;  %v1036_v8 = vsel %vm10168_vm1, %v962_v53, %v6276_v58  ;;  %v1037_v59 = vsel %vm10181_vm6, %v964_v9, %v6277_v40  ;;  %vm10185_vm1 = vmmov %vm10184_vm11  ;;  %vm10186_vm11 = vcmask 523264  }
 0x362   :  { %v6282_v5 = vunpack.i.h.bf16 %v6280_v19  ;;  %v6281_v54 = vunpack.i.l.bf16 %v6280_v19  ;;  %v1050_v20 = vpack.c.bf16 %v1037_v59, %v1036_v8  ;;  %v887_v32 = vsel %vm10185_vm1, %v884_v13, %v886_v38 }
 0x363   :  { %vm10187_vm1 = vcmask 1045504  }
 0x364   :  { %v7470_v29 = vpop.permute.xlu0 %851  ;;  %v1026_v56 = vsel %vm10182_vm7, %v507_v60, %v6281_v54  ;;  %v1027_v3 = vsel %vm10183_vm15, %v508_v17, %v6282_v5  ;;  %1293 = vmatprep.mubr.bf16.mxu1 %v1050_v20  ;;  %vm10027_vm7 = vcmp.eq.s32.totalorder %v7448_v36, 1  ;;  %vm10026_vm15 = vcmp.eq.s32.totalorder %v7452_v18, 1 }
 0x365   :  { %vm10013_vm13 = vcmp.eq.s32.totalorder %v7470_v29, 1  ;;  %v7479_v1 = vpop.permute.xlu1 %854  ;;  %v1049_v7 = vpack.c.bf16 %v1027_v3, %v1026_v56  ;;  %v966_v38 = vsel %vm10187_vm1, %v963_v61, %v965_v12  ;;  %v509_v54 = vsel %vm10027_vm7, %v7165_v25, 0.0 }
 0x366   :  { %v906_v11 = vsel %vm10013_vm13, %v885_v26, 0.0  ;;  %vm10014_vm6 = vcmp.eq.s32.totalorder %v7479_v1, 1  ;;  %vm10188_vm13 = vmmov %vm10187_vm1  ;;  %v510_v53 = vsel %vm10026_vm15, %v7170_v48, 0.0  ;;  %vm10196_vm1 = vcmask 1043456  }
 0x367   :  { %v907_v16 = vsel %vm10014_vm6, %v887_v32, 0.0  ;;  %1294 = vmatmul.mubr.bf16.gmra.mrb[12].mxu1 %v1049_v7  ;;  %v968_v13 = vsel %vm10188_vm13, %v965_v12, %v967_v30  ;;  %vm10189_vm6 = vmmov %vm10186_vm11  ;;  %vm10193_vm13 = vcmask 1044480  }
 0x368   :  { %v1054_v37 = vpack.c.bf16 %v907_v16, %v906_v11  ;;  %v6285_v55 = vpop.permute.xlu0 %6284  ;;  %vm10190_vm10 = vmmov %vm10189_vm6 }
 0x369   :  { %v6287_v0 = vunpack.i.h.bf16 %v6285_v55  ;;  %v6286_v40 = vunpack.i.l.bf16 %v6285_v55  ;;  %v6290_v58 = vpop.permute.xlu1 %6289  ;;  %vm10191_vm9 = vmmov %vm10189_vm6  ;;  %v6513_v55 = vld [vmem:[%s9955_s9 + $0x88] sm:$0xff]  }
 0x36a   :  { %v6292_v19 = vunpack.i.h.bf16 %v6290_v58  ;;  %v6291_v5 = vunpack.i.l.bf16 %v6290_v58  ;;  %5999 = vmatmul.mubr.msk.bf16.gmra.mrb[32].mxu0 %vm10186_vm11, %v1054_v37  ;;  %vm10192_vm11 = vmmov %vm10189_vm6  ;;  %v6512_v37 = vld [vmem:[%s9955_s9 + $0x80] sm:$0xff]  }
 0x36b   :  { %v1038_v9 = vsel %vm10189_vm6, %v966_v38, %v6286_v40  ;;  %v1039_v60 = vsel %vm10190_vm10, %v968_v13, %v6287_v0  ;;  %2334 = vmatpush1.bf16.msra.mxu1 %v6512_v37  ;;  %v6515_v0 = vld [vmem:[%s9955_s9 + $0x40] sm:$0xff]   ;;  %v6514_v40 = vld [vmem:[%s9955_s9 + $0x90] sm:$0xff]   ;;  %v6516_v13 = vld [vmem:[%s9955_s9 + $0x98] sm:$0xff]   ;;  %vm10194_vm10 = vcmask 1046528   ;;  %vm10195_vm6 = vcmask 1041408  }
 0x36c   :  { %v1053_v17 = vpack.c.bf16 %v1039_v60, %v1038_v9  ;;  %v1028_v8 = vsel %vm10191_vm9, %v509_v54, %v6291_v5  ;;  %v1029_v59 = vsel %vm10192_vm11, %v510_v53, %v6292_v19  ;;  %2335 = vmatprep.subr.bf16.mxu1 %v10134_v57  ;;  %5808 = vmatprep.subr.bf16.mxu0 %v6515_v0  ;;  %v6517_v58 = vld [vmem:[%s9955_s9] sm:$0xff]   ;;  %v6518_v19 = vld [vmem:[%s9955_s9 + $0x48] sm:$0xff]   ;;  %v6521_v38 = vld [vmem:[%s9955_s9 + $0x50] sm:$0xff]   ;;  %vm10038_vm9 = vcmask 1042432  }
 0x36d   :  { %v1052_v61 = vpack.c.bf16 %v1029_v59, %v1028_v8  ;;  %5809 = vmatpush3.bf16.msra.mxu0 %v6517_v58  ;;  %v6520_v5 = vld [vmem:[%s9955_s9 + $0x8] sm:$0xff]   ;;  %v6523_v54 = vld [vmem:[%s9955_s9 + $0x10] sm:$0xff]   ;;  %v6524_v53 = vld [vmem:[%s9955_s9 + $0x58] sm:$0xff]   ;;  %vm10197_vm11 = vcmask 1045504  }
 0x36e   :  { %1301 = vmatprep.mubr.bf16.mxu1 %v1053_v17  ;;  %5810 = vmatprep.subr.bf16.mxu0 %v6518_v19  ;;  %v6519_v9 = vld [vmem:[%s9955_s9 + $0xa0] sm:$0xff]   ;;  %v6526_v60 = vld [vmem:[%s9955_s9 + $0x18] sm:$0xff]   ;;  %v6522_v8 = vld [vmem:[%s9955_s9 + $0xa8] sm:$0xff]  }
 0x36f   :  { %1302 = vmatmul.mubr.bf16.gmra.mrb[16].mxu1 %v1052_v61  ;;  %v6527_v17 = vld [vmem:[%s9955_s9 + $0x60] sm:$0xff]   ;;  %v6530_v61 = vld [vmem:[%s9955_s9 + $0x68] sm:$0xff]  }
 0x370   :  { %2336 = vmatpush1.bf16.msra.mxu1 %v6513_v55  ;;  %v6529_v59 = vld [vmem:[%s9955_s9 + $0x20] sm:$0xff]   ;;  %v6534_v37 = vld [vmem:[%s9955_s9 + $0xc8] sm:$0xff]  }
 0x371   :  { %2337 = vmatprep.subr.bf16.mxu1 %v10134_v57  ;;  %5811 = vmatpush3.bf16.msra.mxu0 %v6520_v5  ;;  %v7600_v0 = vld [vmem:[%s9956_s8] ss:$0 sm:$0xff] }
 0x372   :  { %5812 = vmatprep.subr.bf16.mxu0 %v6521_v38 }
 0x374   :  { %2338 = vmatpush1.bf16.msra.mxu1 %v6514_v40 }
 0x375   :  { %2339 = vmatprep.subr.bf16.mxu1 %v10134_v57  ;;  %5813 = vmatpush3.bf16.msra.mxu0 %v6523_v54 }
 0x376   :  { %5814 = vmatprep.subr.bf16.mxu0 %v6524_v53 }
 0x378   :  { %2340 = vmatpush1.bf16.msra.mxu1 %v6516_v13 }
 0x379   :  { %2341 = vmatprep.subr.bf16.mxu1 %v10134_v57  ;;  %5815 = vmatpush3.bf16.msra.mxu0 %v6526_v60 }
 0x37a   :  { %5816 = vmatprep.subr.bf16.mxu0 %v6527_v17 }
 0x37c   :  { %2342 = vmatpush1.bf16.msra.mxu1 %v6519_v9 }
 0x37d   :  { %2343 = vmatprep.subr.bf16.mxu1 %v10134_v57  ;;  %5817 = vmatpush3.bf16.msra.mxu0 %v6529_v59 }
 0x37e   :  { %5818 = vmatprep.subr.bf16.mxu0 %v6530_v61 }
 0x380   :  { %2344 = vmatpush1.bf16.msra.mxu1 %v6522_v8 }
 0x381   :  { %2345 = vmatprep.subr.bf16.mxu1 %v10134_v57 }
 0x396   :  { %v7503_v20 = vpop.f32.mrb[16].mxu0 }
 0x397   :  { %v5984_v56 = vpop.f32.mrb[17].mxu0 }
 0x398   :  { %v7505_v25 = vpop.f32.mrb[18].mxu0  ;;  %v6525_v56 = vld [vmem:[%s9955_s9 + $0xb0] sm:$0xff]  }
 0x399   :  { %v5985_v3 = vpop.f32.mrb[19].mxu0  ;;  %2346 = vmatpush1.bf16.msra.mxu1 %v6525_v56 }
 0x39a   :  { %v6532_v3 = vld [vmem:[%s9955_s9 + $0x28] sm:$0xff]   ;;  %2347 = vmatprep.subr.bf16.mxu1 %v10134_v57 }
 0x39b   :  { %5819 = vmatpush3.bf16.msra.mxu0 %v6532_v3 }
 0x39e   :  { %v7507_v30 = vpop.f32.mrb[20].mxu0 }
 0x39f   :  { %v5988_v48 = vpop.f32.mrb[21].mxu0 }
 0x3a0   :  { %v7509_v26 = vpop.f32.mrb[22].mxu0  ;;  %v6533_v48 = vld [vmem:[%s9955_s9 + $0x70] sm:$0xff]  }
 0x3a1   :  { %v5989_v7 = vpop.f32.mrb[23].mxu0  ;;  %5820 = vmatprep.subr.bf16.mxu0 %v6533_v48 }
 0x3a2   :  { %v6528_v7 = vld [vmem:[%s9955_s9 + $0xb8] sm:$0xff]  }
 0x3a3   :  { %2348 = vmatpush1.bf16.msra.mxu1 %v6528_v7 }
 0x3a4   :  { %2349 = vmatprep.subr.bf16.mxu1 %v10134_v57 }
 0x3a6   :  { %v7511_v12 = vpop.f32.mrb[24].mxu0 }
 0x3a7   :  { %v5992_v11 = vpop.f32.mrb[25].mxu0 }
 0x3a8   :  { %v7513_v32 = vpop.f32.mrb[26].mxu0  ;;  %v6535_v11 = vld [vmem:[%s9955_s9 + $0x30] sm:$0xff]  }
 0x3a9   :  { %v5993_v16 = vpop.f32.mrb[27].mxu0  ;;  %5821 = vmatpush3.bf16.msra.mxu0 %v6535_v11 }
 0x3aa   :  { %v6531_v16 = vld [vmem:[%s9955_s9 + $0xc0] sm:$0xff]  }
 0x3ab   :  { %2350 = vmatpush1.bf16.msra.mxu1 %v6531_v16 }
 0x3ac   :  { %2351 = vmatprep.subr.bf16.mxu1 %v10134_v57 }
 0x3af   :  { %2352 = vmatpush1.bf16.msra.mxu1 %v6534_v37 }
 0x3b0   :  { %2353 = vmatprep.subr.bf16.mxu1 %v10134_v57 }
 0x413   :  { %v5769_v55 = vpop.f32.mrb[0].mxu1 }
 0x414   :  { %v5770_v40 = vpop.f32.mrb[1].mxu1 }
 0x415   :  { %v5771_v58 = vadd.f32 %v5770_v40, %v5769_v55  ;;  %v5772_v19 = vpop.f32.mrb[2].mxu1 }
 0x416   :  { %v5773_v5 = vpop.f32.mrb[3].mxu1 }
 0x417   :  { %v1272_v38 = vadd.f32 %v5771_v58, %v7600_v0  ;;  %v5774_v13 = vadd.f32 %v5773_v5, %v5772_v19 }
 0x419   :  { %v1345_v54 = vadd.f32 %v7503_v20, %v1272_v38  ;;  %v1275_v53 = vadd.f32 %v5774_v13, %v7600_v0 }
 0x41b   :  { %v1383_v9 = vmax.f32 %v1345_v54, 0.0  ;;  %v1348_v60 = vadd.f32 %v7505_v25, %v1275_v53 }
 0x41d   :  { %v1404_v17 = vrot.slane %v1383_v9, 5  ;;  %v1384_v8 = vmax.f32 %v1348_v60, 0.0  ;;  %v7646_v9 = vpop.permute.xlu0 %1487  ;;  %v1444_v60 = vadd.s32 4294967293, %v7256_v50 }
 0x41f   :  { %v7607_v59 = vsel %vm10038_vm9, 0.0, %v1404_v17  ;;  %v7609_v61 = vrot.slane %v1384_v8, 5  ;;  %v7654_v8 = vpop.permute.xlu1 %1490 }
 0x420   :  { %v1873_v56 = vrot.slane %v7607_v59, 3  ;;  %v1538_v20 = vrot.slane %v7607_v59, 1  ;;  %v1792_v48 = vrot.slane %v7607_v59, 6  ;;  %v1661_v25 = vrot.slane %v7607_v59, 5 }
 0x421   :  { %v7614_v3 = vsel %vm10038_vm9, %v1404_v17, %v7609_v61  ;;  %v1620_v55 = vrot.slane %v7607_v59, 4  ;;  %v1579_v58 = vrot.slane %v7607_v59, 2 }
 0x422   :  { %v10022_v7 = vrot.slane %v7614_v3, 3  ;;  %v10021_v11 = vrot.slane %v7614_v3, 1  ;;  %v10019_v16 = vrot.slane %v7614_v3, 6  ;;  %v10018_v37 = vrot.slane %v7614_v3, 5 }
 0x423   :  { %v10017_v40 = vrot.slane %v7614_v3, 4  ;;  %v10020_v19 = vrot.slane %v7614_v3, 2  ;;  %v1757_v41 = vpop.permute.xlu1 %1756 }
 0x424   :  { %v7630_v5 = vsel %vm10193_vm13, %v1873_v56, %v10022_v7  ;;  %v1540_v38 = vsel %vm10194_vm10, %v1538_v20, %v10021_v11  ;;  %v1794_v13 = vsel %vm10195_vm6, %v1792_v48, %v10019_v16  ;;  %v1663_v54 = vsel %vm10038_vm9, %v1661_v25, %v10018_v37  ;;  %v6569_v56 = vld [vmem:[%s10098_s29 + $0x48] sm:$0xff] }
 0x425   :  { %v7644_v53 = vsel %vm10196_vm1, %v1620_v55, %v10017_v40  ;;  %v7652_v17 = vsel %vm10197_vm11, %v1579_v58, %v10020_v19  ;;  %v1445_v20 = vadd.s32 4294967293, %v6569_v56  ;;  %vm1454_vm13 = vcmp.ge.s32.totalorder %v1444_v60, 0  ;;  %v1754_v58 = vpop.permute.xlu0 %1753 }
 0x426   :  { %vm1464_vm10 = vcmp.lt.s32.totalorder %v1444_v60, 40  ;;  %vm1782_vm7 = vcmp.eq.s32.totalorder %v1754_v58, 1  ;;  %vm1783_vm14 = vcmp.eq.s32.totalorder %v1757_v41, 1  ;;  %v1569_v21 = vsel %vm491_vm12, %v1540_v38, 0.0 }
 0x427   :  { %vm1455_vm6 = vcmp.ge.s32.totalorder %v1445_v20, 0  ;;  %vm1465_vm1 = vcmp.lt.s32.totalorder %v1445_v20, 40  ;;  %vm1474_vm11 = vmand %vm1454_vm13, %vm1464_vm10  ;;  %v1823_v35 = vsel %vm1782_vm7, %v1794_v13, 0.0  ;;  %v7692_v22 = vadd.s32 3, %v6569_v56 }
 0x428   :  { %v5775_v48 = vpop.f32.mrb[4].mxu1  ;;  %vm1475_vm15 = vmand %vm1455_vm6, %vm1465_vm1  ;;  %vm10200_vm12 = vcmask 1044480   ;;  %vm10202_vm7 = vcmask 1046528   ;;  %vm10204_vm13 = vcmask 1041408  }
 0x429   :  { %v5776_v25 = vpop.f32.mrb[5].mxu1  ;;  %vm10210_vm6 = vmmov %vm10202_vm7 }
 0x42a   :  { %v5777_v55 = vadd.f32 %v5776_v25, %v5775_v48  ;;  %v5778_v40 = vpop.f32.mrb[6].mxu1 }
 0x42b   :  { %v5779_v16 = vpop.f32.mrb[7].mxu1 }
 0x42c   :  { %v1280_v19 = vadd.f32 %v5777_v55, %v7600_v0  ;;  %v5780_v11 = vadd.f32 %v5779_v16, %v5778_v40  ;;  %v7668_v16 = vsel %vm1474_vm11, 1, %v10134_v57  ;;  %vm10212_vm11 = vmmov %vm10210_vm6 }
 0x42d   :  { %v7659_v37 = vpop.f32.mrb[28].mxu0 }
 0x42e   :  { %v5996_v7 = vpop.f32.mrb[29].mxu0  ;;  %v1353_v44 = vadd.f32 %v7507_v30, %v1280_v19  ;;  %v1283_v48 = vadd.f32 %v5780_v11, %v7600_v0  ;;  %v6536_v30 = vld [vmem:[%s9955_s9 + $0x78] sm:$0xff]   ;;  %v6537_v11 = vld [vmem:[%s9955_s9 + $0xd0] sm:$0xff]  }
 0x42f   :  { %v7662_v34 = vpop.f32.mrb[30].mxu0  ;;  %v7671_v7 = vsel %vm1475_vm15, 1, %v10134_v57  ;;  %vm10198_vm15 = vcmp.eq.s32.totalorder %v6985_v45, 1  ;;  %5822 = vmatprep.subr.bf16.mxu0 %v6536_v30  ;;  %2354 = vmatpush1.bf16.msra.mxu1 %v6537_v11  ;;  %v10199_v30 = vrot.slane %v7614_v3, 3 }
 0x430   :  { %v5997_v25 = vpop.f32.mrb[31].mxu0  ;;  %v1385_v60 = vmax.f32 %v1353_v44, 0.0  ;;  %v1356_v20 = vadd.f32 %v7509_v26, %v1283_v48  ;;  %v6538_v44 = vld [vmem:[%s9955_s9 + $0x38] sm:$0xff]   ;;  %v7683_v48 = vadd.s32 3, %v7256_v50  ;;  %v7690_v28 = vsel %vm10198_vm15, %v1663_v54, 0.0  ;;  %2355 = vmatprep.subr.bf16.mxu1 %v10134_v57 }
 0x431   :  { %5823 = vmatpush3.bf16.msra.mxu0 %v6538_v44  ;;  %v10201_v44 = vrot.slane %v7614_v3, 1  ;;  %vm10213_vm15 = vcmp.eq.s32.totalorder %v6994_v51, 1 }
 0x432   :  { %v5781_v39 = vpop.f32.mrb[8].mxu1  ;;  %v1407_v26 = vrot.slane %v1385_v60, 5  ;;  %v1386_v40 = vmax.f32 %v1356_v20, 0.0 }
 0x433   :  { %v5782_v31 = vpop.f32.mrb[9].mxu1  ;;  %2356 = vmatpush1.bf16.msra.mxu1 %v6539_v43 }
 0x434   :  { %v5783_v19 = vadd.f32 %v5782_v31, %v5781_v39  ;;  %v5784_v55 = vpop.f32.mrb[10].mxu1  ;;  %v7696_v31 = vsel %vm10038_vm9, %v7609_v61, %v1407_v26  ;;  %v1409_v39 = vrot.slane %v1386_v40, 5  ;;  %6019 = vmatprep.subr.mxu1 %v10126_v33 }
 0x435   :  { %v5785_v25 = vpop.f32.mrb[11].mxu1  ;;  %v1876_v45 = vrot.slane %v7696_v31, 3  ;;  %v1541_v38 = vrot.slane %v7696_v31, 1  ;;  %v10036_v13 = vrot.slane %v7696_v31, 6  ;;  %v1664_v61 = vrot.slane %v7696_v31, 5 }
 0x436   :  { %v1288_v50 = vadd.f32 %v5783_v19, %v7600_v0  ;;  %v5786_v60 = vadd.f32 %v5785_v25, %v5784_v55  ;;  %v7708_v54 = vsel %vm10038_vm9, %v1407_v26, %v1409_v39  ;;  %v10203_v19 = vrot.slane %v7614_v3, 6 }
 0x437   :  { %v1877_v11 = vsel %vm10200_vm12, %v10199_v30, %v1876_v45  ;;  %v1542_v40 = vsel %vm10202_vm7, %v10201_v44, %v1541_v38  ;;  %v1878_v43 = vrot.slane %v7708_v54, 3  ;;  %vm1720_vm7 = vcmp.ge.s32.totalorder %v7683_v48, 0 }
 0x438   :  { %v1361_v56 = vadd.f32 %v7511_v12, %v1288_v50  ;;  %v1291_v58 = vadd.f32 %v5786_v60, %v7600_v0  ;;  %v1796_v26 = vsel %vm10204_vm13, %v10203_v19, %v10036_v13  ;;  %v10205_v12 = vrot.slane %v7614_v3, 5  ;;  %v10206_v13 = vld [vmem:[#allocation20_spill] sm:$0xff] }
 0x439   :  { %v6293_v30 = vpack.i.bf16 %v1877_v11, %v7630_v5  ;;  %v1570_v44 = vsel %vm492_vm8, %v1542_v40, 0.0  ;;  %v1824_v19 = vsel %vm1783_vm14, %v1796_v26, 0.0  ;;  %vm10207_vm10 = vcmp.eq.s32.totalorder %v10206_v13, 1  ;;  %vm10208_vm8 = vmmov %vm10200_vm12 }
 0x43a   :  { %v1665_v55 = vsel %vm10038_vm9, %v10205_v12, %v1664_v61  ;;  %v1387_v25 = vmax.f32 %v1361_v56, 0.0  ;;  %v1364_v50 = vadd.f32 %v7513_v32, %v1291_v58  ;;  %v5787_v60 = vpop.f32.mrb[12].mxu1  ;;  %v6298_v15 = vpack.i.bf16 %v1570_v44, %v1569_v21  ;;  %vm10211_vm1 = vmmov %vm10208_vm8 }
 0x43b   :  { %v5788_v20 = vpop.f32.mrb[13].mxu1  ;;  %v1693_v14 = vsel %vm10207_vm10, %v1665_v55, 0.0  ;;  %6294 = vrot.lane.b32.xlu0 %v6293_v30, %s6585_s7  ;;  %v1997_v58 = vpack.c.bf16 %v1824_v19, %v1823_v35  ;;  %v1879_v41 = vsel %vm10208_vm8, %v1876_v45, %v1878_v43  ;;  %v1543_v13 = vrot.slane %v7708_v54, 1  ;;  %vm10216_vm12 = vmmov %vm10210_vm6 }
 0x43c   :  { %v1411_v56 = vrot.slane %v1387_v25, 5  ;;  %v1388_v12 = vmax.f32 %v1364_v50, 0.0  ;;  %v5789_v32 = vadd.f32 %v5788_v20, %v5787_v60  ;;  %v5790_v5 = vpop.f32.mrb[14].mxu1  ;;  %6299 = vrot.lane.b32.xlu1 %v6298_v15, %s6585_s7  ;;  %v6303_v21 = vpack.i.bf16 %v1693_v14, %v7690_v28  ;;  %vm10218_vm8 = vmmov %vm10210_vm6 }
 0x43d   :  { %v7737_v46 = vpop.f32.mrb[32].mxu0  ;;  %v5791_v11 = vpop.f32.mrb[15].mxu1  ;;  %v1666_v40 = vrot.slane %v7708_v54, 5  ;;  %vm10209_vm14 = vcmask 523264   ;;  %v1544_v14 = vsel %vm10210_vm6, %v1541_v38, %v1543_v13  ;;  %vm1730_vm13 = vcmp.lt.s32.totalorder %v7683_v48, 40  ;;  %vm10220_vm6 = vmmov %vm10211_vm1 }
 0x43e   :  { %v7745_v26 = vsel %vm10038_vm9, %v1409_v39, %v1411_v56  ;;  %v1413_v20 = vrot.slane %v1388_v12, 5  ;;  %v1296_v55 = vadd.f32 %v5789_v32, %v7600_v0  ;;  %v5792_v35 = vadd.f32 %v5791_v11, %v5790_v5  ;;  %v6000_v25 = vpop.f32.mrb[33].mxu0  ;;  %5613 = vmatprep.mubr.msk.bf16.mxu1 %vm10209_vm14, %v1997_v58 }
 0x43f   :  { %v1379_v15 = vpop.f32.mrb[34].mxu0  ;;  %v1880_v50 = vrot.slane %v7745_v26, 3  ;;  %v1545_v28 = vrot.slane %v7745_v26, 1  ;;  %v1667_v45 = vsel %vm10038_vm9, %v1664_v61, %v1666_v40  ;;  %6304 = vrot.lane.b32.xlu0 %v6303_v21, %s6585_s7  ;;  %v1571_v19 = vsel %vm493_vm5, %v1544_v14, 0.0 }
 0x440   :  { %v7754_v60 = vsel %vm10038_vm9, %v1411_v56, %v1413_v20  ;;  %v1369_v39 = vadd.f32 %v7659_v37, %v1296_v55  ;;  %v1299_v30 = vadd.f32 %v5792_v35, %v7600_v0  ;;  %v6001_v44 = vpop.f32.mrb[35].mxu0  ;;  %v1668_v32 = vrot.slane %v7745_v26, 5  ;;  %v7772_v35 = vpop.permute.xlu0 %1493 }
 0x441   :  { %v1881_v12 = vsel %vm10211_vm1, %v1878_v43, %v1880_v50  ;;  %v1546_v38 = vsel %vm10212_vm11, %v1543_v13, %v1545_v28  ;;  %v1694_v61 = vsel %vm10213_vm15, %v1667_v45, 0.0  ;;  %v1882_v43 = vrot.slane %v7754_v60, 3 }
 0x442   :  { %v1389_v56 = vmax.f32 %v1369_v39, 0.0  ;;  %v1372_v37 = vadd.f32 %v7662_v34, %v1299_v30  ;;  %v5793_v5 = vpop.f32.mrb[16].mxu1  ;;  %v6308_v58 = vpack.i.bf16 %v1881_v12, %v1879_v41  ;;  %v1572_v11 = vsel %vm494_vm4, %v1546_v38, 0.0  ;;  %v7777_v41 = vpop.permute.xlu1 %1496  ;;  %vm10215_vm4 = vmmov %vm10211_vm1 }
 0x443   :  { %v5794_v21 = vpop.f32.mrb[17].mxu1  ;;  %v6313_v47 = vpack.i.bf16 %v1572_v11, %v1571_v19  ;;  %v1669_v55 = vsel %vm10038_vm9, %v1666_v40, %v1668_v32  ;;  %v1547_v13 = vrot.slane %v7754_v60, 1  ;;  %vm10214_vm5 = vcmp.eq.s32.totalorder %v7029_v24, 1 }
 0x444   :  { %v1415_v51 = vrot.slane %v1389_v56, 5  ;;  %v1390_v25 = vmax.f32 %v1372_v37, 0.0  ;;  %v5795_v14 = vadd.f32 %v5794_v21, %v5793_v5  ;;  %6309 = vrot.lane.b32.xlu1 %v6308_v58, %s6585_s7  ;;  %v5796_v34 = vpop.f32.mrb[18].mxu1  ;;  %v1695_v52 = vsel %vm10214_vm5, %v1669_v55, 0.0 }
 0x445   :  { %6314 = vrot.lane.b32.xlu0 %v6313_v47, %s6585_s7  ;;  %v5797_v40 = vpop.f32.mrb[19].mxu1  ;;  %v6318_v45 = vpack.i.bf16 %v1695_v52, %v1694_v61  ;;  %v1883_v39 = vsel %vm10215_vm4, %v1880_v50, %v1882_v43  ;;  %v1548_v30 = vsel %vm10216_vm12, %v1545_v28, %v1547_v13  ;;  %v1670_v44 = vrot.slane %v7754_v60, 5 }
 0x446   :  { %v7784_v19 = vsel %vm10038_vm9, %v1413_v20, %v1415_v51  ;;  %v1417_v12 = vrot.slane %v1390_v25, 5  ;;  %v1304_v38 = vadd.f32 %v5795_v14, %v7600_v0  ;;  %v5798_v24 = vadd.f32 %v5797_v40, %v5796_v34 }
 0x447   :  { %v1884_v56 = vrot.slane %v7784_v19, 3  ;;  %v1549_v37 = vrot.slane %v7784_v19, 1  ;;  %v1573_v61 = vsel %vm495_vm2, %v1548_v30, 0.0  ;;  %v1671_v50 = vsel %vm10038_vm9, %v1668_v32, %v1670_v44  ;;  %vm10217_vm2 = vmmov %vm10211_vm1 }
 0x448   :  { %v7795_v20 = vsel %vm10038_vm9, %v1415_v51, %v1417_v12  ;;  %v1377_v28 = vadd.f32 %v7737_v46, %v1304_v38  ;;  %v1307_v5 = vadd.f32 %v5798_v24, %v7600_v0  ;;  %1511 = vperm.xlu1 %6242, %v7668_v16   ;;  %v1672_v58 = vrot.slane %v7784_v19, 5  ;;  %v7808_v46 = vpop.permute.xlu0 %1759  ;;  %v7812_v51 = vpop.permute.xlu1 %1762 }
 0x449   :  { %vm1721_vm10 = vcmp.ge.s32.totalorder %v7692_v22, 0  ;;  %1514 = vperm.xlu0 %6241, %v7671_v7   ;;  %v1885_v63 = vsel %vm10217_vm2, %v1882_v43, %v1884_v56  ;;  %v1550_v32 = vsel %vm10218_vm8, %v1547_v13, %v1549_v37  ;;  %vm10219_vm14 = vcmp.eq.s32.totalorder %v7065_v2, 1 }
 0x44a   :  { %v1696_v11 = vsel %vm10219_vm14, %v1671_v50, 0.0  ;;  %v1886_v21 = vrot.slane %v7795_v20, 3  ;;  %v1391_v0 = vmax.f32 %v1377_v28, 0.0  ;;  %v1380_v47 = vadd.f32 %v1379_v15, %v1307_v5 }
 0x44b   :  { %v6323_v16 = vpack.i.bf16 %v1885_v63, %v1883_v39  ;;  %v1574_v55 = vsel %vm496_vm3, %v1550_v32, 0.0  ;;  %v1673_v43 = vsel %vm10038_vm9, %v1670_v44, %v1672_v58  ;;  %v1551_v2 = vrot.slane %v7795_v20, 1  ;;  %vm10222_vm3 = vmmov %vm10218_vm8 }
 0x44c   :  { %v6328_v7 = vpack.i.bf16 %v1574_v55, %v1573_v61  ;;  %v1887_v13 = vsel %vm10220_vm6, %v1884_v56, %v1886_v21  ;;  %v1419_v25 = vrot.slane %v1391_v0, 5  ;;  %v1392_v14 = vmax.f32 %v1380_v47, 0.0  ;;  %6319 = vrot.lane.b32.xlu1 %v6318_v45, %s6585_s7  ;;  %v7841_v50 = vpop.permute.xlu0 %1502  ;;  %v7859_v63 = vpop.permute.xlu1 %1499  ;;  %vm10230_vm8 = vmmov %vm10222_vm3 }
 0x44d   :  { %vm10221_vm1 = vcmp.eq.s32.totalorder %v7143_v49, 1  ;;  %v1674_v34 = vrot.slane %v7795_v20, 5  ;;  %6324 = vrot.lane.b32.xlu0 %v6323_v16, %s6585_s7  ;;  %v1552_v52 = vsel %vm10222_vm3, %v1549_v37, %v1551_v2  ;;  %v10223_v40 = vrot.slane %v7696_v31, 4  ;;  %vm1740_vm6 = vmand %vm1720_vm7, %vm1730_vm13 }
 0x44e   :  { %v1697_v15 = vsel %vm10221_vm1, %v1673_v43, 0.0  ;;  %v10224_v39 = vrot.slane %v7614_v3, 4  ;;  %vm10225_vm11 = vcmask 1043456   ;;  %v1582_v44 = vrot.slane %v7696_v31, 2  ;;  %vm10235_vm7 = vmmov %vm10230_vm8 }
 0x44f   :  { %v6333_v6 = vpack.i.bf16 %v1697_v15, %v1696_v11  ;;  %v7832_v45 = vsel %vm10038_vm9, %v1417_v12, %v1419_v25  ;;  %v1421_v49 = vrot.slane %v1392_v14, 5  ;;  %vm1731_vm15 = vcmp.lt.s32.totalorder %v7692_v22, 40  ;;  %vm10236_vm13 = vmmov %vm10235_vm7 }
 0x450   :  { %v7828_v30 = vsel %vm10225_vm11, %v10224_v39, %v10223_v40  ;;  %v1675_v38 = vsel %vm10038_vm9, %v1672_v58, %v1674_v34  ;;  %v1888_v24 = vrot.slane %v7832_v45, 3  ;;  %v1553_v56 = vrot.slane %v7832_v45, 1  ;;  %6329 = vrot.lane.b32.xlu1 %v6328_v7, %s6585_s7  ;;  %vm1741_vm3 = vmand %vm1721_vm10, %vm1731_vm15  ;;  %v1766_v40 = vpop.permute.xlu1 %1765 }
 0x451   :  { %vm10226_vm5 = vcmp.eq.s32.totalorder %v7394_v27, 1  ;;  %v1676_v61 = vrot.slane %v7832_v45, 5  ;;  %v7844_v28 = vsel %vm10038_vm9, %v1419_v25, %v1421_v49  ;;  %v7847_v12 = vsel %vm10038_vm9, %v1421_v49, 0.0  ;;  %6334 = vrot.lane.b32.xlu0 %v6333_v6, %s6585_s7  ;;  %vm10233_vm11 = vmmov %vm10217_vm2 }
 0x452   :  { %v1575_v37 = vsel %vm10226_vm5, %v1552_v52, 0.0  ;;  %vm10227_vm4 = vcmp.eq.s32.totalorder %v7412_v62, 1  ;;  %v10228_v27 = vrot.slane %v7614_v3, 2  ;;  %vm10229_vm12 = vcmask 1045504   ;;  %vm10234_vm5 = vmmov %vm10217_vm2 }
 0x453   :  { %v1698_v5 = vsel %vm10227_vm4, %v1675_v38, 0.0  ;;  %v1889_v32 = vsel %vm10217_vm2, %v1886_v21, %v1888_v24  ;;  %v1554_v11 = vsel %vm10230_vm8, %v1551_v2, %v1553_v56  ;;  %v1677_v0 = vsel %vm10038_vm9, %v1674_v34, %v1676_v61  ;;  %v1769_v34 = vpop.permute.xlu0 %1768 }
 0x454   :  { %v7857_v58 = vsel %vm10229_vm12, %v10228_v27, %v1582_v44  ;;  %v1890_v62 = vrot.slane %v7844_v28, 3  ;;  %v6338_v47 = vpack.i.bf16 %v1889_v32, %v1887_v13  ;;  %vm10231_vm14 = vcmp.eq.s32.totalorder %v7396_v23, 1 }
 0x455   :  { %v1576_v16 = vsel %vm10231_vm14, %v1554_v11, 0.0  ;;  %vm10232_vm1 = vcmp.eq.s32.totalorder %v7420_v42, 1  ;;  %v1892_v21 = vrot.slane %v7847_v12, 3  ;;  %v1555_v13 = vrot.slane %v7844_v28, 1 }
 0x456   :  { %v1699_v55 = vsel %vm10232_vm1, %v1677_v0, 0.0  ;;  %v6343_v7 = vpack.i.bf16 %v1576_v16, %v1575_v37  ;;  %v1891_v23 = vsel %vm10233_vm11, %v1888_v24, %v1890_v62  ;;  %6339 = vrot.lane.b32.xlu1 %v6338_v47, %s6585_s7  ;;  %v1557_v42 = vrot.slane %v7847_v12, 1 }
 0x457   :  { %v6348_v43 = vpack.i.bf16 %v1699_v55, %v1698_v5  ;;  %v1893_v48 = vsel %vm10234_vm5, %v1890_v62, %v1892_v21  ;;  %v1678_v2 = vrot.slane %v7844_v28, 5  ;;  %v1680_v25 = vrot.slane %v7847_v12, 5  ;;  %v7925_v21 = vpop.permute.xlu0 %1505 }
 0x458   :  { %6344 = vrot.lane.b32.xlu0 %v6343_v7, %s6585_s7  ;;  %v1750_v22 = vsel %vm1740_vm6, 1, %v10134_v57  ;;  %v1556_v14 = vsel %vm10235_vm7, %v1553_v56, %v1555_v13  ;;  %v1797_v15 = vrot.slane %v7708_v54, 6  ;;  %v1751_v6 = vsel %vm1741_vm3, 1, %v10134_v57 }
 0x459   :  { %v1558_v52 = vsel %vm10236_vm13, %v1555_v13, %v1557_v42  ;;  %vm1784_vm10 = vcmp.eq.s32.totalorder %v7808_v46, 1  ;;  %vm1785_vm15 = vcmp.eq.s32.totalorder %v7812_v51, 1  ;;  %v6353_v39 = vpack.i.bf16 %v1893_v48, %v1891_v23  ;;  %v7939_v48 = vpop.permute.xlu1 %1508 }
 0x45a   :  { %v10237_v49 = vrot.slane %v7696_v31, 6  ;;  %vm10238_vm4 = vcmask 1041408   ;;  %1777 = vperm.xlu1 %6242, %v1750_v22   ;;  %vm10239_vm12 = vcmp.eq.s32.totalorder %v7448_v36, 1  ;;  %v1679_v56 = vsel %vm10038_vm9, %v1676_v61, %v1678_v2 }
 0x45b   :  { %v1577_v24 = vsel %vm10239_vm12, %v1556_v14, 0.0  ;;  %v1681_v37 = vsel %vm10038_vm9, %v1678_v2, %v1680_v25  ;;  %v1799_v5 = vrot.slane %v7745_v26, 6  ;;  %vm10240_vm2 = vcmp.eq.s32.totalorder %v7452_v18, 1  ;;  %vm10241_vm8 = vmmov %vm10238_vm4 }
 0x45c   :  { %v1798_v38 = vsel %vm10238_vm4, %v10237_v49, %v1797_v15  ;;  %1780 = vperm.xlu0 %6241, %v1751_v6   ;;  %v1578_v46 = vsel %vm10240_vm2, %v1558_v52, 0.0  ;;  %v1584_v32 = vrot.slane %v7708_v54, 2  ;;  %v1586_v11 = vrot.slane %v7745_v26, 2  ;;  %vm10252_vm12 = vmmov %vm10241_vm8 }
 0x45d   :  { %v7904_v27 = vsel %vm1784_vm10, %v1798_v38, 0.0  ;;  %v1800_v0 = vsel %vm10241_vm8, %v1797_v15, %v1799_v5  ;;  %v1625_v36 = vrot.slane %v7708_v54, 4  ;;  %v1627_v61 = vrot.slane %v7745_v26, 4  ;;  %vm10251_vm10 = vmmov %vm10238_vm4 }
 0x45e   :  { %v1588_v62 = vrot.slane %v7754_v60, 2  ;;  %v7914_v47 = vsel %vm1785_vm15, %v1800_v0, 0.0  ;;  %vm10242_vm14 = vcmask 1045504   ;;  %v1590_v55 = vrot.slane %v7784_v19, 2  ;;  %6349 = vrot.lane.b32.xlu1 %v6348_v43, %s6585_s7 }
 0x45f   :  { %v7919_v18 = vsel %vm10242_vm14, %v1582_v44, %v1584_v32  ;;  %vm10243_vm6 = vmmov %vm10242_vm14  ;;  %vm10244_vm1 = vcmp.eq.s32.totalorder %v7470_v29, 1  ;;  %vm10245_vm3 = vcmp.eq.s32.totalorder %v7479_v1, 1  ;;  %v2001_v23 = vpack.c.bf16 %v7914_v47, %v7904_v27 }
 0x460   :  { %v7922_v16 = vsel %vm10243_vm6, %v1584_v32, %v1586_v11  ;;  %v1700_v7 = vsel %vm10244_vm1, %v1679_v56, 0.0  ;;  %v1701_v51 = vsel %vm10245_vm3, %v1681_v37, 0.0  ;;  %v10246_v44 = vrot.slane %v7696_v31, 4  ;;  %6354 = vrot.lane.b32.xlu0 %v6353_v39, %s6585_s7  ;;  %vm10249_vm7 = vmmov %vm10243_vm6  ;;  %v1772_v39 = vpop.permute.xlu0 %1771 }
 0x461   :  { %vm10247_vm11 = vcmask 1043456   ;;  %v7946_v29 = vsel %vm10249_vm7, %v1586_v11, %v1588_v62  ;;  %vm10250_vm13 = vmmov %vm10243_vm6  ;;  %v6358_v42 = vpack.i.bf16 %v1578_v46, %v1577_v24  ;;  %v1801_v2 = vrot.slane %v7754_v60, 6 }
 0x462   :  { %v7937_v13 = vsel %vm10247_vm11, %v10246_v44, %v1625_v36  ;;  %vm10248_vm5 = vmmov %vm10247_vm11  ;;  %v7949_v1 = vsel %vm10250_vm13, %v1588_v62, %v1590_v55  ;;  %v6363_v25 = vpack.i.bf16 %v1701_v51, %v1700_v7  ;;  %v1803_v22 = vrot.slane %v7784_v19, 6 }
 0x463   :  { %v7943_v43 = vsel %vm10248_vm5, %v1625_v36, %v1627_v61  ;;  %6359 = vrot.lane.b32.xlu1 %v6358_v42, %s6585_s7  ;;  %v1802_v14 = vsel %vm10251_vm10, %v1799_v5, %v1801_v2  ;;  %v1592_v15 = vrot.slane %v7795_v20, 2  ;;  %vm1787_vm15 = vcmp.eq.s32.totalorder %v1769_v34, 1  ;;  %vm10253_vm2 = vmmov %vm10243_vm6  ;;  %v1775_v34 = vpop.permute.xlu1 %1774 }
 0x464   :  { %vm1786_vm4 = vcmp.eq.s32.totalorder %v1766_v40, 1  ;;  %6364 = vrot.lane.b32.xlu0 %v6363_v25, %s6585_s7  ;;  %v1804_v6 = vsel %vm10252_vm12, %v1801_v2, %v1803_v22  ;;  %v1629_v52 = vrot.slane %v7754_v60, 4  ;;  %v1807_v24 = vrot.slane %v7832_v45, 6  ;;  %vm10254_vm8 = vmmov %vm10248_vm5 }
 0x465   :  { %v7959_v49 = vsel %vm1786_vm4, %v1802_v14, 0.0  ;;  %v7961_v38 = vsel %vm1787_vm15, %v1804_v6, 0.0  ;;  %v7967_v56 = vsel %vm10253_vm2, %v1590_v55, %v1592_v15  ;;  %v1631_v5 = vrot.slane %v7784_v19, 4  ;;  %vm10255_vm1 = vmmov %vm10248_vm5  ;;  %v10260_v6 = vld [vmem:[#allocation5_spill] sm:$0xff] }
 0x466   :  { %v2005_v40 = vpack.c.bf16 %v7961_v38, %v7959_v49  ;;  %v7972_v37 = vsel %vm10254_vm8, %v1627_v61, %v1629_v52  ;;  %v1805_v46 = vrot.slane %v7795_v20, 6  ;;  %vm1788_vm14 = vcmp.eq.s32.totalorder %v1772_v39, 1  ;;  %vm10256_vm3 = vmmov %vm10251_vm10 }
 0x467   :  { %v1633_v32 = vrot.slane %v7795_v20, 4  ;;  %vm1789_vm6 = vcmp.eq.s32.totalorder %v1775_v34, 1  ;;  %v7978_v11 = vsel %vm10255_vm1, %v1629_v52, %v1631_v5  ;;  %vm10257_vm11 = vmmov %vm10256_vm3  ;;  %vm1516_vm7 = vcmp.eq.s32.totalorder %v7646_v9, 1 }
 0x468   :  { %v1806_v0 = vsel %vm10256_vm3, %v1803_v22, %v1805_v46  ;;  %v1808_v36 = vsel %vm10257_vm11, %v1805_v46, %v1807_v24  ;;  %vm10258_vm5 = vmmov %vm10255_vm1  ;;  %vm1517_vm13 = vcmp.eq.s32.totalorder %v7654_v8, 1  ;;  %vm10259_vm10 = vcmp.eq.s32.totalorder %v6903_v4, 1 }
 0x469   :  { %v7984_v62 = vsel %vm1788_vm14, %v1806_v0, 0.0  ;;  %v7986_v61 = vsel %vm1789_vm6, %v1808_v36, 0.0  ;;  %v7991_v55 = vsel %vm10258_vm5, %v1631_v5, %v1633_v32  ;;  %v1610_v14 = vsel %vm10259_vm10, %v7652_v17, 0.0 }
 0x46a   :  { %v2009_v7 = vpack.c.bf16 %v7986_v61, %v7984_v62  ;;  %vm10261_vm15 = vcmp.eq.s32.totalorder %v10260_v6, 1  ;;  %v1526_v39 = vsel %vm1516_vm7, %v7607_v59, 0.0  ;;  %v1527_v34 = vsel %vm1517_vm13, %v7614_v3, 0.0  ;;  %v10268_v59 = vld [vmem:[#allocation3_spill] sm:$0xff] }
 0x46b   :  { %v1611_v52 = vsel %vm10261_vm15, %v7857_v58, 0.0  ;;  %vm10262_vm4 = vcmask 523264   ;;  %vm10269_vm6 = vcmp.eq.s32.totalorder %v10268_v59, 1  ;;  %vm1518_vm11 = vcmp.eq.s32.totalorder %v7772_v35, 1 }
 0x46c   :  { %vm10263_vm12 = vmmov %vm10262_vm4  ;;  %v1652_v3 = vsel %vm10269_vm6, %v7828_v30, 0.0  ;;  %vm1519_vm5 = vcmp.eq.s32.totalorder %v7777_v41, 1  ;;  %vm10272_vm7 = vcmp.eq.s32.totalorder %v6911_v10, 1  ;;  %v1635_v38 = vrot.slane %v7832_v45, 4 }
 0x46d   :  { %vm10264_vm2 = vmmov %vm10262_vm4  ;;  %v1612_v30 = vsel %vm10272_vm7, %v7919_v18, 0.0 }
 0x46e   :  { %vm10265_vm8 = vmmov %vm10264_vm2 }
 0x46f   :  { %vm10270_vm1 = vmmov %vm10264_vm2 }
 0x470   :  { %vm10271_vm3 = vmmov %vm10270_vm1 }
 0x471   :  { %vm10275_vm10 = vmmov %vm10270_vm1 }
 0x472   :  { %vm10276_vm15 = vmmov %vm10270_vm1 }
 0x4ad   :  { %v6295_v51 = vpop.permute.xlu0 %6294 }
 0x4ae   :  { %v6297_v44 = vunpack.i.h.bf16 %v6295_v51  ;;  %v6296_v42 = vunpack.i.l.bf16 %v6295_v51  ;;  %v6300_v2 = vpop.permute.xlu1 %6299 }
 0x4af   :  { %v6302_v25 = vunpack.i.h.bf16 %v6300_v2  ;;  %v6301_v22 = vunpack.i.l.bf16 %v6300_v2  ;;  %v10266_v2 = vld [vmem:[#allocation2_spill] sm:$0xff] }
 0x4b0   :  { %v1974_v9 = vsel %vm10262_vm4, %v1610_v14, %v6296_v42  ;;  %v1975_v8 = vsel %vm10263_vm12, %v1611_v52, %v6297_v44  ;;  %vm10267_vm14 = vcmp.eq.s32.totalorder %v10266_v2, 1  ;;  %vm10277_vm4 = vmmov %vm10270_vm1  ;;  %v10284_v2 = vld [vmem:[#allocation9_spill] sm:$0xff] }
 0x4b1   :  { %v1965_v5 = vsel %vm10264_vm2, %v1527_v34, %v6302_v25  ;;  %v1964_v46 = vsel %vm10265_vm8, %v1526_v39, %v6301_v22  ;;  %v6305_v0 = vpop.permute.xlu0 %6304  ;;  %v1995_v36 = vpack.c.bf16 %v1975_v8, %v1974_v9  ;;  %v1651_v58 = vsel %vm10267_vm14, %v7644_v53, 0.0  ;;  %v10273_v34 = vld [vmem:[#allocation8_spill] sm:$0xff]  ;;  %vm10278_vm12 = vmmov %vm10270_vm1 }
 0x4b2   :  { %v1994_v4 = vpack.c.bf16 %v1965_v5, %v1964_v46  ;;  %v6307_v17 = vunpack.i.h.bf16 %v6305_v0  ;;  %v6306_v51 = vunpack.i.l.bf16 %v6305_v0  ;;  %vm10274_vm13 = vcmp.eq.s32.totalorder %v10273_v34, 1  ;;  %vm10279_vm2 = vmmov %vm10270_vm1 }
 0x4b3   :  { %2292 = vmatprep.mubr.bf16.mxu0 %v1995_v36  ;;  %v1613_v9 = vsel %vm10274_vm13, %v7922_v16, 0.0  ;;  %v1528_v8 = vsel %vm1518_vm11, %v7696_v31, 0.0  ;;  %v1529_v5 = vsel %vm1519_vm5, %v7708_v54, 0.0  ;;  %vm1521_vm8 = vcmp.eq.s32.totalorder %v7841_v50, 1  ;;  %v10280_v31 = vld [vmem:[#allocation4_spill] sm:$0xff]  ;;  %vm10288_vm13 = vmmov %vm10279_vm2  ;;  %v10293_v50 = vld [vmem:[#allocation13_spill] sm:$0xff] }
 0x4b4   :  { %v1985_v44 = vsel %vm10270_vm1, %v1652_v3, %v6307_v17  ;;  %v1984_v42 = vsel %vm10271_vm3, %v1651_v58, %v6306_v51  ;;  %2293 = vmatmul.mubr.bf16.vlgmr.msra.gmra.mrb[36].mxu0 %v1994_v4  ;;  %vm1520_vm14 = vcmp.eq.s32.totalorder %v7859_v63, 1  ;;  %vm10281_vm6 = vcmp.eq.s32.totalorder %v10280_v31, 1  ;;  %v10282_v17 = vld [vmem:[#allocation6_spill] sm:$0xff] }
 0x4b5   :  { %v1996_v25 = vpack.c.bf16 %v1985_v44, %v1984_v42  ;;  %v1653_v54 = vsel %vm10281_vm6, %v7937_v13, 0.0  ;;  %vm10283_vm1 = vcmp.eq.s32.totalorder %v10282_v17, 1  ;;  %vm10285_vm3 = vcmp.eq.s32.totalorder %v10284_v2, 1  ;;  %v10286_v44 = vld [vmem:[#allocation12_spill] sm:$0xff] }
 0x4b6   :  { %v6310_v22 = vpop.permute.xlu1 %6309  ;;  %v1654_v51 = vsel %vm10283_vm1, %v7943_v43, 0.0  ;;  %v1614_v58 = vsel %vm10285_vm3, %v7946_v29, 0.0  ;;  %vm1522_vm11 = vcmp.eq.s32.totalorder %v7925_v21, 1  ;;  %vm1523_vm5 = vcmp.eq.s32.totalorder %v7939_v48, 1  ;;  %v10304_v17 = vld [vmem:[#allocation16_spill] sm:$0xff] }
 0x4b7   :  { %v6312_v14 = vunpack.i.h.bf16 %v6310_v22  ;;  %v6311_v6 = vunpack.i.l.bf16 %v6310_v22  ;;  %v6315_v52 = vpop.permute.xlu0 %6314  ;;  %2366 = vmatmul.mubr.bf16.vlgmr.msra.gmra.mrb[20].mxu1 %v1996_v25  ;;  %vm10287_vm7 = vcmp.eq.s32.totalorder %v10286_v44, 1  ;;  %v1594_v42 = vrot.slane %v7832_v45, 2 }
 0x4b8   :  { %v6317_v53 = vunpack.i.h.bf16 %v6315_v52  ;;  %v6316_v39 = vunpack.i.l.bf16 %v6315_v52  ;;  %5614 = vmatprep.mubr.msk.bf16.mxu1 %vm10275_vm10, %v2001_v23  ;;  %v1615_v13 = vsel %vm10287_vm7, %v7949_v1, 0.0  ;;  %vm10289_vm10 = vmmov %vm10279_vm2  ;;  %v1530_v29 = vsel %vm1520_vm14, %v7745_v26, 0.0 }
 0x4b9   :  { %v1976_v35 = vsel %vm10276_vm15, %v1612_v30, %v6311_v6  ;;  %v1977_v41 = vsel %vm10277_vm4, %v1613_v9, %v6312_v14  ;;  %v1531_v22 = vsel %vm1521_vm8, %v7754_v60, 0.0  ;;  %vm10290_vm15 = vmmov %vm10279_vm2 }
 0x4ba   :  { %v1999_v46 = vpack.c.bf16 %v1977_v41, %v1976_v35  ;;  %v1966_v10 = vsel %vm10278_vm12, %v1528_v8, %v6316_v39  ;;  %v1967_v18 = vsel %vm10279_vm2, %v1529_v5, %v6317_v53  ;;  %vm10291_vm4 = vmmov %vm10279_vm2  ;;  %v1809_v53 = vrot.slane %v7844_v28, 6 }
 0x4bb   :  { %v1998_v0 = vpack.c.bf16 %v1967_v18, %v1966_v10  ;;  %v1811_v35 = vrot.slane %v7847_v12, 6  ;;  %vm10292_vm12 = vcmask 1045504   ;;  %vm10294_vm2 = vcmp.eq.s32.totalorder %v10293_v50, 1  ;;  %vm10295_vm8 = vmmov %vm10291_vm4 }
 0x4bc   :  { %2300 = vmatprep.mubr.bf16.mxu0 %v1999_v46  ;;  %v1595_v60 = vsel %vm10292_vm12, %v1592_v15, %v1594_v42  ;;  %v1616_v41 = vsel %vm10294_vm2, %v7967_v56, 0.0  ;;  %vm10296_vm14 = vmmov %vm10291_vm4  ;;  %v10298_v46 = vld [vmem:[#allocation7_spill] sm:$0xff]  ;;  %v10300_v15 = vld [vmem:[#allocation10_spill] sm:$0xff] }
 0x4bd   :  { %2301 = vmatmul.mubr.bf16.gmra.mrb[40].mxu0 %v1998_v0  ;;  %vm10297_vm6 = vmmov %vm10291_vm4  ;;  %vm10299_vm1 = vcmp.eq.s32.totalorder %v10298_v46, 1  ;;  %vm10301_vm3 = vcmp.eq.s32.totalorder %v10300_v15, 1 }
 0x4be   :  { %v1655_v10 = vsel %vm10299_vm1, %v7972_v37, 0.0  ;;  %v1656_v18 = vsel %vm10301_vm3, %v7978_v11, 0.0  ;;  %vm10302_vm7 = vmmov %vm10291_vm4 }
 0x4bf   :  { %vm10307_vm12 = vmmov %vm10291_vm4 }
 0x4c0   :  { %vm10308_vm2 = vmmov %vm10291_vm4 }
 0x4c7   :  { %v8035_v16 = vpop.permute.xlu1 %1511 }
 0x4c8   :  { %v8037_v27 = vpop.permute.xlu0 %1514 }
 0x4cb   :  { %v6320_v47 = vpop.permute.xlu1 %6319 }
 0x4cc   :  { %v6322_v23 = vunpack.i.h.bf16 %v6320_v47  ;;  %v6321_v36 = vunpack.i.l.bf16 %v6320_v47  ;;  %v6325_v4 = vpop.permute.xlu0 %6324 }
 0x4cd   :  { %v6327_v59 = vunpack.i.h.bf16 %v6325_v4  ;;  %v6326_v3 = vunpack.i.l.bf16 %v6325_v4 }
 0x4ce   :  { %v1986_v25 = vsel %vm10288_vm13, %v1653_v54, %v6321_v36  ;;  %v1987_v43 = vsel %vm10289_vm10, %v1654_v51, %v6322_v23  ;;  %vm10303_vm13 = vmmov %vm10291_vm4  ;;  %v1596_v36 = vrot.slane %v7844_v28, 2  ;;  %vm10305_vm10 = vcmp.eq.s32.totalorder %v10304_v17, 1 }
 0x4cf   :  { %v6330_v14 = vpop.permute.xlu1 %6329  ;;  %v2000_v6 = vpack.c.bf16 %v1987_v43, %v1986_v25  ;;  %v1978_v52 = vsel %vm10290_vm15, %v1614_v58, %v6326_v3  ;;  %v1979_v1 = vsel %vm10291_vm4, %v1615_v13, %v6327_v59  ;;  %v1617_v11 = vsel %vm10305_vm10, %v1595_v60, 0.0  ;;  %vm10306_vm15 = vmmov %vm10291_vm4 }
 0x4d0   :  { %v6332_v39 = vunpack.i.h.bf16 %v6330_v14  ;;  %v6331_v30 = vunpack.i.l.bf16 %v6330_v14  ;;  %v6335_v34 = vpop.permute.xlu0 %6334  ;;  %v2003_v9 = vpack.c.bf16 %v1979_v1, %v1978_v52  ;;  %v1598_v51 = vrot.slane %v7847_v12, 2  ;;  %v10317_v1 = vld [vmem:[#allocation14_spill] sm:$0xff] }
 0x4d1   :  { %v6337_v63 = vunpack.i.h.bf16 %v6335_v34  ;;  %v6336_v26 = vunpack.i.l.bf16 %v6335_v34  ;;  %2374 = vmatmul.mubr.bf16.gmra.mrb[24].mxu1 %v2000_v6  ;;  %v1532_v59 = vsel %vm1522_vm11, %v7784_v19, 0.0  ;;  %v1533_v3 = vsel %vm1523_vm5, %v7795_v20, 0.0 }
 0x4d2   :  { %2308 = vmatprep.mubr.bf16.mxu0 %v2003_v9  ;;  %5615 = vmatprep.mubr.msk.bf16.mxu1 %vm10295_vm8, %v2005_v40  ;;  %v1968_v8 = vsel %vm10296_vm14, %v1530_v29, %v6331_v30  ;;  %v1969_v5 = vsel %vm10297_vm6, %v1531_v22, %v6332_v39  ;;  %vm10309_vm8 = vcmask 1043456   ;;  %vm10310_vm14 = vcmask 1045504   ;;  %v10319_v30 = vld [vmem:[#allocation17_spill] sm:$0xff] }
 0x4d3   :  { %v6340_v0 = vpop.permute.xlu1 %6339  ;;  %v2002_v56 = vpack.c.bf16 %v1969_v5, %v1968_v8  ;;  %v1988_v47 = vsel %vm10302_vm7, %v1655_v10, %v6336_v26  ;;  %v1989_v49 = vsel %vm10303_vm13, %v1656_v18, %v6337_v63  ;;  %v1636_v14 = vsel %vm10309_vm8, %v1633_v32, %v1635_v38  ;;  %vm10311_vm11 = vmmov %vm10310_vm14  ;;  %v10315_v32 = vld [vmem:[#allocation11_spill] sm:$0xff] }
 0x4d4   :  { %v6342_v40 = vunpack.i.h.bf16 %v6340_v0  ;;  %v6341_v31 = vunpack.i.l.bf16 %v6340_v0  ;;  %v6345_v54 = vpop.permute.xlu0 %6344  ;;  %v2004_v23 = vpack.c.bf16 %v1989_v49, %v1988_v47  ;;  %v1597_v6 = vsel %vm10310_vm14, %v1594_v42, %v1596_v36  ;;  %vm10314_vm7 = vmmov %vm10308_vm2  ;;  %v10321_v63 = vld [vmem:[#allocation19_spill] sm:$0xff] }
 0x4d5   :  { %v6347_v4 = vunpack.i.h.bf16 %v6345_v54  ;;  %v6346_v37 = vunpack.i.l.bf16 %v6345_v54  ;;  %2309 = vmatmul.mubr.bf16.gmra.mrb[44].mxu0 %v2002_v56  ;;  %v1637_v19 = vrot.slane %v7844_v28, 4  ;;  %v1599_v21 = vsel %vm10311_vm11, %v1596_v36, %v1598_v51  ;;  %vm10324_vm14 = vmmov %vm10314_vm7 }
 0x4d6   :  { %v1980_v2 = vsel %vm10306_vm15, %v1616_v41, %v6341_v31  ;;  %v1981_v58 = vsel %vm10291_vm4, %v1617_v11, %v6342_v40  ;;  %vm10312_vm6 = vcmask 1041408   ;;  %vm10316_vm13 = vcmp.eq.s32.totalorder %v10315_v32, 1  ;;  %vm10325_vm11 = vmmov %vm10314_vm7  ;;  %v2406_v11 = vld [vmem:[%s9957_s11] sm:$0xf] }
 0x4d7   :  { %v2007_v13 = vpack.c.bf16 %v1981_v58, %v1980_v2  ;;  %v1970_v25 = vsel %vm10307_vm12, %v1532_v59, %v6346_v37  ;;  %v1971_v43 = vsel %vm10308_vm2, %v1533_v3, %v6347_v4  ;;  %v1810_v48 = vsel %vm10312_vm6, %v1807_v24, %v1809_v53  ;;  %vm10313_vm1 = vmmov %vm10312_vm6  ;;  %v10334_v4 = vld [vmem:[#allocation18_spill] sm:$0xff] }
 0x4d8   :  { %v2006_v22 = vpack.c.bf16 %v1971_v43, %v1970_v25  ;;  %v1812_v52 = vsel %vm10313_vm1, %v1809_v53, %v1811_v35  ;;  %v1657_v42 = vsel %vm10316_vm13, %v7991_v55, 0.0  ;;  %vm10318_vm10 = vcmp.eq.s32.totalorder %v10317_v1, 1  ;;  %vm10323_vm12 = vmmov %vm10309_vm8  ;;  %v8162_v3 = vld [vmem:[%s9958_s10] ss:$0 sm:$0xff]  ;;  %s6589_s10 = smov 32  }
 0x4d9   :  { %v1778_v44 = vpop.permute.xlu1 %1777  ;;  %2316 = vmatprep.mubr.bf16.mxu0 %v2007_v13  ;;  %2382 = vmatmul.mubr.bf16.gmra.mrb[28].mxu1 %v2004_v23  ;;  %v1658_v39 = vsel %vm10318_vm10, %v1636_v14, 0.0  ;;  %vm10320_vm15 = vcmp.eq.s32.totalorder %v10319_v30, 1  ;;  %v1639_v24 = vrot.slane %v7847_v12, 4  ;;  %vm10322_vm4 = vcmp.eq.s32.totalorder %v10321_v63, 1  ;;  %vm10326_vm6 = vmmov %vm10314_vm7  ;;  %v10332_v23 = vld [vmem:[#allocation15_spill] sm:$0xff] }
 0x4da   :  { %vm1790_vm5 = vcmp.eq.s32.totalorder %v1778_v44, 1  ;;  %5616 = vmatprep.mubr.msk.bf16.mxu1 %vm10314_vm7, %v2009_v7  ;;  %v1618_v34 = vsel %vm10320_vm15, %v1597_v6, 0.0  ;;  %v1619_v62 = vsel %vm10322_vm4, %v1599_v21, 0.0  ;;  %v1638_v61 = vsel %vm10323_vm12, %v1635_v38, %v1637_v19  ;;  %vm10327_vm1 = vmmov %vm10326_vm6 }
 0x4db   :  { %v1781_v29 = vpop.permute.xlu0 %1780  ;;  %v1831_v7 = vsel %vm1790_vm5, %v1810_v48, 0.0  ;;  %vm1524_vm2 = vcmp.eq.s32.totalorder %v8035_v16, 1  ;;  %vm1525_vm8 = vcmp.eq.s32.totalorder %v8037_v27, 1  ;;  %vm10328_vm7 = vmmov %vm10323_vm12  ;;  %vm10333_vm10 = vcmp.eq.s32.totalorder %v10332_v23, 1 }
 0x4dc   :  { %vm1791_vm3 = vcmp.eq.s32.totalorder %v1781_v29, 1  ;;  %v1640_v10 = vsel %vm10328_vm7, %v1637_v19, %v1639_v24  ;;  %v1534_v16 = vsel %vm1524_vm2, %v7832_v45, 0.0  ;;  %v1535_v27 = vsel %vm1525_vm8, %v7844_v28, 0.0  ;;  %vm10329_vm5 = vmmov %vm10327_vm1 }
 0x4dd   :  { %v6350_v20 = vpop.permute.xlu1 %6349  ;;  %v1832_v26 = vsel %vm1791_vm3, %v1812_v52, 0.0  ;;  %2317 = vmatmul.mubr.bf16.gmra.mrb[48].mxu0 %v2006_v22  ;;  %vm10330_vm3 = vmmov %vm10327_vm1  ;;  %v1659_v36 = vsel %vm10333_vm10, %v1638_v61, 0.0  ;;  %vm10335_vm15 = vcmp.eq.s32.totalorder %v10334_v4, 1  ;;  %vm10040_vm2 = vcmask 261120  }
 0x4de   :  { %v6352_v53 = vunpack.i.h.bf16 %v6350_v20  ;;  %v6351_v9 = vunpack.i.l.bf16 %v6350_v20  ;;  %v2013_v15 = vpack.c.bf16 %v1832_v26, %v1831_v7  ;;  %vm10331_vm13 = vmmov %vm10327_vm1  ;;  %v1660_v37 = vsel %vm10335_vm15, %v1640_v10, 0.0  ;;  %6002 = vmatprep.subr.msk.mxu0 %vm10040_vm2, %v2406_v11 }
 0x4df   :  { %v6355_v35 = vpop.permute.xlu0 %6354  ;;  %vm10336_vm4 = vmmov %vm10327_vm1  ;;  %v2556_v51 = vmul.f32 %v2406_v11, %v2406_v11  ;;  %6003 = vmatpush3.xpose.msk.msra.mxu0 %vm10040_vm2, %v2406_v11  ;;  %v10044_v2 = vmov 1.0  }
 0x4e0   :  { %v6357_v60 = vunpack.i.h.bf16 %v6355_v35  ;;  %v6356_v55 = vunpack.i.l.bf16 %v6355_v35  ;;  %v1990_v50 = vsel %vm10324_vm14, %v1657_v42, %v6351_v9  ;;  %v1991_v12 = vsel %vm10325_vm11, %v1658_v39, %v6352_v53  ;;  %vm10337_vm12 = vmmov %vm10327_vm1 }
 0x4e1   :  { %v6360_v41 = vpop.permute.xlu1 %6359  ;;  %v2008_v8 = vpack.c.bf16 %v1991_v12, %v1990_v50  ;;  %6020 = vmatpush3.xpose.msk.msra.mxu1 %vm10040_vm2, %v2556_v51  ;;  %vm10338_vm8 = vmmov %vm10328_vm7  ;;  %vm10039_vm11 = vcmask 31744  }
 0x4e2   :  { %v1982_v5 = vsel %vm10326_vm6, %v1618_v34, %v6356_v55  ;;  %v1983_v46 = vsel %vm10327_vm1, %v1619_v62, %v6357_v60  ;;  %v6362_v18 = vunpack.i.h.bf16 %v6360_v41  ;;  %v6361_v0 = vunpack.i.l.bf16 %v6360_v41  ;;  %6024 = vmatprep.subr.msk.mxu1 %vm10338_vm8, %v2406_v11  ;;  %vm10339_vm14 = vmmov %vm10328_vm7 }
 0x4e3   :  { %v6365_v56 = vpop.permute.xlu0 %6364  ;;  %v2011_v47 = vpack.c.bf16 %v1983_v46, %v1982_v5  ;;  %2390 = vmatmul.mubr.bf16.gmra.mrb[32].mxu1 %v2008_v8 }
 0x4e4   :  { %v6367_v49 = vunpack.i.h.bf16 %v6365_v56  ;;  %v6366_v38 = vunpack.i.l.bf16 %v6365_v56  ;;  %5617 = vmatprep.mubr.msk.bf16.mxu1 %vm10329_vm5, %v2013_v15  ;;  %v1972_v40 = vsel %vm10330_vm3, %v1534_v16, %v6361_v0  ;;  %v1973_v31 = vsel %vm10331_vm13, %v1535_v27, %v6362_v18 }
 0x4e5   :  { %2324 = vmatprep.mubr.bf16.mxu0 %v2011_v47  ;;  %v2010_v54 = vpack.c.bf16 %v1973_v31, %v1972_v40 }
 0x4e6   :  { %v1992_v45 = vsel %vm10336_vm4, %v1659_v36, %v6366_v38  ;;  %v1993_v28 = vsel %vm10337_vm12, %v1660_v37, %v6367_v49 }
 0x4e7   :  { %2325 = vmatmul.mubr.bf16.gmra.mrb[52].mxu0 %v2010_v54  ;;  %v2012_v17 = vpack.c.bf16 %v1993_v28, %v1992_v45 }
 0x4eb   :  { %2398 = vmatmul.mubr.bf16.gmra.mrb[36].mxu1 %v2012_v17 }
 0x4ec   :  { %6021 = vmatprep.mubr.msk.f32.mxu1 %vm10127_vm0, %v10126_v33 }
 0x4f3   :  { %6022 = vmatmul.mubr.msk.f32.vlgmr.msra.gmra.mrb[40].mxu1 %vm10040_vm2, %v10044_v2 }
 0x4f4   :  { %6025 = vmatpush3.msk.msra.mxu1 %vm10339_vm14, %v2406_v11 }
 0x4f5   :  { %6081 = vmatprep.subr.mxu1 %v10126_v33 }
 0x587   :  { %v5824_v58 = vpop.f32.mrb[36].mxu0 }
 0x588   :  { %v5825_v59 = vpop.f32.mrb[37].mxu0 }
 0x589   :  { %v5826_v44 = vadd.f32 %v5825_v59, %v5824_v58  ;;  %v5827_v13 = vpop.f32.mrb[38].mxu0 }
 0x58a   :  { %v5828_v25 = vpop.f32.mrb[39].mxu0  ;;  %v2367_v43 = vpop.f32.mrb[20].mxu1 }
 0x58b   :  { %v5829_v29 = vadd.f32 %v5828_v25, %v5827_v13  ;;  %v2295_v22 = vadd.f32 %v5826_v44, %v8162_v3  ;;  %v2369_v14 = vpop.f32.mrb[21].mxu1 }
 0x58c   :  { %v2370_v6 = vpop.f32.mrb[22].mxu1 }
 0x58d   :  { %v8165_v19 = vadd.f32 %v2367_v43, %v2295_v22  ;;  %v2298_v21 = vadd.f32 %v5829_v29, %v8162_v3  ;;  %v2372_v48 = vpop.f32.mrb[23].mxu1 }
 0x58f   :  { %v8168_v52 = vadd.f32 %v2370_v6, %v2298_v21  ;;  %6004 = vmatprep.mubr.msk.f32.mxu0 %vm10040_vm2, %v8165_v19 }
 0x590   :  { %v5830_v20 = vpop.f32.mrb[40].mxu0 }
 0x591   :  { %v5831_v32 = vpop.f32.mrb[41].mxu0  ;;  %6005 = vmatmul.mubr.msk.f32.vlgmr.msra.gmra.mrb[14].mxu0 %vm10040_vm2, %v8168_v52 }
 0x592   :  { %v5832_v42 = vadd.f32 %v5831_v32, %v5830_v20  ;;  %v5833_v1 = vpop.f32.mrb[42].mxu0  ;;  %v2643_v20 = vlaneseq }
 0x593   :  { %v5834_v39 = vpop.f32.mrb[43].mxu0 }
 0x594   :  { %v5835_v30 = vadd.f32 %v5834_v39, %v5833_v1  ;;  %v2303_v34 = vadd.f32 %v5832_v42, %v8162_v3  ;;  %v8216_v32 = vshrl.u32 %v2643_v20, 7 }
 0x596   :  { %v2306_v35 = vadd.f32 %v5835_v30, %v8162_v3 }
 0x5a4   :  { %v2375_v24 = vpop.f32.mrb[24].mxu1 }
 0x5a5   :  { %v8175_v53 = vadd.f32 %v2375_v24, %v2303_v34  ;;  %v2377_v9 = vpop.f32.mrb[25].mxu1 }
 0x5a6   :  { %v2378_v63 = vpop.f32.mrb[26].mxu1 }
 0x5a7   :  { %v8178_v62 = vadd.f32 %v2378_v63, %v2306_v35  ;;  %v2380_v61 = vpop.f32.mrb[27].mxu1  ;;  %6007 = vmatprep.mubr.msk.f32.mxu0 %vm10040_vm2, %v8175_v53 }
 0x5a8   :  { %v5836_v7 = vpop.f32.mrb[44].mxu0 }
 0x5a9   :  { %v5837_v26 = vpop.f32.mrb[45].mxu0  ;;  %6008 = vmatmul.mubr.msk.f32.gmra.mrb[56].mxu0 %vm10040_vm2, %v8178_v62 }
 0x5aa   :  { %v5838_v60 = vadd.f32 %v5837_v26, %v5836_v7  ;;  %v5839_v55 = vpop.f32.mrb[46].mxu0 }
 0x5ab   :  { %v5840_v50 = vpop.f32.mrb[47].mxu0 }
 0x5ac   :  { %v5841_v12 = vadd.f32 %v5840_v50, %v5839_v55  ;;  %v2311_v41 = vadd.f32 %v5838_v60, %v8162_v3  ;;  %v2383_v8 = vpop.f32.mrb[28].mxu1 }
 0x5ad   :  { %v2385_v5 = vpop.f32.mrb[29].mxu1 }
 0x5ae   :  { %v8185_v46 = vadd.f32 %v2383_v8, %v2311_v41  ;;  %v2314_v10 = vadd.f32 %v5841_v12, %v8162_v3  ;;  %v2386_v15 = vpop.f32.mrb[30].mxu1 }
 0x5af   :  { %v2388_v18 = vpop.f32.mrb[31].mxu1 }
 0x5b0   :  { %v8188_v0 = vadd.f32 %v2386_v15, %v2314_v10  ;;  %v5842_v56 = vpop.f32.mrb[48].mxu0  ;;  %6010 = vmatprep.mubr.msk.f32.mxu0 %vm10040_vm2, %v8185_v46 }
 0x5b1   :  { %v5843_v47 = vpop.f32.mrb[49].mxu0 }
 0x5b2   :  { %v5844_v16 = vadd.f32 %v5843_v47, %v5842_v56  ;;  %v5845_v27 = vpop.f32.mrb[50].mxu0  ;;  %6011 = vmatmul.mubr.msk.f32.gmra.mrb[58].mxu0 %vm10040_vm2, %v8188_v0 }
 0x5b3   :  { %v5846_v49 = vpop.f32.mrb[51].mxu0 }
 0x5b4   :  { %v5847_v38 = vadd.f32 %v5846_v49, %v5845_v27  ;;  %v2319_v40 = vadd.f32 %v5844_v16, %v8162_v3 }
 0x5b6   :  { %v2391_v31 = vpop.f32.mrb[32].mxu1  ;;  %v2322_v36 = vadd.f32 %v5847_v38, %v8162_v3 }
 0x5b7   :  { %v2393_v54 = vpop.f32.mrb[33].mxu1  ;;  %v8195_v23 = vadd.f32 %v2391_v31, %v2319_v40 }
 0x5b8   :  { %v2394_v4 = vpop.f32.mrb[34].mxu1 }
 0x5b9   :  { %v2396_v37 = vpop.f32.mrb[35].mxu1  ;;  %v8198_v45 = vadd.f32 %v2394_v4, %v2322_v36  ;;  %6013 = vmatprep.mubr.msk.f32.mxu0 %vm10040_vm2, %v8195_v23 }
 0x5ba   :  { %v5848_v28 = vpop.f32.mrb[52].mxu0 }
 0x5bb   :  { %v5849_v17 = vpop.f32.mrb[53].mxu0  ;;  %6014 = vmatmul.mubr.msk.f32.gmra.mrb[60].mxu0 %vm10040_vm2, %v8198_v45 }
 0x5bc   :  { %v5850_v11 = vadd.f32 %v5849_v17, %v5848_v28  ;;  %v5851_v51 = vpop.f32.mrb[54].mxu0 }
 0x5bd   :  { %v5852_v58 = vpop.f32.mrb[55].mxu0 }
 0x5be   :  { %v5853_v59 = vadd.f32 %v5852_v58, %v5851_v51  ;;  %v2327_v44 = vadd.f32 %v5850_v11, %v8162_v3  ;;  %v2399_v13 = vpop.f32.mrb[36].mxu1 }
 0x5bf   :  { %v2401_v25 = vpop.f32.mrb[37].mxu1 }
 0x5c0   :  { %v8205_v43 = vadd.f32 %v2399_v13, %v2327_v44  ;;  %v2330_v29 = vadd.f32 %v5853_v59, %v8162_v3  ;;  %v2402_v22 = vpop.f32.mrb[38].mxu1  ;;  %v2645_v3 = vsub.s32 0, %v8216_v32  ;;  %v8243_v13 = vand.u32 127, %v2643_v20 }
 0x5c1   :  { %v2404_v14 = vpop.f32.mrb[39].mxu1 }
 0x5c2   :  { %v8208_v6 = vadd.f32 %v2402_v22, %v2330_v29  ;;  %6016 = vmatprep.mubr.msk.f32.mxu0 %vm10040_vm2, %v8205_v43  ;;  %10340 = vst [vmem:[#allocation21_spill] sm:$0xff] %v8243_v13 }
 0x5c4   :  { %6017 = vmatmul.mubr.msk.f32.gmra.mrb[62].mxu0 %vm10040_vm2, %v8208_v6 }
 0x5c5   :  { %6061 = vmatprep.mubr.msk.f32.mxu0 %vm10127_vm0, %v10126_v33 }
 0x5c6   :  { %v2629_v21 = vpop.f32.mrb[40].mxu1 }
 0x5c7   :  { %v6023_v48 = vpop.f32.mrb[41].mxu1  ;;  %v2646_v42 = vrot.slane %v2629_v21, %v2645_v3 }
 0x664   :  { %v6006_v1 = vpop.f32.mrb[14].mxu0 }
 0x665   :  { %v2634_v39 = vmul.f32 2.0, %v6006_v1  ;;  %v2507_v30 = vpop.f32.mrb[15].mxu0 }
 0x666   :  { %v2633_v34 = vmul.f32 2.0, %v2507_v30 }
 0x667   :  { %v2648_v24 = vsub.f32 %v2646_v42, %v2634_v39 }
 0x668   :  { %v2647_v9 = vsub.f32 %v2646_v42, %v2633_v34 }
 0x669   :  { %v2661_v35 = vsel %vm10039_vm11, %v2648_v24, inf }
 0x66a   :  { %2662 = vmin.xlane.f32.xlu0 %v2661_v35  ;;  %v2658_v63 = vsel %vm10039_vm11, %v2647_v9, inf }
 0x66b   :  { %2659 = vmin.xlane.f32.xlu1 %v2658_v63 }
 0x67c   :  { %v6009_v61 = vpop.f32.mrb[56].mxu0 }
 0x67d   :  { %v2636_v7 = vmul.f32 2.0, %v6009_v61  ;;  %v2517_v26 = vpop.f32.mrb[57].mxu0 }
 0x67e   :  { %v2635_v60 = vmul.f32 2.0, %v2517_v26 }
 0x67f   :  { %v2650_v55 = vsub.f32 %v2646_v42, %v2636_v7 }
 0x680   :  { %v2649_v50 = vsub.f32 %v2646_v42, %v2635_v60 }
 0x681   :  { %v2667_v12 = vsel %vm10039_vm11, %v2650_v55, inf }
 0x682   :  { %2668 = vmin.xlane.f32.xlu1 %v2667_v12  ;;  %v2664_v41 = vsel %vm10039_vm11, %v2649_v50, inf }
 0x683   :  { %2665 = vmin.xlane.f32.xlu0 %v2664_v41 }
 0x685   :  { %v6012_v8 = vpop.f32.mrb[58].mxu0 }
 0x686   :  { %v2638_v5 = vmul.f32 2.0, %v6012_v8  ;;  %v2527_v10 = vpop.f32.mrb[59].mxu0 }
 0x687   :  { %v2637_v15 = vmul.f32 2.0, %v2527_v10 }
 0x688   :  { %v2652_v18 = vsub.f32 %v2646_v42, %v2638_v5 }
 0x689   :  { %v2651_v56 = vsub.f32 %v2646_v42, %v2637_v15 }
 0x68a   :  { %v2673_v47 = vsel %vm10039_vm11, %v2652_v18, inf }
 0x68b   :  { %2674 = vmin.xlane.f32.xlu1 %v2673_v47  ;;  %v2670_v16 = vsel %vm10039_vm11, %v2651_v56, inf }
 0x68c   :  { %2671 = vmin.xlane.f32.xlu0 %v2670_v16 }
 0x68e   :  { %v6015_v27 = vpop.f32.mrb[60].mxu0 }
 0x68f   :  { %v2640_v49 = vmul.f32 2.0, %v6015_v27  ;;  %v2537_v38 = vpop.f32.mrb[61].mxu0 }
 0x690   :  { %v2639_v40 = vmul.f32 2.0, %v2537_v38 }
 0x691   :  { %v8227_v31 = vsub.f32 %v2646_v42, %v2640_v49 }
 0x692   :  { %v8229_v54 = vsub.f32 %v2646_v42, %v2639_v40 }
 0x693   :  { %v2679_v36 = vsel %vm10039_vm11, %v8227_v31, inf }
 0x694   :  { %2680 = vmin.xlane.f32.xlu1 %v2679_v36  ;;  %v2676_v4 = vsel %vm10039_vm11, %v8229_v54, inf }
 0x695   :  { %2677 = vmin.xlane.f32.xlu0 %v2676_v4 }
 0x697   :  { %v6018_v37 = vpop.f32.mrb[62].mxu0 }
 0x698   :  { %v2642_v28 = vmul.f32 2.0, %v6018_v37  ;;  %v2547_v17 = vpop.f32.mrb[63].mxu0 }
 0x699   :  { %v2641_v11 = vmul.f32 2.0, %v2547_v17 }
 0x69a   :  { %v8235_v51 = vsub.f32 %v2646_v42, %v2642_v28 }
 0x69b   :  { %v8237_v58 = vsub.f32 %v2646_v42, %v2641_v11 }
 0x69c   :  { %v2685_v59 = vsel %vm10039_vm11, %v8235_v51, inf }
 0x69d   :  { %2686 = vmin.xlane.f32.xlu1 %v2685_v59  ;;  %v2682_v44 = vsel %vm10039_vm11, %v8237_v58, inf }
 0x69e   :  { %2683 = vmin.xlane.f32.xlu0 %v2682_v44 }
 0x6f7   :  { %v2663_v25 = vpop.xlane.xlu0 %2662 }
 0x6f8   :  { %vm2691_vm6 = vcmp.le.f32.partialorder %v2648_v24, %v2663_v25  ;;  %v2660_v29 = vpop.xlane.xlu1 %2659 }
 0x6f9   :  { %v2701_v22 = vsel %vm2691_vm6, %v8243_v13, 4  ;;  %vm2690_vm1 = vcmp.le.f32.partialorder %v2647_v9, %v2660_v29 }
 0x6fa   :  { %v8247_v14 = vsel %vm10039_vm11, %v2701_v22, 2147483647  ;;  %v2700_v21 = vsel %vm2690_vm1, %v8243_v13, 4 }
 0x6fb   :  { %v8251_v48 = vsel %vm10039_vm11, %v2700_v21, 2147483647  ;;  %v2727_v42 = vshra.s32 %v8247_v14, 16 }
 0x6fc   :  { %v2712_v1 = vshra.s32 %v8251_v48, 16 }
 0x6fd   :  { %v8255_v20 = vcvt.s32.f32 %v2727_v42  ;;  %v2711_v42 = vand.u32 65535, %v8251_v48 }
 0x6fe   :  { %v8257_v39 = vcvt.s32.f32 %v2712_v1 }
 0x6ff   :  { %2730 = vmin.xlane.f32.xlu1 %v8255_v20 }
 0x700   :  { %2715 = vmin.xlane.f32.xlu0 %v8257_v39 }
 0x70f   :  { %v2669_v30 = vpop.xlane.xlu1 %2668 }
 0x710   :  { %vm2693_vm7 = vcmp.le.f32.partialorder %v2650_v55, %v2669_v30  ;;  %v2666_v34 = vpop.xlane.xlu0 %2665 }
 0x711   :  { %v2703_v24 = vsel %vm2693_vm7, %v8243_v13, 4  ;;  %vm2692_vm5 = vcmp.le.f32.partialorder %v2649_v50, %v2666_v34 }
 0x712   :  { %v8263_v9 = vsel %vm10039_vm11, %v2703_v24, 2147483647  ;;  %v2702_v35 = vsel %vm2692_vm5, %v8243_v13, 4 }
 0x713   :  { %v8267_v63 = vsel %vm10039_vm11, %v2702_v35, 2147483647  ;;  %v2757_v61 = vshra.s32 %v8263_v9, 16 }
 0x714   :  { %v2742_v7 = vshra.s32 %v8267_v63, 16 }
 0x715   :  { %v8271_v26 = vcvt.s32.f32 %v2757_v61  ;;  %v2756_v61 = vand.u32 65535, %v8263_v9 }
 0x716   :  { %v8273_v60 = vcvt.s32.f32 %v2742_v7  ;;  %v2741_v7 = vand.u32 65535, %v8267_v63 }
 0x717   :  { %2760 = vmin.xlane.f32.xlu1 %v8271_v26 }
 0x718   :  { %v2675_v55 = vpop.xlane.xlu1 %2674  ;;  %2745 = vmin.xlane.f32.xlu0 %v8273_v60 }
 0x719   :  { %vm2695_vm3 = vcmp.le.f32.partialorder %v2652_v18, %v2675_v55  ;;  %v2672_v50 = vpop.xlane.xlu0 %2671 }
 0x71a   :  { %v2705_v12 = vsel %vm2695_vm3, %v8243_v13, 4  ;;  %vm2694_vm13 = vcmp.le.f32.partialorder %v2651_v56, %v2672_v50 }
 0x71b   :  { %v8279_v41 = vsel %vm10039_vm11, %v2705_v12, 2147483647  ;;  %v2704_v8 = vsel %vm2694_vm13, %v8243_v13, 4 }
 0x71c   :  { %v8283_v5 = vsel %vm10039_vm11, %v2704_v8, 2147483647  ;;  %v2787_v10 = vshra.s32 %v8279_v41, 16  ;;  %v2786_v9 = vand.u32 65535, %v8279_v41 }
 0x71d   :  { %v2772_v15 = vshra.s32 %v8283_v5, 16  ;;  %v2771_v63 = vand.u32 65535, %v8283_v5 }
 0x71e   :  { %v8287_v47 = vcvt.s32.f32 %v2787_v10  ;;  %v2788_v8 = vcvt.s32.f32 %v2786_v9 }
 0x71f   :  { %v8289_v16 = vcvt.s32.f32 %v2772_v15 }
 0x720   :  { %2790 = vmin.xlane.f32.xlu1 %v8287_v47 }
 0x721   :  { %v2681_v18 = vpop.xlane.xlu1 %2680  ;;  %2775 = vmin.xlane.f32.xlu0 %v8289_v16 }
 0x722   :  { %vm2697_vm10 = vcmp.le.f32.partialorder %v8227_v31, %v2681_v18  ;;  %v2678_v56 = vpop.xlane.xlu0 %2677 }
 0x723   :  { %v2707_v27 = vsel %vm2697_vm10, %v8243_v13, 4  ;;  %vm2696_vm15 = vcmp.le.f32.partialorder %v8229_v54, %v2678_v56 }
 0x724   :  { %v2815_v49 = vsel %vm10039_vm11, %v2707_v27, 2147483647  ;;  %v2706_v38 = vsel %vm2696_vm15, %v8243_v13, 4 }
 0x725   :  { %v8299_v40 = vsel %vm10039_vm11, %v2706_v38, 2147483647  ;;  %v2817_v36 = vshra.s32 %v2815_v49, 16  ;;  %v2816_v18 = vand.u32 65535, %v2815_v49 }
 0x726   :  { %v2802_v4 = vshra.s32 %v8299_v40, 16  ;;  %v2801_v41 = vand.u32 65535, %v8299_v40 }
 0x727   :  { %v2819_v37 = vcvt.s32.f32 %v2817_v36  ;;  %v2818_v56 = vcvt.s32.f32 %v2816_v18 }
 0x728   :  { %v8302_v28 = vcvt.s32.f32 %v2802_v4  ;;  %v2803_v38 = vcvt.s32.f32 %v2801_v41 }
 0x729   :  { %2820 = vmin.xlane.f32.xlu1 %v2819_v37 }
 0x72a   :  { %v2687_v31 = vpop.xlane.xlu1 %2686  ;;  %2805 = vmin.xlane.f32.xlu0 %v8302_v28 }
 0x72b   :  { %vm2699_vm4 = vcmp.le.f32.partialorder %v8235_v51, %v2687_v31  ;;  %v2684_v54 = vpop.xlane.xlu0 %2683  ;;  %v2726_v51 = vand.u32 65535, %v8247_v14  ;;  %v2758_v14 = vcvt.s32.f32 %v2756_v61 }
 0x72c   :  { %v2709_v17 = vsel %vm2699_vm4, %v8243_v13, 4  ;;  %vm2698_vm12 = vcmp.le.f32.partialorder %v8237_v58, %v2684_v54  ;;  %v2713_v58 = vcvt.s32.f32 %v2711_v42 }
 0x72d   :  { %v2845_v11 = vsel %vm10039_vm11, %v2709_v17, 2147483647  ;;  %v2708_v59 = vsel %vm2698_vm12, %v8243_v13, 4  ;;  %v2728_v30 = vcvt.s32.f32 %v2726_v51 }
 0x72e   :  { %v2830_v44 = vsel %vm10039_vm11, %v2708_v59, 2147483647  ;;  %v2847_v25 = vshra.s32 %v2845_v11, 16  ;;  %v2846_v36 = vand.u32 65535, %v2845_v11 }
 0x72f   :  { %v2832_v29 = vshra.s32 %v2830_v44, 16  ;;  %v2831_v4 = vand.u32 65535, %v2830_v44 }
 0x730   :  { %v2849_v22 = vcvt.s32.f32 %v2847_v25  ;;  %v2848_v40 = vcvt.s32.f32 %v2846_v36 }
 0x731   :  { %v2834_v21 = vcvt.s32.f32 %v2832_v29  ;;  %v2833_v54 = vcvt.s32.f32 %v2831_v4 }
 0x732   :  { %2850 = vmin.xlane.f32.xlu1 %v2849_v22 }
 0x733   :  { %2835 = vmin.xlane.f32.xlu0 %v2834_v21 }
 0x78c   :  { %v2731_v1 = vpop.xlane.xlu1 %2730 }
 0x78d   :  { %v2716_v34 = vpop.xlane.xlu0 %2715  ;;  %vm2732_vm8 = vcmp.eq.f32.partialorder %v8255_v20, %v2731_v1  ;;  %v2743_v20 = vcvt.s32.f32 %v2741_v7 }
 0x78e   :  { %v2733_v24 = vsel %vm2732_vm8, %v2728_v30, inf  ;;  %vm2717_vm14 = vcmp.eq.f32.partialorder %v8257_v39, %v2716_v34  ;;  %v2722_v59 = vcvt.f32.s32 %v2716_v34  ;;  %vm10341_vm8 = vcmask 1046528  }
 0x78f   :  { %2734 = vmin.xlane.f32.xlu1 %v2733_v24  ;;  %v2718_v35 = vsel %vm2717_vm14, %v2713_v58, inf }
 0x790   :  { %2719 = vmin.xlane.f32.xlu0 %v2718_v35  ;;  %v2723_v51 = vshll.u32 %v2722_v59, 16 }
 0x7a4   :  { %v8317_v55 = vpop.xlane.xlu1 %2760 }
 0x7a5   :  { %v8319_v48 = vpop.xlane.xlu0 %2745  ;;  %vm2762_vm6 = vcmp.eq.f32.partialorder %v8271_v26, %v8317_v55  ;;  %v2773_v26 = vcvt.s32.f32 %v2771_v63  ;;  %v2767_v7 = vcvt.f32.s32 %v8317_v55 }
 0x7a6   :  { %v2763_v50 = vsel %vm2762_vm6, %v2758_v14, inf  ;;  %vm2747_vm1 = vcmp.eq.f32.partialorder %v8273_v60, %v8319_v48  ;;  %v2752_v14 = vcvt.f32.s32 %v8319_v48 }
 0x7a7   :  { %2764 = vmin.xlane.f32.xlu1 %v2763_v50  ;;  %v2748_v39 = vsel %vm2747_vm1, %v2743_v20, inf  ;;  %v2768_v50 = vshll.u32 %v2767_v7, 16 }
 0x7a8   :  { %2749 = vmin.xlane.f32.xlu0 %v2748_v39  ;;  %v2753_v63 = vshll.u32 %v2752_v14, 16 }
 0x7ad   :  { %v8327_v12 = vpop.xlane.xlu1 %2790 }
 0x7ae   :  { %v8329_v10 = vpop.xlane.xlu0 %2775  ;;  %vm2792_vm7 = vcmp.eq.f32.partialorder %v8287_v47, %v8327_v12  ;;  %v2797_v55 = vcvt.f32.s32 %v8327_v12  ;;  %v6570_v12 = vld [vmem:[%s10098_s29] sm:$0xff] }
 0x7af   :  { %v2793_v15 = vsel %vm2792_vm7, %v2788_v8, inf  ;;  %vm2777_vm5 = vcmp.eq.f32.partialorder %v8289_v16, %v8329_v10  ;;  %v2782_v18 = vcvt.f32.s32 %v8329_v10  ;;  %vm3928_vm7 = vcmp.lt.s32.totalorder %v6570_v12, 39  ;;  %v6571_v10 = vld [vmem:[%s10098_s29 + $0x8] sm:$0xff] }
 0x7b0   :  { %2794 = vmin.xlane.f32.xlu1 %v2793_v15  ;;  %v2778_v60 = vsel %vm2777_vm5, %v2773_v26, inf  ;;  %vm3929_vm5 = vcmp.lt.s32.totalorder %v6571_v10, 39  ;;  %v2798_v36 = vshll.u32 %v2797_v55, 16 }
 0x7b1   :  { %2779 = vmin.xlane.f32.xlu0 %v2778_v60 }
 0x7b6   :  { %v8336_v5 = vpop.xlane.xlu1 %2820 }
 0x7b7   :  { %v8338_v27 = vpop.xlane.xlu0 %2805  ;;  %vm2822_vm3 = vcmp.eq.f32.partialorder %v2819_v37, %v8336_v5 }
 0x7b8   :  { %v2823_v47 = vsel %vm2822_vm3, %v2818_v56, inf  ;;  %vm2807_vm13 = vcmp.eq.f32.partialorder %v8302_v28, %v8338_v27  ;;  %v2737_v28 = vcvt.f32.s32 %v2731_v1  ;;  %vm10342_vm3 = vmmov %vm10341_vm8 }
 0x7b9   :  { %2824 = vmin.xlane.f32.xlu1 %v2823_v47  ;;  %v2808_v16 = vsel %vm2807_vm13, %v2803_v38, inf  ;;  %vm10343_vm13 = vmmov %vm10342_vm3 }
 0x7ba   :  { %2809 = vmin.xlane.f32.xlu0 %v2808_v16  ;;  %v2738_v29 = vshll.u32 %v2737_v28, 16 }
 0x7bf   :  { %v8343_v49 = vpop.xlane.xlu1 %2850 }
 0x7c0   :  { %v8345_v31 = vpop.xlane.xlu0 %2835  ;;  %vm2852_vm10 = vcmp.eq.f32.partialorder %v2849_v22, %v8343_v49 }
 0x7c1   :  { %v2853_v17 = vsel %vm2852_vm10, %v2848_v40, inf  ;;  %vm2837_vm15 = vcmp.eq.f32.partialorder %v2834_v21, %v8345_v31  ;;  %v2842_v12 = vcvt.f32.s32 %v8345_v31  ;;  %v6574_v31 = vld [vmem:[%s10098_s29 + $0x20] sm:$0xff] }
 0x7c2   :  { %2854 = vmin.xlane.f32.xlu1 %v2853_v17  ;;  %v2838_v37 = vsel %vm2837_vm15, %v2833_v54, inf }
 0x7c3   :  { %2839 = vmin.xlane.f32.xlu0 %v2838_v37  ;;  %v2783_v37 = vshll.u32 %v2782_v18, 16  ;;  %v10349_v18 = vmov 0 }
 0x81c   :  { %v2735_v25 = vpop.xlane.xlu1 %2734 }
 0x81d   :  { %v2736_v11 = vcvt.f32.s32 %v2735_v25  ;;  %v2720_v44 = vpop.xlane.xlu0 %2719 }
 0x81e   :  { %v2721_v42 = vcvt.f32.s32 %v2720_v44  ;;  %v2827_v44 = vcvt.f32.s32 %v8336_v5 }
 0x81f   :  { %v8349_v30 = vadd.s32 %v2738_v29, %v2736_v11 }
 0x820   :  { %v8351_v58 = vadd.s32 %v2723_v51, %v2721_v42  ;;  %v2812_v42 = vcvt.f32.s32 %v8338_v27  ;;  %v6572_v27 = vld [vmem:[%s10098_s29 + $0x10] sm:$0xff]  ;;  %v2828_v7 = vshll.u32 %v2827_v44, 16  ;;  %v2843_v44 = vshll.u32 %v2842_v12, 16 }
 0x821   :  { %v8354_v22 = vcvt.s32.f32 %v8349_v30  ;;  %vm2861_vm4 = vcmp.eq.s32.totalorder %v8243_v13, %v8349_v30 }
 0x822   :  { %v8359_v21 = vcvt.s32.f32 %v8351_v58  ;;  %vm2860_vm12 = vcmp.eq.s32.totalorder %v8243_v13, %v8351_v58  ;;  %v5632_v35 = vsel %vm2861_vm4, 1.0, %v10126_v33 }
 0x823   :  { %v3899_v1 = vrot.slane %v8354_v22, 1  ;;  %v5631_v34 = vsel %vm2860_vm12, 1.0, %v10126_v33 }
 0x824   :  { %v3898_v24 = vrot.slane %v8359_v21, 1  ;;  %6026 = vmatprep.mubr.msk.f32.mxu1 %vm10039_vm11, %v5631_v34 }
 0x825   :  { %6027 = vmatmul.mubr.msk.f32.vlgmr.msra.gmra.mrb[42].mxu1 %vm10039_vm11, %v5632_v35 }
 0x826   :  { %v3900_v61 = vsel %vm10341_vm8, %v3898_v24, %v3899_v1 }
 0x827   :  { %vm3938_vm14 = vcmp.ne.f32.partialorder %v3900_v61, %v8359_v21 }
 0x828   :  { %vm8406_vm15 = vmand %vm3928_vm7, %vm3938_vm14 }
 0x834   :  { %v2765_v20 = vpop.xlane.xlu1 %2764 }
 0x835   :  { %v2766_v39 = vcvt.f32.s32 %v2765_v20  ;;  %v2750_v9 = vpop.xlane.xlu0 %2749 }
 0x836   :  { %v2751_v8 = vcvt.f32.s32 %v2750_v9 }
 0x837   :  { %v8373_v26 = vadd.s32 %v2768_v50, %v2766_v39  ;;  %v6573_v50 = vld [vmem:[%s10098_s29 + $0x18] sm:$0xff]  ;;  %v2813_v39 = vshll.u32 %v2812_v42, 16 }
 0x838   :  { %v8375_v15 = vadd.s32 %v2753_v63, %v2751_v8  ;;  %vm3931_vm7 = vcmp.lt.s32.totalorder %v6573_v50, 39  ;;  %v6576_v50 = vld [vmem:[%s10098_s29 + $0x30] sm:$0xff] }
 0x839   :  { %v8378_v60 = vcvt.s32.f32 %v8373_v26  ;;  %vm2863_vm6 = vcmp.eq.s32.totalorder %v8243_v13, %v8373_v26 }
 0x83a   :  { %v8384_v48 = vcvt.s32.f32 %v8375_v15  ;;  %vm2862_vm1 = vcmp.eq.s32.totalorder %v8243_v13, %v8375_v15  ;;  %v5634_v47 = vsel %vm2863_vm6, 1.0, %v10126_v33 }
 0x83b   :  { %v3903_v41 = vrot.slane %v8378_v60, 1  ;;  %v5633_v56 = vsel %vm2862_vm1, 1.0, %v10126_v33  ;;  %vm3930_vm1 = vcmp.lt.s32.totalorder %v6572_v27, 39 }
 0x83c   :  { %v3901_v38 = vrot.slane %v8384_v48, 1  ;;  %6029 = vmatprep.mubr.msk.f32.mxu1 %vm10039_vm11, %v5633_v56 }
 0x83d   :  { %v2795_v16 = vpop.xlane.xlu1 %2794  ;;  %6030 = vmatmul.mubr.msk.f32.gmra.mrb[44].mxu1 %vm10039_vm11, %v5634_v47 }
 0x83e   :  { %v2796_v4 = vcvt.f32.s32 %v2795_v16  ;;  %v2780_v40 = vpop.xlane.xlu0 %2779  ;;  %v3902_v54 = vsel %vm10342_vm3, %v3899_v1, %v3901_v38  ;;  %v3904_v17 = vsel %vm10343_vm13, %v3901_v38, %v3903_v41  ;;  %v10351_v38 = vmov 0 }
 0x83f   :  { %v2781_v28 = vcvt.f32.s32 %v2780_v40  ;;  %vm3939_vm10 = vcmp.ne.f32.partialorder %v3902_v54, %v8354_v22  ;;  %vm3940_vm4 = vcmp.ne.f32.partialorder %v3904_v17, %v8384_v48 }
 0x840   :  { %v8411_v25 = vadd.s32 %v2798_v36, %v2796_v4  ;;  %vm8413_vm12 = vmand %vm3929_vm5, %vm3939_vm10 }
 0x841   :  { %v8417_v11 = vadd.s32 %v2783_v37, %v2781_v28  ;;  %vm10348_vm5 = vmmov %vm10342_vm3  ;;  %v6575_v28 = vld [vmem:[%s10098_s29 + $0x28] sm:$0xff] }
 0x842   :  { %v8425_v51 = vcvt.s32.f32 %v8411_v25  ;;  %vm2865_vm14 = vcmp.eq.s32.totalorder %v8243_v13, %v8411_v25  ;;  %vm8454_vm10 = vmand %vm3930_vm1, %vm3940_vm4 }
 0x843   :  { %v8431_v1 = vcvt.s32.f32 %v8417_v11  ;;  %vm2864_vm6 = vcmp.eq.s32.totalorder %v8243_v13, %v8417_v11  ;;  %v5636_v61 = vsel %vm2865_vm14, 1.0, %v10126_v33  ;;  %v10350_v18 = vsel %vm8454_vm10, 4294967295, %v10349_v18 }
 0x844   :  { %v3907_v34 = vrot.slane %v8425_v51, 1  ;;  %v5635_v24 = vsel %vm2864_vm6, 1.0, %v10126_v33 }
 0x845   :  { %v3905_v5 = vrot.slane %v8431_v1, 1  ;;  %6032 = vmatprep.mubr.msk.f32.mxu1 %vm10039_vm11, %v5635_v24 }
 0x846   :  { %v2825_v35 = vpop.xlane.xlu1 %2824  ;;  %6033 = vmatmul.mubr.msk.f32.gmra.mrb[46].mxu1 %vm10039_vm11, %v5636_v61  ;;  %v10355_v61 = vmov 0 }
 0x847   :  { %v2826_v14 = vcvt.f32.s32 %v2825_v35  ;;  %v2810_v20 = vpop.xlane.xlu0 %2809  ;;  %v3906_v63 = vsel %vm10348_vm5, %v3903_v41, %v3905_v5  ;;  %v3908_v8 = vsel %vm10342_vm3, %v3905_v5, %v3907_v34  ;;  %v2857_v41 = vcvt.f32.s32 %v8343_v49 }
 0x848   :  { %v2811_v9 = vcvt.f32.s32 %v2810_v20  ;;  %vm3941_vm13 = vcmp.ne.f32.partialorder %v3906_v63, %v8378_v60  ;;  %vm3942_vm14 = vcmp.ne.f32.partialorder %v3908_v8, %v8431_v1  ;;  %vm3933_vm3 = vcmp.lt.s32.totalorder %v6575_v28, 39  ;;  %v6577_v8 = vld [vmem:[%s10098_s29 + $0x48] sm:$0xff] }
 0x849   :  { %v8449_v55 = vadd.s32 %v2828_v7, %v2826_v14  ;;  %vm8461_vm6 = vmand %vm3931_vm7, %vm3941_vm13  ;;  %vm3932_vm7 = vcmp.lt.s32.totalorder %v6574_v31, 39  ;;  %v2858_v54 = vshll.u32 %v2857_v41, 16  ;;  %v10357_v7 = vmov 0  ;;  %v6578_v41 = vld [vmem:[%s10098_s29 + $0x38] sm:$0xff] }
 0x84a   :  { %v8459_v56 = vadd.s32 %v2813_v39, %v2811_v9  ;;  %v10352_v38 = vsel %vm8461_vm6, 4294967295, %v10351_v38  ;;  %vm10353_vm13 = vmmov %vm10341_vm8  ;;  %v10366_v31 = vmov 0 }
 0x84b   :  { %v8467_v47 = vcvt.s32.f32 %v8449_v55  ;;  %vm2867_vm5 = vcmp.eq.s32.totalorder %v8243_v13, %v8449_v55  ;;  %vm8500_vm9 = vmand %vm3932_vm7, %vm3942_vm14 }
 0x84c   :  { %v8477_v16 = vcvt.s32.f32 %v8459_v56  ;;  %vm2866_vm1 = vcmp.eq.s32.totalorder %v8243_v13, %v8459_v56  ;;  %v5638_v40 = vsel %vm2867_vm5, 1.0, %v10126_v33  ;;  %vm10354_vm5 = vmmov %vm10341_vm8  ;;  %v10356_v61 = vsel %vm8500_vm9, 4294967295, %v10355_v61 }
 0x84d   :  { %v3911_v49 = vrot.slane %v8467_v47, 1  ;;  %v5637_v10 = vsel %vm2866_vm1, 1.0, %v10126_v33 }
 0x84e   :  { %v3909_v36 = vrot.slane %v8477_v16, 1  ;;  %6035 = vmatprep.mubr.msk.f32.mxu1 %vm10039_vm11, %v5637_v10 }
 0x84f   :  { %v2855_v4 = vpop.xlane.xlu1 %2854  ;;  %6036 = vmatmul.mubr.msk.f32.gmra.mrb[48].mxu1 %vm10039_vm11, %v5638_v40  ;;  %v6579_v40 = vld [vmem:[%s10098_s29 + $0x40] sm:$0xff] }
 0x850   :  { %v2856_v17 = vcvt.f32.s32 %v2855_v4  ;;  %v2840_v37 = vpop.xlane.xlu0 %2839  ;;  %v3910_v24 = vsel %vm10353_vm13, %v3907_v34, %v3909_v36  ;;  %v3912_v5 = vsel %vm10354_vm5, %v3909_v36, %v3911_v49  ;;  %vm3937_vm5 = vcmp.lt.s32.totalorder %v6577_v8, 39 }
 0x851   :  { %v2841_v42 = vcvt.f32.s32 %v2840_v37  ;;  %vm3943_vm1 = vcmp.ne.f32.partialorder %v3910_v24, %v8425_v51  ;;  %vm3944_vm4 = vcmp.ne.f32.partialorder %v3912_v5, %v8477_v16  ;;  %v10361_v36 = vmov 0  ;;  %v5653_v37 = vld [vmem:[%s9957_s11 + $0x4] sm:$0xf]  ;;  %s6593_s11 = smov 102  }
 0x852   :  { %v8495_v35 = vadd.s32 %v2858_v54, %v2856_v17  ;;  %vm8507_vm8 = vmand %vm3933_vm3, %vm3943_vm1  ;;  %vm3934_vm3 = vcmp.lt.s32.totalorder %v6576_v50, 39  ;;  %vm3935_vm1 = vcmp.lt.s32.totalorder %v6578_v41, 39  ;;  %v10368_v54 = vmov 0 }
 0x853   :  { %v8505_v27 = vadd.s32 %v2843_v44, %v2841_v42  ;;  %v10358_v7 = vsel %vm8507_vm8, 4294967295, %v10357_v7  ;;  %v10046_v17 = vmov 0.0|0.0   ;;  %v3296_v28 = vmul.f32 %v5653_v37, %v5653_v37 }
 0x854   :  { %v8512_v34 = vcvt.s32.f32 %v8495_v35  ;;  %vm2869_vm13 = vcmp.eq.s32.totalorder %v8243_v13, %v8495_v35  ;;  %6170 = vmatprep.subr.bf16.mxu0 %v10046_v17 }
 0x855   :  { %v8521_v14 = vcvt.s32.f32 %v8505_v27  ;;  %vm2868_vm7 = vcmp.eq.s32.totalorder %v8243_v13, %v8505_v27  ;;  %v5640_v63 = vsel %vm2869_vm13, 1.0, %v10126_v33  ;;  %vm8547_vm13 = vmand %vm3934_vm3, %vm3944_vm4 }
 0x856   :  { %v5639_v20 = vsel %vm2868_vm7, 1.0, %v10126_v33  ;;  %v3915_v39 = vrot.slane %v8512_v34, 1  ;;  %vm10359_vm7 = vcmask 1046528   ;;  %v10362_v36 = vsel %vm8547_vm13, 4294967295, %v10361_v36 }
 0x857   :  { %v3913_v9 = vrot.slane %v8521_v14, 1  ;;  %6038 = vmatprep.mubr.msk.f32.mxu1 %vm10039_vm11, %v5639_v20  ;;  %vm10360_vm14 = vmmov %vm10359_vm7 }
 0x858   :  { %6039 = vmatmul.mubr.msk.f32.gmra.mrb[50].mxu1 %vm10039_vm11, %v5640_v63  ;;  %v3927_v12 = vsel %vm10359_vm7, %v3915_v39, %v8512_v34  ;;  %vm10363_vm11 = vmmov %vm10359_vm7  ;;  %vm3936_vm7 = vcmp.lt.s32.totalorder %v6579_v40, 39 }
 0x859   :  { %6083 = vmatprep.mubr.msk.f32.mxu1 %vm10127_vm0, %v10126_v33  ;;  %v3914_v10 = vsel %vm10360_vm14, %v3911_v49, %v3913_v9  ;;  %v3916_v4 = vsel %vm10363_vm11, %v3913_v9, %v3915_v39  ;;  %vm3947_vm2 = vcmp.ne.f32.partialorder %v3927_v12, %v8512_v34  ;;  %v10364_v49 = vmov 0 }
 0x85a   :  { %vm3945_vm9 = vcmp.ne.f32.partialorder %v3914_v10, %v8467_v47  ;;  %vm3946_vm8 = vcmp.ne.f32.partialorder %v3916_v4, %v8521_v14  ;;  %vm8558_vm14 = vmand %vm3937_vm5, %vm3947_vm2  ;;  %vm10371_vm5 = vcmask 1043456  }
 0x85b   :  { %v10365_v49 = vsel %vm8558_vm14, 4294967295, %v10364_v49  ;;  %vm8562_vm4 = vmand %vm3935_vm1, %vm3945_vm9  ;;  %vm10370_vm9 = vcmask 261120  }
 0x85c   :  { %v10367_v31 = vsel %vm8562_vm4, 4294967295, %v10366_v31  ;;  %vm8570_vm3 = vmand %vm3936_vm7, %vm3946_vm8  ;;  %6082 = vmatpush3.xpose.msk.msra.mxu1 %vm10370_vm9, %v3296_v28  ;;  %vm10043_vm7 = vcmask 654336  }
 0x85d   :  { %v10369_v54 = vsel %vm8570_vm3, 4294967295, %v10368_v54  ;;  %6086 = vmatprep.subr.msk.mxu1 %vm10371_vm5, %v5653_v37  ;;  %vm10372_vm8 = vmmov %vm10370_vm9 }
 0x85e   :  { %vm10373_vm1 = vmmov %vm10371_vm5 }
 0x85f   :  { %6084 = vmatmul.mubr.msk.f32.vlgmr.msra.gmra.mrb[52].mxu1 %vm10372_vm8, %v10044_v2  ;;  %vm10394_vm9 = vmmov %vm10372_vm8 }
 0x860   :  { %6087 = vmatpush3.msk.msra.mxu1 %vm10373_vm1, %v5653_v37  ;;  %vm10395_vm5 = vmmov %vm10372_vm8 }
 0x861   :  { %6200 = vmatprep.subr.bf16.mxu1 %v10046_v17  ;;  %vm10396_vm8 = vmmov %vm10395_vm5 }
 0x862   :  { %vm10397_vm1 = vmmov %vm10395_vm5 }
 0x863   :  { %vm10398_vm2 = vmmov %vm10397_vm1 }
 0x864   :  { %vm10399_vm11 = vmmov %vm10397_vm1 }
 0x8f8   :  { %v8588_v44 = vpop.f32.mrb[42].mxu1 }
 0x8f9   :  { %10374 = vst [vmem:[#allocation20_spill] sm:$0xff] %v8588_v44  ;;  %v8592_v42 = vsub.f32 %v8168_v52, %v8588_v44  ;;  %v8594_v24 = vpop.f32.mrb[43].mxu1 }
 0x8fa   :  { %10376 = vst [vmem:[#allocation2_spill] sm:$0xff] %v8594_v24  ;;  %v8598_v5 = vsub.f32 %v8165_v19, %v8594_v24 }
 0x8fb   :  { %10375 = vst [vmem:[#allocation5_spill] sm:$0xff] %v8592_v42  ;;  %v3048_v20 = vmul.f32 %v8592_v42, %v8592_v42 }
 0x8fc   :  { %10377 = vst [vmem:[#allocation3_spill] sm:$0xff] %v8598_v5  ;;  %v3047_v50 = vmul.f32 %v8598_v5, %v8598_v5 }
 0x8fe   :  { %v6171_v39 = vpack.c.bf16 %v3048_v20, %v3047_v50 }
 0x900   :  { %6172 = vmatpush3.bf16.msra.mxu0 %v6171_v39 }
 0x901   :  { %6173 = vmatprep.subr.bf16.mxu0 %v10046_v17 }
 0x910   :  { %v8605_v9 = vpop.f32.mrb[44].mxu1 }
 0x911   :  { %10378 = vst [vmem:[#allocation8_spill] sm:$0xff] %v8605_v9  ;;  %v8609_v52 = vsub.f32 %v8178_v62, %v8605_v9  ;;  %v8611_v63 = vpop.f32.mrb[45].mxu1 }
 0x912   :  { %10380 = vst [vmem:[#allocation6_spill] sm:$0xff] %v8611_v63  ;;  %v8615_v19 = vsub.f32 %v8175_v53, %v8611_v63 }
 0x913   :  { %10379 = vst [vmem:[#allocation4_spill] sm:$0xff] %v8609_v52  ;;  %v3050_v8 = vmul.f32 %v8609_v52, %v8609_v52 }
 0x914   :  { %10381 = vst [vmem:[#allocation9_spill] sm:$0xff] %v8615_v19  ;;  %v3049_v41 = vmul.f32 %v8615_v19, %v8615_v19 }
 0x916   :  { %v6174_v12 = vpack.c.bf16 %v3050_v8, %v3049_v41 }
 0x918   :  { %6175 = vmatpush3.bf16.msra.mxu0 %v6174_v12 }
 0x919   :  { %v8621_v10 = vpop.f32.mrb[46].mxu1  ;;  %6176 = vmatprep.subr.bf16.mxu0 %v10046_v17 }
 0x91a   :  { %10382 = vst [vmem:[#allocation12_spill] sm:$0xff] %v8621_v10  ;;  %v8626_v62 = vsub.f32 %v8188_v0, %v8621_v10  ;;  %v8628_v4 = vpop.f32.mrb[47].mxu1 }
 0x91b   :  { %10384 = vst [vmem:[#allocation7_spill] sm:$0xff] %v8628_v4  ;;  %v8632_v53 = vsub.f32 %v8185_v46, %v8628_v4 }
 0x91c   :  { %10383 = vst [vmem:[#allocation13_spill] sm:$0xff] %v8626_v62  ;;  %v3052_v40 = vmul.f32 %v8626_v62, %v8626_v62 }
 0x91d   :  { %10385 = vst [vmem:[#allocation10_spill] sm:$0xff] %v8632_v53  ;;  %v3051_v28 = vmul.f32 %v8632_v53, %v8632_v53 }
 0x91f   :  { %v6177_v20 = vpack.c.bf16 %v3052_v40, %v3051_v28 }
 0x921   :  { %6178 = vmatpush3.bf16.msra.mxu0 %v6177_v20 }
 0x922   :  { %v8638_v50 = vpop.f32.mrb[48].mxu1  ;;  %6179 = vmatprep.subr.bf16.mxu0 %v10046_v17 }
 0x923   :  { %10386 = vst [vmem:[#allocation16_spill] sm:$0xff] %v8638_v50  ;;  %v8642_v0 = vsub.f32 %v8198_v45, %v8638_v50  ;;  %v8644_v39 = vpop.f32.mrb[49].mxu1 }
 0x924   :  { %10388 = vst [vmem:[#allocation14_spill] sm:$0xff] %v8644_v39  ;;  %v8649_v46 = vsub.f32 %v8195_v23, %v8644_v39 }
 0x925   :  { %10387 = vst [vmem:[#allocation11_spill] sm:$0xff] %v8642_v0  ;;  %v3054_v8 = vmul.f32 %v8642_v0, %v8642_v0 }
 0x926   :  { %10389 = vst [vmem:[#allocation17_spill] sm:$0xff] %v8649_v46  ;;  %v3053_v41 = vmul.f32 %v8649_v46, %v8649_v46 }
 0x928   :  { %v6180_v12 = vpack.c.bf16 %v3054_v8, %v3053_v41 }
 0x92a   :  { %6181 = vmatpush3.bf16.msra.mxu0 %v6180_v12 }
 0x92b   :  { %v8655_v40 = vpop.f32.mrb[50].mxu1  ;;  %6182 = vmatprep.subr.bf16.mxu0 %v10046_v17 }
 0x92c   :  { %10390 = vst [vmem:[#allocation19_spill] sm:$0xff] %v8655_v40  ;;  %v8659_v45 = vsub.f32 %v8208_v6, %v8655_v40  ;;  %v8661_v28 = vpop.f32.mrb[51].mxu1 }
 0x92d   :  { %10392 = vst [vmem:[#allocation18_spill] sm:$0xff] %v8661_v28  ;;  %v8666_v23 = vsub.f32 %v8205_v43, %v8661_v28 }
 0x92e   :  { %10391 = vst [vmem:[#allocation15_spill] sm:$0xff] %v8659_v45  ;;  %v3056_v20 = vmul.f32 %v8659_v45, %v8659_v45 }
 0x92f   :  { %10393 = vst [vmem:[#allocation22_spill] sm:$0xff] %v8666_v23  ;;  %v3055_v8 = vmul.f32 %v8666_v23, %v8666_v23 }
 0x931   :  { %v6183_v41 = vpack.c.bf16 %v3056_v20, %v3055_v8 }
 0x932   :  { %v3366_v43 = vpop.f32.mrb[52].mxu1 }
 0x933   :  { %6184 = vmatpush3.bf16.msra.mxu0 %v6183_v41  ;;  %v6085_v6 = vpop.f32.mrb[53].mxu1  ;;  %v3383_v20 = vrot.slane %v3366_v43, %v2645_v3 }
 0x934   :  { %6064 = vmatprep.subr.msk.mxu0 %vm10394_vm9, %v5653_v37  ;;  %vm10400_vm9 = vmmov %vm10397_vm1 }
 0x936   :  { %6062 = vmatmul.mubr.msk.f32.vlgmr.msra.gmra.mrb[64].mxu0 %vm10043_vm7, %v10044_v2  ;;  %vm10401_vm7 = vmmov %vm10397_vm1 }
 0x937   :  { %6066 = vmatprep.mubr.msk.f32.mxu0 %vm10395_vm5, %v8598_v5  ;;  %vm10402_vm5 = vmmov %vm10397_vm1 }
 0x93c   :  { %6065 = vmatpush3.xpose.msk.msra.mxu0 %vm10396_vm8, %v5653_v37  ;;  %vm10403_vm8 = vmmov %vm10397_vm1 }
 0x93d   :  { %6185 = vmatprep.subr.bf16.mxu0 %v10046_v17 }
 0x93f   :  { %6067 = vmatmul.mubr.msk.f32.vlgmr.msra.gmra.mrb[66].mxu0 %vm10397_vm1, %v8592_v42 }
 0x940   :  { %6069 = vmatprep.mubr.msk.f32.mxu0 %vm10398_vm2, %v8615_v19  ;;  %vm10404_vm2 = vmmov %vm10397_vm1 }
 0x943   :  { %6070 = vmatmul.mubr.msk.f32.gmra.mrb[68].mxu0 %vm10399_vm11, %v8609_v52  ;;  %vm10406_vm11 = vcmask 31744  }
 0x944   :  { %6072 = vmatprep.mubr.msk.f32.mxu0 %vm10400_vm9, %v8632_v53 }
 0x947   :  { %6073 = vmatmul.mubr.msk.f32.gmra.mrb[70].mxu0 %vm10401_vm7, %v8626_v62  ;;  %vm10407_vm7 = vmmov %vm10406_vm11 }
 0x948   :  { %6075 = vmatprep.mubr.msk.f32.mxu0 %vm10402_vm5, %v8649_v46  ;;  %vm10408_vm9 = vmmov %vm10407_vm7 }
 0x949   :  { %vm10409_vm5 = vmmov %vm10407_vm7 }
 0x94b   :  { %6076 = vmatmul.mubr.msk.f32.gmra.mrb[72].mxu0 %vm10403_vm8, %v8642_v0  ;;  %vm10410_vm8 = vmmov %vm10409_vm5 }
 0x94c   :  { %6078 = vmatprep.mubr.msk.f32.mxu0 %vm10397_vm1, %v8666_v23  ;;  %vm10411_vm1 = vmmov %vm10409_vm5 }
 0x94f   :  { %6079 = vmatmul.mubr.msk.f32.gmra.mrb[74].mxu0 %vm10404_vm2, %v8659_v45  ;;  %vm10412_vm2 = vmmov %vm10411_vm1 }
 0x950   :  { %6123 = vmatprep.mubr.msk.f32.mxu0 %vm10127_vm0, %v10126_v33 }
 0xa09   :  { %v8699_v37 = vpop.f32.mrb[64].mxu0 }
 0xa0a   :  { %10405 = vst [vmem:[#allocation23_spill] sm:$0xff] %v8699_v37  ;;  %v6063_v12 = vpop.f32.mrb[65].mxu0 }
 0xa12   :  { %v6068_v8 = vpop.f32.mrb[66].mxu0 }
 0xa13   :  { %v3371_v41 = vmul.f32 2.0, %v6068_v8  ;;  %v3247_v2 = vpop.f32.mrb[67].mxu0 }
 0xa14   :  { %v3370_v17 = vmul.f32 2.0, %v3247_v2 }
 0xa15   :  { %v3385_v28 = vsub.f32 %v3383_v20, %v3371_v41 }
 0xa16   :  { %v3384_v23 = vsub.f32 %v3383_v20, %v3370_v17  ;;  %v6071_v40 = vpop.f32.mrb[68].mxu0 }
 0xa17   :  { %v3373_v39 = vmul.f32 2.0, %v6071_v40  ;;  %v3257_v45 = vpop.f32.mrb[69].mxu0  ;;  %v3397_v46 = vsel %vm10406_vm11, %v3385_v28, inf  ;;  %vm10413_vm11 = vmmov %vm10411_vm1 }
 0xa18   :  { %v3372_v50 = vmul.f32 2.0, %v3257_v45  ;;  %3398 = vmin.xlane.f32.xlu1 %v3397_v46  ;;  %v3394_v6 = vsel %vm10407_vm7, %v3384_v23, inf  ;;  %vm10414_vm7 = vmmov %vm10411_vm1 }
 0xa19   :  { %v3387_v37 = vsub.f32 %v3383_v20, %v3373_v39  ;;  %3395 = vmin.xlane.f32.xlu0 %v3394_v6 }
 0xa1a   :  { %v3386_v12 = vsub.f32 %v3383_v20, %v3372_v50  ;;  %v6074_v32 = vpop.f32.mrb[70].mxu0 }
 0xa1b   :  { %v3375_v3 = vmul.f32 2.0, %v6074_v32  ;;  %v3267_v43 = vpop.f32.mrb[71].mxu0  ;;  %v3403_v8 = vsel %vm10408_vm9, %v3387_v37, inf  ;;  %vm10415_vm9 = vmmov %vm10411_vm1 }
 0xa1c   :  { %v3374_v2 = vmul.f32 2.0, %v3267_v43  ;;  %3404 = vmin.xlane.f32.xlu1 %v3403_v8  ;;  %v3400_v17 = vsel %vm10409_vm5, %v3386_v12, inf }
 0xa1d   :  { %v3389_v40 = vsub.f32 %v3383_v20, %v3375_v3  ;;  %3401 = vmin.xlane.f32.xlu0 %v3400_v17 }
 0xa1e   :  { %v3388_v41 = vsub.f32 %v3383_v20, %v3374_v2  ;;  %v6077_v0 = vpop.f32.mrb[72].mxu0 }
 0xa1f   :  { %v3377_v45 = vmul.f32 2.0, %v6077_v0  ;;  %v3277_v46 = vpop.f32.mrb[73].mxu0  ;;  %v3409_v4 = vsel %vm10410_vm8, %v3389_v40, inf }
 0xa20   :  { %v3376_v39 = vmul.f32 2.0, %v3277_v46  ;;  %3410 = vmin.xlane.f32.xlu1 %v3409_v4  ;;  %v3406_v50 = vsel %vm10411_vm1, %v3388_v41, inf }
 0xa21   :  { %v3391_v6 = vsub.f32 %v3383_v20, %v3377_v45  ;;  %3407 = vmin.xlane.f32.xlu0 %v3406_v50 }
 0xa22   :  { %v3390_v32 = vsub.f32 %v3383_v20, %v3376_v39  ;;  %v6080_v53 = vpop.f32.mrb[74].mxu0 }
 0xa23   :  { %v3379_v43 = vmul.f32 2.0, %v6080_v53  ;;  %v3287_v8 = vpop.f32.mrb[75].mxu0  ;;  %v3415_v10 = vsel %vm10412_vm2, %v3391_v6, inf  ;;  %vm10416_vm2 = vmmov %vm10411_vm1 }
 0xa24   :  { %v3378_v3 = vmul.f32 2.0, %v3287_v8  ;;  %3416 = vmin.xlane.f32.xlu1 %v3415_v10  ;;  %v3412_v2 = vsel %vm10413_vm11, %v3390_v32, inf }
 0xa25   :  { %v8711_v0 = vsub.f32 %v3383_v20, %v3379_v43  ;;  %3413 = vmin.xlane.f32.xlu0 %v3412_v2 }
 0xa26   :  { %v8713_v17 = vsub.f32 %v3383_v20, %v3378_v3 }
 0xa27   :  { %v3421_v4 = vsel %vm10414_vm7, %v8711_v0, inf }
 0xa28   :  { %3422 = vmin.xlane.f32.xlu1 %v3421_v4  ;;  %v3418_v45 = vsel %vm10415_vm9, %v8713_v17, inf  ;;  %vm10417_vm9 = vmmov %vm10411_vm1 }
 0xa29   :  { %3419 = vmin.xlane.f32.xlu0 %v3418_v45 }
 0xaa5   :  { %v3399_v53 = vpop.xlane.xlu1 %3398 }
 0xaa6   :  { %vm3425_vm5 = vcmp.le.f32.partialorder %v3385_v28, %v3399_v53  ;;  %v3396_v46 = vpop.xlane.xlu0 %3395 }
 0xaa7   :  { %v3435_v10 = vsel %vm3425_vm5, %v8243_v13, 4  ;;  %vm3424_vm8 = vcmp.le.f32.partialorder %v3384_v23, %v3396_v46  ;;  %vm10418_vm5 = vmmov %vm10411_vm1 }
 0xaa8   :  { %v8721_v39 = vsel %vm10411_vm1, %v3435_v10, 2147483647  ;;  %v3434_v20 = vsel %vm3424_vm8, %v8243_v13, 4 }
 0xaa9   :  { %v8725_v50 = vsel %vm10416_vm2, %v3434_v20, 2147483647  ;;  %v3405_v43 = vpop.xlane.xlu1 %3404  ;;  %v3461_v8 = vshra.s32 %v8721_v39, 16 }
 0xaaa   :  { %vm3427_vm11 = vcmp.le.f32.partialorder %v3387_v37, %v3405_v43  ;;  %v3402_v3 = vpop.xlane.xlu0 %3401  ;;  %v3446_v2 = vshra.s32 %v8725_v50, 16 }
 0xaab   :  { %v3437_v28 = vsel %vm3427_vm11, %v8243_v13, 4  ;;  %vm3426_vm7 = vcmp.le.f32.partialorder %v3386_v12, %v3402_v3  ;;  %v8730_v4 = vcvt.s32.f32 %v3461_v8  ;;  %vm10419_vm11 = vmmov %vm10416_vm2 }
 0xaac   :  { %v8733_v23 = vsel %vm10417_vm9, %v3437_v28, 2147483647  ;;  %v3436_v45 = vsel %vm3426_vm7, %v8243_v13, 4  ;;  %v8736_v53 = vcvt.s32.f32 %v3446_v2 }
 0xaad   :  { %v3491_v46 = vshra.s32 %v8733_v23, 16  ;;  %v8740_v10 = vsel %vm10418_vm5, %v3436_v45, 2147483647  ;;  %v3411_v37 = vpop.xlane.xlu1 %3410  ;;  %3464 = vmin.xlane.f32.xlu1 %v8730_v4  ;;  %vm10420_vm5 = vmmov %vm10416_vm2 }
 0xaae   :  { %vm3429_vm8 = vcmp.le.f32.partialorder %v3389_v40, %v3411_v37  ;;  %v3408_v20 = vpop.xlane.xlu0 %3407  ;;  %3449 = vmin.xlane.f32.xlu0 %v8736_v53  ;;  %v3476_v12 = vshra.s32 %v8740_v10, 16 }
 0xaaf   :  { %v3439_v43 = vsel %vm3429_vm8, %v8243_v13, 4  ;;  %vm3428_vm1 = vcmp.le.f32.partialorder %v3388_v41, %v3408_v20  ;;  %v8746_v8 = vcvt.s32.f32 %v3491_v46  ;;  %vm10421_vm8 = vmmov %vm10416_vm2 }
 0xab0   :  { %v8749_v3 = vsel %vm10416_vm2, %v3439_v43, 2147483647  ;;  %v3438_v2 = vsel %vm3428_vm1, %v8243_v13, 4  ;;  %v8752_v28 = vcvt.s32.f32 %v3476_v12 }
 0xab1   :  { %v3521_v45 = vshra.s32 %v8749_v3, 16  ;;  %v8756_v40 = vsel %vm10419_vm11, %v3438_v2, 2147483647  ;;  %v3417_v37 = vpop.xlane.xlu1 %3416  ;;  %3494 = vmin.xlane.f32.xlu1 %v8746_v8  ;;  %vm10422_vm11 = vmmov %vm10420_vm5 }
 0xab2   :  { %v3506_v62 = vshra.s32 %v8756_v40, 16  ;;  %vm3431_vm7 = vcmp.le.f32.partialorder %v3391_v6, %v3417_v37  ;;  %v3414_v41 = vpop.xlane.xlu0 %3413  ;;  %3479 = vmin.xlane.f32.xlu0 %v8752_v28  ;;  %v3505_v44 = vand.u32 65535, %v8756_v40 }
 0xab3   :  { %v3441_v46 = vsel %vm3431_vm7, %v8243_v13, 4  ;;  %vm3430_vm9 = vcmp.le.f32.partialorder %v3390_v32, %v3414_v41  ;;  %v3523_v20 = vcvt.s32.f32 %v3521_v45  ;;  %vm10423_vm7 = vmmov %vm10420_vm5 }
 0xab4   :  { %v8763_v12 = vsel %vm10420_vm5, %v3441_v46, 2147483647  ;;  %v3440_v43 = vsel %vm3430_vm9, %v8243_v13, 4  ;;  %v3508_v2 = vcvt.s32.f32 %v3506_v62 }
 0xab5   :  { %v3551_v63 = vshra.s32 %v8763_v12, 16  ;;  %v8768_v19 = vsel %vm10421_vm8, %v3440_v43, 2147483647  ;;  %3524 = vmin.xlane.f32.xlu1 %v3523_v20  ;;  %v3423_v6 = vpop.xlane.xlu1 %3422 }
 0xab6   :  { %v3536_v37 = vshra.s32 %v8768_v19, 16  ;;  %vm3433_vm1 = vcmp.le.f32.partialorder %v8711_v0, %v3423_v6  ;;  %3509 = vmin.xlane.f32.xlu0 %v3508_v2  ;;  %v3420_v32 = vpop.xlane.xlu0 %3419  ;;  %v3535_v40 = vand.u32 65535, %v8768_v19 }
 0xab7   :  { %v3443_v45 = vsel %vm3433_vm1, %v8243_v13, 4  ;;  %vm3432_vm2 = vcmp.le.f32.partialorder %v8713_v17, %v3420_v32  ;;  %v3553_v41 = vcvt.s32.f32 %v3551_v63  ;;  %v3460_v63 = vand.u32 65535, %v8721_v39 }
 0xab8   :  { %v8775_v62 = vsel %vm10422_vm11, %v3443_v45, 2147483647  ;;  %v3442_v46 = vsel %vm3432_vm2, %v8243_v13, 4  ;;  %v3538_v43 = vcvt.s32.f32 %v3536_v37  ;;  %v3445_v17 = vand.u32 65535, %v8725_v50 }
 0xab9   :  { %v3581_v9 = vshra.s32 %v8775_v62, 16  ;;  %v3564_v52 = vsel %vm10423_vm7, %v3442_v46, 2147483647  ;;  %3554 = vmin.xlane.f32.xlu1 %v3553_v41  ;;  %v3490_v32 = vand.u32 65535, %v8733_v23  ;;  %v3462_v45 = vcvt.s32.f32 %v3460_v63 }
 0xaba   :  { %v3566_v24 = vshra.s32 %v3564_v52, 16  ;;  %3539 = vmin.xlane.f32.xlu0 %v3538_v43  ;;  %v3520_v50 = vand.u32 65535, %v8749_v3  ;;  %v3550_v3 = vand.u32 65535, %v8763_v12 }
 0xabb   :  { %v3583_v0 = vcvt.s32.f32 %v3581_v9  ;;  %v3447_v9 = vcvt.s32.f32 %v3445_v17  ;;  %v3492_v63 = vcvt.s32.f32 %v3490_v32 }
 0xabc   :  { %v8780_v6 = vcvt.s32.f32 %v3566_v24  ;;  %v3475_v24 = vand.u32 65535, %v8740_v10  ;;  %v3522_v32 = vcvt.s32.f32 %v3520_v50  ;;  %v3552_v12 = vcvt.s32.f32 %v3550_v3 }
 0xabd   :  { %3584 = vmin.xlane.f32.xlu1 %v3583_v0 }
 0xabe   :  { %3569 = vmin.xlane.f32.xlu0 %v8780_v6  ;;  %v3477_v10 = vcvt.s32.f32 %v3475_v24  ;;  %v3580_v24 = vand.u32 65535, %v8775_v62 }
 0xb3a   :  { %v8786_v37 = vpop.xlane.xlu1 %3464 }
 0xb3b   :  { %vm3466_vm9 = vcmp.eq.f32.partialorder %v8730_v4, %v8786_v37  ;;  %v8790_v46 = vpop.xlane.xlu0 %3449 }
 0xb3c   :  { %vm3451_vm5 = vcmp.eq.f32.partialorder %v8736_v53, %v8790_v46  ;;  %v3467_v5 = vsel %vm3466_vm9, %v3462_v45, inf  ;;  %v3507_v45 = vcvt.s32.f32 %v3505_v44 }
 0xb3d   :  { %3468 = vmin.xlane.f32.xlu1 %v3467_v5  ;;  %v3452_v39 = vsel %vm3451_vm5, %v3447_v9, inf }
 0xb3e   :  { %v8796_v23 = vpop.xlane.xlu1 %3494  ;;  %3453 = vmin.xlane.f32.xlu0 %v3452_v39 }
 0xb3f   :  { %vm3496_vm8 = vcmp.eq.f32.partialorder %v8746_v8, %v8796_v23  ;;  %v8801_v4 = vpop.xlane.xlu0 %3479 }
 0xb40   :  { %vm3481_vm1 = vcmp.eq.f32.partialorder %v8752_v28, %v8801_v4  ;;  %v3497_v53 = vsel %vm3496_vm8, %v3492_v63, inf  ;;  %v3565_v63 = vand.u32 65535, %v3564_v52 }
 0xb41   :  { %3498 = vmin.xlane.f32.xlu1 %v3497_v53  ;;  %v3482_v5 = vsel %vm3481_vm1, %v3477_v10, inf  ;;  %v3582_v10 = vcvt.s32.f32 %v3580_v24  ;;  %v8852_v24 = vld [vmem:[%s9959_s3 + $0x18] sm:$0xff] }
 0xb42   :  { %v8806_v17 = vpop.xlane.xlu1 %3524  ;;  %3483 = vmin.xlane.f32.xlu0 %v3482_v5  ;;  %v3567_v53 = vcvt.s32.f32 %v3565_v63 }
 0xb43   :  { %vm3526_vm2 = vcmp.eq.f32.partialorder %v3523_v20, %v8806_v17  ;;  %v8810_v8 = vpop.xlane.xlu0 %3509  ;;  %v3537_v20 = vcvt.s32.f32 %v3535_v40  ;;  %v8844_v40 = vld [vmem:[%s9959_s3 + $0x10] sm:$0xff] }
 0xb44   :  { %vm3511_vm11 = vcmp.eq.f32.partialorder %v3508_v2, %v8810_v8  ;;  %v3527_v9 = vsel %vm3526_vm2, %v3522_v32, inf }
 0xb45   :  { %3528 = vmin.xlane.f32.xlu1 %v3527_v9  ;;  %v3512_v28 = vsel %vm3511_vm11, %v3507_v45, inf }
 0xb46   :  { %v8814_v39 = vpop.xlane.xlu1 %3554  ;;  %3513 = vmin.xlane.f32.xlu0 %v3512_v28  ;;  %v4301_v28 = vadd.s32 4294967295, %v8844_v40 }
 0xb47   :  { %vm3556_vm7 = vcmp.eq.f32.partialorder %v3553_v41, %v8814_v39  ;;  %v8817_v19 = vpop.xlane.xlu0 %3539 }
 0xb48   :  { %vm3541_vm9 = vcmp.eq.f32.partialorder %v3538_v43, %v8817_v19  ;;  %v3557_v44 = vsel %vm3556_vm7, %v3552_v12, inf  ;;  %v8830_v43 = vld [vmem:[%s9959_s3 + $0x8] sm:$0xff] }
 0xb49   :  { %3558 = vmin.xlane.f32.xlu1 %v3557_v44  ;;  %v3542_v2 = vsel %vm3541_vm9, %v3537_v20, inf  ;;  %v4300_v5 = vadd.s32 4294967295, %v8830_v43  ;;  %v4417_v9 = vadd.s32 1, %v8830_v43  ;;  %v4536_v63 = vadd.s32 2, %v8830_v43 }
 0xb4a   :  { %v8820_v50 = vpop.xlane.xlu1 %3584  ;;  %3543 = vmin.xlane.f32.xlu0 %v3542_v2  ;;  %v4419_v44 = vadd.s32 1, %v8852_v24 }
 0xb4b   :  { %vm3586_vm5 = vcmp.eq.f32.partialorder %v3583_v0, %v8820_v50  ;;  %v8823_v62 = vpop.xlane.xlu0 %3569  ;;  %v8836_v0 = vld [vmem:[%s9959_s3] sm:$0xff]  ;;  %vm4309_vm1 = vcmp.ge.s32.totalorder %v4300_v5, 0  ;;  %vm4318_vm2 = vcmp.lt.s32.totalorder %v4300_v5, 5  ;;  %vm4554_vm4 = vcmp.lt.s32.totalorder %v4536_v63, 5 }
 0xb4c   :  { %vm3571_vm8 = vcmp.eq.f32.partialorder %v8780_v6, %v8823_v62  ;;  %v3587_v52 = vsel %vm3586_vm5, %v3582_v10, inf  ;;  %v4416_v6 = vadd.s32 1, %v8836_v0  ;;  %v4299_v3 = vadd.s32 4294967295, %v8836_v0  ;;  %vm4327_vm11 = vmand %vm4309_vm1, %vm4318_vm2 }
 0xb4d   :  { %3588 = vmin.xlane.f32.xlu1 %v3587_v52  ;;  %v3572_v41 = vsel %vm3571_vm8, %v3567_v53, inf  ;;  %v4535_v32 = vadd.s32 2, %v8836_v0  ;;  %v4336_v45 = vsel %vm4327_vm11, 1, %v10134_v57  ;;  %vm4426_vm2 = vcmp.ge.s32.totalorder %v4417_v9, 0 }
 0xb4e   :  { %3573 = vmin.xlane.f32.xlu0 %v3572_v41  ;;  %vm4425_vm7 = vcmp.ge.s32.totalorder %v4416_v6, 0  ;;  %vm4434_vm9 = vcmp.lt.s32.totalorder %v4416_v6, 5  ;;  %vm4308_vm5 = vcmp.ge.s32.totalorder %v4299_v3, 0  ;;  %vm4317_vm8 = vcmp.lt.s32.totalorder %v4299_v3, 5  ;;  %v8865_v41 = vld [vmem:[%s9959_s3 + $0x28] sm:$0xff] }
 0xb4f   :  { %vm4443_vm0 = vmand %vm4425_vm7, %vm4434_vm9  ;;  %vm4544_vm3 = vcmp.ge.s32.totalorder %v4535_v32, 0  ;;  %vm4553_vm14 = vcmp.lt.s32.totalorder %v4535_v32, 5  ;;  %vm4435_vm11 = vcmp.lt.s32.totalorder %v4417_v9, 5  ;;  %vm4310_vm7 = vcmp.ge.s32.totalorder %v4301_v28, 0 }
 0xb50   :  { %vm4326_vm1 = vmand %vm4308_vm5, %vm4317_vm8  ;;  %v4452_v12 = vsel %vm4443_vm0, 1, %v10134_v57  ;;  %vm4319_vm9 = vcmp.lt.s32.totalorder %v4301_v28, 5  ;;  %vm4545_vm8 = vcmp.ge.s32.totalorder %v4536_v63, 0  ;;  %v4302_v10 = vadd.s32 4294967295, %v8852_v24 }
 0xb51   :  { %vm4562_vm13 = vmand %vm4544_vm3, %vm4553_vm14  ;;  %v4335_v20 = vsel %vm4326_vm1, 1, %v10134_v57  ;;  %vm4428_vm10 = vcmp.ge.s32.totalorder %v4419_v44, 0  ;;  %vm4437_vm14 = vcmp.lt.s32.totalorder %v4419_v44, 5  ;;  %v4538_v52 = vadd.s32 2, %v8852_v24 }
 0xb52   :  { %vm4444_vm5 = vmand %vm4426_vm2, %vm4435_vm11  ;;  %v4571_v2 = vsel %vm4562_vm13, 1, %v10134_v57  ;;  %vm4311_vm13 = vcmp.ge.s32.totalorder %v4302_v10, 0  ;;  %vm4320_vm1 = vcmp.lt.s32.totalorder %v4302_v10, 5  ;;  %v4418_v6 = vadd.s32 1, %v8844_v40 }
 0xb53   :  { %vm4328_vm0 = vmand %vm4310_vm7, %vm4319_vm9  ;;  %v4453_v53 = vsel %vm4444_vm5, 1, %v10134_v57  ;;  %vm4547_vm11 = vcmp.ge.s32.totalorder %v4538_v52, 0  ;;  %vm4556_vm7 = vcmp.lt.s32.totalorder %v4538_v52, 5  ;;  %v4304_v32 = vadd.s32 4294967295, %v8865_v41 }
 0xb54   :  { %vm4563_vm3 = vmand %vm4545_vm8, %vm4554_vm4  ;;  %v4337_v5 = vsel %vm4328_vm0, 1, %v10134_v57  ;;  %vm4427_vm9 = vcmp.ge.s32.totalorder %v4418_v6, 0  ;;  %vm4436_vm5 = vcmp.lt.s32.totalorder %v4418_v6, 5  ;;  %v4537_v28 = vadd.s32 2, %v8844_v40 }
 0xb55   :  { %vm4446_vm2 = vmand %vm4428_vm10, %vm4437_vm14  ;;  %v4572_v3 = vsel %vm4563_vm3, 1, %v10134_v57  ;;  %vm4313_vm8 = vcmp.ge.s32.totalorder %v4304_v32, 0  ;;  %vm4322_vm0 = vcmp.lt.s32.totalorder %v4304_v32, 5 }
 0xb56   :  { %vm4329_vm4 = vmand %vm4311_vm13, %vm4320_vm1  ;;  %v4455_v9 = vsel %vm4446_vm2, 1, %v10134_v57  ;;  %vm4546_vm3 = vcmp.ge.s32.totalorder %v4537_v28, 0  ;;  %vm4555_vm13 = vcmp.lt.s32.totalorder %v4537_v28, 5 }
 0xb57   :  { %vm4565_vm10 = vmand %vm4547_vm11, %vm4556_vm7 }
 0xb58   :  { %vm4445_vm14 = vmand %vm4427_vm9, %vm4436_vm5 }
 0xb59   :  { %vm4331_vm1 = vmand %vm4313_vm8, %vm4322_vm0 }
 0xb5a   :  { %vm4564_vm7 = vmand %vm4546_vm3, %vm4555_vm13  ;;  %v4340_v10 = vsel %vm4331_vm1, 1, %v10134_v57  ;;  %vm10076_vm3 = vcmp.eq.s32.totalorder %v8243_v13, 1 }
 0xb5e   :  { %4348 = vperm.xlu1 %6242, %v4336_v45   ;;  %v8874_v45 = vld [vmem:[%s9959_s3 + $0x20] sm:$0xff] }
 0xb5f   :  { %v4420_v63 = vadd.s32 1, %v8874_v45  ;;  %v4303_v44 = vadd.s32 4294967295, %v8874_v45  ;;  %v4539_v28 = vadd.s32 2, %v8874_v45 }
 0xb61   :  { %vm4429_vm2 = vcmp.ge.s32.totalorder %v4420_v63, 0  ;;  %vm4438_vm11 = vcmp.lt.s32.totalorder %v4420_v63, 5  ;;  %vm4321_vm6 = vcmp.lt.s32.totalorder %v4303_v44, 5  ;;  %v3456_v63 = vcvt.f32.s32 %v8790_v46 }
 0xb62   :  { %4462 = vperm.xlu1 %6242, %v4452_v12   ;;  %v4338_v12 = vsel %vm4329_vm4, 1, %v10134_v57  ;;  %vm4312_vm4 = vcmp.ge.s32.totalorder %v4303_v44, 0  ;;  %vm4447_vm9 = vmand %vm4429_vm2, %vm4438_vm11  ;;  %v3531_v44 = vcvt.f32.s32 %v8806_v17  ;;  %vm4557_vm8 = vcmp.lt.s32.totalorder %v4539_v28, 5 }
 0xb63   :  { %vm4330_vm5 = vmand %vm4312_vm4, %vm4321_vm6  ;;  %v4456_v52 = vsel %vm4447_vm9, 1, %v10134_v57  ;;  %vm4548_vm6 = vcmp.ge.s32.totalorder %v4539_v28, 0  ;;  %v3457_v17 = vshll.u32 %v3456_v63, 16 }
 0xb64   :  { %4345 = vperm.xlu0 %6241, %v4335_v20   ;;  %v4574_v20 = vsel %vm4565_vm10, 1, %v10134_v57  ;;  %vm10075_vm10 = vcmp.eq.s32.totalorder %v8243_v13, 0  ;;  %vm8952_vm13 = vmand %vm4548_vm6, %vm4557_vm8  ;;  %vm10428_vm6 = vcmask 31744  }
 0xb65   :  { %v5505_v6 = vsel %vm10075_vm10, %v8349_v30, 0  ;;  %v8899_v32 = vsel %vm10075_vm10, %v8373_v26, 0  ;;  %v8910_v30 = vsel %vm10075_vm10, %v8411_v25, 0  ;;  %v8920_v26 = vsel %vm10075_vm10, %v8449_v55, 0  ;;  %vm10429_vm8 = vmmov %vm10428_vm6 }
 0xb66   :  { %4581 = vperm.xlu1 %6242, %v4571_v2   ;;  %v4454_v2 = vsel %vm4445_vm14, 1, %v10134_v57  ;;  %v8931_v25 = vsel %vm10075_vm10, %v8495_v35, 0  ;;  %v3486_v55 = vcvt.f32.s32 %v8801_v4  ;;  %v3546_v35 = vcvt.f32.s32 %v8817_v19  ;;  %v8994_v19 = vld [vmem:[%s9959_s3 + $0x30] sm:$0xff] }
 0xb67   :  { %v8946_v46 = vsel %vm10075_vm10, %v8505_v27, 0  ;;  %v3576_v4 = vcvt.f32.s32 %v8823_v62  ;;  %v8962_v62 = vld [vmem:[%s9959_s3 + $0x38] sm:$0xff] }
 0xb68   :  { %4465 = vperm.xlu0 %6241, %v4453_v53   ;;  %v4573_v53 = vsel %vm4564_vm7, 1, %v10134_v57  ;;  %v8966_v28 = vshll.u32 %v3546_v35, 16  ;;  %vm4051_vm7 = vcmask 7168   ;;  %v8986_v35 = vadd.s32 4294967295, %v8962_v62 }
 0xb6a   :  { %4351 = vperm.xlu1 %6242, %v4337_v5   ;;  %v4339_v5 = vsel %vm4330_vm5, 1, %v10134_v57 }
 0xb6c   :  { %4584 = vperm.xlu0 %6241, %v4572_v3   ;;  %v8894_v3 = vsel %vm10075_vm10, %v8351_v58, 0  ;;  %v8915_v58 = vsel %vm10075_vm10, %v8417_v11, 0  ;;  %v3471_v11 = vcvt.f32.s32 %v8786_v37  ;;  %v3591_v37 = vcvt.f32.s32 %v8820_v50 }
 0xb6e   :  { %4471 = vperm.xlu1 %6242, %v4455_v9   ;;  %v8904_v9 = vsel %vm10075_vm10, %v8375_v15, 0  ;;  %v4421_v15 = vadd.s32 1, %v8865_v41  ;;  %v8968_v63 = vshll.u32 %v3591_v37, 16 }
 0xb70   :  { %4354 = vperm.xlu0 %6241, %v4338_v12   ;;  %v8926_v12 = vsel %vm10075_vm10, %v8459_v56, 0  ;;  %v3561_v56 = vcvt.f32.s32 %v8814_v39  ;;  %vm4430_vm0 = vcmp.ge.s32.totalorder %v4421_v15, 0  ;;  %vm4439_vm14 = vcmp.lt.s32.totalorder %v4421_v15, 5 }
 0xb71   :  { %v3487_v39 = vshll.u32 %v3486_v55, 16  ;;  %vm4448_vm1 = vmand %vm4430_vm0, %vm4439_vm14  ;;  %v8970_v55 = vshll.u32 %v3576_v4, 16  ;;  %vm4315_vm0 = vcmp.ge.s32.totalorder %v8986_v35, 0  ;;  %vm4324_vm14 = vcmp.lt.s32.totalorder %v8986_v35, 5 }
 0xb72   :  { %4590 = vperm.xlu1 %6242, %v4574_v20   ;;  %v3501_v20 = vcvt.f32.s32 %v8796_v23  ;;  %v3472_v23 = vshll.u32 %v3471_v11, 16  ;;  %v8964_v11 = vshll.u32 %v3561_v56, 16  ;;  %v8978_v42 = vsel %vm4448_vm1, 1, %v10134_v57 }
 0xb74   :  { %4468 = vperm.xlu0 %6241, %v4454_v2   ;;  %v3516_v2 = vcvt.f32.s32 %v8810_v8  ;;  %v3502_v8 = vshll.u32 %v3501_v20, 16 }
 0xb76   :  { %4360 = vperm.xlu1 %6242, %v4340_v10   ;;  %v4540_v10 = vadd.s32 2, %v8865_v41  ;;  %v8956_v50 = vshll.u32 %v3516_v2, 16 }
 0xb78   :  { %4587 = vperm.xlu0 %6241, %v4573_v53   ;;  %v3532_v53 = vshll.u32 %v3531_v44, 16  ;;  %vm4549_vm2 = vcmp.ge.s32.totalorder %v4540_v10, 0  ;;  %vm4558_vm11 = vcmp.lt.s32.totalorder %v4540_v10, 5 }
 0xb79   :  { %vm8981_vm4 = vmand %vm4549_vm2, %vm4558_vm11 }
 0xb7a   :  { %4474 = vperm.xlu1 %6242, %v4456_v52  }
 0xb7c   :  { %4357 = vperm.xlu0 %6241, %v4339_v5  }
 0xbca   :  { %v3469_v52 = vpop.xlane.xlu1 %3468 }
 0xbcb   :  { %v3470_v27 = vcvt.f32.s32 %v3469_v52  ;;  %v3454_v5 = vpop.xlane.xlu0 %3453  ;;  %v8975_v52 = vsel %vm8952_vm13, 1, %v10134_v57  ;;  %vm10430_vm13 = vmpackc.low %vm8413_vm12, %vm8406_vm15 }
 0xbcc   :  { %v3455_v20 = vcvt.f32.s32 %v3454_v5  ;;  %vm10432_vm15 = vmmov %vm10428_vm6 }
 0xbcd   :  { %v3473_v44 = vadd.s32 %v3472_v23, %v3470_v27  ;;  %vm10433_vm12 = vmmov %vm10428_vm6 }
 0xbce   :  { %v3458_v15 = vadd.s32 %v3457_v17, %v3455_v20  ;;  %v3499_v2 = vpop.xlane.xlu1 %3498 }
 0xbcf   :  { %v4042_v37 = vcvt.s32.f32 %v3473_v44  ;;  %v5515_v23 = vsel %vm10076_vm3, %v3473_v44, %v5505_v6  ;;  %v3500_v4 = vcvt.f32.s32 %v3499_v2  ;;  %v3484_v17 = vpop.xlane.xlu0 %3483  ;;  %vm3595_vm9 = vcmp.eq.s32.totalorder %v8243_v13, %v3473_v44 }
 0xbd0   :  { %5525 = vst [vmem:[%s9960_s16 + $0x8] sm:$0xff] %v5515_v23  ;;  %v4041_v10 = vcvt.s32.f32 %v3458_v15  ;;  %v5514_v27 = vsel %vm10076_vm3, %v3458_v15, %v8894_v3  ;;  %v3485_v5 = vcvt.f32.s32 %v3484_v17  ;;  %vm3594_vm5 = vcmp.eq.s32.totalorder %v8243_v13, %v3458_v15 }
 0xbd1   :  { %5524 = vst [vmem:[%s9960_s16] sm:$0xff] %v5514_v27  ;;  %v3503_v6 = vadd.s32 %v3502_v8, %v3500_v4  ;;  %v5667_v20 = vsel %vm3594_vm5, 1.0, %v10126_v33  ;;  %v4053_v44 = vsel %vm4051_vm7, %v8354_v22, %v4042_v37  ;;  %v9012_v2 = vsel %vm8981_vm4, 1, %v10134_v57 }
 0xbd2   :  { %v3488_v23 = vadd.s32 %v3487_v39, %v3485_v5  ;;  %v3529_v3 = vpop.xlane.xlu1 %3528  ;;  %6088 = vmatprep.mubr.msk.f32.mxu1 %vm10428_vm6, %v5667_v20  ;;  %v5668_v15 = vsel %vm3595_vm9, 1.0, %v10126_v33  ;;  %v4052_v17 = vsel %vm4051_vm7, %v8359_v21, %v4041_v10  ;;  %v9019_v8 = vadd.s32 4294967295, %v8994_v19 }
 0xbd3   :  { %v4044_v4 = vcvt.s32.f32 %v3503_v6  ;;  %v5517_v22 = vsel %vm10076_vm3, %v3503_v6, %v8899_v32  ;;  %v3530_v56 = vcvt.f32.s32 %v3529_v3  ;;  %6089 = vmatmul.mubr.msk.f32.vlgmr.msra.gmra.mrb[54].mxu1 %vm10429_vm8, %v5668_v15  ;;  %v3514_v39 = vpop.xlane.xlu0 %3513  ;;  %v6368_v37 = vpack.i.bf16 %v4053_v44, %v4052_v17 }
 0xbd4   :  { %5527 = vst [vmem:[%s9960_s16 + $0x18] sm:$0xff] %v5517_v22  ;;  %v4043_v21 = vcvt.s32.f32 %v3488_v23  ;;  %v5516_v10 = vsel %vm10076_vm3, %v3488_v23, %v8904_v9  ;;  %v6588_v27 = vmov 1.0|1.0   ;;  %v3515_v32 = vcvt.f32.s32 %v3514_v39 }
 0xbd5   :  { %6202 = vmatpush3.bf16.msk.msra.mxu1 %vm10430_vm13, %v6588_v27  ;;  %vm3596_vm1 = vcmp.eq.s32.totalorder %v8243_v13, %v3488_v23  ;;  %5526 = vst [vmem:[%s9960_s16 + $0x10] sm:$0xff] %v5516_v10  ;;  %v3533_v5 = vadd.s32 %v3532_v53, %v3530_v56  ;;  %6369 = vrot.lane.b32.xlu1 %v6368_v37, %s6589_s10  ;;  %v10431_v20 = vmov 0.0|0.0   ;;  %v9055_v3 = vadd.s32 1, %v8962_v62 }
 0xbd6   :  { %v5669_v9 = vsel %vm3596_vm1, 1.0, %v10126_v33  ;;  %6203 = vmatprep.subr.bf16.mxu1 %v10431_v20  ;;  %vm3597_vm2 = vcmp.eq.s32.totalorder %v8243_v13, %v3503_v6  ;;  %v4055_v59 = vsel %vm4051_vm7, %v8378_v60, %v4044_v4  ;;  %v3518_v29 = vadd.s32 %v8956_v50, %v3515_v32  ;;  %v3559_v44 = vpop.xlane.xlu1 %3558  ;;  %vm10437_vm1 = vmmov %vm10433_vm12 }
 0xbd7   :  { %6091 = vmatprep.mubr.msk.f32.mxu1 %vm10432_vm15, %v5669_v9  ;;  %v5670_v23 = vsel %vm3597_vm2, 1.0, %v10126_v33  ;;  %v4054_v53 = vsel %vm4051_vm7, %v8384_v48, %v4043_v21  ;;  %v4046_v15 = vcvt.s32.f32 %v3533_v5  ;;  %v5519_v6 = vsel %vm10076_vm3, %v3533_v5, %v8910_v30  ;;  %v3544_v60 = vpop.xlane.xlu0 %3543  ;;  %vm10438_vm2 = vmmov %vm10437_vm1 }
 0xbd8   :  { %v3560_v17 = vcvt.f32.s32 %v3559_v44  ;;  %6092 = vmatmul.mubr.msk.f32.gmra.mrb[56].mxu1 %vm10433_vm12, %v5670_v23  ;;  %v6373_v50 = vpack.i.bf16 %v4055_v59, %v4054_v53  ;;  %vm4314_vm11 = vcmp.ge.s32.totalorder %v9019_v8, 0  ;;  %vm4323_vm4 = vcmp.lt.s32.totalorder %v9019_v8, 5  ;;  %5529 = vst [vmem:[%s9960_s16 + $0x28] sm:$0xff] %v5519_v6 }
 0xbd9   :  { %v4045_v48 = vcvt.s32.f32 %v3518_v29  ;;  %v5518_v4 = vsel %vm10076_vm3, %v3518_v29, %v8915_v58  ;;  %vm10434_vm9 = vnez %v10352_v38  ;;  %vm10435_vm5 = vnez %v10350_v18  ;;  %4593 = vperm.xlu1 %6242, %v8975_v52  }
 0xbda   :  { %vm10436_vm6 = vmpackc.low %vm10434_vm9, %vm10435_vm5  ;;  %v3545_v30 = vcvt.f32.s32 %v3544_v60  ;;  %vm3598_vm8 = vcmp.eq.s32.totalorder %v8243_v13, %v3518_v29  ;;  %v4057_v22 = vsel %vm4051_vm7, %v8425_v51, %v4046_v15  ;;  %5528 = vst [vmem:[%s9960_s16 + $0x20] sm:$0xff] %v5518_v4  ;;  %v3563_v56 = vadd.s32 %v8964_v11, %v3560_v17  ;;  %6374 = vrot.lane.b32.xlu0 %v6373_v50, %s6589_s10  ;;  %v3589_v39 = vpop.xlane.xlu1 %3588 }
 0xbdb   :  { %6205 = vmatpush3.bf16.msk.msra.mxu1 %vm10436_vm6, %v6588_v27  ;;  %v5671_v18 = vsel %vm3598_vm8, 1.0, %v10126_v33  ;;  %vm3599_vm13 = vcmp.eq.s32.totalorder %v8243_v13, %v3533_v5  ;;  %v4087_v38 = vrot.slane %v4057_v22, 5  ;;  %v4056_v11 = vsel %vm4051_vm7, %v8431_v1, %v4045_v48  ;;  %v3574_v10 = vpop.xlane.xlu0 %3573  ;;  %vm10442_vm8 = vmmov %vm10437_vm1 }
 0xbdc   :  { %v3548_v58 = vadd.s32 %v8966_v28, %v3545_v30  ;;  %6094 = vmatprep.mubr.msk.f32.mxu1 %vm10437_vm1, %v5671_v18  ;;  %6206 = vmatprep.subr.bf16.mxu1 %v10431_v20  ;;  %v5672_v51 = vsel %vm3599_vm13, 1.0, %v10126_v33  ;;  %v4048_v52 = vcvt.s32.f32 %v3563_v56  ;;  %v5521_v37 = vsel %vm10076_vm3, %v3563_v56, %v8920_v26  ;;  %vm9129_vm1 = vmand %vm4315_vm0, %vm4324_vm14 }
 0xbdd   :  { %v3590_v21 = vcvt.f32.s32 %v3589_v39  ;;  %6095 = vmatmul.mubr.msk.f32.gmra.mrb[58].mxu1 %vm10438_vm2, %v5672_v51  ;;  %vm3601_vm15 = vcmp.eq.s32.totalorder %v8243_v13, %v3563_v56  ;;  %5531 = vst [vmem:[%s9960_s16 + $0x38] sm:$0xff] %v5521_v37  ;;  %vm10439_vm12 = vnez %v10358_v7  ;;  %vm10440_vm9 = vnez %v10356_v61 }
 0xbde   :  { %v4047_v28 = vcvt.s32.f32 %v3548_v58  ;;  %v5520_v1 = vsel %vm10076_vm3, %v3548_v58, %v8926_v12  ;;  %vm10441_vm5 = vmpackc.low %vm10439_vm12, %vm10440_vm9  ;;  %v3575_v26 = vcvt.f32.s32 %v3574_v10  ;;  %vm3600_vm6 = vcmp.eq.s32.totalorder %v8243_v13, %v3548_v58  ;;  %4477 = vperm.xlu0 %6241, %v8978_v42  }
 0xbdf   :  { %6208 = vmatpush3.bf16.msk.msra.mxu1 %vm10441_vm5, %v6588_v27  ;;  %v4059_v32 = vsel %vm4051_vm7, %v8467_v47, %v4048_v52  ;;  %5530 = vst [vmem:[%s9960_s16 + $0x30] sm:$0xff] %v5520_v1  ;;  %v3593_v5 = vadd.s32 %v8968_v63, %v3590_v21  ;;  %v5673_v7 = vsel %vm3600_vm6, 1.0, %v10126_v33  ;;  %v5674_v61 = vsel %vm3601_vm15, 1.0, %v10126_v33 }
 0xbe0   :  { %6209 = vmatprep.subr.bf16.mxu1 %v10431_v20  ;;  %v4090_v12 = vrot.slane %v4059_v32, 5  ;;  %v4058_v9 = vsel %vm4051_vm7, %v8477_v16, %v4047_v28  ;;  %v3578_v47 = vadd.s32 %v8970_v55, %v3575_v26  ;;  %6097 = vmatprep.mubr.msk.f32.mxu1 %vm10442_vm8, %v5673_v7  ;;  %vm10443_vm13 = vcmask 1042432   ;;  %vm10451_vm8 = vmmov %vm10438_vm2  ;;  %v9232_v7 = vpop.permute.xlu1 %4348 }
 0xbe1   :  { %v4097_v59 = vsel %vm10443_vm13, %v4056_v11, %v4087_v38  ;;  %v4088_v63 = vrot.slane %v4058_v9, 5  ;;  %v4050_v29 = vcvt.s32.f32 %v3593_v5  ;;  %v5523_v16 = vsel %vm10076_vm3, %v3593_v5, %v8931_v25  ;;  %6098 = vmatmul.mubr.msk.f32.gmra.mrb[60].mxu1 %vm10438_vm2, %v5674_v61  ;;  %vm10449_vm5 = vmmov %vm10443_vm13 }
 0xbe2   :  { %v4422_v55 = vadd.s32 1, %v8994_v19  ;;  %5533 = vst [vmem:[%s9960_s16 + $0x48] sm:$0xff] %v5523_v16  ;;  %v4049_v44 = vcvt.s32.f32 %v3578_v47  ;;  %v5522_v35 = vsel %vm10076_vm3, %v3578_v47, %v8946_v46  ;;  %vm10446_vm0 = vnez %v10367_v31  ;;  %4596 = vperm.xlu0 %6241, %v9012_v2   ;;  %vm10450_vm6 = vmmov %vm10449_vm5 }
 0xbe3   :  { %vm10447_vm14 = vnez %v10362_v36  ;;  %vm3602_vm12 = vcmp.eq.s32.totalorder %v8243_v13, %v3578_v47  ;;  %vm3603_vm9 = vcmp.eq.s32.totalorder %v8243_v13, %v3593_v5  ;;  %5532 = vst [vmem:[%s9960_s16 + $0x40] sm:$0xff] %v5522_v35  ;;  %v4089_v31 = vsel %vm10449_vm5, %v4087_v38, %v4088_v63  ;;  %vm4332_vm13 = vmand %vm4314_vm11, %vm4323_vm4  ;;  %v9230_v5 = vpop.permute.xlu0 %4345 }
 0xbe4   :  { %vm10448_vm15 = vmpackc.low %vm10446_vm0, %vm10447_vm14  ;;  %v5675_v25 = vsel %vm3602_vm12, 1.0, %v10126_v33  ;;  %v4342_v36 = vsel %vm9129_vm1, 1, %v10134_v57  ;;  %v4091_v46 = vsel %vm10450_vm6, %v4088_v63, %v4090_v12  ;;  %v4060_v23 = vsel %vm4051_vm7, %v8521_v14, %v4049_v44 }
 0xbe5   :  { %6211 = vmatpush3.bf16.msk.msra.mxu1 %vm10448_vm15, %v6588_v27  ;;  %6100 = vmatprep.mubr.msk.f32.mxu1 %vm10451_vm8, %v5675_v25  ;;  %v5676_v53 = vsel %vm3603_vm9, 1.0, %v10126_v33  ;;  %v6378_v2 = vpack.i.bf16 %v4089_v31, %v4097_v59  ;;  %v4061_v15 = vsel %vm4051_vm7, %v8512_v34, %v4050_v29  ;;  %v4092_v6 = vrot.slane %v4060_v23, 5  ;;  %vm10452_vm1 = vmmov %vm10438_vm2 }
 0xbe6   :  { %6212 = vmatprep.subr.bf16.mxu1 %v10431_v20  ;;  %6101 = vmatmul.mubr.msk.f32.gmra.mrb[62].mxu1 %vm10452_vm1, %v5676_v53  ;;  %vm4432_vm2 = vcmp.ge.s32.totalorder %v9055_v3, 0  ;;  %vm4441_vm0 = vcmp.lt.s32.totalorder %v9055_v3, 5  ;;  %v4094_v14 = vrot.slane %v4061_v15, 5  ;;  %vm10453_vm14 = vnez %v10365_v49  ;;  %vm10456_vm7 = vmmov %vm10449_vm5  ;;  %v9190_v49 = vld [vmem:[%s9959_s3 + $0x40] sm:$0x3f]  ;;  %v10461_v15 = vld [vmem:[#allocation5_spill] sm:$0xff] }
 0xbe7   :  { %vm10454_vm15 = vnez %v10369_v54  ;;  %6379 = vrot.lane.b32.xlu1 %v6378_v2, %s6589_s10  ;;  %vm4431_vm11 = vcmp.ge.s32.totalorder %v4422_v55, 0  ;;  %vm4440_vm4 = vcmp.lt.s32.totalorder %v4422_v55, 5  ;;  %v4541_v34 = vadd.s32 2, %v8994_v19  ;;  %4366 = vperm.xlu0 %6241, %v4342_v36   ;;  %vm10457_vm9 = vmmov %vm10449_vm5  ;;  %v9234_v61 = vpop.permute.xlu0 %4465  ;;  %s6590_s3 = smov 68  }
 0xbe8   :  { %vm10455_vm12 = vmpackc.low %vm10453_vm14, %vm10454_vm15  ;;  %v4341_v8 = vsel %vm4332_vm13, 1, %v10134_v57  ;;  %v4093_v17 = vsel %vm10456_vm7, %v4090_v12, %v4092_v6  ;;  %v4095_v60 = vsel %vm10457_vm9, %v4092_v6, %v4094_v14  ;;  %vm10458_vm5 = vmmov 0   ;;  %v9236_v12 = vpop.permute.xlu1 %4462  ;;  %v10462_v14 = vld [vmem:[#allocation20_spill] sm:$0xff] }
 0xbe9   :  { %6214 = vmatpush3.bf16.msk.msra.mxu1 %vm10455_vm12, %v6588_v27  ;;  %6146 = vmatprep.mubr.msk.f32.mxu1 %vm10458_vm5, %v10126_v33  ;;  %v6383_v54 = vpack.i.bf16 %v4093_v17, %v4091_v46  ;;  %vm4450_vm6 = vmand %vm4432_vm2, %vm4441_vm0  ;;  %v4542_v27 = vadd.s32 2, %v8962_v62  ;;  %v10459_v50 = vmov 1.0   ;;  %vm10460_vm13 = vcmask 654336  }
 0xbea   :  { %5312 = vmatprep.subr.bf16.mxu1 %v10134_v57  ;;  %vm4449_vm8 = vmand %vm4431_vm11, %vm4440_vm4  ;;  %vm4550_vm1 = vcmp.ge.s32.totalorder %v4541_v34, 0  ;;  %vm4559_vm14 = vcmp.lt.s32.totalorder %v4541_v34, 5  ;;  %v4307_v48 = vadd.s32 4294967295, %v9190_v49  ;;  %v4459_v4 = vsel %vm4450_vm6, 1, %v10134_v57 }
 0xbeb   :  { %4363 = vperm.xlu1 %6242, %v4341_v8   ;;  %6384 = vrot.lane.b32.xlu0 %v6383_v54, %s6589_s10  ;;  %v4458_v3 = vsel %vm4449_vm8, 1, %v10134_v57  ;;  %vm4568_vm2 = vmand %vm4550_vm1, %vm4559_vm14  ;;  %vm4551_vm0 = vcmp.ge.s32.totalorder %v4542_v27, 0  ;;  %vm4560_vm15 = vcmp.lt.s32.totalorder %v4542_v27, 5  ;;  %v4424_v30 = vadd.s32 1, %v9190_v49  ;;  %v9238_v9 = vpop.permute.xlu0 %4584  ;;  %v10464_v27 = vld [vmem:[#allocation2_spill] sm:$0xff] }
 0xbec   :  { %6147 = vmatmul.mubr.msk.f32.vlgmr.msra.gmra.mrb[64].mxu1 %vm10460_vm13, %v10459_v50  ;;  %vm4316_vm12 = vcmp.ge.s32.totalorder %v4307_v48, 0  ;;  %vm4325_vm11 = vcmp.lt.s32.totalorder %v4307_v48, 5  ;;  %v4543_v22 = vadd.s32 2, %v9190_v49  ;;  %v4577_v56 = vsel %vm4568_vm2, 1, %v10134_v57  ;;  %vm4569_vm4 = vmand %vm4551_vm0, %vm4560_vm15  ;;  %v9240_v47 = vpop.permute.xlu1 %4581 }
 0xbed   :  { %vm4334_vm7 = vmand %vm4316_vm12, %vm4325_vm11  ;;  %vm4433_vm9 = vcmp.ge.s32.totalorder %v4424_v30, 0  ;;  %vm4442_vm13 = vcmp.lt.s32.totalorder %v4424_v30, 5  ;;  %v4209_v18 = vadd.s32 4294967294, %v8836_v0  ;;  %v4210_v38 = vadd.s32 4294967294, %v8830_v43 }
 0xbee   :  { %vm4552_vm6 = vcmp.ge.s32.totalorder %v4543_v22, 0  ;;  %vm4561_vm8 = vcmp.lt.s32.totalorder %v4543_v22, 5  ;;  %v4578_v58 = vsel %vm4569_vm4, 1, %v10134_v57  ;;  %v4343_v39 = vsel %vm4334_vm7, 1, %v10134_v57  ;;  %vm4451_vm1 = vmand %vm4433_vm9, %vm4442_vm13 }
 0xbef   :  { %4483 = vperm.xlu1 %6242, %v4459_v4   ;;  %4480 = vperm.xlu0 %6241, %v4458_v3   ;;  %vm4570_vm14 = vmand %vm4552_vm6, %vm4561_vm8  ;;  %vm4218_vm2 = vcmp.ge.s32.totalorder %v4209_v18, 0  ;;  %vm4227_vm0 = vcmp.lt.s32.totalorder %v4209_v18, 5  ;;  %v4211_v51 = vadd.s32 4294967294, %v8844_v40  ;;  %vm4219_vm15 = vcmp.ge.s32.totalorder %v4210_v38, 0  ;;  %v9242_v59 = vpop.permute.xlu0 %4354 }
 0xbf0   :  { %vm4228_vm12 = vcmp.lt.s32.totalorder %v4210_v38, 5  ;;  %v4212_v0 = vadd.s32 4294967294, %v8852_v24  ;;  %v4460_v11 = vsel %vm4451_vm1, 1, %v10134_v57  ;;  %v4579_v43 = vsel %vm4570_vm14, 1, %v10134_v57  ;;  %vm4236_vm11 = vmand %vm4218_vm2, %vm4227_vm0  ;;  %v9244_v42 = vpop.permute.xlu1 %4351 }
 0xbf1   :  { %vm4237_vm4 = vmand %vm4219_vm15, %vm4228_vm12  ;;  %vm4220_vm10 = vcmp.ge.s32.totalorder %v4211_v51, 0  ;;  %vm4229_vm7 = vcmp.lt.s32.totalorder %v4211_v51, 5  ;;  %v4213_v52 = vadd.s32 4294967294, %v8874_v45  ;;  %v4214_v40 = vadd.s32 4294967294, %v8865_v41 }
 0xbf2   :  { %vm4221_vm9 = vcmp.ge.s32.totalorder %v4212_v0, 0  ;;  %vm4230_vm13 = vcmp.lt.s32.totalorder %v4212_v0, 5  ;;  %v4245_v37 = vsel %vm4236_vm11, 1, %v10134_v57  ;;  %v4246_v24 = vsel %vm4237_vm4, 1, %v10134_v57  ;;  %vm4238_vm6 = vmand %vm4220_vm10, %vm4229_vm7 }
 0xbf3   :  { %4153 = vrot.lane.b32.xlu1 %v4095_v60, %s6589_s10  ;;  %4599 = vperm.xlu0 %6241, %v4577_v56   ;;  %vm4239_vm8 = vmand %vm4221_vm9, %vm4230_vm13  ;;  %vm4222_vm1 = vcmp.ge.s32.totalorder %v4213_v52, 0  ;;  %vm4231_vm14 = vcmp.lt.s32.totalorder %v4213_v52, 5  ;;  %v4215_v21 = vadd.s32 4294967294, %v8994_v19  ;;  %vm4223_vm2 = vcmp.ge.s32.totalorder %v4214_v40, 0  ;;  %v9246_v63 = vpop.permute.xlu0 %4468  ;;  %v10468_v52 = vld [vmem:[#allocation8_spill] sm:$0xff] }
 0xbf4   :  { %vm4232_vm0 = vcmp.lt.s32.totalorder %v4214_v40, 5  ;;  %v4216_v45 = vadd.s32 4294967294, %v8962_v62  ;;  %v4247_v10 = vsel %vm4238_vm6, 1, %v10134_v57  ;;  %v4248_v41 = vsel %vm4239_vm8, 1, %v10134_v57  ;;  %vm4240_vm15 = vmand %vm4222_vm1, %vm4231_vm14  ;;  %v9248_v29 = vpop.permute.xlu1 %4471 }
 0xbf5   :  { %vm4241_vm12 = vmand %vm4223_vm2, %vm4232_vm0  ;;  %vm4224_vm11 = vcmp.ge.s32.totalorder %v4215_v21, 0  ;;  %vm4233_vm4 = vcmp.lt.s32.totalorder %v4215_v21, 5  ;;  %v4217_v28 = vadd.s32 4294967294, %v9190_v49  ;;  %v4249_v19 = vsel %vm4240_vm15, 1, %v10134_v57  ;;  %v10463_v49 = vld [vmem:[#allocation3_spill] sm:$0xff]  ;;  %v10469_v21 = vld [vmem:[#allocation9_spill] sm:$0xff] }
 0xbf6   :  { %vm4225_vm10 = vcmp.ge.s32.totalorder %v4216_v45, 0  ;;  %vm4234_vm7 = vcmp.lt.s32.totalorder %v4216_v45, 5  ;;  %v4250_v1 = vsel %vm4241_vm12, 1, %v10134_v57  ;;  %vm4242_vm9 = vmand %vm4224_vm11, %vm4233_vm4  ;;  %vm10471_vm14 = vcmask 1042432  }
 0xbf7   :  { %4602 = vperm.xlu1 %6242, %v4578_v58   ;;  %4369 = vperm.xlu0 %6241, %v4343_v39   ;;  %vm4243_vm13 = vmand %vm4225_vm10, %vm4234_vm7  ;;  %vm4226_vm3 = vcmp.ge.s32.totalorder %v4217_v28, 0  ;;  %vm4235_vm6 = vcmp.lt.s32.totalorder %v4217_v28, 5  ;;  %v4251_v62 = vsel %vm4242_vm9, 1, %v10134_v57  ;;  %v9250_v16 = vpop.permute.xlu0 %4587  ;;  %vm10472_vm2 = vcmask 1041408  }
 0xbf8   :  { %v4252_v26 = vsel %vm4243_vm13, 1, %v10134_v57  ;;  %vm4244_vm8 = vmand %vm4226_vm3, %vm4235_vm6  ;;  %v9252_v55 = vpop.permute.xlu1 %4590  ;;  %vm10465_vm3 = vcmask 261120   ;;  %vm10082_vm9 = vcmp.eq.s32.totalorder %v9230_v5, 1  ;;  %vm10081_vm13 = vcmp.eq.s32.totalorder %v9232_v7, 1 }
 0xbf9   :  { %v4253_v32 = vsel %vm4244_vm8, 1, %v10134_v57  ;;  %vm10466_vm1 = vmmov %vm10465_vm3  ;;  %vm10488_vm6 = vcmask 1045504  }
 0xbfa   :  { %vm10473_vm0 = vmmov %vm10472_vm2 }
 0xbfb   :  { %4486 = vperm.xlu1 %6242, %v4460_v11   ;;  %4605 = vperm.xlu0 %6241, %v4579_v43   ;;  %v9254_v44 = vpop.permute.xlu0 %4357  ;;  %v10467_v11 = vld [vmem:[#allocation4_spill] sm:$0xff]  ;;  %vm10474_vm15 = vmmov %vm10466_vm1 }
 0xbfc   :  { %v9256_v35 = vpop.permute.xlu1 %4360  ;;  %vm10475_vm12 = vmmov %vm10466_vm1 }
 0xbfd   :  { %vm10480_vm11 = vmmov %vm10473_vm0 }
 0xbfe   :  { %vm10481_vm4 = vmmov %vm10473_vm0 }
 0xbff   :  { %4255 = vperm.xlu1 %6242, %v4245_v37   ;;  %4258 = vperm.xlu0 %6241, %v4246_v24   ;;  %vm10482_vm10 = vmmov %vm10471_vm14 }
 0xc00   :  { %v9258_v31 = vpop.permute.xlu1 %4474  ;;  %vm10485_vm7 = vmmov %vm10466_vm1 }
 0xc01   :  { %vm10489_vm8 = vmmov %vm10473_vm0 }
 0xc03   :  { %4261 = vperm.xlu1 %6242, %v4247_v10   ;;  %4264 = vperm.xlu0 %6241, %v4248_v41   ;;  %v10470_v10 = vld [vmem:[#allocation6_spill] sm:$0xff] }
 0xc07   :  { %4267 = vperm.xlu1 %6242, %v4249_v19   ;;  %4270 = vperm.xlu0 %6241, %v4250_v1  }
 0xc0b   :  { %4273 = vperm.xlu1 %6242, %v4251_v62   ;;  %4276 = vperm.xlu0 %6241, %v4252_v26  }
 0xc0f   :  { %4279 = vperm.xlu1 %6242, %v4253_v32  }
 0xc47   :  { %v6370_v46 = vpop.permute.xlu1 %6369 }
 0xc48   :  { %v6372_v53 = vunpack.i.h.bf16 %v6370_v46  ;;  %v6371_v17 = vunpack.i.l.bf16 %v6370_v46 }
 0xc4c   :  { %v6375_v25 = vpop.permute.xlu0 %6374 }
 0xc4d   :  { %v6377_v4 = vunpack.i.h.bf16 %v6375_v25  ;;  %v6376_v51 = vunpack.i.l.bf16 %v6375_v25 }
 0xc58   :  { %v9268_v60 = vpop.permute.xlu1 %4593 }
 0xc5c   :  { %v9294_v26 = vpop.permute.xlu1 %6379 }
 0xc5d   :  { %v9260_v36 = vpop.permute.xlu0 %4477 }
 0xc61   :  { %v9262_v2 = vpop.permute.xlu0 %4596 }
 0xc66   :  { %v9289_v19 = vpop.permute.xlu0 %4366 }
 0xca6   :  { %v6090_v23 = vpop.f32.mrb[54].mxu1 }
 0xca7   :  { %v3772_v6 = vsub.f32 %v10461_v15, %v6090_v23  ;;  %v9266_v34 = vadd.f32 %v6090_v23, %v10462_v14  ;;  %v3722_v8 = vpop.f32.mrb[55].mxu1  ;;  %v10476_v14 = vld [vmem:[#allocation13_spill] sm:$0xff] }
 0xca8   :  { %v3771_v54 = vsub.f32 %v10463_v49, %v3722_v8  ;;  %v3866_v48 = vadd.f32 %v3722_v8, %v10464_v27 }
 0xca9   :  { %v3782_v3 = vmul.f32 %v3772_v6, %v3772_v6  ;;  %v10077_v30 = vrot.slane %v9266_v34, 5  ;;  %v4165_v22 = vsel %vm10465_vm3, %v9266_v34, %v6372_v53  ;;  %vm10493_vm3 = vmmov %vm10488_vm6 }
 0xcaa   :  { %v4183_v56 = vrot.slane %v4165_v22, 6  ;;  %v3781_v18 = vmul.f32 %v3771_v54, %v3771_v54  ;;  %v4103_v38 = vrot.slane %v3866_v48, 5  ;;  %v4164_v58 = vsel %vm10466_vm1, %v3866_v48, %v6371_v17  ;;  %v10477_v17 = vld [vmem:[#allocation12_spill] sm:$0xff]  ;;  %v10478_v48 = vld [vmem:[#allocation10_spill] sm:$0xff] }
 0xcab   :  { %v6093_v39 = vpop.f32.mrb[56].mxu1  ;;  %v4182_v0 = vrot.slane %v4164_v58, 6  ;;  %vm4607_vm1 = vcmp.eq.s32.totalorder %v9240_v47, 1  ;;  %v6541_v47 = vld [vmem:[%s9961_s12 + $0x8] sm:$0xff]  }
 0xcac   :  { %v3774_v43 = vsub.f32 %v10467_v11, %v6093_v39  ;;  %v9278_v40 = vadd.f32 %v6093_v39, %v10468_v52  ;;  %v3732_v37 = vpop.f32.mrb[57].mxu1  ;;  %v6186_v24 = vpack.c.bf16 %v3782_v3, %v3781_v18  ;;  %v9287_v28 = vsel %vm10471_vm14, %v4103_v38, %v10077_v30  ;;  %vm10494_vm14 = vmmov %vm10482_vm10 }
 0xcad   :  { %v3773_v45 = vsub.f32 %v10469_v21, %v3732_v37  ;;  %v9282_v41 = vadd.f32 %v3732_v37, %v10470_v10  ;;  %v9292_v1 = vsel %vm10472_vm2, %v4182_v0, %v4183_v56  ;;  %v9297_v32 = vsel %vm10473_vm0, 0.0, %v4182_v0  ;;  %v9320_v0 = vpop.permute.xlu1 %4363  ;;  %v10483_v21 = vld [vmem:[#allocation11_spill] sm:$0xff]  ;;  %v10484_v10 = vld [vmem:[#allocation16_spill] sm:$0xff]  ;;  %vm10495_vm2 = vmmov %vm10482_vm10 }
 0xcae   :  { %v3784_v62 = vmul.f32 %v3774_v43, %v3774_v43  ;;  %v4167_v25 = vsel %vm10474_vm15, %v9278_v40, %v6377_v4  ;;  %6187 = vmatpush3.bf16.msra.mxu0 %v6186_v24  ;;  %v10479_v4 = vld [vmem:[#allocation7_spill] sm:$0xff]  ;;  %v4689_v52 = vrot.slane %v9297_v32, 2  ;;  %v4690_v37 = vrot.slane %v9292_v1, 2  ;;  %v9324_v24 = vpop.permute.xlu0 %6384  ;;  %vm10497_vm15 = vmmov %vm10485_vm7 }
 0xcaf   :  { %v3783_v46 = vmul.f32 %v3773_v45, %v3773_v45  ;;  %v4166_v23 = vsel %vm10475_vm12, %v9282_v41, %v6376_v51  ;;  %v4187_v15 = vrot.slane %v4167_v25, 6  ;;  %6188 = vmatprep.subr.bf16.mxu0 %v10431_v20  ;;  %v6381_v51 = vunpack.i.l.bf16 %v9294_v26  ;;  %vm10498_vm12 = vmmov %vm10485_vm7 }
 0xcb0   :  { %v6096_v53 = vpop.f32.mrb[58].mxu1  ;;  %v4185_v6 = vrot.slane %v4166_v23, 6  ;;  %vm4608_vm0 = vcmp.eq.s32.totalorder %v9238_v9, 1  ;;  %v4382_v13 = vrot.slane %v9292_v1, 1 }
 0xcb1   :  { %v3776_v8 = vsub.f32 %v10476_v14, %v6096_v53  ;;  %v9305_v49 = vadd.f32 %v6096_v53, %v10477_v17  ;;  %v3742_v54 = vpop.f32.mrb[59].mxu1  ;;  %v6189_v27 = vpack.c.bf16 %v3784_v62, %v3783_v46 }
 0xcb2   :  { %v3775_v3 = vsub.f32 %v10478_v48, %v3742_v54  ;;  %v9310_v22 = vadd.f32 %v3742_v54, %v10479_v4  ;;  %v9313_v18 = vsel %vm10480_vm11, %v4183_v56, %v4185_v6  ;;  %v9316_v38 = vsel %vm10481_vm4, %v4185_v6, %v4187_v15  ;;  %v10486_v6 = vld [vmem:[#allocation17_spill] sm:$0xff] }
 0xcb3   :  { %v3786_v58 = vmul.f32 %v3776_v8, %v3776_v8  ;;  %v4067_v39 = vrot.slane %v9305_v49, 5  ;;  %6190 = vmatpush3.bf16.msra.mxu0 %v6189_v27  ;;  %v10078_v46 = vrot.slane %v9313_v18, 2  ;;  %v10487_v8 = vld [vmem:[#allocation14_spill] sm:$0xff]  ;;  %v6382_v54 = vunpack.i.h.bf16 %v9294_v26 }
 0xcb4   :  { %v3785_v11 = vmul.f32 %v3775_v3, %v3775_v3  ;;  %v6099_v43 = vpop.f32.mrb[60].mxu1  ;;  %6191 = vmatprep.subr.bf16.mxu0 %v10431_v20  ;;  %v6386_v4 = vunpack.i.l.bf16 %v9324_v24  ;;  %vm10088_vm11 = vcmp.eq.s32.totalorder %v9236_v12, 1  ;;  %vm10084_vm4 = vcmp.eq.s32.totalorder %v9234_v61, 1 }
 0xcb5   :  { %v4081_v56 = vsel %vm10482_vm10, %v9310_v22, %v4067_v39  ;;  %v3778_v45 = vsub.f32 %v10483_v21, %v6099_v43  ;;  %v9330_v62 = vadd.f32 %v6099_v43, %v10484_v10  ;;  %v3752_v25 = vpop.f32.mrb[61].mxu1  ;;  %v4691_v43 = vsel %vm10488_vm6, %v4689_v52, %v4690_v37  ;;  %v10490_v21 = vld [vmem:[#allocation15_spill] sm:$0xff]  ;;  %vm10500_vm10 = vmmov %vm10489_vm8 }
 0xcb6   :  { %v6192_v23 = vpack.c.bf16 %v3786_v58, %v3785_v11  ;;  %v4168_v53 = vsel %vm10485_vm7, %v4081_v56, %v6381_v51  ;;  %v3777_v14 = vsub.f32 %v10486_v6, %v3752_v25  ;;  %v9337_v17 = vadd.f32 %v3752_v25, %v10487_v8  ;;  %v10491_v10 = vld [vmem:[#allocation19_spill] sm:$0xff]  ;;  %v10496_v6 = vld [vmem:[#allocation22_spill] sm:$0xff]  ;;  %v9362_v8 = vpop.permute.xlu1 %4483  ;;  %vm10501_vm7 = vmmov %vm10489_vm8 }
 0xcb7   :  { %v4189_v27 = vrot.slane %v4168_v53, 6  ;;  %v3788_v48 = vmul.f32 %v3778_v45, %v3778_v45  ;;  %v4070_v3 = vrot.slane %v9330_v62, 5  ;;  %v4693_v53 = vsel %vm10493_vm3, %v4690_v37, %v10078_v46 }
 0xcb8   :  { %v3787_v58 = vmul.f32 %v3777_v14, %v3777_v14  ;;  %v4068_v51 = vrot.slane %v9337_v17, 5  ;;  %6193 = vmatpush3.bf16.msra.mxu0 %v6192_v23  ;;  %vm10502_vm6 = vcmask 1046528  }
 0xcb9   :  { %v6102_v11 = vpop.f32.mrb[62].mxu1  ;;  %v9347_v56 = vsel %vm10489_vm8, %v4187_v15, %v4189_v27  ;;  %6194 = vmatprep.subr.bf16.mxu0 %v10431_v20  ;;  %vm10083_vm8 = vcmp.eq.s32.totalorder %v9244_v42, 1  ;;  %vm10503_vm3 = vmmov %vm10502_vm6 }
 0xcba   :  { %v3780_v26 = vsub.f32 %v10490_v21, %v6102_v11  ;;  %v9351_v45 = vadd.f32 %v6102_v11, %v10491_v10  ;;  %v3762_v25 = vpop.f32.mrb[63].mxu1  ;;  %v6195_v23 = vpack.c.bf16 %v3788_v48, %v3787_v58  ;;  %v4069_v52 = vsel %vm10494_vm14, %v4067_v39, %v4068_v51  ;;  %v10499_v39 = vld [vmem:[#allocation18_spill] sm:$0xff] }
 0xcbb   :  { %v4071_v15 = vsel %vm10495_vm2, %v4068_v51, %v4070_v3  ;;  %v3779_v14 = vsub.f32 %v10496_v6, %v3762_v25  ;;  %v4169_v11 = vsel %vm10497_vm15, %v4069_v52, %v6382_v54  ;;  %v9368_v58 = vadd.f32 %v3762_v25, %v10499_v39  ;;  %vm10504_vm15 = vmmov %vm10495_vm2 }
 0xcbc   :  { %10492 = vst [vmem:[#allocation5_spill] sm:$0xff] %v9351_v45  ;;  %v4170_v21 = vsel %vm10498_vm12, %v4071_v15, %v6386_v4  ;;  %v3790_v37 = vmul.f32 %v3780_v26, %v3780_v26  ;;  %v4191_v10 = vrot.slane %v4169_v11, 6  ;;  %v4074_v46 = vrot.slane %v9351_v45, 5  ;;  %6196 = vmatpush3.bf16.msra.mxu0 %v6195_v23  ;;  %v6540_v11 = vld [vmem:[%s9961_s12] sm:$0xff]  }
 0xcbd   :  { %v4193_v30 = vrot.slane %v4170_v21, 6  ;;  %v3789_v48 = vmul.f32 %v3779_v14, %v3779_v14  ;;  %v6388_v51 = vpack.i.bf16 %v4693_v53, %v4691_v43  ;;  %v4381_v6 = vrot.slane %v9297_v32, 1  ;;  %6197 = vmatprep.subr.bf16.mxu0 %v10431_v20  ;;  %v4154_v21 = vpop.permute.xlu1 %4153 }
 0xcbe   :  { %v9376_v54 = vsel %vm10500_vm10, %v4189_v27, %v4191_v10  ;;  %v4384_v25 = vrot.slane %v9313_v18, 1  ;;  %v6387_v43 = vunpack.i.h.bf16 %v9324_v24  ;;  %v4072_v53 = vrot.slane %v9368_v58, 5 }
 0xcbf   :  { %v9379_v4 = vsel %vm10501_vm7, %v4191_v10, %v4193_v30  ;;  %v6198_v26 = vpack.c.bf16 %v3790_v37, %v3789_v48  ;;  %6389 = vrot.lane.b32.xlu0 %v6388_v51, %s6590_s3  ;;  %v4383_v23 = vsel %vm10502_vm6, %v4381_v6, %v4382_v13  ;;  %v4616_v52 = vrot.slane %v9297_v32, 4 }
 0xcc0   :  { %v4385_v27 = vsel %vm10503_vm3, %v4382_v13, %v4384_v25  ;;  %v4407_v15 = vsel %vm10082_vm9, %v4383_v23, 0.0  ;;  %v4617_v24 = vrot.slane %v9292_v1, 4  ;;  %v4619_v14 = vrot.slane %v9313_v18, 4 }
 0xcc1   :  { %6199 = vmatpush3.bf16.msra.mxu0 %v6198_v26  ;;  %vm10085_vm14 = vcmp.eq.s32.totalorder %v9242_v59, 1  ;;  %v4073_v37 = vsel %vm10495_vm2, %v4070_v3, %v4072_v53  ;;  %v4075_v10 = vsel %vm10504_vm15, %v4072_v53, %v4074_v46  ;;  %v4408_v13 = vsel %vm10081_vm13, %v4385_v27, 0.0 }
 0xcc2   :  { %v4498_v48 = vrot.slane %v9297_v32, 3  ;;  %4967 = vmatprep.subr.bf16.mxu0 %v10134_v57  ;;  %vm4609_vm12 = vcmp.eq.s32.totalorder %v9250_v16, 1  ;;  %vm10505_vm10 = vcmask 261120   ;;  %v6393_v6 = vpack.i.bf16 %v4408_v13, %v4407_v15 }
 0xcc3   :  { %v4171_v39 = vsel %vm10505_vm10, %v4073_v37, %v6387_v43  ;;  %vm10506_vm7 = vmmov %vm10505_vm10  ;;  %vm10507_vm6 = vcmask 1043456   ;;  %vm4610_vm3 = vcmp.eq.s32.totalorder %v9252_v55, 1  ;;  %vm10087_vm2 = vcmp.eq.s32.totalorder %v9246_v63, 1 }
 0xcc4   :  { %v4172_v51 = vsel %vm10506_vm7, %v4075_v10, %v4154_v21  ;;  %v4618_v26 = vsel %vm10507_vm6, %v4616_v52, %v4617_v24  ;;  %v4195_v46 = vrot.slane %v4171_v39, 6  ;;  %vm10508_vm15 = vmmov %vm10507_vm6  ;;  %vm10509_vm10 = vcmask 654336   ;;  %6394 = vrot.lane.b32.xlu1 %v6393_v6, %s6591_s2 }
 0xcc5   :  { %v4197_v3 = vrot.slane %v4172_v51, 6  ;;  %v4620_v53 = vsel %vm10508_vm15, %v4617_v24, %v4619_v14  ;;  %v4644_v23 = vsel %vm4607_vm1, %v4618_v26, 0.0  ;;  %6124 = vmatmul.mubr.msk.f32.vlgmr.msra.gmra.mrb[76].mxu0 %vm10509_vm10, %v10459_v50  ;;  %vm10086_vm7 = vcmp.eq.s32.totalorder %v9248_v29, 1 }
 0xcc6   :  { %v4645_v43 = vsel %vm4608_vm0, %v4620_v53, 0.0  ;;  %v4499_v52 = vrot.slane %v9292_v1, 3  ;;  %v4501_v27 = vrot.slane %v9313_v18, 3  ;;  %v4694_v15 = vrot.slane %v9316_v38, 2  ;;  %4968 = vmatpush1.bf16.msra.mxu0 %v6540_v11 }
 0xcc7   :  { %vm10510_vm1 = vcmask 1041408   ;;  %v6403_v37 = vpack.i.bf16 %v4645_v43, %v4644_v23  ;;  %v4696_v9 = vrot.slane %v9347_v56, 2  ;;  %4969 = vmatprep.subr.bf16.mxu0 %v10134_v57  ;;  %vm10512_vm0 = vcmask 1044480  }
 0xcc8   :  { %v9429_v24 = vsel %vm10510_vm1, %v4193_v30, %v4195_v46  ;;  %vm10511_vm6 = vmmov %vm10510_vm1  ;;  %v4500_v10 = vsel %vm10512_vm0, %v4498_v48, %v4499_v52  ;;  %v10514_v11 = vrot.slane %v9313_v18, 2  ;;  %vm10515_vm10 = vcmask 1045504   ;;  %v9443_v30 = vpop.permute.xlu0 %4480 }
 0xcc9   :  { %v9432_v21 = vsel %vm10511_vm6, %v4195_v46, %v4197_v3  ;;  %vm10513_vm15 = vmmov %vm10512_vm0  ;;  %v4386_v51 = vrot.slane %v9316_v38, 1  ;;  %vm4375_vm1 = vcmp.eq.s32.totalorder %v9254_v44, 1  ;;  %6404 = vrot.lane.b32.xlu0 %v6403_v37, %s6592_s4  ;;  %v4526_v6 = vsel %vm10088_vm11, %v4500_v10, 0.0 }
 0xcca   :  { %v4502_v13 = vsel %vm10513_vm15, %v4499_v52, %v4501_v27  ;;  %v4695_v39 = vsel %vm10515_vm10, %v10514_v11, %v4694_v15  ;;  %vm10516_vm6 = vmmov %vm10515_vm10  ;;  %v4388_v46 = vrot.slane %v9347_v56, 1  ;;  %vm4376_vm0 = vcmp.eq.s32.totalorder %v9256_v35, 1  ;;  %4970 = vmatpush1.bf16.msra.mxu0 %v6541_v47  ;;  %v6542_v52 = vld [vmem:[%s9961_s12 + $0x10] sm:$0xff]  }
 0xccb   :  { %v4527_v48 = vsel %vm10084_vm4, %v4502_v13, 0.0  ;;  %v4697_v26 = vsel %vm10516_vm6, %v4694_v15, %v4696_v9  ;;  %vm4611_vm15 = vcmp.eq.s32.totalorder %v9268_v60, 1  ;;  %vm10517_vm10 = vcmask 1046528   ;;  %4971 = vmatprep.subr.bf16.mxu0 %v10134_v57 }
 0xccc   :  { %v6398_v3 = vpack.i.bf16 %v4527_v48, %v4526_v6  ;;  %v6408_v53 = vpack.i.bf16 %v4697_v26, %v4695_v39  ;;  %v4387_v23 = vsel %vm10517_vm10, %v4384_v25, %v4386_v51  ;;  %v4621_v43 = vrot.slane %v9316_v38, 4  ;;  %vm10518_vm9 = vmmov %vm10517_vm10  ;;  %v9494_v16 = vpop.permute.xlu0 %4599 }
 0xccd   :  { %vm4492_vm6 = vcmp.eq.s32.totalorder %v9258_v31, 1  ;;  %vm4612_vm13 = vcmp.eq.s32.totalorder %v9262_v2, 1  ;;  %v4389_v15 = vsel %vm10518_vm9, %v4386_v51, %v4388_v46  ;;  %v4409_v37 = vsel %vm10083_vm8, %v4387_v23, 0.0 }
 0xcce   :  { %v4623_v10 = vrot.slane %v9347_v56, 4  ;;  %v4503_v25 = vrot.slane %v9316_v38, 3  ;;  %vm4493_vm10 = vcmp.eq.s32.totalorder %v9260_v36, 1  ;;  %6399 = vrot.lane.b32.xlu1 %v6398_v3, %s6593_s11  ;;  %v4410_v47 = vsel %vm10085_vm14, %v4389_v15, 0.0  ;;  %6409 = vrot.lane.b32.xlu0 %v6408_v53, %s6590_s3  ;;  %v6543_v53 = vld [vmem:[%s9961_s12 + $0x18] sm:$0xff]  }
 0xccf   :  { %vm10519_vm9 = vcmask 1043456   ;;  %v4505_v11 = vrot.slane %v9347_v56, 3  ;;  %v4698_v39 = vrot.slane %v9376_v54, 2  ;;  %v6413_v51 = vpack.i.bf16 %v4410_v47, %v4409_v37  ;;  %4972 = vmatpush1.bf16.msra.mxu0 %v6542_v52 }
 0xcd0   :  { %v4622_v13 = vsel %vm10519_vm9, %v4619_v14, %v4621_v43  ;;  %vm10520_vm8 = vmmov %vm10519_vm9  ;;  %vm10521_vm4 = vcmask 1044480   ;;  %vm10523_vm9 = vcmask 1045504   ;;  %v4390_v37 = vrot.slane %v9376_v54, 1  ;;  %4973 = vmatprep.subr.bf16.mxu0 %v10134_v57 }
 0xcd1   :  { %v4624_v6 = vsel %vm10520_vm8, %v4621_v43, %v4623_v10  ;;  %v4646_v48 = vsel %vm4609_vm12, %v4622_v13, 0.0  ;;  %v4504_v26 = vsel %vm10521_vm4, %v4501_v27, %v4503_v25  ;;  %vm10522_vm14 = vmmov %vm10521_vm4  ;;  %v4699_v15 = vsel %vm10523_vm9, %v4696_v9, %v4698_v39 }
 0xcd2   :  { %v4647_v3 = vsel %vm4610_vm3, %v4624_v6, 0.0  ;;  %v4506_v23 = vsel %vm10522_vm14, %v4503_v25, %v4505_v11  ;;  %v4528_v14 = vsel %vm10087_vm2, %v4504_v26, 0.0  ;;  %vm10092_vm8 = vcmp.eq.s32.totalorder %v9289_v19, 1  ;;  %6414 = vrot.lane.b32.xlu1 %v6413_v51, %s6591_s2  ;;  %vm10524_vm3 = vmmov %vm10523_vm9 }
 0xcd3   :  { %vm4377_vm12 = vcmp.eq.s32.totalorder %v9320_v0, 1  ;;  %v6423_v55 = vpack.i.bf16 %v4647_v3, %v4646_v48  ;;  %v4529_v27 = vsel %vm10086_vm7, %v4506_v23, 0.0  ;;  %v4700_v43 = vrot.slane %v9379_v4, 2  ;;  %4974 = vmatpush1.bf16.msra.mxu0 %v6543_v53 }
 0xcd4   :  { %v6418_v9 = vpack.i.bf16 %v4529_v27, %v4528_v14  ;;  %v4392_v52 = vrot.slane %v9379_v4, 1  ;;  %v4625_v25 = vrot.slane %v9376_v54, 4  ;;  %v4627_v47 = vrot.slane %v9379_v4, 4  ;;  %4975 = vmatprep.subr.bf16.mxu0 %v10134_v57 }
 0xcd5   :  { %vm4495_vm4 = vcmp.eq.s32.totalorder %v9362_v8, 1  ;;  %vm4494_vm14 = vcmp.eq.s32.totalorder %v9443_v30, 1  ;;  %6424 = vrot.lane.b32.xlu0 %v6423_v55, %s6592_s4  ;;  %v4701_v13 = vsel %vm10524_vm3, %v4698_v39, %v4700_v43  ;;  %vm10525_vm9 = vcmask 1046528   ;;  %v6544_v39 = vld [vmem:[%s9961_s12 + $0x20] sm:$0xff]  }
 0xcd6   :  { %v4391_v6 = vsel %vm10525_vm9, %v4388_v46, %v4390_v37  ;;  %v4507_v48 = vrot.slane %v9376_v54, 3  ;;  %v4509_v51 = vrot.slane %v9379_v4, 3  ;;  %vm4613_vm7 = vcmp.eq.s32.totalorder %v9494_v16, 1  ;;  %vm10526_vm2 = vmmov %vm10525_vm9  ;;  %6419 = vrot.lane.b32.xlu1 %v6418_v9, %s6593_s11 }
 0xcd7   :  { %v6428_v26 = vpack.i.bf16 %v4701_v13, %v4699_v15  ;;  %v4393_v3 = vsel %vm10526_vm2, %v4390_v37, %v4392_v52  ;;  %v4411_v23 = vsel %vm4375_vm1, %v4391_v6, 0.0  ;;  %vm10527_vm11 = vcmask 1043456   ;;  %4976 = vmatpush1.bf16.msra.mxu0 %v6544_v39 }
 0xcd8   :  { %v4626_v14 = vsel %vm10527_vm11, %v4623_v10, %v4625_v25  ;;  %v4412_v46 = vsel %vm4376_vm0, %v4393_v3, 0.0  ;;  %vm10528_vm3 = vmmov %vm10527_vm11  ;;  %vm10529_vm9 = vcmask 1044480   ;;  %v4396_v6 = vrot.slane %v9432_v21, 1  ;;  %4977 = vmatprep.subr.bf16.mxu0 %v10134_v57 }
 0xcd9   :  { %v4628_v55 = vsel %vm10528_vm3, %v4625_v25, %v4627_v47  ;;  %v4648_v15 = vsel %vm4611_vm15, %v4626_v14, 0.0  ;;  %v4508_v27 = vsel %vm10529_vm9, %v4505_v11, %v4507_v48  ;;  %v6433_v10 = vpack.i.bf16 %v4412_v46, %v4411_v23  ;;  %vm10530_vm11 = vmmov %vm10529_vm9  ;;  %6429 = vrot.lane.b32.xlu0 %v6428_v26, %s6590_s3  ;;  %v6545_v26 = vld [vmem:[%s9961_s12 + $0x28] sm:$0xff]  }
 0xcda   :  { %v4649_v53 = vsel %vm4612_vm13, %v4628_v55, 0.0  ;;  %v4510_v37 = vsel %vm10530_vm11, %v4507_v48, %v4509_v51  ;;  %v4530_v13 = vsel %vm4492_vm6, %v4508_v27, 0.0  ;;  %v4394_v11 = vrot.slane %v9429_v24, 1  ;;  %vm10531_vm13 = vmmov %vm10526_vm2 }
 0xcdb   :  { %v6443_v25 = vpack.i.bf16 %v4649_v53, %v4648_v15  ;;  %v4531_v60 = vsel %vm4493_vm10, %v4510_v37, 0.0  ;;  %v4702_v3 = vrot.slane %v9429_v24, 2  ;;  %v4704_v2 = vrot.slane %v9432_v21, 2  ;;  %6434 = vrot.lane.b32.xlu1 %v6433_v10, %s6591_s2  ;;  %v4603_v53 = vpop.permute.xlu1 %4602  ;;  %vm10534_vm11 = vmmov %vm10529_vm9  ;;  %4978 = vmatpush1.bf16.msra.mxu0 %v6545_v26 }
 0xcdc   :  { %v6438_v9 = vpack.i.bf16 %v4531_v60, %v4530_v13  ;;  %v4511_v48 = vrot.slane %v9429_v24, 3  ;;  %v4395_v23 = vsel %vm10531_vm13, %v4392_v52, %v4394_v11  ;;  %v4397_v14 = vsel %vm10526_vm2, %v4394_v11, %v4396_v6  ;;  %4979 = vmatprep.subr.bf16.mxu0 %v10134_v57 }
 0xcdd   :  { %v4513_v46 = vrot.slane %v9432_v21, 3  ;;  %v4629_v55 = vrot.slane %v9429_v24, 4  ;;  %v4413_v39 = vsel %vm4377_vm12, %v4395_v23, 0.0  ;;  %v4414_v15 = vsel %vm10092_vm8, %v4397_v14, 0.0  ;;  %6444 = vrot.lane.b32.xlu0 %v6443_v25, %s6592_s4  ;;  %v6546_v25 = vld [vmem:[%s9961_s12 + $0x30] sm:$0xff]  }
 0xcde   :  { %vm10532_vm15 = vcmask 1045504   ;;  %v6453_v37 = vpack.i.bf16 %v4414_v15, %v4413_v39  ;;  %v4512_v60 = vsel %vm10529_vm9, %v4509_v51, %v4511_v48  ;;  %vm10535_vm13 = vcmask 1043456  }
 0xcdf   :  { %v4703_v52 = vsel %vm10532_vm15, %v4700_v43, %v4702_v3  ;;  %vm10533_vm3 = vmmov %vm10532_vm15  ;;  %v4514_v10 = vsel %vm10534_vm11, %v4511_v48, %v4513_v46  ;;  %v4532_v11 = vsel %vm4494_vm14, %v4512_v60, 0.0  ;;  %v4630_v43 = vsel %vm10535_vm13, %v4627_v47, %v4629_v55  ;;  %6439 = vrot.lane.b32.xlu1 %v6438_v9, %s6593_s11  ;;  %4980 = vmatpush1.bf16.msra.mxu0 %v6546_v25  ;;  %v6547_v9 = vld [vmem:[%s9961_s12 + $0x38] sm:$0xff]  }
 0xce0   :  { %v4705_v27 = vsel %vm10533_vm3, %v4702_v3, %v4704_v2  ;;  %v4533_v23 = vsel %vm4495_vm4, %v4514_v10, 0.0  ;;  %v4631_v14 = vrot.slane %v9432_v21, 4  ;;  %v4650_v51 = vsel %vm4613_vm7, %v4630_v43, 0.0  ;;  %vm10536_vm15 = vmmov %vm10535_vm13  ;;  %4981 = vmatprep.subr.bf16.mxu0 %v10134_v57 }
 0xce1   :  { %v6448_v13 = vpack.i.bf16 %v4705_v27, %v4703_v52  ;;  %v6458_v3 = vpack.i.bf16 %v4533_v23, %v4532_v11  ;;  %vm4614_vm2 = vcmp.eq.s32.totalorder %v4603_v53, 1  ;;  %v4108_v48 = vrot.slane %v9278_v40, 5  ;;  %6454 = vrot.lane.b32.xlu0 %v6453_v37, %s6591_s2  ;;  %v9626_v23 = vpop.permute.xlu1 %4486 }
 0xce2   :  { %v4632_v47 = vsel %vm10536_vm15, %v4629_v55, %v4631_v14  ;;  %v4106_v39 = vrot.slane %v9282_v41, 5  ;;  %v4110_v26 = vrot.slane %v9310_v22, 5  ;;  %v4118_v15 = vrot.slane %v9337_v17, 2  ;;  %v9590_v22 = vpop.permute.xlu0 %4369 }
 0xce3   :  { %v4651_v52 = vsel %vm4614_vm2, %v4632_v47, 0.0  ;;  %v4120_v16 = vrot.slane %v9330_v62, 2  ;;  %v10089_v27 = vrot.slane %v9351_v45, 2  ;;  %v4122_v53 = vrot.slane %v9368_v58, 2  ;;  %6449 = vrot.lane.b32.xlu1 %v6448_v13, %s6590_s3  ;;  %4982 = vmatpush1.bf16.msra.mxu0 %v6547_v9  ;;  %v6548_v13 = vld [vmem:[%s9961_s12 + $0x40] sm:$0xff]  }
 0xce4   :  { %v6463_v40 = vpack.i.bf16 %v4651_v52, %v4650_v51  ;;  %v4117_v41 = vrot.slane %v9305_v49, 2  ;;  %v4515_v62 = vrot.slane %v10126_v33, 3  ;;  %v10537_v17 = vrot.slane %v9266_v34, 5  ;;  %4983 = vmatprep.subr.bf16.mxu0 %v10134_v57  ;;  %v6549_v51 = vld [vmem:[%s9961_s12 + $0x48] sm:$0xff]  }
 0xce5   :  { %6459 = vrot.lane.b32.xlu0 %v6458_v3, %s6593_s11  ;;  %vm10538_vm7 = vcmask 1042432   ;;  %vm10541_vm11 = vcmask 1045504   ;;  %v4633_v25 = vrot.slane %v10126_v33, 4 }
 0xce6   :  { %v9598_v58 = vsel %vm10538_vm7, %v10537_v17, %v4106_v39  ;;  %vm10539_vm3 = vmmov %vm10538_vm7  ;;  %v4119_v37 = vsel %vm10541_vm11, %v4117_v41, %v4118_v15 }
 0xce7   :  { %v9601_v55 = vsel %vm10539_vm3, %v4106_v39, %v4108_v48  ;;  %vm10540_vm9 = vmmov %vm10539_vm3  ;;  %6464 = vrot.lane.b32.xlu1 %v6463_v40, %s6592_s4  ;;  %4984 = vmatpush1.bf16.msra.mxu0 %v6548_v13 }
 0xce8   :  { %v9604_v49 = vsel %vm10540_vm9, %v4108_v48, %v4110_v26  ;;  %vm10542_vm13 = vmmov %vm10539_vm3  ;;  %vm10090_vm3 = vcmp.eq.s32.totalorder %v9590_v22, 1  ;;  %vm10546_vm9 = vcmask 1044480   ;;  %v4606_v48 = vpop.permute.xlu0 %4605  ;;  %4985 = vmatprep.subr.bf16.mxu0 %v10134_v57 }
 0xce9   :  { %v9611_v60 = vsel %vm10542_vm13, %v4110_v26, %v4119_v37  ;;  %vm10543_vm2 = vmmov %vm10541_vm11  ;;  %v4415_v43 = vsel %vm10090_vm3, %v4396_v6, 0.0  ;;  %v4516_v3 = vsel %vm10546_vm9, %v4513_v46, %v4515_v62  ;;  %vm10091_vm11 = vcmp.eq.s32.totalorder %v9626_v23, 1  ;;  %v6550_v6 = vld [vmem:[%s9961_s12 + $0x50] sm:$0x1f]  }
 0xcea   :  { %v9614_v34 = vsel %vm10543_vm2, %v4118_v15, %v4120_v16  ;;  %vm10544_vm15 = vmmov %vm10543_vm2  ;;  %4678 = vrot.lane.b32.xlu0 %v4415_v43, %s6591_s2  ;;  %v4534_v46 = vsel %vm10091_vm11, %v4516_v3, 0.0  ;;  %vm10547_vm13 = vcmask 1043456  }
 0xceb   :  { %v9617_v10 = vsel %vm10544_vm15, %v4120_v16, %v4122_v53  ;;  %vm10545_vm7 = vmmov %vm10543_vm2  ;;  %4722 = vrot.lane.b32.xlu1 %v4704_v2, %s6590_s3  ;;  %v4634_v47 = vsel %vm10547_vm13, %v4631_v14, %v4633_v25  ;;  %vm4615_vm2 = vcmp.eq.s32.totalorder %v4606_v48, 1  ;;  %4986 = vmatpush1.bf16.msra.mxu0 %v6549_v51  ;;  %v4256_v2 = vpop.permute.xlu1 %4255 }
 0xcec   :  { %v9622_v11 = vsel %vm10545_vm7, %v4122_v53, %v10089_v27  ;;  %v4652_v39 = vsel %vm4615_vm2, %v4634_v47, 0.0  ;;  %4987 = vmatprep.subr.bf16.mxu0 %v10134_v57  ;;  %vm10548_vm15 = vmmov %vm10546_vm9  ;;  %v4259_v15 = vpop.permute.xlu0 %4258  ;;  %vm4805_vm7 = vcmask 277504   ;;  %vm4281_vm9 = vcmp.eq.s32.totalorder %v4256_v2, 1 }
 0xced   :  { %v4965_v26 = vsel %vm10548_vm15, %v6550_v6, 0  ;;  %vm4282_vm13 = vcmp.eq.s32.totalorder %v4259_v15, 1  ;;  %v4290_v25 = vsel %vm4281_vm9, %v9297_v32, 0.0  ;;  %vm4815_vm2 = vcmask 556032  }
 0xcee   :  { %4758 = vrot.lane.b32.xlu0 %v4534_v46, %s6593_s11  ;;  %v4291_v3 = vsel %vm4282_vm13, %v9292_v1, 0.0  ;;  %vm4825_vm15 = vcmask 834560   ;;  %vm4948_vm9 = vcmask 343040   ;;  %vm10549_vm13 = vcmask 64512  }
 0xcef   :  { %4794 = vrot.lane.b32.xlu1 %v4652_v39, %s6592_s4  ;;  %4988 = vmatpush1.bf16.msra.mxu0 %v4965_v26  ;;  %v4262_v52 = vpop.permute.xlu1 %4261  ;;  %vm10550_vm3 = vmmov %vm10549_vm13 }
 0xcf0   :  { %6215 = vmatprep.subr.bf16.mxu0 %v10431_v20  ;;  %v4265_v16 = vpop.permute.xlu0 %4264  ;;  %vm4283_vm11 = vcmp.eq.s32.totalorder %v4262_v52, 1 }
 0xcf1   :  { %vm4284_vm8 = vcmp.eq.s32.totalorder %v4265_v16, 1 }
 0xcf3   :  { %v9655_v53 = vpop.permute.xlu1 %4267 }
 0xcf4   :  { %v9657_v14 = vpop.permute.xlu0 %4270 }
 0xcf7   :  { %v9659_v40 = vpop.permute.xlu1 %4273 }
 0xcf8   :  { %v9661_v9 = vpop.permute.xlu0 %4276 }
 0xcfb   :  { %v9663_v41 = vpop.permute.xlu1 %4279 }
 0xd31   :  { %v6390_v62 = vpop.permute.xlu0 %6389 }
 0xd32   :  { %v6392_v47 = vunpack.i.h.bf16 %v6390_v62  ;;  %v6391_v39 = vunpack.i.l.bf16 %v6390_v62 }
 0xd36   :  { %v6395_v17 = vpop.permute.xlu1 %6394 }
 0xd37   :  { %v6397_v37 = vunpack.i.h.bf16 %v6395_v17  ;;  %v6396_v13 = vunpack.i.l.bf16 %v6395_v17 }
 0xd39   :  { %v4807_v51 = vsel %vm4805_vm7, %v4291_v3, %v6397_v37  ;;  %v4806_v48 = vsel %vm4805_vm7, %v4290_v25, %v6396_v13 }
 0xd3a   :  { %v4816_v15 = vsel %vm4815_vm2, %v4806_v48, %v6391_v39  ;;  %v4817_v32 = vsel %vm4815_vm2, %v4807_v51, %v6392_v47  ;;  %v4293_v48 = vsel %vm4284_vm8, %v9316_v38, 0.0  ;;  %v4292_v51 = vsel %vm4283_vm11, %v9313_v18, 0.0  ;;  %vm10551_vm8 = vmmov %vm10550_vm3 }
 0xd3b   :  { %v6405_v43 = vpop.permute.xlu0 %6404  ;;  %vm4285_vm11 = vcmp.eq.s32.totalorder %v9655_v53, 1 }
 0xd3c   :  { %v6407_v6 = vunpack.i.h.bf16 %v6405_v43  ;;  %v6406_v46 = vunpack.i.l.bf16 %v6405_v43 }
 0xd40   :  { %v6400_v26 = vpop.permute.xlu1 %6399  ;;  %v6410_v2 = vpop.permute.xlu0 %6409 }
 0xd41   :  { %v6402_v17 = vunpack.i.h.bf16 %v6400_v26  ;;  %v6401_v27 = vunpack.i.l.bf16 %v6400_v26 }
 0xd43   :  { %v4836_v1 = vsel %vm10549_vm13, %v6402_v17, %v6407_v6  ;;  %v4826_v37 = vsel %vm4825_vm15, %v4816_v15, %v6401_v27  ;;  %v4827_v13 = vsel %vm4825_vm15, %v4817_v32, %v6402_v17  ;;  %v4835_v43 = vsel %vm10550_vm3, %v6401_v27, %v6406_v46 }
 0xd44   :  { %v4844_v25 = vpack.c.bf16 %v4827_v13, %v4826_v37  ;;  %v4845_v62 = vpack.c.bf16 %v4836_v1, %v4835_v43  ;;  %v6415_v3 = vpop.permute.xlu1 %6414  ;;  %v6412_v46 = vunpack.i.h.bf16 %v6410_v2  ;;  %v6411_v17 = vunpack.i.l.bf16 %v6410_v2 }
 0xd45   :  { %v6417_v26 = vunpack.i.h.bf16 %v6415_v3  ;;  %v6416_v50 = vunpack.i.l.bf16 %v6415_v3  ;;  %vm4286_vm13 = vcmp.eq.s32.totalorder %v9657_v14, 1 }
 0xd46   :  { %5712 = vmatprep.mubr.msk.bf16.mxu0 %vm4948_vm9, %v4845_v62 }
 0xd47   :  { %v6425_v45 = vpop.permute.xlu0 %6424  ;;  %v4809_v6 = vsel %vm4805_vm7, %v4293_v48, %v6417_v26  ;;  %v4808_v47 = vsel %vm4805_vm7, %v4292_v51, %v6416_v50  ;;  %5000 = vmatmul.mubr.bf16.vlgmr.msra.gmra.mrb[80].mxu0 %v4844_v25  ;;  %v4294_v26 = vsel %vm4285_vm11, %v9347_v56, 0.0  ;;  %v4295_v48 = vsel %vm4286_vm13, %v9376_v54, 0.0 }
 0xd48   :  { %v6427_v39 = vunpack.i.h.bf16 %v6425_v45  ;;  %v6426_v27 = vunpack.i.l.bf16 %v6425_v45  ;;  %v6420_v52 = vpop.permute.xlu1 %6419  ;;  %v4818_v1 = vsel %vm4815_vm2, %v4808_v47, %v6411_v17  ;;  %v4819_v38 = vsel %vm4815_vm2, %v4809_v6, %v6412_v46 }
 0xd49   :  { %v6422_v16 = vunpack.i.h.bf16 %v6420_v52  ;;  %v6421_v15 = vunpack.i.l.bf16 %v6420_v52  ;;  %vm10552_vm11 = vcmask 64512  }
 0xd4a   :  { %vm10553_vm13 = vmmov %vm10552_vm11 }
 0xd4b   :  { %v6430_v32 = vpop.permute.xlu0 %6429  ;;  %v4838_v18 = vsel %vm10551_vm8, %v6422_v16, %v6427_v39  ;;  %v4837_v37 = vsel %vm10550_vm3, %v6421_v15, %v6426_v27  ;;  %v4828_v13 = vsel %vm4825_vm15, %v4818_v1, %v6421_v15  ;;  %v4829_v50 = vsel %vm4825_vm15, %v4819_v38, %v6422_v16 }
 0xd4c   :  { %v4847_v45 = vpack.c.bf16 %v4838_v18, %v4837_v37  ;;  %v4846_v25 = vpack.c.bf16 %v4829_v50, %v4828_v13  ;;  %vm4287_vm8 = vcmp.eq.s32.totalorder %v9659_v40, 1  ;;  %vm4288_vm3 = vcmp.eq.s32.totalorder %v9661_v9, 1 }
 0xd4d   :  { %v6435_v43 = vpop.permute.xlu1 %6434  ;;  %v6432_v53 = vunpack.i.h.bf16 %v6430_v32  ;;  %v6431_v14 = vunpack.i.l.bf16 %v6430_v32  ;;  %v4296_v54 = vsel %vm4287_vm8, %v9379_v4, 0.0  ;;  %v4297_v17 = vsel %vm4288_vm3, %v9429_v24, 0.0  ;;  %vm10554_vm8 = vmmov %vm10552_vm11 }
 0xd4e   :  { %v6437_v2 = vunpack.i.h.bf16 %v6435_v43  ;;  %v6436_v62 = vunpack.i.l.bf16 %v6435_v43  ;;  %5713 = vmatprep.mubr.msk.bf16.mxu0 %vm4948_vm9, %v4847_v45  ;;  %vm10555_vm3 = vmmov %vm10554_vm8 }
 0xd4f   :  { %v6445_v3 = vpop.permute.xlu0 %6444  ;;  %5008 = vmatmul.mubr.bf16.gmra.mrb[84].mxu0 %v4846_v25 }
 0xd50   :  { %v4811_v51 = vsel %vm4805_vm7, %v4295_v48, %v6437_v2  ;;  %v4810_v6 = vsel %vm4805_vm7, %v4294_v26, %v6436_v62  ;;  %v6447_v47 = vunpack.i.h.bf16 %v6445_v3  ;;  %v6446_v39 = vunpack.i.l.bf16 %v6445_v3 }
 0xd51   :  { %v6440_v27 = vpop.permute.xlu1 %6439  ;;  %v4820_v1 = vsel %vm4815_vm2, %v4810_v6, %v6431_v14  ;;  %v4821_v38 = vsel %vm4815_vm2, %v4811_v51, %v6432_v53 }
 0xd52   :  { %v6442_v46 = vunpack.i.h.bf16 %v6440_v27  ;;  %v6441_v56 = vunpack.i.l.bf16 %v6440_v27 }
 0xd53   :  { %v6455_v52 = vpop.permute.xlu0 %6454 }
 0xd54   :  { %v6457_v16 = vunpack.i.h.bf16 %v6455_v52  ;;  %v6456_v15 = vunpack.i.l.bf16 %v6455_v52  ;;  %v4840_v40 = vsel %vm10552_vm11, %v6442_v46, %v6447_v47  ;;  %v4839_v9 = vsel %vm10553_vm13, %v6441_v56, %v6446_v39  ;;  %vm10556_vm13 = vmmov %vm10555_vm3 }
 0xd55   :  { %v4830_v32 = vsel %vm4825_vm15, %v4820_v1, %v6441_v56  ;;  %v4831_v18 = vsel %vm4825_vm15, %v4821_v38, %v6442_v46  ;;  %v4849_v37 = vpack.c.bf16 %v4840_v40, %v4839_v9  ;;  %v6450_v13 = vpop.permute.xlu1 %6449  ;;  %vm4289_vm11 = vcmp.eq.s32.totalorder %v9663_v41, 1 }
 0xd56   :  { %v4813_v4 = vsel %vm4805_vm7, %v4297_v17, %v6457_v16  ;;  %v4812_v24 = vsel %vm4805_vm7, %v4296_v54, %v6456_v15  ;;  %v4848_v50 = vpack.c.bf16 %v4831_v18, %v4830_v32  ;;  %v6452_v45 = vunpack.i.h.bf16 %v6450_v13  ;;  %v9724_v18 = vpop.f32.mrb[64].mxu1 }
 0xd57   :  { %v6451_v43 = vunpack.i.l.bf16 %v6450_v13  ;;  %v6460_v25 = vpop.permute.xlu0 %6459  ;;  %5714 = vmatprep.mubr.msk.bf16.mxu0 %vm4948_vm9, %v4849_v37  ;;  %v4298_v17 = vsel %vm4289_vm11, %v9432_v21, 0.0  ;;  %v6551_v37 = vld [vmem:[%s9962_s14] sm:$0xff]   ;;  %v6553_v13 = vld [vmem:[%s9962_s14 + $0x10] sm:$0xff]  }
 0xd58   :  { %v6462_v2 = vunpack.i.h.bf16 %v6460_v25  ;;  %v6461_v62 = vunpack.i.l.bf16 %v6460_v25  ;;  %v4823_v3 = vsel %vm4815_vm2, %v4813_v4, %v6452_v45  ;;  %5016 = vmatmul.mubr.bf16.gmra.mrb[88].mxu0 %v4848_v50  ;;  %v6148_v4 = vpop.f32.mrb[65].mxu1  ;;  %5313 = vmatpush1.bf16.msra.mxu1 %v6551_v37  ;;  %v6554_v50 = vld [vmem:[%s9962_s14 + $0x18] sm:$0xff]   ;;  %v6555_v45 = vld [vmem:[%s9962_s14 + $0x20] sm:$0xff]   ;;  %v6557_v25 = vld [vmem:[%s9962_s14 + $0x30] sm:$0xff]  }
 0xd59   :  { %v4822_v26 = vsel %vm4815_vm2, %v4812_v24, %v6451_v43  ;;  %v6465_v48 = vpop.permute.xlu1 %6464  ;;  %v6552_v24 = vld [vmem:[%s9962_s14 + $0x8] sm:$0xff]   ;;  %5314 = vmatprep.subr.bf16.mxu1 %v10134_v57 }
 0xd5a   :  { %v4832_v51 = vsel %vm4825_vm15, %v4822_v26, %v6461_v62  ;;  %v4833_v6 = vsel %vm4825_vm15, %v4823_v3, %v6462_v2  ;;  %v6467_v47 = vunpack.i.h.bf16 %v6465_v48  ;;  %v6466_v39 = vunpack.i.l.bf16 %v6465_v48  ;;  %v6556_v43 = vld [vmem:[%s9962_s14 + $0x28] sm:$0xff]   ;;  %v9767_v26 = vld [vmem:[%s9963_s13] ss:$0 sm:$0xff] }
 0xd5b   :  { %v4850_v14 = vpack.c.bf16 %v4833_v6, %v4832_v51  ;;  %v6560_v3 = vld [vmem:[%s9962_s14 + $0x48] sm:$0xff]  }
 0xd5c   :  { %v4679_v53 = vpop.permute.xlu0 %4678  ;;  %v4842_v27 = vsel %vm10554_vm8, %v6462_v2, %v6467_v47  ;;  %v4841_v46 = vsel %vm10555_vm3, %v6461_v62, %v6466_v39  ;;  %5315 = vmatpush1.bf16.msra.mxu1 %v6552_v24  ;;  %v6558_v2 = vld [vmem:[%s9962_s14 + $0x38] sm:$0xff]   ;;  %v6559_v62 = vld [vmem:[%s9962_s14 + $0x40] sm:$0xff]   ;;  %v6561_v47 = vld [vmem:[%s9962_s14 + $0x50] sm:$0xff]   ;;  %vm10563_vm3 = vcmp.eq.s32.totalorder %v9236_v12, 1 }
 0xd5d   :  { %v4851_v56 = vpack.c.bf16 %v4842_v27, %v4841_v46  ;;  %v4723_v54 = vpop.permute.xlu1 %4722  ;;  %v4814_v52 = vsel %vm4805_vm7, %v4298_v17, %v4679_v53  ;;  %5316 = vmatprep.subr.bf16.mxu1 %v10134_v57  ;;  %v6562_v24 = vld [vmem:[%s9962_s14 + $0x58] sm:$0xff]  }
 0xd5e   :  { %v4824_v1 = vsel %vm4815_vm2, %v4814_v52, %v4723_v54  ;;  %vm10559_vm2 = vcmask 1046528  }
 0xd5f   :  { %5715 = vmatprep.mubr.msk.bf16.mxu0 %vm4948_vm9, %v4851_v56  ;;  %vm10564_vm11 = vmmov %vm10559_vm2 }
 0xd60   :  { %v4759_v16 = vpop.permute.xlu0 %4758  ;;  %5024 = vmatmul.mubr.bf16.gmra.mrb[92].mxu0 %v4850_v14  ;;  %5317 = vmatpush1.bf16.msra.mxu1 %v6553_v13 }
 0xd61   :  { %v4795_v15 = vpop.permute.xlu1 %4794  ;;  %v4834_v40 = vsel %vm4825_vm15, %v4824_v1, %v4759_v16  ;;  %5318 = vmatprep.subr.bf16.mxu1 %v10134_v57  ;;  %vm10560_vm15 = vcmask 1045504  }
 0xd62   :  { %v4843_v38 = vsel %vm10556_vm13, %v4759_v16, %v4795_v15  ;;  %v4852_v41 = vpack.c.bf16 %v4834_v40, %v4834_v40  ;;  %vm10565_vm13 = vmmov %vm10560_vm15 }
 0xd63   :  { %v4853_v9 = vpack.c.bf16 %v4843_v38, %v4843_v38 }
 0xd64   :  { %5319 = vmatpush1.bf16.msra.mxu1 %v6554_v50 }
 0xd65   :  { %5716 = vmatprep.mubr.msk.bf16.mxu0 %vm4948_vm9, %v4853_v9  ;;  %5320 = vmatprep.subr.bf16.mxu1 %v10134_v57 }
 0xd68   :  { %5032 = vmatmul.mubr.bf16.gmra.mrb[96].mxu0 %v4852_v41  ;;  %5321 = vmatpush1.bf16.msra.mxu1 %v6555_v45 }
 0xd69   :  { %6167 = vmatprep.mubr.msk.f32.mxu0 %vm10458_vm5, %v10126_v33  ;;  %5322 = vmatprep.subr.bf16.mxu1 %v10134_v57  ;;  %vm10557_vm5 = vcmask 1040384  }
 0xd6a   :  { %vm10558_vm7 = vmmov %vm10557_vm5 }
 0xd6b   :  { %vm10561_vm9 = vmmov %vm10557_vm5 }
 0xd6c   :  { %5323 = vmatpush1.bf16.msra.mxu1 %v6556_v43  ;;  %vm10562_vm8 = vmmov %vm10557_vm5 }
 0xd6d   :  { %5324 = vmatprep.subr.bf16.mxu1 %v10134_v57 }
 0xd70   :  { %5325 = vmatpush1.bf16.msra.mxu1 %v6557_v25 }
 0xd71   :  { %5326 = vmatprep.subr.bf16.mxu1 %v10134_v57 }
 0xd74   :  { %5327 = vmatpush1.bf16.msra.mxu1 %v6558_v2 }
 0xd75   :  { %5328 = vmatprep.subr.bf16.mxu1 %v10134_v57 }
 0xd78   :  { %5329 = vmatpush1.bf16.msra.mxu1 %v6559_v62 }
 0xd79   :  { %5330 = vmatprep.subr.bf16.mxu1 %v10134_v57 }
 0xd7c   :  { %5331 = vmatpush1.bf16.msra.mxu1 %v6560_v3 }
 0xd7d   :  { %5332 = vmatprep.subr.bf16.mxu1 %v10134_v57 }
 0xd80   :  { %5333 = vmatpush1.bf16.msra.mxu1 %v6561_v47 }
 0xd81   :  { %5334 = vmatprep.subr.bf16.mxu1 %v10134_v57 }
 0xd84   :  { %5335 = vmatpush1.bf16.msra.mxu1 %v6562_v24 }
 0xd98   :  { %v9722_v21 = vpop.f32.mrb[76].mxu0 }
 0xd99   :  { %v6125_v32 = vpop.f32.mrb[77].mxu0 }
 0xe1a   :  { %v5001_v48 = vpop.f32.mrb[80].mxu0 }
 0xe1b   :  { %v5002_v51 = vadd.f32 %v9767_v26, %v5001_v48  ;;  %v5003_v6 = vpop.f32.mrb[81].mxu0 }
 0xe1c   :  { %v5004_v39 = vpop.f32.mrb[82].mxu0 }
 0xe1d   :  { %v5039_v53 = vmax.f32 %v5002_v51, 0.0  ;;  %v5005_v14 = vadd.f32 %v9767_v26, %v5004_v39  ;;  %v5006_v27 = vpop.f32.mrb[83].mxu0 }
 0xe1f   :  { %v5057_v46 = vrot.slane %v5039_v53, 7  ;;  %v5040_v56 = vmax.f32 %v5005_v14, 0.0 }
 0xe21   :  { %v9778_v54 = vsel %vm10557_vm5, 0.0, %v5057_v46  ;;  %v5058_v17 = vrot.slane %v5040_v56, 7  ;;  %vm10566_vm5 = vcmp.eq.s32.totalorder %v9234_v61, 1 }
 0xe22   :  { %v5009_v52 = vpop.f32.mrb[84].mxu0  ;;  %v5096_v38 = vrot.slane %v9778_v54, 2  ;;  %v5131_v40 = vrot.slane %v9778_v54, 1 }
 0xe23   :  { %v9781_v16 = vsel %vm10558_vm7, %v5057_v46, %v5058_v17  ;;  %v5010_v15 = vadd.f32 %v9767_v26, %v5009_v52  ;;  %v5011_v1 = vpop.f32.mrb[85].mxu0  ;;  %vm10567_vm7 = vmmov %vm10559_vm2 }
 0xe24   :  { %v5097_v9 = vrot.slane %v9781_v16, 2  ;;  %v5132_v41 = vrot.slane %v9781_v16, 1  ;;  %v5012_v57 = vpop.f32.mrb[86].mxu0 }
 0xe25   :  { %v5041_v32 = vmax.f32 %v5010_v15, 0.0  ;;  %v5013_v37 = vadd.f32 %v9767_v26, %v5012_v57  ;;  %v5014_v4 = vpop.f32.mrb[87].mxu0 }
 0xe26   :  { %v5133_v13 = vsel %vm10559_vm2, %v5131_v40, %v5132_v41  ;;  %v5098_v50 = vsel %vm10560_vm15, %v5096_v38, %v5097_v9  ;;  %vm10568_vm2 = vmmov %vm10565_vm13  ;;  %vm10569_vm15 = vcmask 523264  }
 0xe27   :  { %v5060_v45 = vrot.slane %v5041_v32, 7  ;;  %v5042_v43 = vmax.f32 %v5013_v37, 0.0  ;;  %v5122_v39 = vsel %vm10563_vm3, %v5098_v50, 0.0  ;;  %vm10571_vm3 = vcmp.eq.s32.totalorder %v9246_v63, 1 }
 0xe29   :  { %v9795_v25 = vsel %vm10561_vm9, %v5058_v17, %v5060_v45  ;;  %v5062_v2 = vrot.slane %v5042_v43, 7  ;;  %vm10570_vm9 = vmmov %vm10562_vm8 }
 0xe2a   :  { %v5099_v62 = vrot.slane %v9795_v25, 2  ;;  %v5134_v3 = vrot.slane %v9795_v25, 1 }
 0xe2b   :  { %v5017_v48 = vpop.f32.mrb[88].mxu0  ;;  %v9800_v51 = vsel %vm10562_vm8, %v5060_v45, %v5062_v2 }
 0xe2c   :  { %v5018_v6 = vadd.f32 %v9767_v26, %v5017_v48  ;;  %v5019_v47 = vpop.f32.mrb[89].mxu0  ;;  %v5101_v53 = vrot.slane %v9800_v51, 2  ;;  %v5136_v14 = vrot.slane %v9800_v51, 1  ;;  %v5135_v46 = vsel %vm10564_vm11, %v5132_v41, %v5134_v3  ;;  %vm10572_vm11 = vmmov %vm10567_vm7 }
 0xe2d   :  { %v5020_v27 = vpop.f32.mrb[90].mxu0  ;;  %v5100_v56 = vsel %vm10565_vm13, %v5097_v9, %v5099_v62  ;;  %v6468_v1 = vpack.i.bf16 %v5135_v46, %v5133_v13  ;;  %vm10573_vm13 = vmmov %vm10568_vm2 }
 0xe2e   :  { %v5043_v17 = vmax.f32 %v5018_v6, 0.0  ;;  %v5021_v52 = vadd.f32 %v9767_v26, %v5020_v27  ;;  %v5022_v15 = vpop.f32.mrb[91].mxu0  ;;  %v5123_v38 = vsel %vm10566_vm5, %v5100_v56, 0.0  ;;  %v5137_v12 = vsel %vm10567_vm7, %v5134_v3, %v5136_v14 }
 0xe2f   :  { %v5185_v40 = vpack.c.bf16 %v5123_v38, %v5122_v39  ;;  %v5102_v57 = vsel %vm10568_vm2, %v5099_v62, %v5101_v53  ;;  %6469 = vrot.lane.b32.xlu0 %v6468_v1, %s6585_s7  ;;  %vm10574_vm5 = vcmp.eq.s32.totalorder %v9248_v29, 1 }
 0xe30   :  { %v5064_v32 = vrot.slane %v5043_v17, 7  ;;  %v5044_v37 = vmax.f32 %v5021_v52, 0.0  ;;  %v9827_v43 = vsel %vm10571_vm3, %v5102_v57, 0.0  ;;  %vm10578_vm3 = vmmov %vm10568_vm2 }
 0xe31   :  { %5730 = vmatprep.mubr.msk.bf16.mxu1 %vm10569_vm15, %v5185_v40  ;;  %vm10575_vm15 = vmmov %vm10562_vm8 }
 0xe32   :  { %v9817_v9 = vsel %vm10570_vm9, %v5062_v2, %v5064_v32  ;;  %v5066_v41 = vrot.slane %v5044_v37, 7  ;;  %vm10576_vm9 = vmmov %vm10562_vm8 }
 0xe33   :  { %v5103_v4 = vrot.slane %v9817_v9, 2  ;;  %v5138_v61 = vrot.slane %v9817_v9, 1  ;;  %v5025_v24 = vpop.f32.mrb[92].mxu0 }
 0xe34   :  { %v9822_v13 = vsel %vm10562_vm8, %v5064_v32, %v5066_v41  ;;  %v5026_v50 = vadd.f32 %v9767_v26, %v5025_v24  ;;  %v5027_v45 = vpop.f32.mrb[93].mxu0  ;;  %vm10577_vm8 = vmmov %vm10567_vm7 }
 0xe35   :  { %v5105_v62 = vrot.slane %v9822_v13, 2  ;;  %v5140_v2 = vrot.slane %v9822_v13, 1  ;;  %v5028_v3 = vpop.f32.mrb[94].mxu0  ;;  %v5139_v48 = vsel %vm10572_vm11, %v5136_v14, %v5138_v61  ;;  %v5104_v6 = vsel %vm10573_vm13, %v5101_v53, %v5103_v4  ;;  %vm10579_vm11 = vmmov %vm10567_vm7 }
 0xe36   :  { %v5045_v47 = vmax.f32 %v5026_v50, 0.0  ;;  %v5029_v39 = vadd.f32 %v9767_v26, %v5028_v3  ;;  %v5030_v27 = vpop.f32.mrb[95].mxu0  ;;  %v6473_v46 = vpack.i.bf16 %v5139_v48, %v5137_v12  ;;  %v5125_v56 = vsel %vm10574_vm5, %v5104_v6, 0.0  ;;  %vm10580_vm13 = vmmov %vm10568_vm2 }
 0xe37   :  { %v5141_v63 = vsel %vm10567_vm7, %v5138_v61, %v5140_v2  ;;  %v5187_v17 = vpack.c.bf16 %v5125_v56, %v9827_v43  ;;  %v5106_v52 = vsel %vm10568_vm2, %v5103_v4, %v5105_v62  ;;  %vm10581_vm5 = vmmov %vm10576_vm9 }
 0xe38   :  { %v5068_v15 = vrot.slane %v5045_v47, 7  ;;  %v5046_v1 = vmax.f32 %v5029_v39, 0.0  ;;  %6474 = vrot.lane.b32.xlu1 %v6473_v46, %s6585_s7  ;;  %v5126_v3 = vsel %vm4492_vm6, %v5106_v52, 0.0  ;;  %vm10582_vm6 = vmmov %vm10567_vm7 }
 0xe3a   :  { %v9841_v53 = vsel %vm10575_vm15, %v5066_v41, %v5068_v15  ;;  %v5070_v14 = vrot.slane %v5046_v1, 7  ;;  %vm10586_vm15 = vcmask 523264  }
 0xe3b   :  { %v5107_v38 = vrot.slane %v9841_v53, 2  ;;  %v5142_v40 = vrot.slane %v9841_v53, 1  ;;  %v5033_v29 = vpop.f32.mrb[96].mxu0  ;;  %v5091_v44 = vsel %vm4377_vm12, %v9841_v53, 0.0 }
 0xe3c   :  { %v9846_v12 = vsel %vm10576_vm9, %v5068_v15, %v5070_v14  ;;  %v5034_v57 = vadd.f32 %v9767_v26, %v5033_v29  ;;  %v5035_v32 = vpop.f32.mrb[97].mxu0  ;;  %vm10587_vm9 = vmmov %vm10586_vm15 }
 0xe3d   :  { %v5109_v37 = vrot.slane %v9846_v12, 2  ;;  %v5144_v4 = vrot.slane %v9846_v12, 1  ;;  %v5036_v61 = vpop.f32.mrb[98].mxu0  ;;  %v5143_v41 = vsel %vm10577_vm8, %v5140_v2, %v5142_v40  ;;  %v5108_v24 = vsel %vm10578_vm3, %v5105_v62, %v5107_v38  ;;  %vm10588_vm8 = vmmov %vm10587_vm9 }
 0xe3e   :  { %v5047_v50 = vmax.f32 %v5034_v57, 0.0  ;;  %v5037_v45 = vpop.f32.mrb[99].mxu0  ;;  %v6478_v43 = vpack.i.bf16 %v5143_v41, %v5141_v63  ;;  %v5127_v48 = vsel %vm4493_vm10, %v5108_v24, 0.0  ;;  %vm3130_vm10 = vcmask 253952  }
 0xe3f   :  { %v5145_v26 = vsel %vm10579_vm11, %v5142_v40, %v5144_v4  ;;  %v5189_v6 = vpack.c.bf16 %v5127_v48, %v5126_v3  ;;  %v5110_v47 = vsel %vm10580_vm13, %v5107_v38, %v5109_v37  ;;  %v3861_v1 = vsel %vm3130_vm10, %v9722_v21, 0.0  ;;  %vm10591_vm13 = vmmov %vm10588_vm8 }
 0xe40   :  { %v5072_v39 = vrot.slane %v5047_v50, 7  ;;  %6479 = vrot.lane.b32.xlu0 %v6478_v43, %s6585_s7  ;;  %v5128_v63 = vsel %vm4494_vm14, %v5110_v47, 0.0  ;;  %v9875_v40 = vmul.f32 0.012820513, %v9724_v18  ;;  %vm10585_vm14 = vcmp.eq.s32.totalorder %v9232_v7, 1 }
 0xe41   :  { %v5086_v21 = vsel %vm10585_vm14, %v9781_v16, 0.0  ;;  %vm10589_vm3 = vcmp.eq.s32.totalorder %v9244_v42, 1  ;;  %vm10590_vm11 = vcmp.eq.s32.totalorder %v9242_v59, 1  ;;  %v5089_v42 = vsel %vm4375_vm1, %v9817_v9, 0.0 }
 0xe42   :  { %v5073_v2 = vsel %vm10581_vm5, %v5070_v14, %v5072_v39  ;;  %v10583_v14 = vld [vmem:[#allocation23_spill] sm:$0xff]  ;;  %v5088_v7 = vsel %vm10590_vm11, %v9800_v51, 0.0  ;;  %vm10592_vm5 = vmmov %vm10588_vm8  ;;  %v5090_v59 = vsel %vm4376_vm0, %v9822_v13, 0.0  ;;  %vm10597_vm1 = vcmp.eq.s32.totalorder %v9289_v19, 1 }
 0xe43   :  { %v5084_v62 = vsel %vm10567_vm7, %v5073_v2, 0.0  ;;  %v3131_v38 = vsel %vm3130_vm10, %v10583_v14, 0.0  ;;  %vm10593_vm7 = vmmov %vm10592_vm5  ;;  %v5092_v35 = vsel %vm10597_vm1, %v9846_v12, 0.0  ;;  %vm10598_vm0 = vcmp.eq.s32.totalorder %v9626_v23, 1  ;;  %v5717_v23 = vld [vmem:[%s9964_s15] ss:$0 sm:$0xff] }
 0xe44   :  { %v5111_v27 = vrot.slane %v5084_v62, 2  ;;  %v5146_v46 = vrot.slane %v5084_v62, 1  ;;  %vm10606_vm11 = vcmask 1045504  }
 0xe46   :  { %5164 = vrot.lane.b32.xlu0 %v5146_v46, %s6585_s7  ;;  %v5147_v31 = vsel %vm10582_vm6, %v5144_v4, %v5146_v46  ;;  %v5112_v36 = vsel %vm10568_vm2, %v5109_v37, %v5111_v27  ;;  %vm10594_vm6 = vmmov %vm10592_vm5  ;;  %v5130_v9 = vsel %vm10598_vm0, %v5111_v27, 0.0 }
 0xe47   :  { %v6483_v56 = vpack.i.bf16 %v5147_v31, %v5145_v26  ;;  %v5129_v52 = vsel %vm4495_vm4, %v5112_v36, 0.0  ;;  %vm10584_vm4 = vcmp.eq.s32.totalorder %v9230_v5, 1  ;;  %v5087_v5 = vsel %vm10589_vm3, %v9795_v25, 0.0  ;;  %vm10595_vm2 = vmmov %vm10592_vm5 }
 0xe48   :  { %v5191_v15 = vpack.c.bf16 %v5129_v52, %v5128_v63  ;;  %v5085_v57 = vsel %vm10584_vm4, %v9778_v54, 0.0  ;;  %vm10596_vm4 = vmmov %vm10595_vm2  ;;  %v5193_v39 = vpack.c.bf16 %v5130_v9, %v5130_v9  ;;  %vm5402_vm3 = vcmask 572416  }
 0xe49   :  { %6484 = vrot.lane.b32.xlu1 %v6483_v56, %s6585_s7  ;;  %vm10599_vm14 = vmmov %vm10595_vm2 }
 0xe4a   :  { %vm10603_vm12 = vmmov %vm10595_vm2 }
 0xe65   :  { %3862 = vadd.xlane.f32.xlu0 %v3861_v1 }
 0xe6d   :  { %3132 = vadd.xlane.f32.xlu1 %v3131_v38 }
 0xe7e   :  { %5491 = vperm.xlu1 %6242, %v9875_v40  }
 0xea1   :  { %v6470_v30 = vpop.permute.xlu0 %6469 }
 0xea2   :  { %v6472_v8 = vunpack.i.h.bf16 %v6470_v30  ;;  %v6471_v29 = vunpack.i.l.bf16 %v6470_v30 }
 0xea4   :  { %v5176_v32 = vsel %vm10586_vm15, %v5086_v21, %v6472_v8  ;;  %v5175_v37 = vsel %vm10587_vm9, %v5085_v57, %v6471_v29  ;;  %vm10600_vm15 = vmmov %vm10595_vm2 }
 0xea5   :  { %v5184_v4 = vpack.c.bf16 %v5176_v32, %v5175_v37  ;;  %vm10601_vm9 = vmmov %vm10595_vm2 }
 0xea7   :  { %5345 = vmatmul.mubr.bf16.vlgmr.msra.gmra.mrb[68].mxu1 %v5184_v4 }
 0xea8   :  { %5731 = vmatprep.mubr.msk.bf16.mxu1 %vm10588_vm8, %v5187_v17  ;;  %vm10602_vm8 = vcmp.eq.s32.totalorder %v9590_v22, 1 }
 0xea9   :  { %v5093_v0 = vsel %vm10602_vm8, %v5084_v62, 0.0 }
 0xeaa   :  { %v6475_v18 = vpop.permute.xlu1 %6474 }
 0xeab   :  { %v6477_v61 = vunpack.i.h.bf16 %v6475_v18  ;;  %v6476_v41 = vunpack.i.l.bf16 %v6475_v18 }
 0xead   :  { %v5177_v54 = vsel %vm10591_vm13, %v5087_v5, %v6476_v41  ;;  %v5178_v16 = vsel %vm10592_vm5, %v5088_v7, %v6477_v61 }
 0xeae   :  { %v5186_v24 = vpack.c.bf16 %v5178_v16, %v5177_v54 }
 0xeb0   :  { %5353 = vmatmul.mubr.bf16.gmra.mrb[72].mxu1 %v5186_v24 }
 0xeb1   :  { %5732 = vmatprep.mubr.msk.bf16.mxu1 %vm10593_vm7, %v5189_v6 }
 0xeb2   :  { %v6480_v17 = vpop.permute.xlu0 %6479 }
 0xeb3   :  { %v6482_v50 = vunpack.i.h.bf16 %v6480_v17  ;;  %v6481_v45 = vunpack.i.l.bf16 %v6480_v17 }
 0xeb5   :  { %v5179_v25 = vsel %vm10594_vm6, %v5089_v42, %v6481_v45  ;;  %v5180_v51 = vsel %vm10595_vm2, %v5090_v59, %v6482_v50 }
 0xeb6   :  { %v5188_v43 = vpack.c.bf16 %v5180_v51, %v5179_v25 }
 0xeb8   :  { %5361 = vmatmul.mubr.bf16.gmra.mrb[76].mxu1 %v5188_v43  ;;  %v5165_v2 = vpop.permute.xlu0 %5164 }
 0xeb9   :  { %5733 = vmatprep.mubr.msk.bf16.mxu1 %vm10596_vm4, %v5191_v15  ;;  %v5183_v53 = vsel %vm10603_vm12, %v5093_v0, %v5165_v2 }
 0xeba   :  { %v5192_v19 = vpack.c.bf16 %v5183_v53, %v5183_v53 }
 0xebb   :  { %v6485_v3 = vpop.permute.xlu1 %6484 }
 0xebc   :  { %v6487_v48 = vunpack.i.h.bf16 %v6485_v3  ;;  %v6486_v26 = vunpack.i.l.bf16 %v6485_v3 }
 0xebe   :  { %v5181_v13 = vsel %vm10599_vm14, %v5091_v44, %v6486_v26  ;;  %v5182_v6 = vsel %vm10600_vm15, %v5092_v35, %v6487_v48  ;;  %v10604_v35 = vld [vmem:[#allocation5_spill] sm:$0xff] }
 0xebf   :  { %v5190_v47 = vpack.c.bf16 %v5182_v6, %v5181_v13  ;;  %v10605_v9 = vrot.slane %v10604_v35, 2 }
 0xec1   :  { %5369 = vmatmul.mubr.bf16.gmra.mrb[80].mxu1 %v5190_v47 }
 0xec2   :  { %5734 = vmatprep.mubr.msk.bf16.mxu1 %vm10601_vm9, %v5193_v39 }
 0xec9   :  { %5377 = vmatmul.mubr.bf16.gmra.mrb[84].mxu1 %v5192_v19 }
 0xef2   :  { %v3863_v0 = vpop.xlane.xlu0 %3862 }
 0xef3   :  { %v3864_v19 = vmul.f32 0.000390625, %v3863_v0 }
 0xefa   :  { %v3133_v2 = vpop.xlane.xlu1 %3132 }
 0xefb   :  { %v3135_v53 = vmul.f32 0.000390625, %v3133_v2 }
 0xf7a   :  { %v5346_v12 = vpop.f32.mrb[68].mxu1 }
 0xf7b   :  { %v5347_v27 = vadd.f32 %v5717_v23, %v5346_v12  ;;  %v5348_v46 = vpop.f32.mrb[69].mxu1 }
 0xf7c   :  { %v5349_v31 = vpop.f32.mrb[70].mxu1 }
 0xf7d   :  { %v5384_v36 = vsub.f32 %v5347_v27, %v9287_v28  ;;  %v5350_v56 = vadd.f32 %v5717_v23, %v5349_v31  ;;  %v5351_v63 = vpop.f32.mrb[71].mxu1 }
 0xf7e   :  { %v5492_v63 = vpop.permute.xlu1 %5491 }
 0xf7f   :  { %v5385_v52 = vsub.f32 %v5350_v56, %v9598_v58  ;;  %v5393_v22 = vmul.f32 %v5384_v36, %v5384_v36  ;;  %v10608_v56 = vld [vmem:[#allocation21_spill] sm:$0xff] }
 0xf80   :  { %vm5488_vm13 = vcmp.eq.s32.totalorder %v10608_v56, 2  ;;  %vm10609_vm5 = vcmp.eq.s32.totalorder %v10608_v56, 1  ;;  %vm10610_vm7 = vcmp.eq.s32.totalorder %v10608_v56, 0 }
 0xf81   :  { %v5394_v62 = vmul.f32 %v5385_v52, %v5385_v52 }
 0xf83   :  { %v5354_v15 = vpop.f32.mrb[72].mxu1  ;;  %v6216_v1 = vpack.c.bf16 %v5394_v62, %v5393_v22 }
 0xf84   :  { %v5355_v14 = vadd.f32 %v5717_v23, %v5354_v15  ;;  %v5356_v38 = vpop.f32.mrb[73].mxu1 }
 0xf85   :  { %v5357_v30 = vpop.f32.mrb[74].mxu1  ;;  %6217 = vmatpush3.bf16.msra.mxu0 %v6216_v1 }
 0xf86   :  { %v5386_v8 = vsub.f32 %v5355_v14, %v9601_v55  ;;  %v5358_v29 = vadd.f32 %v5717_v23, %v5357_v30  ;;  %v5359_v57 = vpop.f32.mrb[75].mxu1  ;;  %6218 = vmatprep.subr.bf16.mxu0 %v10431_v20 }
 0xf88   :  { %v5387_v28 = vsub.f32 %v5358_v29, %v9604_v49  ;;  %v5395_v21 = vmul.f32 %v5386_v8, %v5386_v8 }
 0xf8a   :  { %v5396_v32 = vmul.f32 %v5387_v28, %v5387_v28 }
 0xf8b   :  { %v5362_v37 = vpop.f32.mrb[76].mxu1 }
 0xf8c   :  { %v6219_v58 = vpack.c.bf16 %v5396_v32, %v5395_v21  ;;  %v5363_v4 = vadd.f32 %v5717_v23, %v5362_v37  ;;  %v5364_v18 = vpop.f32.mrb[77].mxu1 }
 0xf8d   :  { %v5365_v61 = vpop.f32.mrb[78].mxu1 }
 0xf8e   :  { %v5388_v41 = vsub.f32 %v5363_v4, %v9611_v60  ;;  %v5366_v5 = vadd.f32 %v5717_v23, %v5365_v61  ;;  %v5367_v7 = vpop.f32.mrb[79].mxu1  ;;  %6220 = vmatpush3.bf16.msra.mxu0 %v6219_v58 }
 0xf8f   :  { %6221 = vmatprep.subr.bf16.mxu0 %v10431_v20 }
 0xf90   :  { %v5389_v55 = vsub.f32 %v5366_v5, %v9614_v34  ;;  %v5397_v54 = vmul.f32 %v5388_v41, %v5388_v41 }
 0xf92   :  { %v5398_v16 = vmul.f32 %v5389_v55, %v5389_v55 }
 0xf94   :  { %v6222_v24 = vpack.c.bf16 %v5398_v16, %v5397_v54  ;;  %v5370_v49 = vpop.f32.mrb[80].mxu1 }
 0xf95   :  { %v5371_v17 = vadd.f32 %v5717_v23, %v5370_v49  ;;  %v5372_v50 = vpop.f32.mrb[81].mxu1 }
 0xf96   :  { %v5373_v45 = vpop.f32.mrb[82].mxu1  ;;  %6223 = vmatpush3.bf16.msra.mxu0 %v6222_v24 }
 0xf97   :  { %v5390_v42 = vsub.f32 %v5371_v17, %v9617_v10  ;;  %v5374_v59 = vadd.f32 %v5717_v23, %v5373_v45  ;;  %v5375_v25 = vpop.f32.mrb[83].mxu1  ;;  %6224 = vmatprep.subr.bf16.mxu0 %v10431_v20  ;;  %v10607_v20 = vmov 1.0  }
 0xf99   :  { %v5391_v60 = vsub.f32 %v5374_v59, %v9622_v11  ;;  %v5399_v51 = vmul.f32 %v5390_v42, %v5390_v42 }
 0xf9b   :  { %v5400_v43 = vmul.f32 %v5391_v60, %v5391_v60 }
 0xf9c   :  { %v5378_v3 = vpop.f32.mrb[84].mxu1 }
 0xf9d   :  { %v6225_v34 = vpack.c.bf16 %v5400_v43, %v5399_v51  ;;  %v5379_v48 = vadd.f32 %v5717_v23, %v5378_v3  ;;  %v5380_v26 = vpop.f32.mrb[85].mxu1  ;;  %v3865_v23 = vadd.f32 %v3864_v19, %v3135_v53 }
 0xf9e   :  { %v5381_v44 = vpop.f32.mrb[86].mxu1 }
 0xf9f   :  { %v5392_v13 = vsub.f32 %v5379_v48, %v10605_v9  ;;  %v5382_v6 = vpop.f32.mrb[87].mxu1  ;;  %6226 = vmatpush3.bf16.msra.mxu0 %v6225_v34  ;;  %v3877_v27 = vmul.f32 0.5, %v3865_v23 }
 0xfa0   :  { %6165 = vmatprep.subr.mxu0 %v10126_v33  ;;  %v5484_v33 = vmul.f32 0.1, %v9875_v40 }
 0xfa1   :  { %v5401_v10 = vmul.f32 %v5392_v13, %v5392_v13  ;;  %v5494_v52 = vsel %vm5488_vm13, %v3877_v27, %v5492_v63 }
 0xfa3   :  { %6166 = vmatpush3.msk.msra.mxu0 %vm10606_vm11, %v5401_v10 }
 0xfa4   :  { %6168 = vmatmul.mubr.msk.f32.vlgmr.msra.gmra.mrb[78].mxu0 %vm5402_vm3, %v10607_v20 }
0x1077   :  { %v5474_v11 = vpop.f32.mrb[78].mxu0 }
0x1078   :  { %v5478_v47 = vsel %vm3130_vm10, %v5474_v11, 0.0  ;;  %v6169_v39 = vpop.f32.mrb[79].mxu0  ;;  %vm5502_vm10 = vcmask 24576  }
0x1079   :  { %5479 = vadd.xlane.f32.xlu0 %v5478_v47 }
0x1106   :  { %v5480_v12 = vpop.xlane.xlu0 %5479 }
0x1107   :  { %v5482_v46 = vmul.f32 0.00044642857, %v5480_v12 }
0x1109   :  { %v5483_v31 = vadd.f32 %v5482_v46, %v3877_v27  ;;  %v5495_v22 = vsel %vm10609_vm5, %v5482_v46, %v5494_v52 }
0x110b   :  { %v5485_v36 = vadd.f32 %v5484_v33, %v5483_v31 }
0x110d   :  { %5498 = vperm.xlu0 %6241, %v5485_v36  }
0x118c   :  { %v5499_v62 = vpop.permute.xlu0 %5498 }
0x118d   :  { %v5501_v15 = vsel %vm10610_vm7, %v5499_v62, %v5495_v22 }
0x118e   :  { %5503 = vst.msk [vmem:[%s9965_s17] sm:$0x1] %vm5502_vm10, %v5501_v15 }

</bundles_post_ra>
